<compile_context>
chip_gen: v7x
topology: tpu7x:2x2x1
jax: 0.10.0
libtpu: 0.0.40
codegen_flags: <defaults>
</compile_context>

<pallas_src>
import math
import jax
import jax.numpy as jnp
from jax.experimental import pallas as pl
from jax.experimental.pallas import tpu as pltpu

# -------------------- config (__C) --------------------
HIDDEN = 32          # __C.HIDDEN_SIZE
HEADS = 4            # __C.MULTI_HEAD
DH = HIDDEN // HEADS # __C.HIDDEN_SIZE_HEAD
FF = 64              # __C.FF_SIZE
LAYERS = 2           # __C.LAYER
EPS = 1e-6           # LayerNorm eps
DTYPE = jnp.float32

NEG_MASK = -10000.0   # PyTorch masked_fill value (applied additively)
NEG_CROSS = -1e9      # cross-batch separation (exp underflows to exactly 0)


# -------------------- in-kernel building blocks --------------------
def _layer_norm(r, ln_ref, l):
    """MCAN LayerNorm: g*(x-mean)/(std_unbiased+eps)+b, rows of shape (R, H)."""
    g = ln_ref[l, 0]                    # (1, H)
    b = ln_ref[l, 1]                    # (1, H)
    mean = jnp.mean(r, axis=-1, keepdims=True)
    diff = r - mean
    var = jnp.sum(diff * diff, axis=-1, keepdims=True) * (1.0 / (HIDDEN - 1))
    std = jnp.sqrt(var)
    return g * (diff * pl.reciprocal(std + EPS, approx=True)) + b


def _mhatt(q_rows, kv_rows, bias, wqkv_ref, bqkv_ref, wm_ref, bm_ref, l):
    """Multi-head attention over batch-folded rows.

    q_rows : (Rq, H) queries (all batches stacked)
    kv_rows: (Rk, H) keys/values (all batches stacked)
    bias   : (Rq, Rk) additive score bias (0 / -1e4 padded key / -1e9 cross-batch)
    wqkv   : (LAYERS, 3, HEADS, H, DH), bqkv: (LAYERS, 3, HEADS, 1, DH)
    wm     : (LAYERS, HEADS, DH, H),    bm  : (LAYERS, 1, H)
    """
    scale = 1.0 / math.sqrt(DH)
    merged = None
    for h in range(HEADS):
        qh = jnp.dot(q_rows, wqkv_ref[l, 0, h],
                     preferred_element_type=jnp.float32) + bqkv_ref[l, 0, h]
        kh = jnp.dot(kv_rows, wqkv_ref[l, 1, h],
                     preferred_element_type=jnp.float32) + bqkv_ref[l, 1, h]
        vh = jnp.dot(kv_rows, wqkv_ref[l, 2, h],
                     preferred_element_type=jnp.float32) + bqkv_ref[l, 2, h]
        # scores = qh @ kh^T / sqrt(d_k) + additive mask bias
        s = jax.lax.dot_general(qh, kh, (((1,), (1,)), ((), ())),
                                preferred_element_type=jnp.float32) * scale + bias
        s = s - jnp.max(s, axis=-1, keepdims=True)        # stable softmax
        p = jnp.exp(s)
        p = p * pl.reciprocal(jnp.sum(p, axis=-1, keepdims=True), approx=True)
        ctx = jnp.dot(p, vh, preferred_element_type=jnp.float32)          # (Rq, DH)
        part = jnp.dot(ctx, wm_ref[l, h], preferred_element_type=jnp.float32)  # (Rq, H)
        merged = part if merged is None else merged + part
    return merged + bm_ref[l]


def _ffn(rows, w1_ref, b1_ref, w2_ref, b2_ref, l):
    h1 = jnp.dot(rows, w1_ref[l], preferred_element_type=jnp.float32) + b1_ref[l]
    h1 = jnp.maximum(h1, 0.0)                                 # use_relu=True
    return jnp.dot(h1, w2_ref[l], preferred_element_type=jnp.float32) + b2_ref[l]


# -------------------- the fused MCA_ED kernel --------------------
def _mca_ed_kernel(x_ref, y_ref, bxx_ref, byy_ref, byx_ref,
                   e_wqkv, e_bqkv, e_wm, e_bm, e_ln1, e_w1, e_b1, e_w2, e_b2, e_ln2,
                   d_wqkv1, d_bqkv1, d_wm1, d_bm1, d_ln1,
                   d_wqkv2, d_bqkv2, d_wm2, d_bm2, d_ln2,
                   d_w1, d_b1, d_w2, d_b2, d_ln3,
                   xo_ref, yo_ref):
    x = x_ref[...]          # (B*Lx, H)
    y = y_ref[...]          # (B*Ly, H)
    bxx = bxx_ref[...]      # (B*Lx, B*Lx) additive bias for x self-attn
    byy = byy_ref[...]      # (B*Ly, B*Ly) additive bias for y self-attn
    byx = byx_ref[...]      # (B*Ly, B*Lx) additive bias for y->x cross-attn

    # ----- encoder: SA layers -----
    for l in range(LAYERS):
        x = _layer_norm(x + _mhatt(x, x, bxx, e_wqkv, e_bqkv, e_wm, e_bm, l), e_ln1, l)
        x = _layer_norm(x + _ffn(x, e_w1, e_b1, e_w2, e_b2, l), e_ln2, l)

    # ----- decoder: SGA layers (self-attn on y, cross-attn to encoder x) -----
    for l in range(LAYERS):
        y = _layer_norm(y + _mhatt(y, y, byy, d_wqkv1, d_bqkv1, d_wm1, d_bm1, l), d_ln1, l)
        y = _layer_norm(y + _mhatt(y, x, byx, d_wqkv2, d_bqkv2, d_wm2, d_bm2, l), d_ln2, l)
        y = _layer_norm(y + _ffn(y, d_w1, d_b1, d_w2, d_b2, l), d_ln3, l)

    xo_ref[...] = x
    yo_ref[...] = y


# -------------------- wrapper --------------------
def _build_bias(B, Lq, Lk, k_pad):
    """(B*Lq, B*Lk) additive score bias from key padding mask k_pad (B, Lk) bool."""
    qb = jnp.repeat(jnp.arange(B), Lq)
    kb = jnp.repeat(jnp.arange(B), Lk)
    cross = qb[:, None] != kb[None, :]
    pad = jnp.broadcast_to(k_pad.reshape(1, B * Lk), (B * Lq, B * Lk))
    return jnp.where(cross, NEG_CROSS, jnp.where(pad, NEG_MASK, 0.0)).astype(DTYPE)


def mca_ed_forward(x, y, x_mask, y_mask, flat_params):
    """x: (B,Lx,H), y: (B,Ly,H), masks: (B,1,1,L*) bool with True == padded."""
    B, Lx, H = x.shape
    Ly = y.shape[1]
    x2d = x.reshape(B * Lx, H)
    y2d = y.reshape(B * Ly, H)
    x_pad = x_mask.reshape(B, Lx)
    y_pad = y_mask.reshape(B, Ly)
    bxx = _build_bias(B, Lx, Lx, x_pad)
    byy = _build_bias(B, Ly, Ly, y_pad)
    byx = _build_bias(B, Ly, Lx, x_pad)

    x_out, y_out = pl.pallas_call(
        _mca_ed_kernel,
        out_shape=(jax.ShapeDtypeStruct((B * Lx, H), DTYPE),
                   jax.ShapeDtypeStruct((B * Ly, H), DTYPE)),
    )(x2d, y2d, bxx, byy, byx, *flat_params)
    return x_out.reshape(B, Lx, H), y_out.reshape(B, Ly, H)


# -------------------- parameter init (deterministic, synthetic) --------------------
def init_linear(key, fan_in, fan_out):
    k1, k2 = jax.random.split(key)
    bound = 1.0 / math.sqrt(fan_in)
    w = jax.random.uniform(k1, (fan_in, fan_out), DTYPE, -bound, bound)
    b = jax.random.uniform(k2, (1, fan_out), DTYPE, -bound, bound)
    return w, b


def init_mhatt(key):
    ks = jax.random.split(key, 4)
    wq, bq = init_linear(ks[0], HIDDEN, HIDDEN)
    wk, bk = init_linear(ks[1], HIDDEN, HIDDEN)
    wv, bv = init_linear(ks[2], HIDDEN, HIDDEN)
    wm, bm = init_linear(ks[3], HIDDEN, HIDDEN)
    return dict(wq=wq, bq=bq, wk=wk, bk=bk, wv=wv, bv=bv, wm=wm, bm=bm)


def init_ffn(key):
    k1, k2 = jax.random.split(key)
    w1, b1 = init_linear(k1, HIDDEN, FF)
    w2, b2 = init_linear(k2, FF, HIDDEN)
    return dict(w1=w1, b1=b1, w2=w2, b2=b2)


def init_ln():
    return dict(g=jnp.ones((1, HIDDEN), DTYPE), b=jnp.zeros((1, HIDDEN), DTYPE))


def init_sa(key):
    k1, k2 = jax.random.split(key)
    return dict(att=init_mhatt(k1), ffn=init_ffn(k2), ln1=init_ln(), ln2=init_ln())


def init_sga(key):
    k1, k2, k3 = jax.random.split(key, 3)
    return dict(att1=init_mhatt(k1), att2=init_mhatt(k2), ffn=init_ffn(k3),
                ln1=init_ln(), ln2=init_ln(), ln3=init_ln())


def init_mca_ed(key):
    keys = jax.random.split(key, 2 * LAYERS)
    enc = [init_sa(keys[i]) for i in range(LAYERS)]
    dec = [init_sga(keys[LAYERS + i]) for i in range(LAYERS)]
    return dict(enc=enc, dec=dec)


# -------------------- parameter packing (per-head splits, layer stacking) --------------------
def _split_heads_w(w):   # (H, H) -> (HEADS, H, DH);  w[:, h*DH:(h+1)*DH] == out[h]
    return w.reshape(HIDDEN, HEADS, DH).transpose(1, 0, 2)


def _split_heads_b(b):   # (1, H) -> (HEADS, 1, DH)
    return b.reshape(1, HEADS, DH).transpose(1, 0, 2)


def _pack_att(layers):
    wqkv = jnp.stack([jnp.stack([_split_heads_w(a['wq']), _split_heads_w(a['wk']),
                                 _split_heads_w(a['wv'])]) for a in layers])   # (L,3,HEADS,H,DH)
    bqkv = jnp.stack([jnp.stack([_split_heads_b(a['bq']), _split_heads_b(a['bk']),
                                 _split_heads_b(a['bv'])]) for a in layers])   # (L,3,HEADS,1,DH)
    wm = jnp.stack([a['wm'].reshape(HEADS, DH, HIDDEN) for a in layers])       # (L,HEADS,DH,H)
    bm = jnp.stack([a['bm'] for a in layers])                                  # (L,1,H)
    return wqkv, bqkv, wm, bm


def _pack_ln(layers):
    return jnp.stack([jnp.stack([p['g'], p['b']]) for p in layers])            # (L,2,1,H)


def _pack_ffn(layers):
    w1 = jnp.stack([p['w1'] for p in layers])
    b1 = jnp.stack([p['b1'] for p in layers])
    w2 = jnp.stack([p['w2'] for p in layers])
    b2 = jnp.stack([p['b2'] for p in layers])
    return w1, b1, w2, b2


def pack_params(params):
    enc, dec = params['enc'], params['dec']
    e_att = _pack_att([p['att'] for p in enc])
    e_ln1 = _pack_ln([p['ln1'] for p in enc])
    e_ffn = _pack_ffn([p['ffn'] for p in enc])
    e_ln2 = _pack_ln([p['ln2'] for p in enc])
    d_att1 = _pack_att([p['att1'] for p in dec])
    d_ln1 = _pack_ln([p['ln1'] for p in dec])
    d_att2 = _pack_att([p['att2'] for p in dec])
    d_ln2 = _pack_ln([p['ln2'] for p in dec])
    d_ffn = _pack_ffn([p['ffn'] for p in dec])
    d_ln3 = _pack_ln([p['ln3'] for p in dec])
    return (*e_att, e_ln1, *e_ffn, e_ln2,
            *d_att1, d_ln1, *d_att2, d_ln2, *d_ffn, d_ln3)


# -------------------- main --------------------
if __name__ == "__main__":
    key = jax.random.PRNGKey(0)
    kx, ky, kp = jax.random.split(key, 3)

    B, Lx, Ly = 2, 16, 8
    x = jax.random.normal(kx, (B, Lx, HIDDEN), DTYPE)
    y = jax.random.normal(ky, (B, Ly, HIDDEN), DTYPE)

    # PyTorch-style padding masks: (B, 1, 1, L), True == padded position.
    x_pad = jnp.arange(Lx)[None, :] >= jnp.array([Lx - 3, Lx - 1])[:, None]  # (B, Lx)
    y_pad = jnp.arange(Ly)[None, :] >= jnp.array([Ly - 2, Ly])[:, None]      # (B, Ly)
    x_mask = x_pad.reshape(B, 1, 1, Lx)
    y_mask = y_pad.reshape(B, 1, 1, Ly)

    params = init_mca_ed(kp)
    flat_params = pack_params(params)

    x_out, y_out = jax.jit(mca_ed_forward)(x, y, x_mask, y_mask, flat_params)
    jax.block_until_ready((x_out, y_out))

    assert x_out.shape == (B, Lx, HIDDEN) and y_out.shape == (B, Ly, HIDDEN)
    assert bool(jnp.all(jnp.isfinite(x_out))) and bool(jnp.all(jnp.isfinite(y_out)))
    print("KERNEL_OK")
</pallas_src>

<mosaic_0001>
module attributes {stable_mosaic.version = 11 : i64} {
  func.func @_mca_ed_kernel(%arg0: memref<32x32xf32, #tpu.memory_space<vmem>>, %arg1: memref<16x32xf32, #tpu.memory_space<vmem>>, %arg2: memref<32x32xf32, #tpu.memory_space<vmem>>, %arg3: memref<16x16xf32, #tpu.memory_space<vmem>>, %arg4: memref<16x32xf32, #tpu.memory_space<vmem>>, %arg5: memref<2x3x4x32x8xf32, #tpu.memory_space<vmem>>, %arg6: memref<2x3x4x1x8xf32, #tpu.memory_space<vmem>>, %arg7: memref<2x4x8x32xf32, #tpu.memory_space<vmem>>, %arg8: memref<2x1x32xf32, #tpu.memory_space<vmem>>, %arg9: memref<2x2x1x32xf32, #tpu.memory_space<vmem>>, %arg10: memref<2x32x64xf32, #tpu.memory_space<vmem>>, %arg11: memref<2x1x64xf32, #tpu.memory_space<vmem>>, %arg12: memref<2x64x32xf32, #tpu.memory_space<vmem>>, %arg13: memref<2x1x32xf32, #tpu.memory_space<vmem>>, %arg14: memref<2x2x1x32xf32, #tpu.memory_space<vmem>>, %arg15: memref<2x3x4x32x8xf32, #tpu.memory_space<vmem>>, %arg16: memref<2x3x4x1x8xf32, #tpu.memory_space<vmem>>, %arg17: memref<2x4x8x32xf32, #tpu.memory_space<vmem>>, %arg18: memref<2x1x32xf32, #tpu.memory_space<vmem>>, %arg19: memref<2x2x1x32xf32, #tpu.memory_space<vmem>>, %arg20: memref<2x3x4x32x8xf32, #tpu.memory_space<vmem>>, %arg21: memref<2x3x4x1x8xf32, #tpu.memory_space<vmem>>, %arg22: memref<2x4x8x32xf32, #tpu.memory_space<vmem>>, %arg23: memref<2x1x32xf32, #tpu.memory_space<vmem>>, %arg24: memref<2x2x1x32xf32, #tpu.memory_space<vmem>>, %arg25: memref<2x32x64xf32, #tpu.memory_space<vmem>>, %arg26: memref<2x1x64xf32, #tpu.memory_space<vmem>>, %arg27: memref<2x64x32xf32, #tpu.memory_space<vmem>>, %arg28: memref<2x1x32xf32, #tpu.memory_space<vmem>>, %arg29: memref<2x2x1x32xf32, #tpu.memory_space<vmem>>, %arg30: memref<32x32xf32, #tpu.memory_space<vmem>>, %arg31: memref<16x32xf32, #tpu.memory_space<vmem>>) attributes {dimension_semantics = [], scalar_prefetch = 0 : i64, scratch_operands = 0 : i64, tpu.core_type = #tpu.core_type<tc>} {
    %c0 = arith.constant 0 : index
    %c0_0 = arith.constant 0 : index
    %0 = vector.load %arg0[%c0, %c0_0] : memref<32x32xf32, #tpu.memory_space<vmem>>, vector<32x32xf32>
    %c0_1 = arith.constant 0 : index
    %c0_2 = arith.constant 0 : index
    %1 = vector.load %arg1[%c0_1, %c0_2] : memref<16x32xf32, #tpu.memory_space<vmem>>, vector<16x32xf32>
    %c0_3 = arith.constant 0 : index
    %c0_4 = arith.constant 0 : index
    %2 = vector.load %arg2[%c0_3, %c0_4] : memref<32x32xf32, #tpu.memory_space<vmem>>, vector<32x32xf32>
    %c0_5 = arith.constant 0 : index
    %c0_6 = arith.constant 0 : index
    %3 = vector.load %arg3[%c0_5, %c0_6] : memref<16x16xf32, #tpu.memory_space<vmem>>, vector<16x16xf32>
    %c0_7 = arith.constant 0 : index
    %c0_8 = arith.constant 0 : index
    %4 = vector.load %arg4[%c0_7, %c0_8] : memref<16x32xf32, #tpu.memory_space<vmem>>, vector<16x32xf32>
    %c0_9 = arith.constant 0 : index
    %c0_10 = arith.constant 0 : index
    %c0_11 = arith.constant 0 : index
    %c0_12 = arith.constant 0 : index
    %c0_13 = arith.constant 0 : index
    %5 = vector.load %arg5[%c0_9, %c0_10, %c0_11, %c0_12, %c0_13] : memref<2x3x4x32x8xf32, #tpu.memory_space<vmem>>, vector<1x1x1x32x8xf32>
    %6 = vector.shape_cast %5 : vector<1x1x1x32x8xf32> to vector<32x8xf32>
    %cst = arith.constant dense<0.000000e+00> : vector<32x8xf32>
    %7 = tpu.matmul %0, %6, %cst {dimension_numbers = #tpu.dot_dimension_numbers<[1], [0], [0], [1], [0, 0, 1, 1], [], []>} : vector<32x32xf32>, vector<32x8xf32>, vector<32x8xf32> -> vector<32x8xf32>
    %c0_14 = arith.constant 0 : index
    %c0_15 = arith.constant 0 : index
    %c0_16 = arith.constant 0 : index
    %c0_17 = arith.constant 0 : index
    %c0_18 = arith.constant 0 : index
    %8 = vector.load %arg6[%c0_14, %c0_15, %c0_16, %c0_17, %c0_18] : memref<2x3x4x1x8xf32, #tpu.memory_space<vmem>>, vector<1x1x1x1x8xf32>
    %9 = vector.shape_cast %8 : vector<1x1x1x1x8xf32> to vector<1x8xf32>
    %10 = vector.broadcast %9 : vector<1x8xf32> to vector<32x8xf32>
    %11 = arith.addf %7, %10 : vector<32x8xf32>
    %c0_19 = arith.constant 0 : index
    %c1 = arith.constant 1 : index
    %c0_20 = arith.constant 0 : index
    %c0_21 = arith.constant 0 : index
    %c0_22 = arith.constant 0 : index
    %12 = vector.load %arg5[%c0_19, %c1, %c0_20, %c0_21, %c0_22] : memref<2x3x4x32x8xf32, #tpu.memory_space<vmem>>, vector<1x1x1x32x8xf32>
    %13 = vector.shape_cast %12 : vector<1x1x1x32x8xf32> to vector<32x8xf32>
    %cst_23 = arith.constant dense<0.000000e+00> : vector<32x8xf32>
    %14 = tpu.matmul %0, %13, %cst_23 {dimension_numbers = #tpu.dot_dimension_numbers<[1], [0], [0], [1], [0, 0, 1, 1], [], []>} : vector<32x32xf32>, vector<32x8xf32>, vector<32x8xf32> -> vector<32x8xf32>
    %c0_24 = arith.constant 0 : index
    %c1_25 = arith.constant 1 : index
    %c0_26 = arith.constant 0 : index
    %c0_27 = arith.constant 0 : index
    %c0_28 = arith.constant 0 : index
    %15 = vector.load %arg6[%c0_24, %c1_25, %c0_26, %c0_27, %c0_28] : memref<2x3x4x1x8xf32, #tpu.memory_space<vmem>>, vector<1x1x1x1x8xf32>
    %16 = vector.shape_cast %15 : vector<1x1x1x1x8xf32> to vector<1x8xf32>
    %17 = vector.broadcast %16 : vector<1x8xf32> to vector<32x8xf32>
    %18 = arith.addf %14, %17 : vector<32x8xf32>
    %c0_29 = arith.constant 0 : index
    %c2 = arith.constant 2 : index
    %c0_30 = arith.constant 0 : index
    %c0_31 = arith.constant 0 : index
    %c0_32 = arith.constant 0 : index
    %19 = vector.load %arg5[%c0_29, %c2, %c0_30, %c0_31, %c0_32] : memref<2x3x4x32x8xf32, #tpu.memory_space<vmem>>, vector<1x1x1x32x8xf32>
    %20 = vector.shape_cast %19 : vector<1x1x1x32x8xf32> to vector<32x8xf32>
    %cst_33 = arith.constant dense<0.000000e+00> : vector<32x8xf32>
    %21 = tpu.matmul %0, %20, %cst_33 {dimension_numbers = #tpu.dot_dimension_numbers<[1], [0], [0], [1], [0, 0, 1, 1], [], []>} : vector<32x32xf32>, vector<32x8xf32>, vector<32x8xf32> -> vector<32x8xf32>
    %c0_34 = arith.constant 0 : index
    %c2_35 = arith.constant 2 : index
    %c0_36 = arith.constant 0 : index
    %c0_37 = arith.constant 0 : index
    %c0_38 = arith.constant 0 : index
    %22 = vector.load %arg6[%c0_34, %c2_35, %c0_36, %c0_37, %c0_38] : memref<2x3x4x1x8xf32, #tpu.memory_space<vmem>>, vector<1x1x1x1x8xf32>
    %23 = vector.shape_cast %22 : vector<1x1x1x1x8xf32> to vector<1x8xf32>
    %24 = vector.broadcast %23 : vector<1x8xf32> to vector<32x8xf32>
    %25 = arith.addf %21, %24 : vector<32x8xf32>
    %cst_39 = arith.constant dense<0.000000e+00> : vector<32x32xf32>
    %26 = tpu.matmul %11, %18, %cst_39 {dimension_numbers = #tpu.dot_dimension_numbers<[1], [1], [0], [0], [0, 0, 1, 0], [], []>} : vector<32x8xf32>, vector<32x8xf32>, vector<32x32xf32> -> vector<32x32xf32>
    %cst_40 = arith.constant 0.353553385 : f32
    %27 = vector.broadcast %cst_40 : f32 to vector<32x32xf32>
    %28 = arith.mulf %26, %27 : vector<32x32xf32>
    %29 = arith.addf %28, %2 : vector<32x32xf32>
    %cst_41 = arith.constant dense<0xFF800000> : vector<32xf32>
    %30 = vector.multi_reduction <maximumf>, %29, %cst_41 [1] : vector<32x32xf32> to vector<32xf32>
    %31 = vector.shape_cast %30 : vector<32xf32> to vector<32x1xf32>
    %32 = vector.broadcast %31 : vector<32x1xf32> to vector<32x32xf32>
    %33 = arith.subf %29, %32 : vector<32x32xf32>
    %34 = math.exp %33 : vector<32x32xf32>
    %cst_42 = arith.constant dense<0.000000e+00> : vector<32xf32>
    %35 = vector.multi_reduction <add>, %34, %cst_42 [1] : vector<32x32xf32> to vector<32xf32>
    %36 = vector.shape_cast %35 : vector<32xf32> to vector<32x1xf32>
    %37 = tpu.reciprocal %36 {approx = true} : vector<32x1xf32> -> vector<32x1xf32>
    %38 = vector.broadcast %37 : vector<32x1xf32> to vector<32x32xf32>
    %39 = arith.mulf %34, %38 : vector<32x32xf32>
    %cst_43 = arith.constant dense<0.000000e+00> : vector<32x8xf32>
    %40 = tpu.matmul %39, %25, %cst_43 {dimension_numbers = #tpu.dot_dimension_numbers<[1], [0], [0], [1], [0, 0, 1, 1], [], []>} : vector<32x32xf32>, vector<32x8xf32>, vector<32x8xf32> -> vector<32x8xf32>
    %c0_44 = arith.constant 0 : index
    %c0_45 = arith.constant 0 : index
    %c0_46 = arith.constant 0 : index
    %c0_47 = arith.constant 0 : index
    %41 = vector.load %arg7[%c0_44, %c0_45, %c0_46, %c0_47] : memref<2x4x8x32xf32, #tpu.memory_space<vmem>>, vector<1x1x8x32xf32>
    %42 = vector.shape_cast %41 : vector<1x1x8x32xf32> to vector<8x32xf32>
    %cst_48 = arith.constant dense<0.000000e+00> : vector<32x32xf32>
    %43 = tpu.matmul %40, %42, %cst_48 {dimension_numbers = #tpu.dot_dimension_numbers<[1], [0], [0], [1], [0, 0, 1, 1], [], []>} : vector<32x8xf32>, vector<8x32xf32>, vector<32x32xf32> -> vector<32x32xf32>
    %c0_49 = arith.constant 0 : index
    %c0_50 = arith.constant 0 : index
    %c1_51 = arith.constant 1 : index
    %c0_52 = arith.constant 0 : index
    %c0_53 = arith.constant 0 : index
    %44 = vector.load %arg5[%c0_49, %c0_50, %c1_51, %c0_52, %c0_53] : memref<2x3x4x32x8xf32, #tpu.memory_space<vmem>>, vector<1x1x1x32x8xf32>
    %45 = vector.shape_cast %44 : vector<1x1x1x32x8xf32> to vector<32x8xf32>
    %cst_54 = arith.constant dense<0.000000e+00> : vector<32x8xf32>
    %46 = tpu.matmul %0, %45, %cst_54 {dimension_numbers = #tpu.dot_dimension_numbers<[1], [0], [0], [1], [0, 0, 1, 1], [], []>} : vector<32x32xf32>, vector<32x8xf32>, vector<32x8xf32> -> vector<32x8xf32>
    %c0_55 = arith.constant 0 : index
    %c0_56 = arith.constant 0 : index
    %c1_57 = arith.constant 1 : index
    %c0_58 = arith.constant 0 : index
    %c0_59 = arith.constant 0 : index
    %47 = vector.load %arg6[%c0_55, %c0_56, %c1_57, %c0_58, %c0_59] : memref<2x3x4x1x8xf32, #tpu.memory_space<vmem>>, vector<1x1x1x1x8xf32>
    %48 = vector.shape_cast %47 : vector<1x1x1x1x8xf32> to vector<1x8xf32>
    %49 = vector.broadcast %48 : vector<1x8xf32> to vector<32x8xf32>
    %50 = arith.addf %46, %49 : vector<32x8xf32>
    %c0_60 = arith.constant 0 : index
    %c1_61 = arith.constant 1 : index
    %c1_62 = arith.constant 1 : index
    %c0_63 = arith.constant 0 : index
    %c0_64 = arith.constant 0 : index
    %51 = vector.load %arg5[%c0_60, %c1_61, %c1_62, %c0_63, %c0_64] : memref<2x3x4x32x8xf32, #tpu.memory_space<vmem>>, vector<1x1x1x32x8xf32>
    %52 = vector.shape_cast %51 : vector<1x1x1x32x8xf32> to vector<32x8xf32>
    %cst_65 = arith.constant dense<0.000000e+00> : vector<32x8xf32>
    %53 = tpu.matmul %0, %52, %cst_65 {dimension_numbers = #tpu.dot_dimension_numbers<[1], [0], [0], [1], [0, 0, 1, 1], [], []>} : vector<32x32xf32>, vector<32x8xf32>, vector<32x8xf32> -> vector<32x8xf32>
    %c0_66 = arith.constant 0 : index
    %c1_67 = arith.constant 1 : index
    %c1_68 = arith.constant 1 : index
    %c0_69 = arith.constant 0 : index
    %c0_70 = arith.constant 0 : index
    %54 = vector.load %arg6[%c0_66, %c1_67, %c1_68, %c0_69, %c0_70] : memref<2x3x4x1x8xf32, #tpu.memory_space<vmem>>, vector<1x1x1x1x8xf32>
    %55 = vector.shape_cast %54 : vector<1x1x1x1x8xf32> to vector<1x8xf32>
    %56 = vector.broadcast %55 : vector<1x8xf32> to vector<32x8xf32>
    %57 = arith.addf %53, %56 : vector<32x8xf32>
    %c0_71 = arith.constant 0 : index
    %c2_72 = arith.constant 2 : index
    %c1_73 = arith.constant 1 : index
    %c0_74 = arith.constant 0 : index
    %c0_75 = arith.constant 0 : index
    %58 = vector.load %arg5[%c0_71, %c2_72, %c1_73, %c0_74, %c0_75] : memref<2x3x4x32x8xf32, #tpu.memory_space<vmem>>, vector<1x1x1x32x8xf32>
    %59 = vector.shape_cast %58 : vector<1x1x1x32x8xf32> to vector<32x8xf32>
    %cst_76 = arith.constant dense<0.000000e+00> : vector<32x8xf32>
    %60 = tpu.matmul %0, %59, %cst_76 {dimension_numbers = #tpu.dot_dimension_numbers<[1], [0], [0], [1], [0, 0, 1, 1], [], []>} : vector<32x32xf32>, vector<32x8xf32>, vector<32x8xf32> -> vector<32x8xf32>
    %c0_77 = arith.constant 0 : index
    %c2_78 = arith.constant 2 : index
    %c1_79 = arith.constant 1 : index
    %c0_80 = arith.constant 0 : index
    %c0_81 = arith.constant 0 : index
    %61 = vector.load %arg6[%c0_77, %c2_78, %c1_79, %c0_80, %c0_81] : memref<2x3x4x1x8xf32, #tpu.memory_space<vmem>>, vector<1x1x1x1x8xf32>
    %62 = vector.shape_cast %61 : vector<1x1x1x1x8xf32> to vector<1x8xf32>
    %63 = vector.broadcast %62 : vector<1x8xf32> to vector<32x8xf32>
    %64 = arith.addf %60, %63 : vector<32x8xf32>
    %cst_82 = arith.constant dense<0.000000e+00> : vector<32x32xf32>
    %65 = tpu.matmul %50, %57, %cst_82 {dimension_numbers = #tpu.dot_dimension_numbers<[1], [1], [0], [0], [0, 0, 1, 0], [], []>} : vector<32x8xf32>, vector<32x8xf32>, vector<32x32xf32> -> vector<32x32xf32>
    %cst_83 = arith.constant 0.353553385 : f32
    %66 = vector.broadcast %cst_83 : f32 to vector<32x32xf32>
    %67 = arith.mulf %65, %66 : vector<32x32xf32>
    %68 = arith.addf %67, %2 : vector<32x32xf32>
    %cst_84 = arith.constant dense<0xFF800000> : vector<32xf32>
    %69 = vector.multi_reduction <maximumf>, %68, %cst_84 [1] : vector<32x32xf32> to vector<32xf32>
    %70 = vector.shape_cast %69 : vector<32xf32> to vector<32x1xf32>
    %71 = vector.broadcast %70 : vector<32x1xf32> to vector<32x32xf32>
    %72 = arith.subf %68, %71 : vector<32x32xf32>
    %73 = math.exp %72 : vector<32x32xf32>
    %cst_85 = arith.constant dense<0.000000e+00> : vector<32xf32>
    %74 = vector.multi_reduction <add>, %73, %cst_85 [1] : vector<32x32xf32> to vector<32xf32>
    %75 = vector.shape_cast %74 : vector<32xf32> to vector<32x1xf32>
    %76 = tpu.reciprocal %75 {approx = true} : vector<32x1xf32> -> vector<32x1xf32>
    %77 = vector.broadcast %76 : vector<32x1xf32> to vector<32x32xf32>
    %78 = arith.mulf %73, %77 : vector<32x32xf32>
    %cst_86 = arith.constant dense<0.000000e+00> : vector<32x8xf32>
    %79 = tpu.matmul %78, %64, %cst_86 {dimension_numbers = #tpu.dot_dimension_numbers<[1], [0], [0], [1], [0, 0, 1, 1], [], []>} : vector<32x32xf32>, vector<32x8xf32>, vector<32x8xf32> -> vector<32x8xf32>
    %c0_87 = arith.constant 0 : index
    %c1_88 = arith.constant 1 : index
    %c0_89 = arith.constant 0 : index
    %c0_90 = arith.constant 0 : index
    %80 = vector.load %arg7[%c0_87, %c1_88, %c0_89, %c0_90] : memref<2x4x8x32xf32, #tpu.memory_space<vmem>>, vector<1x1x8x32xf32>
    %81 = vector.shape_cast %80 : vector<1x1x8x32xf32> to vector<8x32xf32>
    %cst_91 = arith.constant dense<0.000000e+00> : vector<32x32xf32>
    %82 = tpu.matmul %79, %81, %cst_91 {dimension_numbers = #tpu.dot_dimension_numbers<[1], [0], [0], [1], [0, 0, 1, 1], [], []>} : vector<32x8xf32>, vector<8x32xf32>, vector<32x32xf32> -> vector<32x32xf32>
    %83 = arith.addf %43, %82 : vector<32x32xf32>
    %c0_92 = arith.constant 0 : index
    %c0_93 = arith.constant 0 : index
    %c2_94 = arith.constant 2 : index
    %c0_95 = arith.constant 0 : index
    %c0_96 = arith.constant 0 : index
    %84 = vector.load %arg5[%c0_92, %c0_93, %c2_94, %c0_95, %c0_96] : memref<2x3x4x32x8xf32, #tpu.memory_space<vmem>>, vector<1x1x1x32x8xf32>
    %85 = vector.shape_cast %84 : vector<1x1x1x32x8xf32> to vector<32x8xf32>
    %cst_97 = arith.constant dense<0.000000e+00> : vector<32x8xf32>
    %86 = tpu.matmul %0, %85, %cst_97 {dimension_numbers = #tpu.dot_dimension_numbers<[1], [0], [0], [1], [0, 0, 1, 1], [], []>} : vector<32x32xf32>, vector<32x8xf32>, vector<32x8xf32> -> vector<32x8xf32>
    %c0_98 = arith.constant 0 : index
    %c0_99 = arith.constant 0 : index
    %c2_100 = arith.constant 2 : index
    %c0_101 = arith.constant 0 : index
    %c0_102 = arith.constant 0 : index
    %87 = vector.load %arg6[%c0_98, %c0_99, %c2_100, %c0_101, %c0_102] : memref<2x3x4x1x8xf32, #tpu.memory_space<vmem>>, vector<1x1x1x1x8xf32>
    %88 = vector.shape_cast %87 : vector<1x1x1x1x8xf32> to vector<1x8xf32>
    %89 = vector.broadcast %88 : vector<1x8xf32> to vector<32x8xf32>
    %90 = arith.addf %86, %89 : vector<32x8xf32>
    %c0_103 = arith.constant 0 : index
    %c1_104 = arith.constant 1 : index
    %c2_105 = arith.constant 2 : index
    %c0_106 = arith.constant 0 : index
    %c0_107 = arith.constant 0 : index
    %91 = vector.load %arg5[%c0_103, %c1_104, %c2_105, %c0_106, %c0_107] : memref<2x3x4x32x8xf32, #tpu.memory_space<vmem>>, vector<1x1x1x32x8xf32>
    %92 = vector.shape_cast %91 : vector<1x1x1x32x8xf32> to vector<32x8xf32>
    %cst_108 = arith.constant dense<0.000000e+00> : vector<32x8xf32>
    %93 = tpu.matmul %0, %92, %cst_108 {dimension_numbers = #tpu.dot_dimension_numbers<[1], [0], [0], [1], [0, 0, 1, 1], [], []>} : vector<32x32xf32>, vector<32x8xf32>, vector<32x8xf32> -> vector<32x8xf32>
    %c0_109 = arith.constant 0 : index
    %c1_110 = arith.constant 1 : index
    %c2_111 = arith.constant 2 : index
    %c0_112 = arith.constant 0 : index
    %c0_113 = arith.constant 0 : index
    %94 = vector.load %arg6[%c0_109, %c1_110, %c2_111, %c0_112, %c0_113] : memref<2x3x4x1x8xf32, #tpu.memory_space<vmem>>, vector<1x1x1x1x8xf32>
    %95 = vector.shape_cast %94 : vector<1x1x1x1x8xf32> to vector<1x8xf32>
    %96 = vector.broadcast %95 : vector<1x8xf32> to vector<32x8xf32>
    %97 = arith.addf %93, %96 : vector<32x8xf32>
    %c0_114 = arith.constant 0 : index
    %c2_115 = arith.constant 2 : index
    %c2_116 = arith.constant 2 : index
    %c0_117 = arith.constant 0 : index
    %c0_118 = arith.constant 0 : index
    %98 = vector.load %arg5[%c0_114, %c2_115, %c2_116, %c0_117, %c0_118] : memref<2x3x4x32x8xf32, #tpu.memory_space<vmem>>, vector<1x1x1x32x8xf32>
    %99 = vector.shape_cast %98 : vector<1x1x1x32x8xf32> to vector<32x8xf32>
    %cst_119 = arith.constant dense<0.000000e+00> : vector<32x8xf32>
    %100 = tpu.matmul %0, %99, %cst_119 {dimension_numbers = #tpu.dot_dimension_numbers<[1], [0], [0], [1], [0, 0, 1, 1], [], []>} : vector<32x32xf32>, vector<32x8xf32>, vector<32x8xf32> -> vector<32x8xf32>
    %c0_120 = arith.constant 0 : index
    %c2_121 = arith.constant 2 : index
    %c2_122 = arith.constant 2 : index
    %c0_123 = arith.constant 0 : index
    %c0_124 = arith.constant 0 : index
    %101 = vector.load %arg6[%c0_120, %c2_121, %c2_122, %c0_123, %c0_124] : memref<2x3x4x1x8xf32, #tpu.memory_space<vmem>>, vector<1x1x1x1x8xf32>
    %102 = vector.shape_cast %101 : vector<1x1x1x1x8xf32> to vector<1x8xf32>
    %103 = vector.broadcast %102 : vector<1x8xf32> to vector<32x8xf32>
    %104 = arith.addf %100, %103 : vector<32x8xf32>
    %cst_125 = arith.constant dense<0.000000e+00> : vector<32x32xf32>
    %105 = tpu.matmul %90, %97, %cst_125 {dimension_numbers = #tpu.dot_dimension_numbers<[1], [1], [0], [0], [0, 0, 1, 0], [], []>} : vector<32x8xf32>, vector<32x8xf32>, vector<32x32xf32> -> vector<32x32xf32>
    %cst_126 = arith.constant 0.353553385 : f32
    %106 = vector.broadcast %cst_126 : f32 to vector<32x32xf32>
    %107 = arith.mulf %105, %106 : vector<32x32xf32>
    %108 = arith.addf %107, %2 : vector<32x32xf32>
    %cst_127 = arith.constant dense<0xFF800000> : vector<32xf32>
    %109 = vector.multi_reduction <maximumf>, %108, %cst_127 [1] : vector<32x32xf32> to vector<32xf32>
    %110 = vector.shape_cast %109 : vector<32xf32> to vector<32x1xf32>
    %111 = vector.broadcast %110 : vector<32x1xf32> to vector<32x32xf32>
    %112 = arith.subf %108, %111 : vector<32x32xf32>
    %113 = math.exp %112 : vector<32x32xf32>
    %cst_128 = arith.constant dense<0.000000e+00> : vector<32xf32>
    %114 = vector.multi_reduction <add>, %113, %cst_128 [1] : vector<32x32xf32> to vector<32xf32>
    %115 = vector.shape_cast %114 : vector<32xf32> to vector<32x1xf32>
    %116 = tpu.reciprocal %115 {approx = true} : vector<32x1xf32> -> vector<32x1xf32>
    %117 = vector.broadcast %116 : vector<32x1xf32> to vector<32x32xf32>
    %118 = arith.mulf %113, %117 : vector<32x32xf32>
    %cst_129 = arith.constant dense<0.000000e+00> : vector<32x8xf32>
    %119 = tpu.matmul %118, %104, %cst_129 {dimension_numbers = #tpu.dot_dimension_numbers<[1], [0], [0], [1], [0, 0, 1, 1], [], []>} : vector<32x32xf32>, vector<32x8xf32>, vector<32x8xf32> -> vector<32x8xf32>
    %c0_130 = arith.constant 0 : index
    %c2_131 = arith.constant 2 : index
    %c0_132 = arith.constant 0 : index
    %c0_133 = arith.constant 0 : index
    %120 = vector.load %arg7[%c0_130, %c2_131, %c0_132, %c0_133] : memref<2x4x8x32xf32, #tpu.memory_space<vmem>>, vector<1x1x8x32xf32>
    %121 = vector.shape_cast %120 : vector<1x1x8x32xf32> to vector<8x32xf32>
    %cst_134 = arith.constant dense<0.000000e+00> : vector<32x32xf32>
    %122 = tpu.matmul %119, %121, %cst_134 {dimension_numbers = #tpu.dot_dimension_numbers<[1], [0], [0], [1], [0, 0, 1, 1], [], []>} : vector<32x8xf32>, vector<8x32xf32>, vector<32x32xf32> -> vector<32x32xf32>
    %123 = arith.addf %83, %122 : vector<32x32xf32>
    %c0_135 = arith.constant 0 : index
    %c0_136 = arith.constant 0 : index
    %c3 = arith.constant 3 : index
    %c0_137 = arith.constant 0 : index
    %c0_138 = arith.constant 0 : index
    %124 = vector.load %arg5[%c0_135, %c0_136, %c3, %c0_137, %c0_138] : memref<2x3x4x32x8xf32, #tpu.memory_space<vmem>>, vector<1x1x1x32x8xf32>
    %125 = vector.shape_cast %124 : vector<1x1x1x32x8xf32> to vector<32x8xf32>
    %cst_139 = arith.constant dense<0.000000e+00> : vector<32x8xf32>
    %126 = tpu.matmul %0, %125, %cst_139 {dimension_numbers = #tpu.dot_dimension_numbers<[1], [0], [0], [1], [0, 0, 1, 1], [], []>} : vector<32x32xf32>, vector<32x8xf32>, vector<32x8xf32> -> vector<32x8xf32>
    %c0_140 = arith.constant 0 : index
    %c0_141 = arith.constant 0 : index
    %c3_142 = arith.constant 3 : index
    %c0_143 = arith.constant 0 : index
    %c0_144 = arith.constant 0 : index
    %127 = vector.load %arg6[%c0_140, %c0_141, %c3_142, %c0_143, %c0_144] : memref<2x3x4x1x8xf32, #tpu.memory_space<vmem>>, vector<1x1x1x1x8xf32>
    %128 = vector.shape_cast %127 : vector<1x1x1x1x8xf32> to vector<1x8xf32>
    %129 = vector.broadcast %128 : vector<1x8xf32> to vector<32x8xf32>
    %130 = arith.addf %126, %129 : vector<32x8xf32>
    %c0_145 = arith.constant 0 : index
    %c1_146 = arith.constant 1 : index
    %c3_147 = arith.constant 3 : index
    %c0_148 = arith.constant 0 : index
    %c0_149 = arith.constant 0 : index
    %131 = vector.load %arg5[%c0_145, %c1_146, %c3_147, %c0_148, %c0_149] : memref<2x3x4x32x8xf32, #tpu.memory_space<vmem>>, vector<1x1x1x32x8xf32>
    %132 = vector.shape_cast %131 : vector<1x1x1x32x8xf32> to vector<32x8xf32>
    %cst_150 = arith.constant dense<0.000000e+00> : vector<32x8xf32>
    %133 = tpu.matmul %0, %132, %cst_150 {dimension_numbers = #tpu.dot_dimension_numbers<[1], [0], [0], [1], [0, 0, 1, 1], [], []>} : vector<32x32xf32>, vector<32x8xf32>, vector<32x8xf32> -> vector<32x8xf32>
    %c0_151 = arith.constant 0 : index
    %c1_152 = arith.constant 1 : index
    %c3_153 = arith.constant 3 : index
    %c0_154 = arith.constant 0 : index
    %c0_155 = arith.constant 0 : index
    %134 = vector.load %arg6[%c0_151, %c1_152, %c3_153, %c0_154, %c0_155] : memref<2x3x4x1x8xf32, #tpu.memory_space<vmem>>, vector<1x1x1x1x8xf32>
    %135 = vector.shape_cast %134 : vector<1x1x1x1x8xf32> to vector<1x8xf32>
    %136 = vector.broadcast %135 : vector<1x8xf32> to vector<32x8xf32>
    %137 = arith.addf %133, %136 : vector<32x8xf32>
    %c0_156 = arith.constant 0 : index
    %c2_157 = arith.constant 2 : index
    %c3_158 = arith.constant 3 : index
    %c0_159 = arith.constant 0 : index
    %c0_160 = arith.constant 0 : index
    %138 = vector.load %arg5[%c0_156, %c2_157, %c3_158, %c0_159, %c0_160] : memref<2x3x4x32x8xf32, #tpu.memory_space<vmem>>, vector<1x1x1x32x8xf32>
    %139 = vector.shape_cast %138 : vector<1x1x1x32x8xf32> to vector<32x8xf32>
    %cst_161 = arith.constant dense<0.000000e+00> : vector<32x8xf32>
    %140 = tpu.matmul %0, %139, %cst_161 {dimension_numbers = #tpu.dot_dimension_numbers<[1], [0], [0], [1], [0, 0, 1, 1], [], []>} : vector<32x32xf32>, vector<32x8xf32>, vector<32x8xf32> -> vector<32x8xf32>
    %c0_162 = arith.constant 0 : index
    %c2_163 = arith.constant 2 : index
    %c3_164 = arith.constant 3 : index
    %c0_165 = arith.constant 0 : index
    %c0_166 = arith.constant 0 : index
    %141 = vector.load %arg6[%c0_162, %c2_163, %c3_164, %c0_165, %c0_166] : memref<2x3x4x1x8xf32, #tpu.memory_space<vmem>>, vector<1x1x1x1x8xf32>
    %142 = vector.shape_cast %141 : vector<1x1x1x1x8xf32> to vector<1x8xf32>
    %143 = vector.broadcast %142 : vector<1x8xf32> to vector<32x8xf32>
    %144 = arith.addf %140, %143 : vector<32x8xf32>
    %cst_167 = arith.constant dense<0.000000e+00> : vector<32x32xf32>
    %145 = tpu.matmul %130, %137, %cst_167 {dimension_numbers = #tpu.dot_dimension_numbers<[1], [1], [0], [0], [0, 0, 1, 0], [], []>} : vector<32x8xf32>, vector<32x8xf32>, vector<32x32xf32> -> vector<32x32xf32>
    %cst_168 = arith.constant 0.353553385 : f32
    %146 = vector.broadcast %cst_168 : f32 to vector<32x32xf32>
    %147 = arith.mulf %145, %146 : vector<32x32xf32>
    %148 = arith.addf %147, %2 : vector<32x32xf32>
    %cst_169 = arith.constant dense<0xFF800000> : vector<32xf32>
    %149 = vector.multi_reduction <maximumf>, %148, %cst_169 [1] : vector<32x32xf32> to vector<32xf32>
    %150 = vector.shape_cast %149 : vector<32xf32> to vector<32x1xf32>
    %151 = vector.broadcast %150 : vector<32x1xf32> to vector<32x32xf32>
    %152 = arith.subf %148, %151 : vector<32x32xf32>
    %153 = math.exp %152 : vector<32x32xf32>
    %cst_170 = arith.constant dense<0.000000e+00> : vector<32xf32>
    %154 = vector.multi_reduction <add>, %153, %cst_170 [1] : vector<32x32xf32> to vector<32xf32>
    %155 = vector.shape_cast %154 : vector<32xf32> to vector<32x1xf32>
    %156 = tpu.reciprocal %155 {approx = true} : vector<32x1xf32> -> vector<32x1xf32>
    %157 = vector.broadcast %156 : vector<32x1xf32> to vector<32x32xf32>
    %158 = arith.mulf %153, %157 : vector<32x32xf32>
    %cst_171 = arith.constant dense<0.000000e+00> : vector<32x8xf32>
    %159 = tpu.matmul %158, %144, %cst_171 {dimension_numbers = #tpu.dot_dimension_numbers<[1], [0], [0], [1], [0, 0, 1, 1], [], []>} : vector<32x32xf32>, vector<32x8xf32>, vector<32x8xf32> -> vector<32x8xf32>
    %c0_172 = arith.constant 0 : index
    %c3_173 = arith.constant 3 : index
    %c0_174 = arith.constant 0 : index
    %c0_175 = arith.constant 0 : index
    %160 = vector.load %arg7[%c0_172, %c3_173, %c0_174, %c0_175] : memref<2x4x8x32xf32, #tpu.memory_space<vmem>>, vector<1x1x8x32xf32>
    %161 = vector.shape_cast %160 : vector<1x1x8x32xf32> to vector<8x32xf32>
    %cst_176 = arith.constant dense<0.000000e+00> : vector<32x32xf32>
    %162 = tpu.matmul %159, %161, %cst_176 {dimension_numbers = #tpu.dot_dimension_numbers<[1], [0], [0], [1], [0, 0, 1, 1], [], []>} : vector<32x8xf32>, vector<8x32xf32>, vector<32x32xf32> -> vector<32x32xf32>
    %163 = arith.addf %123, %162 : vector<32x32xf32>
    %c0_177 = arith.constant 0 : index
    %c0_178 = arith.constant 0 : index
    %c0_179 = arith.constant 0 : index
    %164 = vector.load %arg8[%c0_177, %c0_178, %c0_179] : memref<2x1x32xf32, #tpu.memory_space<vmem>>, vector<1x1x32xf32>
    %165 = vector.shape_cast %164 : vector<1x1x32xf32> to vector<1x32xf32>
    %166 = vector.broadcast %165 : vector<1x32xf32> to vector<32x32xf32>
    %167 = arith.addf %163, %166 : vector<32x32xf32>
    %168 = arith.addf %0, %167 : vector<32x32xf32>
    %c0_180 = arith.constant 0 : index
    %c0_181 = arith.constant 0 : index
    %c0_182 = arith.constant 0 : index
    %c0_183 = arith.constant 0 : index
    %169 = vector.load %arg9[%c0_180, %c0_181, %c0_182, %c0_183] : memref<2x2x1x32xf32, #tpu.memory_space<vmem>>, vector<1x1x1x32xf32>
    %170 = vector.shape_cast %169 : vector<1x1x1x32xf32> to vector<1x32xf32>
    %c0_184 = arith.constant 0 : index
    %c1_185 = arith.constant 1 : index
    %c0_186 = arith.constant 0 : index
    %c0_187 = arith.constant 0 : index
    %171 = vector.load %arg9[%c0_184, %c1_185, %c0_186, %c0_187] : memref<2x2x1x32xf32, #tpu.memory_space<vmem>>, vector<1x1x1x32xf32>
    %172 = vector.shape_cast %171 : vector<1x1x1x32xf32> to vector<1x32xf32>
    %cst_188 = arith.constant dense<0.000000e+00> : vector<32xf32>
    %173 = vector.multi_reduction <add>, %168, %cst_188 [1] : vector<32x32xf32> to vector<32xf32>
    %174 = vector.shape_cast %173 : vector<32xf32> to vector<32x1xf32>
    %cst_189 = arith.constant 3.200000e+01 : f32
    %175 = vector.broadcast %cst_189 : f32 to vector<32x1xf32>
    %176 = arith.divf %174, %175 : vector<32x1xf32>
    %177 = vector.broadcast %176 : vector<32x1xf32> to vector<32x32xf32>
    %178 = arith.subf %168, %177 : vector<32x32xf32>
    %179 = arith.mulf %178, %178 : vector<32x32xf32>
    %cst_190 = arith.constant dense<0.000000e+00> : vector<32xf32>
    %180 = vector.multi_reduction <add>, %179, %cst_190 [1] : vector<32x32xf32> to vector<32xf32>
    %181 = vector.shape_cast %180 : vector<32xf32> to vector<32x1xf32>
    %cst_191 = arith.constant 0.0322580636 : f32
    %182 = vector.broadcast %cst_191 : f32 to vector<32x1xf32>
    %183 = arith.mulf %181, %182 : vector<32x1xf32>
    %184 = math.sqrt %183 : vector<32x1xf32>
    %cst_192 = arith.constant 9.99999997E-7 : f32
    %185 = vector.broadcast %cst_192 : f32 to vector<32x1xf32>
    %186 = arith.addf %184, %185 : vector<32x1xf32>
    %187 = tpu.reciprocal %186 {approx = true} : vector<32x1xf32> -> vector<32x1xf32>
    %188 = vector.broadcast %187 : vector<32x1xf32> to vector<32x32xf32>
    %189 = arith.mulf %178, %188 : vector<32x32xf32>
    %190 = vector.broadcast %170 : vector<1x32xf32> to vector<32x32xf32>
    %191 = arith.mulf %190, %189 : vector<32x32xf32>
    %192 = vector.broadcast %172 : vector<1x32xf32> to vector<32x32xf32>
    %193 = arith.addf %191, %192 : vector<32x32xf32>
    %c0_193 = arith.constant 0 : index
    %c0_194 = arith.constant 0 : index
    %c0_195 = arith.constant 0 : index
    %194 = vector.load %arg10[%c0_193, %c0_194, %c0_195] : memref<2x32x64xf32, #tpu.memory_space<vmem>>, vector<1x32x64xf32>
    %195 = vector.shape_cast %194 : vector<1x32x64xf32> to vector<32x64xf32>
    %cst_196 = arith.constant dense<0.000000e+00> : vector<32x64xf32>
    %196 = tpu.matmul %193, %195, %cst_196 {dimension_numbers = #tpu.dot_dimension_numbers<[1], [0], [0], [1], [0, 0, 1, 1], [], []>} : vector<32x32xf32>, vector<32x64xf32>, vector<32x64xf32> -> vector<32x64xf32>
    %c0_197 = arith.constant 0 : index
    %c0_198 = arith.constant 0 : index
    %c0_199 = arith.constant 0 : index
    %197 = vector.load %arg11[%c0_197, %c0_198, %c0_199] : memref<2x1x64xf32, #tpu.memory_space<vmem>>, vector<1x1x64xf32>
    %198 = vector.shape_cast %197 : vector<1x1x64xf32> to vector<1x64xf32>
    %199 = vector.broadcast %198 : vector<1x64xf32> to vector<32x64xf32>
    %200 = arith.addf %196, %199 : vector<32x64xf32>
    %cst_200 = arith.constant 0.000000e+00 : f32
    %201 = vector.broadcast %cst_200 : f32 to vector<32x64xf32>
    %202 = arith.maximumf %200, %201 : vector<32x64xf32>
    %c0_201 = arith.constant 0 : index
    %c0_202 = arith.constant 0 : index
    %c0_203 = arith.constant 0 : index
    %203 = vector.load %arg12[%c0_201, %c0_202, %c0_203] : memref<2x64x32xf32, #tpu.memory_space<vmem>>, vector<1x64x32xf32>
    %204 = vector.shape_cast %203 : vector<1x64x32xf32> to vector<64x32xf32>
    %cst_204 = arith.constant dense<0.000000e+00> : vector<32x32xf32>
    %205 = tpu.matmul %202, %204, %cst_204 {dimension_numbers = #tpu.dot_dimension_numbers<[1], [0], [0], [1], [0, 0, 1, 1], [], []>} : vector<32x64xf32>, vector<64x32xf32>, vector<32x32xf32> -> vector<32x32xf32>
    %c0_205 = arith.constant 0 : index
    %c0_206 = arith.constant 0 : index
    %c0_207 = arith.constant 0 : index
    %206 = vector.load %arg13[%c0_205, %c0_206, %c0_207] : memref<2x1x32xf32, #tpu.memory_space<vmem>>, vector<1x1x32xf32>
    %207 = vector.shape_cast %206 : vector<1x1x32xf32> to vector<1x32xf32>
    %208 = vector.broadcast %207 : vector<1x32xf32> to vector<32x32xf32>
    %209 = arith.addf %205, %208 : vector<32x32xf32>
    %210 = arith.addf %193, %209 : vector<32x32xf32>
    %c0_208 = arith.constant 0 : index
    %c0_209 = arith.constant 0 : index
    %c0_210 = arith.constant 0 : index
    %c0_211 = arith.constant 0 : index
    %211 = vector.load %arg14[%c0_208, %c0_209, %c0_210, %c0_211] : memref<2x2x1x32xf32, #tpu.memory_space<vmem>>, vector<1x1x1x32xf32>
    %212 = vector.shape_cast %211 : vector<1x1x1x32xf32> to vector<1x32xf32>
    %c0_212 = arith.constant 0 : index
    %c1_213 = arith.constant 1 : index
    %c0_214 = arith.constant 0 : index
    %c0_215 = arith.constant 0 : index
    %213 = vector.load %arg14[%c0_212, %c1_213, %c0_214, %c0_215] : memref<2x2x1x32xf32, #tpu.memory_space<vmem>>, vector<1x1x1x32xf32>
    %214 = vector.shape_cast %213 : vector<1x1x1x32xf32> to vector<1x32xf32>
    %cst_216 = arith.constant dense<0.000000e+00> : vector<32xf32>
    %215 = vector.multi_reduction <add>, %210, %cst_216 [1] : vector<32x32xf32> to vector<32xf32>
    %216 = vector.shape_cast %215 : vector<32xf32> to vector<32x1xf32>
    %cst_217 = arith.constant 3.200000e+01 : f32
    %217 = vector.broadcast %cst_217 : f32 to vector<32x1xf32>
    %218 = arith.divf %216, %217 : vector<32x1xf32>
    %219 = vector.broadcast %218 : vector<32x1xf32> to vector<32x32xf32>
    %220 = arith.subf %210, %219 : vector<32x32xf32>
    %221 = arith.mulf %220, %220 : vector<32x32xf32>
    %cst_218 = arith.constant dense<0.000000e+00> : vector<32xf32>
    %222 = vector.multi_reduction <add>, %221, %cst_218 [1] : vector<32x32xf32> to vector<32xf32>
    %223 = vector.shape_cast %222 : vector<32xf32> to vector<32x1xf32>
    %cst_219 = arith.constant 0.0322580636 : f32
    %224 = vector.broadcast %cst_219 : f32 to vector<32x1xf32>
    %225 = arith.mulf %223, %224 : vector<32x1xf32>
    %226 = math.sqrt %225 : vector<32x1xf32>
    %cst_220 = arith.constant 9.99999997E-7 : f32
    %227 = vector.broadcast %cst_220 : f32 to vector<32x1xf32>
    %228 = arith.addf %226, %227 : vector<32x1xf32>
    %229 = tpu.reciprocal %228 {approx = true} : vector<32x1xf32> -> vector<32x1xf32>
    %230 = vector.broadcast %229 : vector<32x1xf32> to vector<32x32xf32>
    %231 = arith.mulf %220, %230 : vector<32x32xf32>
    %232 = vector.broadcast %212 : vector<1x32xf32> to vector<32x32xf32>
    %233 = arith.mulf %232, %231 : vector<32x32xf32>
    %234 = vector.broadcast %214 : vector<1x32xf32> to vector<32x32xf32>
    %235 = arith.addf %233, %234 : vector<32x32xf32>
    %c1_221 = arith.constant 1 : index
    %c0_222 = arith.constant 0 : index
    %c0_223 = arith.constant 0 : index
    %c0_224 = arith.constant 0 : index
    %c0_225 = arith.constant 0 : index
    %236 = vector.load %arg5[%c1_221, %c0_222, %c0_223, %c0_224, %c0_225] : memref<2x3x4x32x8xf32, #tpu.memory_space<vmem>>, vector<1x1x1x32x8xf32>
    %237 = vector.shape_cast %236 : vector<1x1x1x32x8xf32> to vector<32x8xf32>
    %cst_226 = arith.constant dense<0.000000e+00> : vector<32x8xf32>
    %238 = tpu.matmul %235, %237, %cst_226 {dimension_numbers = #tpu.dot_dimension_numbers<[1], [0], [0], [1], [0, 0, 1, 1], [], []>} : vector<32x32xf32>, vector<32x8xf32>, vector<32x8xf32> -> vector<32x8xf32>
    %c1_227 = arith.constant 1 : index
    %c0_228 = arith.constant 0 : index
    %c0_229 = arith.constant 0 : index
    %c0_230 = arith.constant 0 : index
    %c0_231 = arith.constant 0 : index
    %239 = vector.load %arg6[%c1_227, %c0_228, %c0_229, %c0_230, %c0_231] : memref<2x3x4x1x8xf32, #tpu.memory_space<vmem>>, vector<1x1x1x1x8xf32>
    %240 = vector.shape_cast %239 : vector<1x1x1x1x8xf32> to vector<1x8xf32>
    %241 = vector.broadcast %240 : vector<1x8xf32> to vector<32x8xf32>
    %242 = arith.addf %238, %241 : vector<32x8xf32>
    %c1_232 = arith.constant 1 : index
    %c1_233 = arith.constant 1 : index
    %c0_234 = arith.constant 0 : index
    %c0_235 = arith.constant 0 : index
    %c0_236 = arith.constant 0 : index
    %243 = vector.load %arg5[%c1_232, %c1_233, %c0_234, %c0_235, %c0_236] : memref<2x3x4x32x8xf32, #tpu.memory_space<vmem>>, vector<1x1x1x32x8xf32>
    %244 = vector.shape_cast %243 : vector<1x1x1x32x8xf32> to vector<32x8xf32>
    %cst_237 = arith.constant dense<0.000000e+00> : vector<32x8xf32>
    %245 = tpu.matmul %235, %244, %cst_237 {dimension_numbers = #tpu.dot_dimension_numbers<[1], [0], [0], [1], [0, 0, 1, 1], [], []>} : vector<32x32xf32>, vector<32x8xf32>, vector<32x8xf32> -> vector<32x8xf32>
    %c1_238 = arith.constant 1 : index
    %c1_239 = arith.constant 1 : index
    %c0_240 = arith.constant 0 : index
    %c0_241 = arith.constant 0 : index
    %c0_242 = arith.constant 0 : index
    %246 = vector.load %arg6[%c1_238, %c1_239, %c0_240, %c0_241, %c0_242] : memref<2x3x4x1x8xf32, #tpu.memory_space<vmem>>, vector<1x1x1x1x8xf32>
    %247 = vector.shape_cast %246 : vector<1x1x1x1x8xf32> to vector<1x8xf32>
    %248 = vector.broadcast %247 : vector<1x8xf32> to vector<32x8xf32>
    %249 = arith.addf %245, %248 : vector<32x8xf32>
    %c1_243 = arith.constant 1 : index
    %c2_244 = arith.constant 2 : index
    %c0_245 = arith.constant 0 : index
    %c0_246 = arith.constant 0 : index
    %c0_247 = arith.constant 0 : index
    %250 = vector.load %arg5[%c1_243, %c2_244, %c0_245, %c0_246, %c0_247] : memref<2x3x4x32x8xf32, #tpu.memory_space<vmem>>, vector<1x1x1x32x8xf32>
    %251 = vector.shape_cast %250 : vector<1x1x1x32x8xf32> to vector<32x8xf32>
    %cst_248 = arith.constant dense<0.000000e+00> : vector<32x8xf32>
    %252 = tpu.matmul %235, %251, %cst_248 {dimension_numbers = #tpu.dot_dimension_numbers<[1], [0], [0], [1], [0, 0, 1, 1], [], []>} : vector<32x32xf32>, vector<32x8xf32>, vector<32x8xf32> -> vector<32x8xf32>
    %c1_249 = arith.constant 1 : index
    %c2_250 = arith.constant 2 : index
    %c0_251 = arith.constant 0 : index
    %c0_252 = arith.constant 0 : index
    %c0_253 = arith.constant 0 : index
    %253 = vector.load %arg6[%c1_249, %c2_250, %c0_251, %c0_252, %c0_253] : memref<2x3x4x1x8xf32, #tpu.memory_space<vmem>>, vector<1x1x1x1x8xf32>
    %254 = vector.shape_cast %253 : vector<1x1x1x1x8xf32> to vector<1x8xf32>
    %255 = vector.broadcast %254 : vector<1x8xf32> to vector<32x8xf32>
    %256 = arith.addf %252, %255 : vector<32x8xf32>
    %cst_254 = arith.constant dense<0.000000e+00> : vector<32x32xf32>
    %257 = tpu.matmul %242, %249, %cst_254 {dimension_numbers = #tpu.dot_dimension_numbers<[1], [1], [0], [0], [0, 0, 1, 0], [], []>} : vector<32x8xf32>, vector<32x8xf32>, vector<32x32xf32> -> vector<32x32xf32>
    %cst_255 = arith.constant 0.353553385 : f32
    %258 = vector.broadcast %cst_255 : f32 to vector<32x32xf32>
    %259 = arith.mulf %257, %258 : vector<32x32xf32>
    %260 = arith.addf %259, %2 : vector<32x32xf32>
    %cst_256 = arith.constant dense<0xFF800000> : vector<32xf32>
    %261 = vector.multi_reduction <maximumf>, %260, %cst_256 [1] : vector<32x32xf32> to vector<32xf32>
    %262 = vector.shape_cast %261 : vector<32xf32> to vector<32x1xf32>
    %263 = vector.broadcast %262 : vector<32x1xf32> to vector<32x32xf32>
    %264 = arith.subf %260, %263 : vector<32x32xf32>
    %265 = math.exp %264 : vector<32x32xf32>
    %cst_257 = arith.constant dense<0.000000e+00> : vector<32xf32>
    %266 = vector.multi_reduction <add>, %265, %cst_257 [1] : vector<32x32xf32> to vector<32xf32>
    %267 = vector.shape_cast %266 : vector<32xf32> to vector<32x1xf32>
    %268 = tpu.reciprocal %267 {approx = true} : vector<32x1xf32> -> vector<32x1xf32>
    %269 = vector.broadcast %268 : vector<32x1xf32> to vector<32x32xf32>
    %270 = arith.mulf %265, %269 : vector<32x32xf32>
    %cst_258 = arith.constant dense<0.000000e+00> : vector<32x8xf32>
    %271 = tpu.matmul %270, %256, %cst_258 {dimension_numbers = #tpu.dot_dimension_numbers<[1], [0], [0], [1], [0, 0, 1, 1], [], []>} : vector<32x32xf32>, vector<32x8xf32>, vector<32x8xf32> -> vector<32x8xf32>
    %c1_259 = arith.constant 1 : index
    %c0_260 = arith.constant 0 : index
    %c0_261 = arith.constant 0 : index
    %c0_262 = arith.constant 0 : index
    %272 = vector.load %arg7[%c1_259, %c0_260, %c0_261, %c0_262] : memref<2x4x8x32xf32, #tpu.memory_space<vmem>>, vector<1x1x8x32xf32>
    %273 = vector.shape_cast %272 : vector<1x1x8x32xf32> to vector<8x32xf32>
    %cst_263 = arith.constant dense<0.000000e+00> : vector<32x32xf32>
    %274 = tpu.matmul %271, %273, %cst_263 {dimension_numbers = #tpu.dot_dimension_numbers<[1], [0], [0], [1], [0, 0, 1, 1], [], []>} : vector<32x8xf32>, vector<8x32xf32>, vector<32x32xf32> -> vector<32x32xf32>
    %c1_264 = arith.constant 1 : index
    %c0_265 = arith.constant 0 : index
    %c1_266 = arith.constant 1 : index
    %c0_267 = arith.constant 0 : index
    %c0_268 = arith.constant 0 : index
    %275 = vector.load %arg5[%c1_264, %c0_265, %c1_266, %c0_267, %c0_268] : memref<2x3x4x32x8xf32, #tpu.memory_space<vmem>>, vector<1x1x1x32x8xf32>
    %276 = vector.shape_cast %275 : vector<1x1x1x32x8xf32> to vector<32x8xf32>
    %cst_269 = arith.constant dense<0.000000e+00> : vector<32x8xf32>
    %277 = tpu.matmul %235, %276, %cst_269 {dimension_numbers = #tpu.dot_dimension_numbers<[1], [0], [0], [1], [0, 0, 1, 1], [], []>} : vector<32x32xf32>, vector<32x8xf32>, vector<32x8xf32> -> vector<32x8xf32>
    %c1_270 = arith.constant 1 : index
    %c0_271 = arith.constant 0 : index
    %c1_272 = arith.constant 1 : index
    %c0_273 = arith.constant 0 : index
    %c0_274 = arith.constant 0 : index
    %278 = vector.load %arg6[%c1_270, %c0_271, %c1_272, %c0_273, %c0_274] : memref<2x3x4x1x8xf32, #tpu.memory_space<vmem>>, vector<1x1x1x1x8xf32>
    %279 = vector.shape_cast %278 : vector<1x1x1x1x8xf32> to vector<1x8xf32>
    %280 = vector.broadcast %279 : vector<1x8xf32> to vector<32x8xf32>
    %281 = arith.addf %277, %280 : vector<32x8xf32>
    %c1_275 = arith.constant 1 : index
    %c1_276 = arith.constant 1 : index
    %c1_277 = arith.constant 1 : index
    %c0_278 = arith.constant 0 : index
    %c0_279 = arith.constant 0 : index
    %282 = vector.load %arg5[%c1_275, %c1_276, %c1_277, %c0_278, %c0_279] : memref<2x3x4x32x8xf32, #tpu.memory_space<vmem>>, vector<1x1x1x32x8xf32>
    %283 = vector.shape_cast %282 : vector<1x1x1x32x8xf32> to vector<32x8xf32>
    %cst_280 = arith.constant dense<0.000000e+00> : vector<32x8xf32>
    %284 = tpu.matmul %235, %283, %cst_280 {dimension_numbers = #tpu.dot_dimension_numbers<[1], [0], [0], [1], [0, 0, 1, 1], [], []>} : vector<32x32xf32>, vector<32x8xf32>, vector<32x8xf32> -> vector<32x8xf32>
    %c1_281 = arith.constant 1 : index
    %c1_282 = arith.constant 1 : index
    %c1_283 = arith.constant 1 : index
    %c0_284 = arith.constant 0 : index
    %c0_285 = arith.constant 0 : index
    %285 = vector.load %arg6[%c1_281, %c1_282, %c1_283, %c0_284, %c0_285] : memref<2x3x4x1x8xf32, #tpu.memory_space<vmem>>, vector<1x1x1x1x8xf32>
    %286 = vector.shape_cast %285 : vector<1x1x1x1x8xf32> to vector<1x8xf32>
    %287 = vector.broadcast %286 : vector<1x8xf32> to vector<32x8xf32>
    %288 = arith.addf %284, %287 : vector<32x8xf32>
    %c1_286 = arith.constant 1 : index
    %c2_287 = arith.constant 2 : index
    %c1_288 = arith.constant 1 : index
    %c0_289 = arith.constant 0 : index
    %c0_290 = arith.constant 0 : index
    %289 = vector.load %arg5[%c1_286, %c2_287, %c1_288, %c0_289, %c0_290] : memref<2x3x4x32x8xf32, #tpu.memory_space<vmem>>, vector<1x1x1x32x8xf32>
    %290 = vector.shape_cast %289 : vector<1x1x1x32x8xf32> to vector<32x8xf32>
    %cst_291 = arith.constant dense<0.000000e+00> : vector<32x8xf32>
    %291 = tpu.matmul %235, %290, %cst_291 {dimension_numbers = #tpu.dot_dimension_numbers<[1], [0], [0], [1], [0, 0, 1, 1], [], []>} : vector<32x32xf32>, vector<32x8xf32>, vector<32x8xf32> -> vector<32x8xf32>
    %c1_292 = arith.constant 1 : index
    %c2_293 = arith.constant 2 : index
    %c1_294 = arith.constant 1 : index
    %c0_295 = arith.constant 0 : index
    %c0_296 = arith.constant 0 : index
    %292 = vector.load %arg6[%c1_292, %c2_293, %c1_294, %c0_295, %c0_296] : memref<2x3x4x1x8xf32, #tpu.memory_space<vmem>>, vector<1x1x1x1x8xf32>
    %293 = vector.shape_cast %292 : vector<1x1x1x1x8xf32> to vector<1x8xf32>
    %294 = vector.broadcast %293 : vector<1x8xf32> to vector<32x8xf32>
    %295 = arith.addf %291, %294 : vector<32x8xf32>
    %cst_297 = arith.constant dense<0.000000e+00> : vector<32x32xf32>
    %296 = tpu.matmul %281, %288, %cst_297 {dimension_numbers = #tpu.dot_dimension_numbers<[1], [1], [0], [0], [0, 0, 1, 0], [], []>} : vector<32x8xf32>, vector<32x8xf32>, vector<32x32xf32> -> vector<32x32xf32>
    %cst_298 = arith.constant 0.353553385 : f32
    %297 = vector.broadcast %cst_298 : f32 to vector<32x32xf32>
    %298 = arith.mulf %296, %297 : vector<32x32xf32>
    %299 = arith.addf %298, %2 : vector<32x32xf32>
    %cst_299 = arith.constant dense<0xFF800000> : vector<32xf32>
    %300 = vector.multi_reduction <maximumf>, %299, %cst_299 [1] : vector<32x32xf32> to vector<32xf32>
    %301 = vector.shape_cast %300 : vector<32xf32> to vector<32x1xf32>
    %302 = vector.broadcast %301 : vector<32x1xf32> to vector<32x32xf32>
    %303 = arith.subf %299, %302 : vector<32x32xf32>
    %304 = math.exp %303 : vector<32x32xf32>
    %cst_300 = arith.constant dense<0.000000e+00> : vector<32xf32>
    %305 = vector.multi_reduction <add>, %304, %cst_300 [1] : vector<32x32xf32> to vector<32xf32>
    %306 = vector.shape_cast %305 : vector<32xf32> to vector<32x1xf32>
    %307 = tpu.reciprocal %306 {approx = true} : vector<32x1xf32> -> vector<32x1xf32>
    %308 = vector.broadcast %307 : vector<32x1xf32> to vector<32x32xf32>
    %309 = arith.mulf %304, %308 : vector<32x32xf32>
    %cst_301 = arith.constant dense<0.000000e+00> : vector<32x8xf32>
    %310 = tpu.matmul %309, %295, %cst_301 {dimension_numbers = #tpu.dot_dimension_numbers<[1], [0], [0], [1], [0, 0, 1, 1], [], []>} : vector<32x32xf32>, vector<32x8xf32>, vector<32x8xf32> -> vector<32x8xf32>
    %c1_302 = arith.constant 1 : index
    %c1_303 = arith.constant 1 : index
    %c0_304 = arith.constant 0 : index
    %c0_305 = arith.constant 0 : index
    %311 = vector.load %arg7[%c1_302, %c1_303, %c0_304, %c0_305] : memref<2x4x8x32xf32, #tpu.memory_space<vmem>>, vector<1x1x8x32xf32>
    %312 = vector.shape_cast %311 : vector<1x1x8x32xf32> to vector<8x32xf32>
    %cst_306 = arith.constant dense<0.000000e+00> : vector<32x32xf32>
    %313 = tpu.matmul %310, %312, %cst_306 {dimension_numbers = #tpu.dot_dimension_numbers<[1], [0], [0], [1], [0, 0, 1, 1], [], []>} : vector<32x8xf32>, vector<8x32xf32>, vector<32x32xf32> -> vector<32x32xf32>
    %314 = arith.addf %274, %313 : vector<32x32xf32>
    %c1_307 = arith.constant 1 : index
    %c0_308 = arith.constant 0 : index
    %c2_309 = arith.constant 2 : index
    %c0_310 = arith.constant 0 : index
    %c0_311 = arith.constant 0 : index
    %315 = vector.load %arg5[%c1_307, %c0_308, %c2_309, %c0_310, %c0_311] : memref<2x3x4x32x8xf32, #tpu.memory_space<vmem>>, vector<1x1x1x32x8xf32>
    %316 = vector.shape_cast %315 : vector<1x1x1x32x8xf32> to vector<32x8xf32>
    %cst_312 = arith.constant dense<0.000000e+00> : vector<32x8xf32>
    %317 = tpu.matmul %235, %316, %cst_312 {dimension_numbers = #tpu.dot_dimension_numbers<[1], [0], [0], [1], [0, 0, 1, 1], [], []>} : vector<32x32xf32>, vector<32x8xf32>, vector<32x8xf32> -> vector<32x8xf32>
    %c1_313 = arith.constant 1 : index
    %c0_314 = arith.constant 0 : index
    %c2_315 = arith.constant 2 : index
    %c0_316 = arith.constant 0 : index
    %c0_317 = arith.constant 0 : index
    %318 = vector.load %arg6[%c1_313, %c0_314, %c2_315, %c0_316, %c0_317] : memref<2x3x4x1x8xf32, #tpu.memory_space<vmem>>, vector<1x1x1x1x8xf32>
    %319 = vector.shape_cast %318 : vector<1x1x1x1x8xf32> to vector<1x8xf32>
    %320 = vector.broadcast %319 : vector<1x8xf32> to vector<32x8xf32>
    %321 = arith.addf %317, %320 : vector<32x8xf32>
    %c1_318 = arith.constant 1 : index
    %c1_319 = arith.constant 1 : index
    %c2_320 = arith.constant 2 : index
    %c0_321 = arith.constant 0 : index
    %c0_322 = arith.constant 0 : index
    %322 = vector.load %arg5[%c1_318, %c1_319, %c2_320, %c0_321, %c0_322] : memref<2x3x4x32x8xf32, #tpu.memory_space<vmem>>, vector<1x1x1x32x8xf32>
    %323 = vector.shape_cast %322 : vector<1x1x1x32x8xf32> to vector<32x8xf32>
    %cst_323 = arith.constant dense<0.000000e+00> : vector<32x8xf32>
    %324 = tpu.matmul %235, %323, %cst_323 {dimension_numbers = #tpu.dot_dimension_numbers<[1], [0], [0], [1], [0, 0, 1, 1], [], []>} : vector<32x32xf32>, vector<32x8xf32>, vector<32x8xf32> -> vector<32x8xf32>
    %c1_324 = arith.constant 1 : index
    %c1_325 = arith.constant 1 : index
    %c2_326 = arith.constant 2 : index
    %c0_327 = arith.constant 0 : index
    %c0_328 = arith.constant 0 : index
    %325 = vector.load %arg6[%c1_324, %c1_325, %c2_326, %c0_327, %c0_328] : memref<2x3x4x1x8xf32, #tpu.memory_space<vmem>>, vector<1x1x1x1x8xf32>
    %326 = vector.shape_cast %325 : vector<1x1x1x1x8xf32> to vector<1x8xf32>
    %327 = vector.broadcast %326 : vector<1x8xf32> to vector<32x8xf32>
    %328 = arith.addf %324, %327 : vector<32x8xf32>
    %c1_329 = arith.constant 1 : index
    %c2_330 = arith.constant 2 : index
    %c2_331 = arith.constant 2 : index
    %c0_332 = arith.constant 0 : index
    %c0_333 = arith.constant 0 : index
    %329 = vector.load %arg5[%c1_329, %c2_330, %c2_331, %c0_332, %c0_333] : memref<2x3x4x32x8xf32, #tpu.memory_space<vmem>>, vector<1x1x1x32x8xf32>
    %330 = vector.shape_cast %329 : vector<1x1x1x32x8xf32> to vector<32x8xf32>
    %cst_334 = arith.constant dense<0.000000e+00> : vector<32x8xf32>
    %331 = tpu.matmul %235, %330, %cst_334 {dimension_numbers = #tpu.dot_dimension_numbers<[1], [0], [0], [1], [0, 0, 1, 1], [], []>} : vector<32x32xf32>, vector<32x8xf32>, vector<32x8xf32> -> vector<32x8xf32>
    %c1_335 = arith.constant 1 : index
    %c2_336 = arith.constant 2 : index
    %c2_337 = arith.constant 2 : index
    %c0_338 = arith.constant 0 : index
    %c0_339 = arith.constant 0 : index
    %332 = vector.load %arg6[%c1_335, %c2_336, %c2_337, %c0_338, %c0_339] : memref<2x3x4x1x8xf32, #tpu.memory_space<vmem>>, vector<1x1x1x1x8xf32>
    %333 = vector.shape_cast %332 : vector<1x1x1x1x8xf32> to vector<1x8xf32>
    %334 = vector.broadcast %333 : vector<1x8xf32> to vector<32x8xf32>
    %335 = arith.addf %331, %334 : vector<32x8xf32>
    %cst_340 = arith.constant dense<0.000000e+00> : vector<32x32xf32>
    %336 = tpu.matmul %321, %328, %cst_340 {dimension_numbers = #tpu.dot_dimension_numbers<[1], [1], [0], [0], [0, 0, 1, 0], [], []>} : vector<32x8xf32>, vector<32x8xf32>, vector<32x32xf32> -> vector<32x32xf32>
    %cst_341 = arith.constant 0.353553385 : f32
    %337 = vector.broadcast %cst_341 : f32 to vector<32x32xf32>
    %338 = arith.mulf %336, %337 : vector<32x32xf32>
    %339 = arith.addf %338, %2 : vector<32x32xf32>
    %cst_342 = arith.constant dense<0xFF800000> : vector<32xf32>
    %340 = vector.multi_reduction <maximumf>, %339, %cst_342 [1] : vector<32x32xf32> to vector<32xf32>
    %341 = vector.shape_cast %340 : vector<32xf32> to vector<32x1xf32>
    %342 = vector.broadcast %341 : vector<32x1xf32> to vector<32x32xf32>
    %343 = arith.subf %339, %342 : vector<32x32xf32>
    %344 = math.exp %343 : vector<32x32xf32>
    %cst_343 = arith.constant dense<0.000000e+00> : vector<32xf32>
    %345 = vector.multi_reduction <add>, %344, %cst_343 [1] : vector<32x32xf32> to vector<32xf32>
    %346 = vector.shape_cast %345 : vector<32xf32> to vector<32x1xf32>
    %347 = tpu.reciprocal %346 {approx = true} : vector<32x1xf32> -> vector<32x1xf32>
    %348 = vector.broadcast %347 : vector<32x1xf32> to vector<32x32xf32>
    %349 = arith.mulf %344, %348 : vector<32x32xf32>
    %cst_344 = arith.constant dense<0.000000e+00> : vector<32x8xf32>
    %350 = tpu.matmul %349, %335, %cst_344 {dimension_numbers = #tpu.dot_dimension_numbers<[1], [0], [0], [1], [0, 0, 1, 1], [], []>} : vector<32x32xf32>, vector<32x8xf32>, vector<32x8xf32> -> vector<32x8xf32>
    %c1_345 = arith.constant 1 : index
    %c2_346 = arith.constant 2 : index
    %c0_347 = arith.constant 0 : index
    %c0_348 = arith.constant 0 : index
    %351 = vector.load %arg7[%c1_345, %c2_346, %c0_347, %c0_348] : memref<2x4x8x32xf32, #tpu.memory_space<vmem>>, vector<1x1x8x32xf32>
    %352 = vector.shape_cast %351 : vector<1x1x8x32xf32> to vector<8x32xf32>
    %cst_349 = arith.constant dense<0.000000e+00> : vector<32x32xf32>
    %353 = tpu.matmul %350, %352, %cst_349 {dimension_numbers = #tpu.dot_dimension_numbers<[1], [0], [0], [1], [0, 0, 1, 1], [], []>} : vector<32x8xf32>, vector<8x32xf32>, vector<32x32xf32> -> vector<32x32xf32>
    %354 = arith.addf %314, %353 : vector<32x32xf32>
    %c1_350 = arith.constant 1 : index
    %c0_351 = arith.constant 0 : index
    %c3_352 = arith.constant 3 : index
    %c0_353 = arith.constant 0 : index
    %c0_354 = arith.constant 0 : index
    %355 = vector.load %arg5[%c1_350, %c0_351, %c3_352, %c0_353, %c0_354] : memref<2x3x4x32x8xf32, #tpu.memory_space<vmem>>, vector<1x1x1x32x8xf32>
    %356 = vector.shape_cast %355 : vector<1x1x1x32x8xf32> to vector<32x8xf32>
    %cst_355 = arith.constant dense<0.000000e+00> : vector<32x8xf32>
    %357 = tpu.matmul %235, %356, %cst_355 {dimension_numbers = #tpu.dot_dimension_numbers<[1], [0], [0], [1], [0, 0, 1, 1], [], []>} : vector<32x32xf32>, vector<32x8xf32>, vector<32x8xf32> -> vector<32x8xf32>
    %c1_356 = arith.constant 1 : index
    %c0_357 = arith.constant 0 : index
    %c3_358 = arith.constant 3 : index
    %c0_359 = arith.constant 0 : index
    %c0_360 = arith.constant 0 : index
    %358 = vector.load %arg6[%c1_356, %c0_357, %c3_358, %c0_359, %c0_360] : memref<2x3x4x1x8xf32, #tpu.memory_space<vmem>>, vector<1x1x1x1x8xf32>
    %359 = vector.shape_cast %358 : vector<1x1x1x1x8xf32> to vector<1x8xf32>
    %360 = vector.broadcast %359 : vector<1x8xf32> to vector<32x8xf32>
    %361 = arith.addf %357, %360 : vector<32x8xf32>
    %c1_361 = arith.constant 1 : index
    %c1_362 = arith.constant 1 : index
    %c3_363 = arith.constant 3 : index
    %c0_364 = arith.constant 0 : index
    %c0_365 = arith.constant 0 : index
    %362 = vector.load %arg5[%c1_361, %c1_362, %c3_363, %c0_364, %c0_365] : memref<2x3x4x32x8xf32, #tpu.memory_space<vmem>>, vector<1x1x1x32x8xf32>
    %363 = vector.shape_cast %362 : vector<1x1x1x32x8xf32> to vector<32x8xf32>
    %cst_366 = arith.constant dense<0.000000e+00> : vector<32x8xf32>
    %364 = tpu.matmul %235, %363, %cst_366 {dimension_numbers = #tpu.dot_dimension_numbers<[1], [0], [0], [1], [0, 0, 1, 1], [], []>} : vector<32x32xf32>, vector<32x8xf32>, vector<32x8xf32> -> vector<32x8xf32>
    %c1_367 = arith.constant 1 : index
    %c1_368 = arith.constant 1 : index
    %c3_369 = arith.constant 3 : index
    %c0_370 = arith.constant 0 : index
    %c0_371 = arith.constant 0 : index
    %365 = vector.load %arg6[%c1_367, %c1_368, %c3_369, %c0_370, %c0_371] : memref<2x3x4x1x8xf32, #tpu.memory_space<vmem>>, vector<1x1x1x1x8xf32>
    %366 = vector.shape_cast %365 : vector<1x1x1x1x8xf32> to vector<1x8xf32>
    %367 = vector.broadcast %366 : vector<1x8xf32> to vector<32x8xf32>
    %368 = arith.addf %364, %367 : vector<32x8xf32>
    %c1_372 = arith.constant 1 : index
    %c2_373 = arith.constant 2 : index
    %c3_374 = arith.constant 3 : index
    %c0_375 = arith.constant 0 : index
    %c0_376 = arith.constant 0 : index
    %369 = vector.load %arg5[%c1_372, %c2_373, %c3_374, %c0_375, %c0_376] : memref<2x3x4x32x8xf32, #tpu.memory_space<vmem>>, vector<1x1x1x32x8xf32>
    %370 = vector.shape_cast %369 : vector<1x1x1x32x8xf32> to vector<32x8xf32>
    %cst_377 = arith.constant dense<0.000000e+00> : vector<32x8xf32>
    %371 = tpu.matmul %235, %370, %cst_377 {dimension_numbers = #tpu.dot_dimension_numbers<[1], [0], [0], [1], [0, 0, 1, 1], [], []>} : vector<32x32xf32>, vector<32x8xf32>, vector<32x8xf32> -> vector<32x8xf32>
    %c1_378 = arith.constant 1 : index
    %c2_379 = arith.constant 2 : index
    %c3_380 = arith.constant 3 : index
    %c0_381 = arith.constant 0 : index
    %c0_382 = arith.constant 0 : index
    %372 = vector.load %arg6[%c1_378, %c2_379, %c3_380, %c0_381, %c0_382] : memref<2x3x4x1x8xf32, #tpu.memory_space<vmem>>, vector<1x1x1x1x8xf32>
    %373 = vector.shape_cast %372 : vector<1x1x1x1x8xf32> to vector<1x8xf32>
    %374 = vector.broadcast %373 : vector<1x8xf32> to vector<32x8xf32>
    %375 = arith.addf %371, %374 : vector<32x8xf32>
    %cst_383 = arith.constant dense<0.000000e+00> : vector<32x32xf32>
    %376 = tpu.matmul %361, %368, %cst_383 {dimension_numbers = #tpu.dot_dimension_numbers<[1], [1], [0], [0], [0, 0, 1, 0], [], []>} : vector<32x8xf32>, vector<32x8xf32>, vector<32x32xf32> -> vector<32x32xf32>
    %cst_384 = arith.constant 0.353553385 : f32
    %377 = vector.broadcast %cst_384 : f32 to vector<32x32xf32>
    %378 = arith.mulf %376, %377 : vector<32x32xf32>
    %379 = arith.addf %378, %2 : vector<32x32xf32>
    %cst_385 = arith.constant dense<0xFF800000> : vector<32xf32>
    %380 = vector.multi_reduction <maximumf>, %379, %cst_385 [1] : vector<32x32xf32> to vector<32xf32>
    %381 = vector.shape_cast %380 : vector<32xf32> to vector<32x1xf32>
    %382 = vector.broadcast %381 : vector<32x1xf32> to vector<32x32xf32>
    %383 = arith.subf %379, %382 : vector<32x32xf32>
    %384 = math.exp %383 : vector<32x32xf32>
    %cst_386 = arith.constant dense<0.000000e+00> : vector<32xf32>
    %385 = vector.multi_reduction <add>, %384, %cst_386 [1] : vector<32x32xf32> to vector<32xf32>
    %386 = vector.shape_cast %385 : vector<32xf32> to vector<32x1xf32>
    %387 = tpu.reciprocal %386 {approx = true} : vector<32x1xf32> -> vector<32x1xf32>
    %388 = vector.broadcast %387 : vector<32x1xf32> to vector<32x32xf32>
    %389 = arith.mulf %384, %388 : vector<32x32xf32>
    %cst_387 = arith.constant dense<0.000000e+00> : vector<32x8xf32>
    %390 = tpu.matmul %389, %375, %cst_387 {dimension_numbers = #tpu.dot_dimension_numbers<[1], [0], [0], [1], [0, 0, 1, 1], [], []>} : vector<32x32xf32>, vector<32x8xf32>, vector<32x8xf32> -> vector<32x8xf32>
    %c1_388 = arith.constant 1 : index
    %c3_389 = arith.constant 3 : index
    %c0_390 = arith.constant 0 : index
    %c0_391 = arith.constant 0 : index
    %391 = vector.load %arg7[%c1_388, %c3_389, %c0_390, %c0_391] : memref<2x4x8x32xf32, #tpu.memory_space<vmem>>, vector<1x1x8x32xf32>
    %392 = vector.shape_cast %391 : vector<1x1x8x32xf32> to vector<8x32xf32>
    %cst_392 = arith.constant dense<0.000000e+00> : vector<32x32xf32>
    %393 = tpu.matmul %390, %392, %cst_392 {dimension_numbers = #tpu.dot_dimension_numbers<[1], [0], [0], [1], [0, 0, 1, 1], [], []>} : vector<32x8xf32>, vector<8x32xf32>, vector<32x32xf32> -> vector<32x32xf32>
    %394 = arith.addf %354, %393 : vector<32x32xf32>
    %c1_393 = arith.constant 1 : index
    %c0_394 = arith.constant 0 : index
    %c0_395 = arith.constant 0 : index
    %395 = vector.load %arg8[%c1_393, %c0_394, %c0_395] : memref<2x1x32xf32, #tpu.memory_space<vmem>>, vector<1x1x32xf32>
    %396 = vector.shape_cast %395 : vector<1x1x32xf32> to vector<1x32xf32>
    %397 = vector.broadcast %396 : vector<1x32xf32> to vector<32x32xf32>
    %398 = arith.addf %394, %397 : vector<32x32xf32>
    %399 = arith.addf %235, %398 : vector<32x32xf32>
    %c1_396 = arith.constant 1 : index
    %c0_397 = arith.constant 0 : index
    %c0_398 = arith.constant 0 : index
    %c0_399 = arith.constant 0 : index
    %400 = vector.load %arg9[%c1_396, %c0_397, %c0_398, %c0_399] : memref<2x2x1x32xf32, #tpu.memory_space<vmem>>, vector<1x1x1x32xf32>
    %401 = vector.shape_cast %400 : vector<1x1x1x32xf32> to vector<1x32xf32>
    %c1_400 = arith.constant 1 : index
    %c1_401 = arith.constant 1 : index
    %c0_402 = arith.constant 0 : index
    %c0_403 = arith.constant 0 : index
    %402 = vector.load %arg9[%c1_400, %c1_401, %c0_402, %c0_403] : memref<2x2x1x32xf32, #tpu.memory_space<vmem>>, vector<1x1x1x32xf32>
    %403 = vector.shape_cast %402 : vector<1x1x1x32xf32> to vector<1x32xf32>
    %cst_404 = arith.constant dense<0.000000e+00> : vector<32xf32>
    %404 = vector.multi_reduction <add>, %399, %cst_404 [1] : vector<32x32xf32> to vector<32xf32>
    %405 = vector.shape_cast %404 : vector<32xf32> to vector<32x1xf32>
    %cst_405 = arith.constant 3.200000e+01 : f32
    %406 = vector.broadcast %cst_405 : f32 to vector<32x1xf32>
    %407 = arith.divf %405, %406 : vector<32x1xf32>
    %408 = vector.broadcast %407 : vector<32x1xf32> to vector<32x32xf32>
    %409 = arith.subf %399, %408 : vector<32x32xf32>
    %410 = arith.mulf %409, %409 : vector<32x32xf32>
    %cst_406 = arith.constant dense<0.000000e+00> : vector<32xf32>
    %411 = vector.multi_reduction <add>, %410, %cst_406 [1] : vector<32x32xf32> to vector<32xf32>
    %412 = vector.shape_cast %411 : vector<32xf32> to vector<32x1xf32>
    %cst_407 = arith.constant 0.0322580636 : f32
    %413 = vector.broadcast %cst_407 : f32 to vector<32x1xf32>
    %414 = arith.mulf %412, %413 : vector<32x1xf32>
    %415 = math.sqrt %414 : vector<32x1xf32>
    %cst_408 = arith.constant 9.99999997E-7 : f32
    %416 = vector.broadcast %cst_408 : f32 to vector<32x1xf32>
    %417 = arith.addf %415, %416 : vector<32x1xf32>
    %418 = tpu.reciprocal %417 {approx = true} : vector<32x1xf32> -> vector<32x1xf32>
    %419 = vector.broadcast %418 : vector<32x1xf32> to vector<32x32xf32>
    %420 = arith.mulf %409, %419 : vector<32x32xf32>
    %421 = vector.broadcast %401 : vector<1x32xf32> to vector<32x32xf32>
    %422 = arith.mulf %421, %420 : vector<32x32xf32>
    %423 = vector.broadcast %403 : vector<1x32xf32> to vector<32x32xf32>
    %424 = arith.addf %422, %423 : vector<32x32xf32>
    %c1_409 = arith.constant 1 : index
    %c0_410 = arith.constant 0 : index
    %c0_411 = arith.constant 0 : index
    %425 = vector.load %arg10[%c1_409, %c0_410, %c0_411] : memref<2x32x64xf32, #tpu.memory_space<vmem>>, vector<1x32x64xf32>
    %426 = vector.shape_cast %425 : vector<1x32x64xf32> to vector<32x64xf32>
    %cst_412 = arith.constant dense<0.000000e+00> : vector<32x64xf32>
    %427 = tpu.matmul %424, %426, %cst_412 {dimension_numbers = #tpu.dot_dimension_numbers<[1], [0], [0], [1], [0, 0, 1, 1], [], []>} : vector<32x32xf32>, vector<32x64xf32>, vector<32x64xf32> -> vector<32x64xf32>
    %c1_413 = arith.constant 1 : index
    %c0_414 = arith.constant 0 : index
    %c0_415 = arith.constant 0 : index
    %428 = vector.load %arg11[%c1_413, %c0_414, %c0_415] : memref<2x1x64xf32, #tpu.memory_space<vmem>>, vector<1x1x64xf32>
    %429 = vector.shape_cast %428 : vector<1x1x64xf32> to vector<1x64xf32>
    %430 = vector.broadcast %429 : vector<1x64xf32> to vector<32x64xf32>
    %431 = arith.addf %427, %430 : vector<32x64xf32>
    %cst_416 = arith.constant 0.000000e+00 : f32
    %432 = vector.broadcast %cst_416 : f32 to vector<32x64xf32>
    %433 = arith.maximumf %431, %432 : vector<32x64xf32>
    %c1_417 = arith.constant 1 : index
    %c0_418 = arith.constant 0 : index
    %c0_419 = arith.constant 0 : index
    %434 = vector.load %arg12[%c1_417, %c0_418, %c0_419] : memref<2x64x32xf32, #tpu.memory_space<vmem>>, vector<1x64x32xf32>
    %435 = vector.shape_cast %434 : vector<1x64x32xf32> to vector<64x32xf32>
    %cst_420 = arith.constant dense<0.000000e+00> : vector<32x32xf32>
    %436 = tpu.matmul %433, %435, %cst_420 {dimension_numbers = #tpu.dot_dimension_numbers<[1], [0], [0], [1], [0, 0, 1, 1], [], []>} : vector<32x64xf32>, vector<64x32xf32>, vector<32x32xf32> -> vector<32x32xf32>
    %c1_421 = arith.constant 1 : index
    %c0_422 = arith.constant 0 : index
    %c0_423 = arith.constant 0 : index
    %437 = vector.load %arg13[%c1_421, %c0_422, %c0_423] : memref<2x1x32xf32, #tpu.memory_space<vmem>>, vector<1x1x32xf32>
    %438 = vector.shape_cast %437 : vector<1x1x32xf32> to vector<1x32xf32>
    %439 = vector.broadcast %438 : vector<1x32xf32> to vector<32x32xf32>
    %440 = arith.addf %436, %439 : vector<32x32xf32>
    %441 = arith.addf %424, %440 : vector<32x32xf32>
    %c1_424 = arith.constant 1 : index
    %c0_425 = arith.constant 0 : index
    %c0_426 = arith.constant 0 : index
    %c0_427 = arith.constant 0 : index
    %442 = vector.load %arg14[%c1_424, %c0_425, %c0_426, %c0_427] : memref<2x2x1x32xf32, #tpu.memory_space<vmem>>, vector<1x1x1x32xf32>
    %443 = vector.shape_cast %442 : vector<1x1x1x32xf32> to vector<1x32xf32>
    %c1_428 = arith.constant 1 : index
    %c1_429 = arith.constant 1 : index
    %c0_430 = arith.constant 0 : index
    %c0_431 = arith.constant 0 : index
    %444 = vector.load %arg14[%c1_428, %c1_429, %c0_430, %c0_431] : memref<2x2x1x32xf32, #tpu.memory_space<vmem>>, vector<1x1x1x32xf32>
    %445 = vector.shape_cast %444 : vector<1x1x1x32xf32> to vector<1x32xf32>
    %cst_432 = arith.constant dense<0.000000e+00> : vector<32xf32>
    %446 = vector.multi_reduction <add>, %441, %cst_432 [1] : vector<32x32xf32> to vector<32xf32>
    %447 = vector.shape_cast %446 : vector<32xf32> to vector<32x1xf32>
    %cst_433 = arith.constant 3.200000e+01 : f32
    %448 = vector.broadcast %cst_433 : f32 to vector<32x1xf32>
    %449 = arith.divf %447, %448 : vector<32x1xf32>
    %450 = vector.broadcast %449 : vector<32x1xf32> to vector<32x32xf32>
    %451 = arith.subf %441, %450 : vector<32x32xf32>
    %452 = arith.mulf %451, %451 : vector<32x32xf32>
    %cst_434 = arith.constant dense<0.000000e+00> : vector<32xf32>
    %453 = vector.multi_reduction <add>, %452, %cst_434 [1] : vector<32x32xf32> to vector<32xf32>
    %454 = vector.shape_cast %453 : vector<32xf32> to vector<32x1xf32>
    %cst_435 = arith.constant 0.0322580636 : f32
    %455 = vector.broadcast %cst_435 : f32 to vector<32x1xf32>
    %456 = arith.mulf %454, %455 : vector<32x1xf32>
    %457 = math.sqrt %456 : vector<32x1xf32>
    %cst_436 = arith.constant 9.99999997E-7 : f32
    %458 = vector.broadcast %cst_436 : f32 to vector<32x1xf32>
    %459 = arith.addf %457, %458 : vector<32x1xf32>
    %460 = tpu.reciprocal %459 {approx = true} : vector<32x1xf32> -> vector<32x1xf32>
    %461 = vector.broadcast %460 : vector<32x1xf32> to vector<32x32xf32>
    %462 = arith.mulf %451, %461 : vector<32x32xf32>
    %463 = vector.broadcast %443 : vector<1x32xf32> to vector<32x32xf32>
    %464 = arith.mulf %463, %462 : vector<32x32xf32>
    %465 = vector.broadcast %445 : vector<1x32xf32> to vector<32x32xf32>
    %466 = arith.addf %464, %465 : vector<32x32xf32>
    %c0_437 = arith.constant 0 : index
    %c0_438 = arith.constant 0 : index
    %c0_439 = arith.constant 0 : index
    %c0_440 = arith.constant 0 : index
    %c0_441 = arith.constant 0 : index
    %467 = vector.load %arg15[%c0_437, %c0_438, %c0_439, %c0_440, %c0_441] : memref<2x3x4x32x8xf32, #tpu.memory_space<vmem>>, vector<1x1x1x32x8xf32>
    %468 = vector.shape_cast %467 : vector<1x1x1x32x8xf32> to vector<32x8xf32>
    %cst_442 = arith.constant dense<0.000000e+00> : vector<16x8xf32>
    %469 = tpu.matmul %1, %468, %cst_442 {dimension_numbers = #tpu.dot_dimension_numbers<[1], [0], [0], [1], [0, 0, 1, 1], [], []>} : vector<16x32xf32>, vector<32x8xf32>, vector<16x8xf32> -> vector<16x8xf32>
    %c0_443 = arith.constant 0 : index
    %c0_444 = arith.constant 0 : index
    %c0_445 = arith.constant 0 : index
    %c0_446 = arith.constant 0 : index
    %c0_447 = arith.constant 0 : index
    %470 = vector.load %arg16[%c0_443, %c0_444, %c0_445, %c0_446, %c0_447] : memref<2x3x4x1x8xf32, #tpu.memory_space<vmem>>, vector<1x1x1x1x8xf32>
    %471 = vector.shape_cast %470 : vector<1x1x1x1x8xf32> to vector<1x8xf32>
    %472 = vector.broadcast %471 : vector<1x8xf32> to vector<16x8xf32>
    %473 = arith.addf %469, %472 : vector<16x8xf32>
    %c0_448 = arith.constant 0 : index
    %c1_449 = arith.constant 1 : index
    %c0_450 = arith.constant 0 : index
    %c0_451 = arith.constant 0 : index
    %c0_452 = arith.constant 0 : index
    %474 = vector.load %arg15[%c0_448, %c1_449, %c0_450, %c0_451, %c0_452] : memref<2x3x4x32x8xf32, #tpu.memory_space<vmem>>, vector<1x1x1x32x8xf32>
    %475 = vector.shape_cast %474 : vector<1x1x1x32x8xf32> to vector<32x8xf32>
    %cst_453 = arith.constant dense<0.000000e+00> : vector<16x8xf32>
    %476 = tpu.matmul %1, %475, %cst_453 {dimension_numbers = #tpu.dot_dimension_numbers<[1], [0], [0], [1], [0, 0, 1, 1], [], []>} : vector<16x32xf32>, vector<32x8xf32>, vector<16x8xf32> -> vector<16x8xf32>
    %c0_454 = arith.constant 0 : index
    %c1_455 = arith.constant 1 : index
    %c0_456 = arith.constant 0 : index
    %c0_457 = arith.constant 0 : index
    %c0_458 = arith.constant 0 : index
    %477 = vector.load %arg16[%c0_454, %c1_455, %c0_456, %c0_457, %c0_458] : memref<2x3x4x1x8xf32, #tpu.memory_space<vmem>>, vector<1x1x1x1x8xf32>
    %478 = vector.shape_cast %477 : vector<1x1x1x1x8xf32> to vector<1x8xf32>
    %479 = vector.broadcast %478 : vector<1x8xf32> to vector<16x8xf32>
    %480 = arith.addf %476, %479 : vector<16x8xf32>
    %c0_459 = arith.constant 0 : index
    %c2_460 = arith.constant 2 : index
    %c0_461 = arith.constant 0 : index
    %c0_462 = arith.constant 0 : index
    %c0_463 = arith.constant 0 : index
    %481 = vector.load %arg15[%c0_459, %c2_460, %c0_461, %c0_462, %c0_463] : memref<2x3x4x32x8xf32, #tpu.memory_space<vmem>>, vector<1x1x1x32x8xf32>
    %482 = vector.shape_cast %481 : vector<1x1x1x32x8xf32> to vector<32x8xf32>
    %cst_464 = arith.constant dense<0.000000e+00> : vector<16x8xf32>
    %483 = tpu.matmul %1, %482, %cst_464 {dimension_numbers = #tpu.dot_dimension_numbers<[1], [0], [0], [1], [0, 0, 1, 1], [], []>} : vector<16x32xf32>, vector<32x8xf32>, vector<16x8xf32> -> vector<16x8xf32>
    %c0_465 = arith.constant 0 : index
    %c2_466 = arith.constant 2 : index
    %c0_467 = arith.constant 0 : index
    %c0_468 = arith.constant 0 : index
    %c0_469 = arith.constant 0 : index
    %484 = vector.load %arg16[%c0_465, %c2_466, %c0_467, %c0_468, %c0_469] : memref<2x3x4x1x8xf32, #tpu.memory_space<vmem>>, vector<1x1x1x1x8xf32>
    %485 = vector.shape_cast %484 : vector<1x1x1x1x8xf32> to vector<1x8xf32>
    %486 = vector.broadcast %485 : vector<1x8xf32> to vector<16x8xf32>
    %487 = arith.addf %483, %486 : vector<16x8xf32>
    %cst_470 = arith.constant dense<0.000000e+00> : vector<16x16xf32>
    %488 = tpu.matmul %473, %480, %cst_470 {dimension_numbers = #tpu.dot_dimension_numbers<[1], [1], [0], [0], [0, 0, 1, 0], [], []>} : vector<16x8xf32>, vector<16x8xf32>, vector<16x16xf32> -> vector<16x16xf32>
    %cst_471 = arith.constant 0.353553385 : f32
    %489 = vector.broadcast %cst_471 : f32 to vector<16x16xf32>
    %490 = arith.mulf %488, %489 : vector<16x16xf32>
    %491 = arith.addf %490, %3 : vector<16x16xf32>
    %cst_472 = arith.constant dense<0xFF800000> : vector<16xf32>
    %492 = vector.multi_reduction <maximumf>, %491, %cst_472 [1] : vector<16x16xf32> to vector<16xf32>
    %493 = vector.shape_cast %492 : vector<16xf32> to vector<16x1xf32>
    %494 = vector.broadcast %493 : vector<16x1xf32> to vector<16x16xf32>
    %495 = arith.subf %491, %494 : vector<16x16xf32>
    %496 = math.exp %495 : vector<16x16xf32>
    %cst_473 = arith.constant dense<0.000000e+00> : vector<16xf32>
    %497 = vector.multi_reduction <add>, %496, %cst_473 [1] : vector<16x16xf32> to vector<16xf32>
    %498 = vector.shape_cast %497 : vector<16xf32> to vector<16x1xf32>
    %499 = tpu.reciprocal %498 {approx = true} : vector<16x1xf32> -> vector<16x1xf32>
    %500 = vector.broadcast %499 : vector<16x1xf32> to vector<16x16xf32>
    %501 = arith.mulf %496, %500 : vector<16x16xf32>
    %cst_474 = arith.constant dense<0.000000e+00> : vector<16x8xf32>
    %502 = tpu.matmul %501, %487, %cst_474 {dimension_numbers = #tpu.dot_dimension_numbers<[1], [0], [0], [1], [0, 0, 1, 1], [], []>} : vector<16x16xf32>, vector<16x8xf32>, vector<16x8xf32> -> vector<16x8xf32>
    %c0_475 = arith.constant 0 : index
    %c0_476 = arith.constant 0 : index
    %c0_477 = arith.constant 0 : index
    %c0_478 = arith.constant 0 : index
    %503 = vector.load %arg17[%c0_475, %c0_476, %c0_477, %c0_478] : memref<2x4x8x32xf32, #tpu.memory_space<vmem>>, vector<1x1x8x32xf32>
    %504 = vector.shape_cast %503 : vector<1x1x8x32xf32> to vector<8x32xf32>
    %cst_479 = arith.constant dense<0.000000e+00> : vector<16x32xf32>
    %505 = tpu.matmul %502, %504, %cst_479 {dimension_numbers = #tpu.dot_dimension_numbers<[1], [0], [0], [1], [0, 0, 1, 1], [], []>} : vector<16x8xf32>, vector<8x32xf32>, vector<16x32xf32> -> vector<16x32xf32>
    %c0_480 = arith.constant 0 : index
    %c0_481 = arith.constant 0 : index
    %c1_482 = arith.constant 1 : index
    %c0_483 = arith.constant 0 : index
    %c0_484 = arith.constant 0 : index
    %506 = vector.load %arg15[%c0_480, %c0_481, %c1_482, %c0_483, %c0_484] : memref<2x3x4x32x8xf32, #tpu.memory_space<vmem>>, vector<1x1x1x32x8xf32>
    %507 = vector.shape_cast %506 : vector<1x1x1x32x8xf32> to vector<32x8xf32>
    %cst_485 = arith.constant dense<0.000000e+00> : vector<16x8xf32>
    %508 = tpu.matmul %1, %507, %cst_485 {dimension_numbers = #tpu.dot_dimension_numbers<[1], [0], [0], [1], [0, 0, 1, 1], [], []>} : vector<16x32xf32>, vector<32x8xf32>, vector<16x8xf32> -> vector<16x8xf32>
    %c0_486 = arith.constant 0 : index
    %c0_487 = arith.constant 0 : index
    %c1_488 = arith.constant 1 : index
    %c0_489 = arith.constant 0 : index
    %c0_490 = arith.constant 0 : index
    %509 = vector.load %arg16[%c0_486, %c0_487, %c1_488, %c0_489, %c0_490] : memref<2x3x4x1x8xf32, #tpu.memory_space<vmem>>, vector<1x1x1x1x8xf32>
    %510 = vector.shape_cast %509 : vector<1x1x1x1x8xf32> to vector<1x8xf32>
    %511 = vector.broadcast %510 : vector<1x8xf32> to vector<16x8xf32>
    %512 = arith.addf %508, %511 : vector<16x8xf32>
    %c0_491 = arith.constant 0 : index
    %c1_492 = arith.constant 1 : index
    %c1_493 = arith.constant 1 : index
    %c0_494 = arith.constant 0 : index
    %c0_495 = arith.constant 0 : index
    %513 = vector.load %arg15[%c0_491, %c1_492, %c1_493, %c0_494, %c0_495] : memref<2x3x4x32x8xf32, #tpu.memory_space<vmem>>, vector<1x1x1x32x8xf32>
    %514 = vector.shape_cast %513 : vector<1x1x1x32x8xf32> to vector<32x8xf32>
    %cst_496 = arith.constant dense<0.000000e+00> : vector<16x8xf32>
    %515 = tpu.matmul %1, %514, %cst_496 {dimension_numbers = #tpu.dot_dimension_numbers<[1], [0], [0], [1], [0, 0, 1, 1], [], []>} : vector<16x32xf32>, vector<32x8xf32>, vector<16x8xf32> -> vector<16x8xf32>
    %c0_497 = arith.constant 0 : index
    %c1_498 = arith.constant 1 : index
    %c1_499 = arith.constant 1 : index
    %c0_500 = arith.constant 0 : index
    %c0_501 = arith.constant 0 : index
    %516 = vector.load %arg16[%c0_497, %c1_498, %c1_499, %c0_500, %c0_501] : memref<2x3x4x1x8xf32, #tpu.memory_space<vmem>>, vector<1x1x1x1x8xf32>
    %517 = vector.shape_cast %516 : vector<1x1x1x1x8xf32> to vector<1x8xf32>
    %518 = vector.broadcast %517 : vector<1x8xf32> to vector<16x8xf32>
    %519 = arith.addf %515, %518 : vector<16x8xf32>
    %c0_502 = arith.constant 0 : index
    %c2_503 = arith.constant 2 : index
    %c1_504 = arith.constant 1 : index
    %c0_505 = arith.constant 0 : index
    %c0_506 = arith.constant 0 : index
    %520 = vector.load %arg15[%c0_502, %c2_503, %c1_504, %c0_505, %c0_506] : memref<2x3x4x32x8xf32, #tpu.memory_space<vmem>>, vector<1x1x1x32x8xf32>
    %521 = vector.shape_cast %520 : vector<1x1x1x32x8xf32> to vector<32x8xf32>
    %cst_507 = arith.constant dense<0.000000e+00> : vector<16x8xf32>
    %522 = tpu.matmul %1, %521, %cst_507 {dimension_numbers = #tpu.dot_dimension_numbers<[1], [0], [0], [1], [0, 0, 1, 1], [], []>} : vector<16x32xf32>, vector<32x8xf32>, vector<16x8xf32> -> vector<16x8xf32>
    %c0_508 = arith.constant 0 : index
    %c2_509 = arith.constant 2 : index
    %c1_510 = arith.constant 1 : index
    %c0_511 = arith.constant 0 : index
    %c0_512 = arith.constant 0 : index
    %523 = vector.load %arg16[%c0_508, %c2_509, %c1_510, %c0_511, %c0_512] : memref<2x3x4x1x8xf32, #tpu.memory_space<vmem>>, vector<1x1x1x1x8xf32>
    %524 = vector.shape_cast %523 : vector<1x1x1x1x8xf32> to vector<1x8xf32>
    %525 = vector.broadcast %524 : vector<1x8xf32> to vector<16x8xf32>
    %526 = arith.addf %522, %525 : vector<16x8xf32>
    %cst_513 = arith.constant dense<0.000000e+00> : vector<16x16xf32>
    %527 = tpu.matmul %512, %519, %cst_513 {dimension_numbers = #tpu.dot_dimension_numbers<[1], [1], [0], [0], [0, 0, 1, 0], [], []>} : vector<16x8xf32>, vector<16x8xf32>, vector<16x16xf32> -> vector<16x16xf32>
    %cst_514 = arith.constant 0.353553385 : f32
    %528 = vector.broadcast %cst_514 : f32 to vector<16x16xf32>
    %529 = arith.mulf %527, %528 : vector<16x16xf32>
    %530 = arith.addf %529, %3 : vector<16x16xf32>
    %cst_515 = arith.constant dense<0xFF800000> : vector<16xf32>
    %531 = vector.multi_reduction <maximumf>, %530, %cst_515 [1] : vector<16x16xf32> to vector<16xf32>
    %532 = vector.shape_cast %531 : vector<16xf32> to vector<16x1xf32>
    %533 = vector.broadcast %532 : vector<16x1xf32> to vector<16x16xf32>
    %534 = arith.subf %530, %533 : vector<16x16xf32>
    %535 = math.exp %534 : vector<16x16xf32>
    %cst_516 = arith.constant dense<0.000000e+00> : vector<16xf32>
    %536 = vector.multi_reduction <add>, %535, %cst_516 [1] : vector<16x16xf32> to vector<16xf32>
    %537 = vector.shape_cast %536 : vector<16xf32> to vector<16x1xf32>
    %538 = tpu.reciprocal %537 {approx = true} : vector<16x1xf32> -> vector<16x1xf32>
    %539 = vector.broadcast %538 : vector<16x1xf32> to vector<16x16xf32>
    %540 = arith.mulf %535, %539 : vector<16x16xf32>
    %cst_517 = arith.constant dense<0.000000e+00> : vector<16x8xf32>
    %541 = tpu.matmul %540, %526, %cst_517 {dimension_numbers = #tpu.dot_dimension_numbers<[1], [0], [0], [1], [0, 0, 1, 1], [], []>} : vector<16x16xf32>, vector<16x8xf32>, vector<16x8xf32> -> vector<16x8xf32>
    %c0_518 = arith.constant 0 : index
    %c1_519 = arith.constant 1 : index
    %c0_520 = arith.constant 0 : index
    %c0_521 = arith.constant 0 : index
    %542 = vector.load %arg17[%c0_518, %c1_519, %c0_520, %c0_521] : memref<2x4x8x32xf32, #tpu.memory_space<vmem>>, vector<1x1x8x32xf32>
    %543 = vector.shape_cast %542 : vector<1x1x8x32xf32> to vector<8x32xf32>
    %cst_522 = arith.constant dense<0.000000e+00> : vector<16x32xf32>
    %544 = tpu.matmul %541, %543, %cst_522 {dimension_numbers = #tpu.dot_dimension_numbers<[1], [0], [0], [1], [0, 0, 1, 1], [], []>} : vector<16x8xf32>, vector<8x32xf32>, vector<16x32xf32> -> vector<16x32xf32>
    %545 = arith.addf %505, %544 : vector<16x32xf32>
    %c0_523 = arith.constant 0 : index
    %c0_524 = arith.constant 0 : index
    %c2_525 = arith.constant 2 : index
    %c0_526 = arith.constant 0 : index
    %c0_527 = arith.constant 0 : index
    %546 = vector.load %arg15[%c0_523, %c0_524, %c2_525, %c0_526, %c0_527] : memref<2x3x4x32x8xf32, #tpu.memory_space<vmem>>, vector<1x1x1x32x8xf32>
    %547 = vector.shape_cast %546 : vector<1x1x1x32x8xf32> to vector<32x8xf32>
    %cst_528 = arith.constant dense<0.000000e+00> : vector<16x8xf32>
    %548 = tpu.matmul %1, %547, %cst_528 {dimension_numbers = #tpu.dot_dimension_numbers<[1], [0], [0], [1], [0, 0, 1, 1], [], []>} : vector<16x32xf32>, vector<32x8xf32>, vector<16x8xf32> -> vector<16x8xf32>
    %c0_529 = arith.constant 0 : index
    %c0_530 = arith.constant 0 : index
    %c2_531 = arith.constant 2 : index
    %c0_532 = arith.constant 0 : index
    %c0_533 = arith.constant 0 : index
    %549 = vector.load %arg16[%c0_529, %c0_530, %c2_531, %c0_532, %c0_533] : memref<2x3x4x1x8xf32, #tpu.memory_space<vmem>>, vector<1x1x1x1x8xf32>
    %550 = vector.shape_cast %549 : vector<1x1x1x1x8xf32> to vector<1x8xf32>
    %551 = vector.broadcast %550 : vector<1x8xf32> to vector<16x8xf32>
    %552 = arith.addf %548, %551 : vector<16x8xf32>
    %c0_534 = arith.constant 0 : index
    %c1_535 = arith.constant 1 : index
    %c2_536 = arith.constant 2 : index
    %c0_537 = arith.constant 0 : index
    %c0_538 = arith.constant 0 : index
    %553 = vector.load %arg15[%c0_534, %c1_535, %c2_536, %c0_537, %c0_538] : memref<2x3x4x32x8xf32, #tpu.memory_space<vmem>>, vector<1x1x1x32x8xf32>
    %554 = vector.shape_cast %553 : vector<1x1x1x32x8xf32> to vector<32x8xf32>
    %cst_539 = arith.constant dense<0.000000e+00> : vector<16x8xf32>
    %555 = tpu.matmul %1, %554, %cst_539 {dimension_numbers = #tpu.dot_dimension_numbers<[1], [0], [0], [1], [0, 0, 1, 1], [], []>} : vector<16x32xf32>, vector<32x8xf32>, vector<16x8xf32> -> vector<16x8xf32>
    %c0_540 = arith.constant 0 : index
    %c1_541 = arith.constant 1 : index
    %c2_542 = arith.constant 2 : index
    %c0_543 = arith.constant 0 : index
    %c0_544 = arith.constant 0 : index
    %556 = vector.load %arg16[%c0_540, %c1_541, %c2_542, %c0_543, %c0_544] : memref<2x3x4x1x8xf32, #tpu.memory_space<vmem>>, vector<1x1x1x1x8xf32>
    %557 = vector.shape_cast %556 : vector<1x1x1x1x8xf32> to vector<1x8xf32>
    %558 = vector.broadcast %557 : vector<1x8xf32> to vector<16x8xf32>
    %559 = arith.addf %555, %558 : vector<16x8xf32>
    %c0_545 = arith.constant 0 : index
    %c2_546 = arith.constant 2 : index
    %c2_547 = arith.constant 2 : index
    %c0_548 = arith.constant 0 : index
    %c0_549 = arith.constant 0 : index
    %560 = vector.load %arg15[%c0_545, %c2_546, %c2_547, %c0_548, %c0_549] : memref<2x3x4x32x8xf32, #tpu.memory_space<vmem>>, vector<1x1x1x32x8xf32>
    %561 = vector.shape_cast %560 : vector<1x1x1x32x8xf32> to vector<32x8xf32>
    %cst_550 = arith.constant dense<0.000000e+00> : vector<16x8xf32>
    %562 = tpu.matmul %1, %561, %cst_550 {dimension_numbers = #tpu.dot_dimension_numbers<[1], [0], [0], [1], [0, 0, 1, 1], [], []>} : vector<16x32xf32>, vector<32x8xf32>, vector<16x8xf32> -> vector<16x8xf32>
    %c0_551 = arith.constant 0 : index
    %c2_552 = arith.constant 2 : index
    %c2_553 = arith.constant 2 : index
    %c0_554 = arith.constant 0 : index
    %c0_555 = arith.constant 0 : index
    %563 = vector.load %arg16[%c0_551, %c2_552, %c2_553, %c0_554, %c0_555] : memref<2x3x4x1x8xf32, #tpu.memory_space<vmem>>, vector<1x1x1x1x8xf32>
    %564 = vector.shape_cast %563 : vector<1x1x1x1x8xf32> to vector<1x8xf32>
    %565 = vector.broadcast %564 : vector<1x8xf32> to vector<16x8xf32>
    %566 = arith.addf %562, %565 : vector<16x8xf32>
    %cst_556 = arith.constant dense<0.000000e+00> : vector<16x16xf32>
    %567 = tpu.matmul %552, %559, %cst_556 {dimension_numbers = #tpu.dot_dimension_numbers<[1], [1], [0], [0], [0, 0, 1, 0], [], []>} : vector<16x8xf32>, vector<16x8xf32>, vector<16x16xf32> -> vector<16x16xf32>
    %cst_557 = arith.constant 0.353553385 : f32
    %568 = vector.broadcast %cst_557 : f32 to vector<16x16xf32>
    %569 = arith.mulf %567, %568 : vector<16x16xf32>
    %570 = arith.addf %569, %3 : vector<16x16xf32>
    %cst_558 = arith.constant dense<0xFF800000> : vector<16xf32>
    %571 = vector.multi_reduction <maximumf>, %570, %cst_558 [1] : vector<16x16xf32> to vector<16xf32>
    %572 = vector.shape_cast %571 : vector<16xf32> to vector<16x1xf32>
    %573 = vector.broadcast %572 : vector<16x1xf32> to vector<16x16xf32>
    %574 = arith.subf %570, %573 : vector<16x16xf32>
    %575 = math.exp %574 : vector<16x16xf32>
    %cst_559 = arith.constant dense<0.000000e+00> : vector<16xf32>
    %576 = vector.multi_reduction <add>, %575, %cst_559 [1] : vector<16x16xf32> to vector<16xf32>
    %577 = vector.shape_cast %576 : vector<16xf32> to vector<16x1xf32>
    %578 = tpu.reciprocal %577 {approx = true} : vector<16x1xf32> -> vector<16x1xf32>
    %579 = vector.broadcast %578 : vector<16x1xf32> to vector<16x16xf32>
    %580 = arith.mulf %575, %579 : vector<16x16xf32>
    %cst_560 = arith.constant dense<0.000000e+00> : vector<16x8xf32>
    %581 = tpu.matmul %580, %566, %cst_560 {dimension_numbers = #tpu.dot_dimension_numbers<[1], [0], [0], [1], [0, 0, 1, 1], [], []>} : vector<16x16xf32>, vector<16x8xf32>, vector<16x8xf32> -> vector<16x8xf32>
    %c0_561 = arith.constant 0 : index
    %c2_562 = arith.constant 2 : index
    %c0_563 = arith.constant 0 : index
    %c0_564 = arith.constant 0 : index
    %582 = vector.load %arg17[%c0_561, %c2_562, %c0_563, %c0_564] : memref<2x4x8x32xf32, #tpu.memory_space<vmem>>, vector<1x1x8x32xf32>
    %583 = vector.shape_cast %582 : vector<1x1x8x32xf32> to vector<8x32xf32>
    %cst_565 = arith.constant dense<0.000000e+00> : vector<16x32xf32>
    %584 = tpu.matmul %581, %583, %cst_565 {dimension_numbers = #tpu.dot_dimension_numbers<[1], [0], [0], [1], [0, 0, 1, 1], [], []>} : vector<16x8xf32>, vector<8x32xf32>, vector<16x32xf32> -> vector<16x32xf32>
    %585 = arith.addf %545, %584 : vector<16x32xf32>
    %c0_566 = arith.constant 0 : index
    %c0_567 = arith.constant 0 : index
    %c3_568 = arith.constant 3 : index
    %c0_569 = arith.constant 0 : index
    %c0_570 = arith.constant 0 : index
    %586 = vector.load %arg15[%c0_566, %c0_567, %c3_568, %c0_569, %c0_570] : memref<2x3x4x32x8xf32, #tpu.memory_space<vmem>>, vector<1x1x1x32x8xf32>
    %587 = vector.shape_cast %586 : vector<1x1x1x32x8xf32> to vector<32x8xf32>
    %cst_571 = arith.constant dense<0.000000e+00> : vector<16x8xf32>
    %588 = tpu.matmul %1, %587, %cst_571 {dimension_numbers = #tpu.dot_dimension_numbers<[1], [0], [0], [1], [0, 0, 1, 1], [], []>} : vector<16x32xf32>, vector<32x8xf32>, vector<16x8xf32> -> vector<16x8xf32>
    %c0_572 = arith.constant 0 : index
    %c0_573 = arith.constant 0 : index
    %c3_574 = arith.constant 3 : index
    %c0_575 = arith.constant 0 : index
    %c0_576 = arith.constant 0 : index
    %589 = vector.load %arg16[%c0_572, %c0_573, %c3_574, %c0_575, %c0_576] : memref<2x3x4x1x8xf32, #tpu.memory_space<vmem>>, vector<1x1x1x1x8xf32>
    %590 = vector.shape_cast %589 : vector<1x1x1x1x8xf32> to vector<1x8xf32>
    %591 = vector.broadcast %590 : vector<1x8xf32> to vector<16x8xf32>
    %592 = arith.addf %588, %591 : vector<16x8xf32>
    %c0_577 = arith.constant 0 : index
    %c1_578 = arith.constant 1 : index
    %c3_579 = arith.constant 3 : index
    %c0_580 = arith.constant 0 : index
    %c0_581 = arith.constant 0 : index
    %593 = vector.load %arg15[%c0_577, %c1_578, %c3_579, %c0_580, %c0_581] : memref<2x3x4x32x8xf32, #tpu.memory_space<vmem>>, vector<1x1x1x32x8xf32>
    %594 = vector.shape_cast %593 : vector<1x1x1x32x8xf32> to vector<32x8xf32>
    %cst_582 = arith.constant dense<0.000000e+00> : vector<16x8xf32>
    %595 = tpu.matmul %1, %594, %cst_582 {dimension_numbers = #tpu.dot_dimension_numbers<[1], [0], [0], [1], [0, 0, 1, 1], [], []>} : vector<16x32xf32>, vector<32x8xf32>, vector<16x8xf32> -> vector<16x8xf32>
    %c0_583 = arith.constant 0 : index
    %c1_584 = arith.constant 1 : index
    %c3_585 = arith.constant 3 : index
    %c0_586 = arith.constant 0 : index
    %c0_587 = arith.constant 0 : index
    %596 = vector.load %arg16[%c0_583, %c1_584, %c3_585, %c0_586, %c0_587] : memref<2x3x4x1x8xf32, #tpu.memory_space<vmem>>, vector<1x1x1x1x8xf32>
    %597 = vector.shape_cast %596 : vector<1x1x1x1x8xf32> to vector<1x8xf32>
    %598 = vector.broadcast %597 : vector<1x8xf32> to vector<16x8xf32>
    %599 = arith.addf %595, %598 : vector<16x8xf32>
    %c0_588 = arith.constant 0 : index
    %c2_589 = arith.constant 2 : index
    %c3_590 = arith.constant 3 : index
    %c0_591 = arith.constant 0 : index
    %c0_592 = arith.constant 0 : index
    %600 = vector.load %arg15[%c0_588, %c2_589, %c3_590, %c0_591, %c0_592] : memref<2x3x4x32x8xf32, #tpu.memory_space<vmem>>, vector<1x1x1x32x8xf32>
    %601 = vector.shape_cast %600 : vector<1x1x1x32x8xf32> to vector<32x8xf32>
    %cst_593 = arith.constant dense<0.000000e+00> : vector<16x8xf32>
    %602 = tpu.matmul %1, %601, %cst_593 {dimension_numbers = #tpu.dot_dimension_numbers<[1], [0], [0], [1], [0, 0, 1, 1], [], []>} : vector<16x32xf32>, vector<32x8xf32>, vector<16x8xf32> -> vector<16x8xf32>
    %c0_594 = arith.constant 0 : index
    %c2_595 = arith.constant 2 : index
    %c3_596 = arith.constant 3 : index
    %c0_597 = arith.constant 0 : index
    %c0_598 = arith.constant 0 : index
    %603 = vector.load %arg16[%c0_594, %c2_595, %c3_596, %c0_597, %c0_598] : memref<2x3x4x1x8xf32, #tpu.memory_space<vmem>>, vector<1x1x1x1x8xf32>
    %604 = vector.shape_cast %603 : vector<1x1x1x1x8xf32> to vector<1x8xf32>
    %605 = vector.broadcast %604 : vector<1x8xf32> to vector<16x8xf32>
    %606 = arith.addf %602, %605 : vector<16x8xf32>
    %cst_599 = arith.constant dense<0.000000e+00> : vector<16x16xf32>
    %607 = tpu.matmul %592, %599, %cst_599 {dimension_numbers = #tpu.dot_dimension_numbers<[1], [1], [0], [0], [0, 0, 1, 0], [], []>} : vector<16x8xf32>, vector<16x8xf32>, vector<16x16xf32> -> vector<16x16xf32>
    %cst_600 = arith.constant 0.353553385 : f32
    %608 = vector.broadcast %cst_600 : f32 to vector<16x16xf32>
    %609 = arith.mulf %607, %608 : vector<16x16xf32>
    %610 = arith.addf %609, %3 : vector<16x16xf32>
    %cst_601 = arith.constant dense<0xFF800000> : vector<16xf32>
    %611 = vector.multi_reduction <maximumf>, %610, %cst_601 [1] : vector<16x16xf32> to vector<16xf32>
    %612 = vector.shape_cast %611 : vector<16xf32> to vector<16x1xf32>
    %613 = vector.broadcast %612 : vector<16x1xf32> to vector<16x16xf32>
    %614 = arith.subf %610, %613 : vector<16x16xf32>
    %615 = math.exp %614 : vector<16x16xf32>
    %cst_602 = arith.constant dense<0.000000e+00> : vector<16xf32>
    %616 = vector.multi_reduction <add>, %615, %cst_602 [1] : vector<16x16xf32> to vector<16xf32>
    %617 = vector.shape_cast %616 : vector<16xf32> to vector<16x1xf32>
    %618 = tpu.reciprocal %617 {approx = true} : vector<16x1xf32> -> vector<16x1xf32>
    %619 = vector.broadcast %618 : vector<16x1xf32> to vector<16x16xf32>
    %620 = arith.mulf %615, %619 : vector<16x16xf32>
    %cst_603 = arith.constant dense<0.000000e+00> : vector<16x8xf32>
    %621 = tpu.matmul %620, %606, %cst_603 {dimension_numbers = #tpu.dot_dimension_numbers<[1], [0], [0], [1], [0, 0, 1, 1], [], []>} : vector<16x16xf32>, vector<16x8xf32>, vector<16x8xf32> -> vector<16x8xf32>
    %c0_604 = arith.constant 0 : index
    %c3_605 = arith.constant 3 : index
    %c0_606 = arith.constant 0 : index
    %c0_607 = arith.constant 0 : index
    %622 = vector.load %arg17[%c0_604, %c3_605, %c0_606, %c0_607] : memref<2x4x8x32xf32, #tpu.memory_space<vmem>>, vector<1x1x8x32xf32>
    %623 = vector.shape_cast %622 : vector<1x1x8x32xf32> to vector<8x32xf32>
    %cst_608 = arith.constant dense<0.000000e+00> : vector<16x32xf32>
    %624 = tpu.matmul %621, %623, %cst_608 {dimension_numbers = #tpu.dot_dimension_numbers<[1], [0], [0], [1], [0, 0, 1, 1], [], []>} : vector<16x8xf32>, vector<8x32xf32>, vector<16x32xf32> -> vector<16x32xf32>
    %625 = arith.addf %585, %624 : vector<16x32xf32>
    %c0_609 = arith.constant 0 : index
    %c0_610 = arith.constant 0 : index
    %c0_611 = arith.constant 0 : index
    %626 = vector.load %arg18[%c0_609, %c0_610, %c0_611] : memref<2x1x32xf32, #tpu.memory_space<vmem>>, vector<1x1x32xf32>
    %627 = vector.shape_cast %626 : vector<1x1x32xf32> to vector<1x32xf32>
    %628 = vector.broadcast %627 : vector<1x32xf32> to vector<16x32xf32>
    %629 = arith.addf %625, %628 : vector<16x32xf32>
    %630 = arith.addf %1, %629 : vector<16x32xf32>
    %c0_612 = arith.constant 0 : index
    %c0_613 = arith.constant 0 : index
    %c0_614 = arith.constant 0 : index
    %c0_615 = arith.constant 0 : index
    %631 = vector.load %arg19[%c0_612, %c0_613, %c0_614, %c0_615] : memref<2x2x1x32xf32, #tpu.memory_space<vmem>>, vector<1x1x1x32xf32>
    %632 = vector.shape_cast %631 : vector<1x1x1x32xf32> to vector<1x32xf32>
    %c0_616 = arith.constant 0 : index
    %c1_617 = arith.constant 1 : index
    %c0_618 = arith.constant 0 : index
    %c0_619 = arith.constant 0 : index
    %633 = vector.load %arg19[%c0_616, %c1_617, %c0_618, %c0_619] : memref<2x2x1x32xf32, #tpu.memory_space<vmem>>, vector<1x1x1x32xf32>
    %634 = vector.shape_cast %633 : vector<1x1x1x32xf32> to vector<1x32xf32>
    %cst_620 = arith.constant dense<0.000000e+00> : vector<16xf32>
    %635 = vector.multi_reduction <add>, %630, %cst_620 [1] : vector<16x32xf32> to vector<16xf32>
    %636 = vector.shape_cast %635 : vector<16xf32> to vector<16x1xf32>
    %cst_621 = arith.constant 3.200000e+01 : f32
    %637 = vector.broadcast %cst_621 : f32 to vector<16x1xf32>
    %638 = arith.divf %636, %637 : vector<16x1xf32>
    %639 = vector.broadcast %638 : vector<16x1xf32> to vector<16x32xf32>
    %640 = arith.subf %630, %639 : vector<16x32xf32>
    %641 = arith.mulf %640, %640 : vector<16x32xf32>
    %cst_622 = arith.constant dense<0.000000e+00> : vector<16xf32>
    %642 = vector.multi_reduction <add>, %641, %cst_622 [1] : vector<16x32xf32> to vector<16xf32>
    %643 = vector.shape_cast %642 : vector<16xf32> to vector<16x1xf32>
    %cst_623 = arith.constant 0.0322580636 : f32
    %644 = vector.broadcast %cst_623 : f32 to vector<16x1xf32>
    %645 = arith.mulf %643, %644 : vector<16x1xf32>
    %646 = math.sqrt %645 : vector<16x1xf32>
    %cst_624 = arith.constant 9.99999997E-7 : f32
    %647 = vector.broadcast %cst_624 : f32 to vector<16x1xf32>
    %648 = arith.addf %646, %647 : vector<16x1xf32>
    %649 = tpu.reciprocal %648 {approx = true} : vector<16x1xf32> -> vector<16x1xf32>
    %650 = vector.broadcast %649 : vector<16x1xf32> to vector<16x32xf32>
    %651 = arith.mulf %640, %650 : vector<16x32xf32>
    %652 = vector.broadcast %632 : vector<1x32xf32> to vector<16x32xf32>
    %653 = arith.mulf %652, %651 : vector<16x32xf32>
    %654 = vector.broadcast %634 : vector<1x32xf32> to vector<16x32xf32>
    %655 = arith.addf %653, %654 : vector<16x32xf32>
    %c0_625 = arith.constant 0 : index
    %c0_626 = arith.constant 0 : index
    %c0_627 = arith.constant 0 : index
    %c0_628 = arith.constant 0 : index
    %c0_629 = arith.constant 0 : index
    %656 = vector.load %arg20[%c0_625, %c0_626, %c0_627, %c0_628, %c0_629] : memref<2x3x4x32x8xf32, #tpu.memory_space<vmem>>, vector<1x1x1x32x8xf32>
    %657 = vector.shape_cast %656 : vector<1x1x1x32x8xf32> to vector<32x8xf32>
    %cst_630 = arith.constant dense<0.000000e+00> : vector<16x8xf32>
    %658 = tpu.matmul %655, %657, %cst_630 {dimension_numbers = #tpu.dot_dimension_numbers<[1], [0], [0], [1], [0, 0, 1, 1], [], []>} : vector<16x32xf32>, vector<32x8xf32>, vector<16x8xf32> -> vector<16x8xf32>
    %c0_631 = arith.constant 0 : index
    %c0_632 = arith.constant 0 : index
    %c0_633 = arith.constant 0 : index
    %c0_634 = arith.constant 0 : index
    %c0_635 = arith.constant 0 : index
    %659 = vector.load %arg21[%c0_631, %c0_632, %c0_633, %c0_634, %c0_635] : memref<2x3x4x1x8xf32, #tpu.memory_space<vmem>>, vector<1x1x1x1x8xf32>
    %660 = vector.shape_cast %659 : vector<1x1x1x1x8xf32> to vector<1x8xf32>
    %661 = vector.broadcast %660 : vector<1x8xf32> to vector<16x8xf32>
    %662 = arith.addf %658, %661 : vector<16x8xf32>
    %c0_636 = arith.constant 0 : index
    %c1_637 = arith.constant 1 : index
    %c0_638 = arith.constant 0 : index
    %c0_639 = arith.constant 0 : index
    %c0_640 = arith.constant 0 : index
    %663 = vector.load %arg20[%c0_636, %c1_637, %c0_638, %c0_639, %c0_640] : memref<2x3x4x32x8xf32, #tpu.memory_space<vmem>>, vector<1x1x1x32x8xf32>
    %664 = vector.shape_cast %663 : vector<1x1x1x32x8xf32> to vector<32x8xf32>
    %cst_641 = arith.constant dense<0.000000e+00> : vector<32x8xf32>
    %665 = tpu.matmul %466, %664, %cst_641 {dimension_numbers = #tpu.dot_dimension_numbers<[1], [0], [0], [1], [0, 0, 1, 1], [], []>} : vector<32x32xf32>, vector<32x8xf32>, vector<32x8xf32> -> vector<32x8xf32>
    %c0_642 = arith.constant 0 : index
    %c1_643 = arith.constant 1 : index
    %c0_644 = arith.constant 0 : index
    %c0_645 = arith.constant 0 : index
    %c0_646 = arith.constant 0 : index
    %666 = vector.load %arg21[%c0_642, %c1_643, %c0_644, %c0_645, %c0_646] : memref<2x3x4x1x8xf32, #tpu.memory_space<vmem>>, vector<1x1x1x1x8xf32>
    %667 = vector.shape_cast %666 : vector<1x1x1x1x8xf32> to vector<1x8xf32>
    %668 = vector.broadcast %667 : vector<1x8xf32> to vector<32x8xf32>
    %669 = arith.addf %665, %668 : vector<32x8xf32>
    %c0_647 = arith.constant 0 : index
    %c2_648 = arith.constant 2 : index
    %c0_649 = arith.constant 0 : index
    %c0_650 = arith.constant 0 : index
    %c0_651 = arith.constant 0 : index
    %670 = vector.load %arg20[%c0_647, %c2_648, %c0_649, %c0_650, %c0_651] : memref<2x3x4x32x8xf32, #tpu.memory_space<vmem>>, vector<1x1x1x32x8xf32>
    %671 = vector.shape_cast %670 : vector<1x1x1x32x8xf32> to vector<32x8xf32>
    %cst_652 = arith.constant dense<0.000000e+00> : vector<32x8xf32>
    %672 = tpu.matmul %466, %671, %cst_652 {dimension_numbers = #tpu.dot_dimension_numbers<[1], [0], [0], [1], [0, 0, 1, 1], [], []>} : vector<32x32xf32>, vector<32x8xf32>, vector<32x8xf32> -> vector<32x8xf32>
    %c0_653 = arith.constant 0 : index
    %c2_654 = arith.constant 2 : index
    %c0_655 = arith.constant 0 : index
    %c0_656 = arith.constant 0 : index
    %c0_657 = arith.constant 0 : index
    %673 = vector.load %arg21[%c0_653, %c2_654, %c0_655, %c0_656, %c0_657] : memref<2x3x4x1x8xf32, #tpu.memory_space<vmem>>, vector<1x1x1x1x8xf32>
    %674 = vector.shape_cast %673 : vector<1x1x1x1x8xf32> to vector<1x8xf32>
    %675 = vector.broadcast %674 : vector<1x8xf32> to vector<32x8xf32>
    %676 = arith.addf %672, %675 : vector<32x8xf32>
    %cst_658 = arith.constant dense<0.000000e+00> : vector<16x32xf32>
    %677 = tpu.matmul %662, %669, %cst_658 {dimension_numbers = #tpu.dot_dimension_numbers<[1], [1], [0], [0], [0, 0, 1, 0], [], []>} : vector<16x8xf32>, vector<32x8xf32>, vector<16x32xf32> -> vector<16x32xf32>
    %cst_659 = arith.constant 0.353553385 : f32
    %678 = vector.broadcast %cst_659 : f32 to vector<16x32xf32>
    %679 = arith.mulf %677, %678 : vector<16x32xf32>
    %680 = arith.addf %679, %4 : vector<16x32xf32>
    %cst_660 = arith.constant dense<0xFF800000> : vector<16xf32>
    %681 = vector.multi_reduction <maximumf>, %680, %cst_660 [1] : vector<16x32xf32> to vector<16xf32>
    %682 = vector.shape_cast %681 : vector<16xf32> to vector<16x1xf32>
    %683 = vector.broadcast %682 : vector<16x1xf32> to vector<16x32xf32>
    %684 = arith.subf %680, %683 : vector<16x32xf32>
    %685 = math.exp %684 : vector<16x32xf32>
    %cst_661 = arith.constant dense<0.000000e+00> : vector<16xf32>
    %686 = vector.multi_reduction <add>, %685, %cst_661 [1] : vector<16x32xf32> to vector<16xf32>
    %687 = vector.shape_cast %686 : vector<16xf32> to vector<16x1xf32>
    %688 = tpu.reciprocal %687 {approx = true} : vector<16x1xf32> -> vector<16x1xf32>
    %689 = vector.broadcast %688 : vector<16x1xf32> to vector<16x32xf32>
    %690 = arith.mulf %685, %689 : vector<16x32xf32>
    %cst_662 = arith.constant dense<0.000000e+00> : vector<16x8xf32>
    %691 = tpu.matmul %690, %676, %cst_662 {dimension_numbers = #tpu.dot_dimension_numbers<[1], [0], [0], [1], [0, 0, 1, 1], [], []>} : vector<16x32xf32>, vector<32x8xf32>, vector<16x8xf32> -> vector<16x8xf32>
    %c0_663 = arith.constant 0 : index
    %c0_664 = arith.constant 0 : index
    %c0_665 = arith.constant 0 : index
    %c0_666 = arith.constant 0 : index
    %692 = vector.load %arg22[%c0_663, %c0_664, %c0_665, %c0_666] : memref<2x4x8x32xf32, #tpu.memory_space<vmem>>, vector<1x1x8x32xf32>
    %693 = vector.shape_cast %692 : vector<1x1x8x32xf32> to vector<8x32xf32>
    %cst_667 = arith.constant dense<0.000000e+00> : vector<16x32xf32>
    %694 = tpu.matmul %691, %693, %cst_667 {dimension_numbers = #tpu.dot_dimension_numbers<[1], [0], [0], [1], [0, 0, 1, 1], [], []>} : vector<16x8xf32>, vector<8x32xf32>, vector<16x32xf32> -> vector<16x32xf32>
    %c0_668 = arith.constant 0 : index
    %c0_669 = arith.constant 0 : index
    %c1_670 = arith.constant 1 : index
    %c0_671 = arith.constant 0 : index
    %c0_672 = arith.constant 0 : index
    %695 = vector.load %arg20[%c0_668, %c0_669, %c1_670, %c0_671, %c0_672] : memref<2x3x4x32x8xf32, #tpu.memory_space<vmem>>, vector<1x1x1x32x8xf32>
    %696 = vector.shape_cast %695 : vector<1x1x1x32x8xf32> to vector<32x8xf32>
    %cst_673 = arith.constant dense<0.000000e+00> : vector<16x8xf32>
    %697 = tpu.matmul %655, %696, %cst_673 {dimension_numbers = #tpu.dot_dimension_numbers<[1], [0], [0], [1], [0, 0, 1, 1], [], []>} : vector<16x32xf32>, vector<32x8xf32>, vector<16x8xf32> -> vector<16x8xf32>
    %c0_674 = arith.constant 0 : index
    %c0_675 = arith.constant 0 : index
    %c1_676 = arith.constant 1 : index
    %c0_677 = arith.constant 0 : index
    %c0_678 = arith.constant 0 : index
    %698 = vector.load %arg21[%c0_674, %c0_675, %c1_676, %c0_677, %c0_678] : memref<2x3x4x1x8xf32, #tpu.memory_space<vmem>>, vector<1x1x1x1x8xf32>
    %699 = vector.shape_cast %698 : vector<1x1x1x1x8xf32> to vector<1x8xf32>
    %700 = vector.broadcast %699 : vector<1x8xf32> to vector<16x8xf32>
    %701 = arith.addf %697, %700 : vector<16x8xf32>
    %c0_679 = arith.constant 0 : index
    %c1_680 = arith.constant 1 : index
    %c1_681 = arith.constant 1 : index
    %c0_682 = arith.constant 0 : index
    %c0_683 = arith.constant 0 : index
    %702 = vector.load %arg20[%c0_679, %c1_680, %c1_681, %c0_682, %c0_683] : memref<2x3x4x32x8xf32, #tpu.memory_space<vmem>>, vector<1x1x1x32x8xf32>
    %703 = vector.shape_cast %702 : vector<1x1x1x32x8xf32> to vector<32x8xf32>
    %cst_684 = arith.constant dense<0.000000e+00> : vector<32x8xf32>
    %704 = tpu.matmul %466, %703, %cst_684 {dimension_numbers = #tpu.dot_dimension_numbers<[1], [0], [0], [1], [0, 0, 1, 1], [], []>} : vector<32x32xf32>, vector<32x8xf32>, vector<32x8xf32> -> vector<32x8xf32>
    %c0_685 = arith.constant 0 : index
    %c1_686 = arith.constant 1 : index
    %c1_687 = arith.constant 1 : index
    %c0_688 = arith.constant 0 : index
    %c0_689 = arith.constant 0 : index
    %705 = vector.load %arg21[%c0_685, %c1_686, %c1_687, %c0_688, %c0_689] : memref<2x3x4x1x8xf32, #tpu.memory_space<vmem>>, vector<1x1x1x1x8xf32>
    %706 = vector.shape_cast %705 : vector<1x1x1x1x8xf32> to vector<1x8xf32>
    %707 = vector.broadcast %706 : vector<1x8xf32> to vector<32x8xf32>
    %708 = arith.addf %704, %707 : vector<32x8xf32>
    %c0_690 = arith.constant 0 : index
    %c2_691 = arith.constant 2 : index
    %c1_692 = arith.constant 1 : index
    %c0_693 = arith.constant 0 : index
    %c0_694 = arith.constant 0 : index
    %709 = vector.load %arg20[%c0_690, %c2_691, %c1_692, %c0_693, %c0_694] : memref<2x3x4x32x8xf32, #tpu.memory_space<vmem>>, vector<1x1x1x32x8xf32>
    %710 = vector.shape_cast %709 : vector<1x1x1x32x8xf32> to vector<32x8xf32>
    %cst_695 = arith.constant dense<0.000000e+00> : vector<32x8xf32>
    %711 = tpu.matmul %466, %710, %cst_695 {dimension_numbers = #tpu.dot_dimension_numbers<[1], [0], [0], [1], [0, 0, 1, 1], [], []>} : vector<32x32xf32>, vector<32x8xf32>, vector<32x8xf32> -> vector<32x8xf32>
    %c0_696 = arith.constant 0 : index
    %c2_697 = arith.constant 2 : index
    %c1_698 = arith.constant 1 : index
    %c0_699 = arith.constant 0 : index
    %c0_700 = arith.constant 0 : index
    %712 = vector.load %arg21[%c0_696, %c2_697, %c1_698, %c0_699, %c0_700] : memref<2x3x4x1x8xf32, #tpu.memory_space<vmem>>, vector<1x1x1x1x8xf32>
    %713 = vector.shape_cast %712 : vector<1x1x1x1x8xf32> to vector<1x8xf32>
    %714 = vector.broadcast %713 : vector<1x8xf32> to vector<32x8xf32>
    %715 = arith.addf %711, %714 : vector<32x8xf32>
    %cst_701 = arith.constant dense<0.000000e+00> : vector<16x32xf32>
    %716 = tpu.matmul %701, %708, %cst_701 {dimension_numbers = #tpu.dot_dimension_numbers<[1], [1], [0], [0], [0, 0, 1, 0], [], []>} : vector<16x8xf32>, vector<32x8xf32>, vector<16x32xf32> -> vector<16x32xf32>
    %cst_702 = arith.constant 0.353553385 : f32
    %717 = vector.broadcast %cst_702 : f32 to vector<16x32xf32>
    %718 = arith.mulf %716, %717 : vector<16x32xf32>
    %719 = arith.addf %718, %4 : vector<16x32xf32>
    %cst_703 = arith.constant dense<0xFF800000> : vector<16xf32>
    %720 = vector.multi_reduction <maximumf>, %719, %cst_703 [1] : vector<16x32xf32> to vector<16xf32>
    %721 = vector.shape_cast %720 : vector<16xf32> to vector<16x1xf32>
    %722 = vector.broadcast %721 : vector<16x1xf32> to vector<16x32xf32>
    %723 = arith.subf %719, %722 : vector<16x32xf32>
    %724 = math.exp %723 : vector<16x32xf32>
    %cst_704 = arith.constant dense<0.000000e+00> : vector<16xf32>
    %725 = vector.multi_reduction <add>, %724, %cst_704 [1] : vector<16x32xf32> to vector<16xf32>
    %726 = vector.shape_cast %725 : vector<16xf32> to vector<16x1xf32>
    %727 = tpu.reciprocal %726 {approx = true} : vector<16x1xf32> -> vector<16x1xf32>
    %728 = vector.broadcast %727 : vector<16x1xf32> to vector<16x32xf32>
    %729 = arith.mulf %724, %728 : vector<16x32xf32>
    %cst_705 = arith.constant dense<0.000000e+00> : vector<16x8xf32>
    %730 = tpu.matmul %729, %715, %cst_705 {dimension_numbers = #tpu.dot_dimension_numbers<[1], [0], [0], [1], [0, 0, 1, 1], [], []>} : vector<16x32xf32>, vector<32x8xf32>, vector<16x8xf32> -> vector<16x8xf32>
    %c0_706 = arith.constant 0 : index
    %c1_707 = arith.constant 1 : index
    %c0_708 = arith.constant 0 : index
    %c0_709 = arith.constant 0 : index
    %731 = vector.load %arg22[%c0_706, %c1_707, %c0_708, %c0_709] : memref<2x4x8x32xf32, #tpu.memory_space<vmem>>, vector<1x1x8x32xf32>
    %732 = vector.shape_cast %731 : vector<1x1x8x32xf32> to vector<8x32xf32>
    %cst_710 = arith.constant dense<0.000000e+00> : vector<16x32xf32>
    %733 = tpu.matmul %730, %732, %cst_710 {dimension_numbers = #tpu.dot_dimension_numbers<[1], [0], [0], [1], [0, 0, 1, 1], [], []>} : vector<16x8xf32>, vector<8x32xf32>, vector<16x32xf32> -> vector<16x32xf32>
    %734 = arith.addf %694, %733 : vector<16x32xf32>
    %c0_711 = arith.constant 0 : index
    %c0_712 = arith.constant 0 : index
    %c2_713 = arith.constant 2 : index
    %c0_714 = arith.constant 0 : index
    %c0_715 = arith.constant 0 : index
    %735 = vector.load %arg20[%c0_711, %c0_712, %c2_713, %c0_714, %c0_715] : memref<2x3x4x32x8xf32, #tpu.memory_space<vmem>>, vector<1x1x1x32x8xf32>
    %736 = vector.shape_cast %735 : vector<1x1x1x32x8xf32> to vector<32x8xf32>
    %cst_716 = arith.constant dense<0.000000e+00> : vector<16x8xf32>
    %737 = tpu.matmul %655, %736, %cst_716 {dimension_numbers = #tpu.dot_dimension_numbers<[1], [0], [0], [1], [0, 0, 1, 1], [], []>} : vector<16x32xf32>, vector<32x8xf32>, vector<16x8xf32> -> vector<16x8xf32>
    %c0_717 = arith.constant 0 : index
    %c0_718 = arith.constant 0 : index
    %c2_719 = arith.constant 2 : index
    %c0_720 = arith.constant 0 : index
    %c0_721 = arith.constant 0 : index
    %738 = vector.load %arg21[%c0_717, %c0_718, %c2_719, %c0_720, %c0_721] : memref<2x3x4x1x8xf32, #tpu.memory_space<vmem>>, vector<1x1x1x1x8xf32>
    %739 = vector.shape_cast %738 : vector<1x1x1x1x8xf32> to vector<1x8xf32>
    %740 = vector.broadcast %739 : vector<1x8xf32> to vector<16x8xf32>
    %741 = arith.addf %737, %740 : vector<16x8xf32>
    %c0_722 = arith.constant 0 : index
    %c1_723 = arith.constant 1 : index
    %c2_724 = arith.constant 2 : index
    %c0_725 = arith.constant 0 : index
    %c0_726 = arith.constant 0 : index
    %742 = vector.load %arg20[%c0_722, %c1_723, %c2_724, %c0_725, %c0_726] : memref<2x3x4x32x8xf32, #tpu.memory_space<vmem>>, vector<1x1x1x32x8xf32>
    %743 = vector.shape_cast %742 : vector<1x1x1x32x8xf32> to vector<32x8xf32>
    %cst_727 = arith.constant dense<0.000000e+00> : vector<32x8xf32>
    %744 = tpu.matmul %466, %743, %cst_727 {dimension_numbers = #tpu.dot_dimension_numbers<[1], [0], [0], [1], [0, 0, 1, 1], [], []>} : vector<32x32xf32>, vector<32x8xf32>, vector<32x8xf32> -> vector<32x8xf32>
    %c0_728 = arith.constant 0 : index
    %c1_729 = arith.constant 1 : index
    %c2_730 = arith.constant 2 : index
    %c0_731 = arith.constant 0 : index
    %c0_732 = arith.constant 0 : index
    %745 = vector.load %arg21[%c0_728, %c1_729, %c2_730, %c0_731, %c0_732] : memref<2x3x4x1x8xf32, #tpu.memory_space<vmem>>, vector<1x1x1x1x8xf32>
    %746 = vector.shape_cast %745 : vector<1x1x1x1x8xf32> to vector<1x8xf32>
    %747 = vector.broadcast %746 : vector<1x8xf32> to vector<32x8xf32>
    %748 = arith.addf %744, %747 : vector<32x8xf32>
    %c0_733 = arith.constant 0 : index
    %c2_734 = arith.constant 2 : index
    %c2_735 = arith.constant 2 : index
    %c0_736 = arith.constant 0 : index
    %c0_737 = arith.constant 0 : index
    %749 = vector.load %arg20[%c0_733, %c2_734, %c2_735, %c0_736, %c0_737] : memref<2x3x4x32x8xf32, #tpu.memory_space<vmem>>, vector<1x1x1x32x8xf32>
    %750 = vector.shape_cast %749 : vector<1x1x1x32x8xf32> to vector<32x8xf32>
    %cst_738 = arith.constant dense<0.000000e+00> : vector<32x8xf32>
    %751 = tpu.matmul %466, %750, %cst_738 {dimension_numbers = #tpu.dot_dimension_numbers<[1], [0], [0], [1], [0, 0, 1, 1], [], []>} : vector<32x32xf32>, vector<32x8xf32>, vector<32x8xf32> -> vector<32x8xf32>
    %c0_739 = arith.constant 0 : index
    %c2_740 = arith.constant 2 : index
    %c2_741 = arith.constant 2 : index
    %c0_742 = arith.constant 0 : index
    %c0_743 = arith.constant 0 : index
    %752 = vector.load %arg21[%c0_739, %c2_740, %c2_741, %c0_742, %c0_743] : memref<2x3x4x1x8xf32, #tpu.memory_space<vmem>>, vector<1x1x1x1x8xf32>
    %753 = vector.shape_cast %752 : vector<1x1x1x1x8xf32> to vector<1x8xf32>
    %754 = vector.broadcast %753 : vector<1x8xf32> to vector<32x8xf32>
    %755 = arith.addf %751, %754 : vector<32x8xf32>
    %cst_744 = arith.constant dense<0.000000e+00> : vector<16x32xf32>
    %756 = tpu.matmul %741, %748, %cst_744 {dimension_numbers = #tpu.dot_dimension_numbers<[1], [1], [0], [0], [0, 0, 1, 0], [], []>} : vector<16x8xf32>, vector<32x8xf32>, vector<16x32xf32> -> vector<16x32xf32>
    %cst_745 = arith.constant 0.353553385 : f32
    %757 = vector.broadcast %cst_745 : f32 to vector<16x32xf32>
    %758 = arith.mulf %756, %757 : vector<16x32xf32>
    %759 = arith.addf %758, %4 : vector<16x32xf32>
    %cst_746 = arith.constant dense<0xFF800000> : vector<16xf32>
    %760 = vector.multi_reduction <maximumf>, %759, %cst_746 [1] : vector<16x32xf32> to vector<16xf32>
    %761 = vector.shape_cast %760 : vector<16xf32> to vector<16x1xf32>
    %762 = vector.broadcast %761 : vector<16x1xf32> to vector<16x32xf32>
    %763 = arith.subf %759, %762 : vector<16x32xf32>
    %764 = math.exp %763 : vector<16x32xf32>
    %cst_747 = arith.constant dense<0.000000e+00> : vector<16xf32>
    %765 = vector.multi_reduction <add>, %764, %cst_747 [1] : vector<16x32xf32> to vector<16xf32>
    %766 = vector.shape_cast %765 : vector<16xf32> to vector<16x1xf32>
    %767 = tpu.reciprocal %766 {approx = true} : vector<16x1xf32> -> vector<16x1xf32>
    %768 = vector.broadcast %767 : vector<16x1xf32> to vector<16x32xf32>
    %769 = arith.mulf %764, %768 : vector<16x32xf32>
    %cst_748 = arith.constant dense<0.000000e+00> : vector<16x8xf32>
    %770 = tpu.matmul %769, %755, %cst_748 {dimension_numbers = #tpu.dot_dimension_numbers<[1], [0], [0], [1], [0, 0, 1, 1], [], []>} : vector<16x32xf32>, vector<32x8xf32>, vector<16x8xf32> -> vector<16x8xf32>
    %c0_749 = arith.constant 0 : index
    %c2_750 = arith.constant 2 : index
    %c0_751 = arith.constant 0 : index
    %c0_752 = arith.constant 0 : index
    %771 = vector.load %arg22[%c0_749, %c2_750, %c0_751, %c0_752] : memref<2x4x8x32xf32, #tpu.memory_space<vmem>>, vector<1x1x8x32xf32>
    %772 = vector.shape_cast %771 : vector<1x1x8x32xf32> to vector<8x32xf32>
    %cst_753 = arith.constant dense<0.000000e+00> : vector<16x32xf32>
    %773 = tpu.matmul %770, %772, %cst_753 {dimension_numbers = #tpu.dot_dimension_numbers<[1], [0], [0], [1], [0, 0, 1, 1], [], []>} : vector<16x8xf32>, vector<8x32xf32>, vector<16x32xf32> -> vector<16x32xf32>
    %774 = arith.addf %734, %773 : vector<16x32xf32>
    %c0_754 = arith.constant 0 : index
    %c0_755 = arith.constant 0 : index
    %c3_756 = arith.constant 3 : index
    %c0_757 = arith.constant 0 : index
    %c0_758 = arith.constant 0 : index
    %775 = vector.load %arg20[%c0_754, %c0_755, %c3_756, %c0_757, %c0_758] : memref<2x3x4x32x8xf32, #tpu.memory_space<vmem>>, vector<1x1x1x32x8xf32>
    %776 = vector.shape_cast %775 : vector<1x1x1x32x8xf32> to vector<32x8xf32>
    %cst_759 = arith.constant dense<0.000000e+00> : vector<16x8xf32>
    %777 = tpu.matmul %655, %776, %cst_759 {dimension_numbers = #tpu.dot_dimension_numbers<[1], [0], [0], [1], [0, 0, 1, 1], [], []>} : vector<16x32xf32>, vector<32x8xf32>, vector<16x8xf32> -> vector<16x8xf32>
    %c0_760 = arith.constant 0 : index
    %c0_761 = arith.constant 0 : index
    %c3_762 = arith.constant 3 : index
    %c0_763 = arith.constant 0 : index
    %c0_764 = arith.constant 0 : index
    %778 = vector.load %arg21[%c0_760, %c0_761, %c3_762, %c0_763, %c0_764] : memref<2x3x4x1x8xf32, #tpu.memory_space<vmem>>, vector<1x1x1x1x8xf32>
    %779 = vector.shape_cast %778 : vector<1x1x1x1x8xf32> to vector<1x8xf32>
    %780 = vector.broadcast %779 : vector<1x8xf32> to vector<16x8xf32>
    %781 = arith.addf %777, %780 : vector<16x8xf32>
    %c0_765 = arith.constant 0 : index
    %c1_766 = arith.constant 1 : index
    %c3_767 = arith.constant 3 : index
    %c0_768 = arith.constant 0 : index
    %c0_769 = arith.constant 0 : index
    %782 = vector.load %arg20[%c0_765, %c1_766, %c3_767, %c0_768, %c0_769] : memref<2x3x4x32x8xf32, #tpu.memory_space<vmem>>, vector<1x1x1x32x8xf32>
    %783 = vector.shape_cast %782 : vector<1x1x1x32x8xf32> to vector<32x8xf32>
    %cst_770 = arith.constant dense<0.000000e+00> : vector<32x8xf32>
    %784 = tpu.matmul %466, %783, %cst_770 {dimension_numbers = #tpu.dot_dimension_numbers<[1], [0], [0], [1], [0, 0, 1, 1], [], []>} : vector<32x32xf32>, vector<32x8xf32>, vector<32x8xf32> -> vector<32x8xf32>
    %c0_771 = arith.constant 0 : index
    %c1_772 = arith.constant 1 : index
    %c3_773 = arith.constant 3 : index
    %c0_774 = arith.constant 0 : index
    %c0_775 = arith.constant 0 : index
    %785 = vector.load %arg21[%c0_771, %c1_772, %c3_773, %c0_774, %c0_775] : memref<2x3x4x1x8xf32, #tpu.memory_space<vmem>>, vector<1x1x1x1x8xf32>
    %786 = vector.shape_cast %785 : vector<1x1x1x1x8xf32> to vector<1x8xf32>
    %787 = vector.broadcast %786 : vector<1x8xf32> to vector<32x8xf32>
    %788 = arith.addf %784, %787 : vector<32x8xf32>
    %c0_776 = arith.constant 0 : index
    %c2_777 = arith.constant 2 : index
    %c3_778 = arith.constant 3 : index
    %c0_779 = arith.constant 0 : index
    %c0_780 = arith.constant 0 : index
    %789 = vector.load %arg20[%c0_776, %c2_777, %c3_778, %c0_779, %c0_780] : memref<2x3x4x32x8xf32, #tpu.memory_space<vmem>>, vector<1x1x1x32x8xf32>
    %790 = vector.shape_cast %789 : vector<1x1x1x32x8xf32> to vector<32x8xf32>
    %cst_781 = arith.constant dense<0.000000e+00> : vector<32x8xf32>
    %791 = tpu.matmul %466, %790, %cst_781 {dimension_numbers = #tpu.dot_dimension_numbers<[1], [0], [0], [1], [0, 0, 1, 1], [], []>} : vector<32x32xf32>, vector<32x8xf32>, vector<32x8xf32> -> vector<32x8xf32>
    %c0_782 = arith.constant 0 : index
    %c2_783 = arith.constant 2 : index
    %c3_784 = arith.constant 3 : index
    %c0_785 = arith.constant 0 : index
    %c0_786 = arith.constant 0 : index
    %792 = vector.load %arg21[%c0_782, %c2_783, %c3_784, %c0_785, %c0_786] : memref<2x3x4x1x8xf32, #tpu.memory_space<vmem>>, vector<1x1x1x1x8xf32>
    %793 = vector.shape_cast %792 : vector<1x1x1x1x8xf32> to vector<1x8xf32>
    %794 = vector.broadcast %793 : vector<1x8xf32> to vector<32x8xf32>
    %795 = arith.addf %791, %794 : vector<32x8xf32>
    %cst_787 = arith.constant dense<0.000000e+00> : vector<16x32xf32>
    %796 = tpu.matmul %781, %788, %cst_787 {dimension_numbers = #tpu.dot_dimension_numbers<[1], [1], [0], [0], [0, 0, 1, 0], [], []>} : vector<16x8xf32>, vector<32x8xf32>, vector<16x32xf32> -> vector<16x32xf32>
    %cst_788 = arith.constant 0.353553385 : f32
    %797 = vector.broadcast %cst_788 : f32 to vector<16x32xf32>
    %798 = arith.mulf %796, %797 : vector<16x32xf32>
    %799 = arith.addf %798, %4 : vector<16x32xf32>
    %cst_789 = arith.constant dense<0xFF800000> : vector<16xf32>
    %800 = vector.multi_reduction <maximumf>, %799, %cst_789 [1] : vector<16x32xf32> to vector<16xf32>
    %801 = vector.shape_cast %800 : vector<16xf32> to vector<16x1xf32>
    %802 = vector.broadcast %801 : vector<16x1xf32> to vector<16x32xf32>
    %803 = arith.subf %799, %802 : vector<16x32xf32>
    %804 = math.exp %803 : vector<16x32xf32>
    %cst_790 = arith.constant dense<0.000000e+00> : vector<16xf32>
    %805 = vector.multi_reduction <add>, %804, %cst_790 [1] : vector<16x32xf32> to vector<16xf32>
    %806 = vector.shape_cast %805 : vector<16xf32> to vector<16x1xf32>
    %807 = tpu.reciprocal %806 {approx = true} : vector<16x1xf32> -> vector<16x1xf32>
    %808 = vector.broadcast %807 : vector<16x1xf32> to vector<16x32xf32>
    %809 = arith.mulf %804, %808 : vector<16x32xf32>
    %cst_791 = arith.constant dense<0.000000e+00> : vector<16x8xf32>
    %810 = tpu.matmul %809, %795, %cst_791 {dimension_numbers = #tpu.dot_dimension_numbers<[1], [0], [0], [1], [0, 0, 1, 1], [], []>} : vector<16x32xf32>, vector<32x8xf32>, vector<16x8xf32> -> vector<16x8xf32>
    %c0_792 = arith.constant 0 : index
    %c3_793 = arith.constant 3 : index
    %c0_794 = arith.constant 0 : index
    %c0_795 = arith.constant 0 : index
    %811 = vector.load %arg22[%c0_792, %c3_793, %c0_794, %c0_795] : memref<2x4x8x32xf32, #tpu.memory_space<vmem>>, vector<1x1x8x32xf32>
    %812 = vector.shape_cast %811 : vector<1x1x8x32xf32> to vector<8x32xf32>
    %cst_796 = arith.constant dense<0.000000e+00> : vector<16x32xf32>
    %813 = tpu.matmul %810, %812, %cst_796 {dimension_numbers = #tpu.dot_dimension_numbers<[1], [0], [0], [1], [0, 0, 1, 1], [], []>} : vector<16x8xf32>, vector<8x32xf32>, vector<16x32xf32> -> vector<16x32xf32>
    %814 = arith.addf %774, %813 : vector<16x32xf32>
    %c0_797 = arith.constant 0 : index
    %c0_798 = arith.constant 0 : index
    %c0_799 = arith.constant 0 : index
    %815 = vector.load %arg23[%c0_797, %c0_798, %c0_799] : memref<2x1x32xf32, #tpu.memory_space<vmem>>, vector<1x1x32xf32>
    %816 = vector.shape_cast %815 : vector<1x1x32xf32> to vector<1x32xf32>
    %817 = vector.broadcast %816 : vector<1x32xf32> to vector<16x32xf32>
    %818 = arith.addf %814, %817 : vector<16x32xf32>
    %819 = arith.addf %655, %818 : vector<16x32xf32>
    %c0_800 = arith.constant 0 : index
    %c0_801 = arith.constant 0 : index
    %c0_802 = arith.constant 0 : index
    %c0_803 = arith.constant 0 : index
    %820 = vector.load %arg24[%c0_800, %c0_801, %c0_802, %c0_803] : memref<2x2x1x32xf32, #tpu.memory_space<vmem>>, vector<1x1x1x32xf32>
    %821 = vector.shape_cast %820 : vector<1x1x1x32xf32> to vector<1x32xf32>
    %c0_804 = arith.constant 0 : index
    %c1_805 = arith.constant 1 : index
    %c0_806 = arith.constant 0 : index
    %c0_807 = arith.constant 0 : index
    %822 = vector.load %arg24[%c0_804, %c1_805, %c0_806, %c0_807] : memref<2x2x1x32xf32, #tpu.memory_space<vmem>>, vector<1x1x1x32xf32>
    %823 = vector.shape_cast %822 : vector<1x1x1x32xf32> to vector<1x32xf32>
    %cst_808 = arith.constant dense<0.000000e+00> : vector<16xf32>
    %824 = vector.multi_reduction <add>, %819, %cst_808 [1] : vector<16x32xf32> to vector<16xf32>
    %825 = vector.shape_cast %824 : vector<16xf32> to vector<16x1xf32>
    %cst_809 = arith.constant 3.200000e+01 : f32
    %826 = vector.broadcast %cst_809 : f32 to vector<16x1xf32>
    %827 = arith.divf %825, %826 : vector<16x1xf32>
    %828 = vector.broadcast %827 : vector<16x1xf32> to vector<16x32xf32>
    %829 = arith.subf %819, %828 : vector<16x32xf32>
    %830 = arith.mulf %829, %829 : vector<16x32xf32>
    %cst_810 = arith.constant dense<0.000000e+00> : vector<16xf32>
    %831 = vector.multi_reduction <add>, %830, %cst_810 [1] : vector<16x32xf32> to vector<16xf32>
    %832 = vector.shape_cast %831 : vector<16xf32> to vector<16x1xf32>
    %cst_811 = arith.constant 0.0322580636 : f32
    %833 = vector.broadcast %cst_811 : f32 to vector<16x1xf32>
    %834 = arith.mulf %832, %833 : vector<16x1xf32>
    %835 = math.sqrt %834 : vector<16x1xf32>
    %cst_812 = arith.constant 9.99999997E-7 : f32
    %836 = vector.broadcast %cst_812 : f32 to vector<16x1xf32>
    %837 = arith.addf %835, %836 : vector<16x1xf32>
    %838 = tpu.reciprocal %837 {approx = true} : vector<16x1xf32> -> vector<16x1xf32>
    %839 = vector.broadcast %838 : vector<16x1xf32> to vector<16x32xf32>
    %840 = arith.mulf %829, %839 : vector<16x32xf32>
    %841 = vector.broadcast %821 : vector<1x32xf32> to vector<16x32xf32>
    %842 = arith.mulf %841, %840 : vector<16x32xf32>
    %843 = vector.broadcast %823 : vector<1x32xf32> to vector<16x32xf32>
    %844 = arith.addf %842, %843 : vector<16x32xf32>
    %c0_813 = arith.constant 0 : index
    %c0_814 = arith.constant 0 : index
    %c0_815 = arith.constant 0 : index
    %845 = vector.load %arg25[%c0_813, %c0_814, %c0_815] : memref<2x32x64xf32, #tpu.memory_space<vmem>>, vector<1x32x64xf32>
    %846 = vector.shape_cast %845 : vector<1x32x64xf32> to vector<32x64xf32>
    %cst_816 = arith.constant dense<0.000000e+00> : vector<16x64xf32>
    %847 = tpu.matmul %844, %846, %cst_816 {dimension_numbers = #tpu.dot_dimension_numbers<[1], [0], [0], [1], [0, 0, 1, 1], [], []>} : vector<16x32xf32>, vector<32x64xf32>, vector<16x64xf32> -> vector<16x64xf32>
    %c0_817 = arith.constant 0 : index
    %c0_818 = arith.constant 0 : index
    %c0_819 = arith.constant 0 : index
    %848 = vector.load %arg26[%c0_817, %c0_818, %c0_819] : memref<2x1x64xf32, #tpu.memory_space<vmem>>, vector<1x1x64xf32>
    %849 = vector.shape_cast %848 : vector<1x1x64xf32> to vector<1x64xf32>
    %850 = vector.broadcast %849 : vector<1x64xf32> to vector<16x64xf32>
    %851 = arith.addf %847, %850 : vector<16x64xf32>
    %cst_820 = arith.constant 0.000000e+00 : f32
    %852 = vector.broadcast %cst_820 : f32 to vector<16x64xf32>
    %853 = arith.maximumf %851, %852 : vector<16x64xf32>
    %c0_821 = arith.constant 0 : index
    %c0_822 = arith.constant 0 : index
    %c0_823 = arith.constant 0 : index
    %854 = vector.load %arg27[%c0_821, %c0_822, %c0_823] : memref<2x64x32xf32, #tpu.memory_space<vmem>>, vector<1x64x32xf32>
    %855 = vector.shape_cast %854 : vector<1x64x32xf32> to vector<64x32xf32>
    %cst_824 = arith.constant dense<0.000000e+00> : vector<16x32xf32>
    %856 = tpu.matmul %853, %855, %cst_824 {dimension_numbers = #tpu.dot_dimension_numbers<[1], [0], [0], [1], [0, 0, 1, 1], [], []>} : vector<16x64xf32>, vector<64x32xf32>, vector<16x32xf32> -> vector<16x32xf32>
    %c0_825 = arith.constant 0 : index
    %c0_826 = arith.constant 0 : index
    %c0_827 = arith.constant 0 : index
    %857 = vector.load %arg28[%c0_825, %c0_826, %c0_827] : memref<2x1x32xf32, #tpu.memory_space<vmem>>, vector<1x1x32xf32>
    %858 = vector.shape_cast %857 : vector<1x1x32xf32> to vector<1x32xf32>
    %859 = vector.broadcast %858 : vector<1x32xf32> to vector<16x32xf32>
    %860 = arith.addf %856, %859 : vector<16x32xf32>
    %861 = arith.addf %844, %860 : vector<16x32xf32>
    %c0_828 = arith.constant 0 : index
    %c0_829 = arith.constant 0 : index
    %c0_830 = arith.constant 0 : index
    %c0_831 = arith.constant 0 : index
    %862 = vector.load %arg29[%c0_828, %c0_829, %c0_830, %c0_831] : memref<2x2x1x32xf32, #tpu.memory_space<vmem>>, vector<1x1x1x32xf32>
    %863 = vector.shape_cast %862 : vector<1x1x1x32xf32> to vector<1x32xf32>
    %c0_832 = arith.constant 0 : index
    %c1_833 = arith.constant 1 : index
    %c0_834 = arith.constant 0 : index
    %c0_835 = arith.constant 0 : index
    %864 = vector.load %arg29[%c0_832, %c1_833, %c0_834, %c0_835] : memref<2x2x1x32xf32, #tpu.memory_space<vmem>>, vector<1x1x1x32xf32>
    %865 = vector.shape_cast %864 : vector<1x1x1x32xf32> to vector<1x32xf32>
    %cst_836 = arith.constant dense<0.000000e+00> : vector<16xf32>
    %866 = vector.multi_reduction <add>, %861, %cst_836 [1] : vector<16x32xf32> to vector<16xf32>
    %867 = vector.shape_cast %866 : vector<16xf32> to vector<16x1xf32>
    %cst_837 = arith.constant 3.200000e+01 : f32
    %868 = vector.broadcast %cst_837 : f32 to vector<16x1xf32>
    %869 = arith.divf %867, %868 : vector<16x1xf32>
    %870 = vector.broadcast %869 : vector<16x1xf32> to vector<16x32xf32>
    %871 = arith.subf %861, %870 : vector<16x32xf32>
    %872 = arith.mulf %871, %871 : vector<16x32xf32>
    %cst_838 = arith.constant dense<0.000000e+00> : vector<16xf32>
    %873 = vector.multi_reduction <add>, %872, %cst_838 [1] : vector<16x32xf32> to vector<16xf32>
    %874 = vector.shape_cast %873 : vector<16xf32> to vector<16x1xf32>
    %cst_839 = arith.constant 0.0322580636 : f32
    %875 = vector.broadcast %cst_839 : f32 to vector<16x1xf32>
    %876 = arith.mulf %874, %875 : vector<16x1xf32>
    %877 = math.sqrt %876 : vector<16x1xf32>
    %cst_840 = arith.constant 9.99999997E-7 : f32
    %878 = vector.broadcast %cst_840 : f32 to vector<16x1xf32>
    %879 = arith.addf %877, %878 : vector<16x1xf32>
    %880 = tpu.reciprocal %879 {approx = true} : vector<16x1xf32> -> vector<16x1xf32>
    %881 = vector.broadcast %880 : vector<16x1xf32> to vector<16x32xf32>
    %882 = arith.mulf %871, %881 : vector<16x32xf32>
    %883 = vector.broadcast %863 : vector<1x32xf32> to vector<16x32xf32>
    %884 = arith.mulf %883, %882 : vector<16x32xf32>
    %885 = vector.broadcast %865 : vector<1x32xf32> to vector<16x32xf32>
    %886 = arith.addf %884, %885 : vector<16x32xf32>
    %c1_841 = arith.constant 1 : index
    %c0_842 = arith.constant 0 : index
    %c0_843 = arith.constant 0 : index
    %c0_844 = arith.constant 0 : index
    %c0_845 = arith.constant 0 : index
    %887 = vector.load %arg15[%c1_841, %c0_842, %c0_843, %c0_844, %c0_845] : memref<2x3x4x32x8xf32, #tpu.memory_space<vmem>>, vector<1x1x1x32x8xf32>
    %888 = vector.shape_cast %887 : vector<1x1x1x32x8xf32> to vector<32x8xf32>
    %cst_846 = arith.constant dense<0.000000e+00> : vector<16x8xf32>
    %889 = tpu.matmul %886, %888, %cst_846 {dimension_numbers = #tpu.dot_dimension_numbers<[1], [0], [0], [1], [0, 0, 1, 1], [], []>} : vector<16x32xf32>, vector<32x8xf32>, vector<16x8xf32> -> vector<16x8xf32>
    %c1_847 = arith.constant 1 : index
    %c0_848 = arith.constant 0 : index
    %c0_849 = arith.constant 0 : index
    %c0_850 = arith.constant 0 : index
    %c0_851 = arith.constant 0 : index
    %890 = vector.load %arg16[%c1_847, %c0_848, %c0_849, %c0_850, %c0_851] : memref<2x3x4x1x8xf32, #tpu.memory_space<vmem>>, vector<1x1x1x1x8xf32>
    %891 = vector.shape_cast %890 : vector<1x1x1x1x8xf32> to vector<1x8xf32>
    %892 = vector.broadcast %891 : vector<1x8xf32> to vector<16x8xf32>
    %893 = arith.addf %889, %892 : vector<16x8xf32>
    %c1_852 = arith.constant 1 : index
    %c1_853 = arith.constant 1 : index
    %c0_854 = arith.constant 0 : index
    %c0_855 = arith.constant 0 : index
    %c0_856 = arith.constant 0 : index
    %894 = vector.load %arg15[%c1_852, %c1_853, %c0_854, %c0_855, %c0_856] : memref<2x3x4x32x8xf32, #tpu.memory_space<vmem>>, vector<1x1x1x32x8xf32>
    %895 = vector.shape_cast %894 : vector<1x1x1x32x8xf32> to vector<32x8xf32>
    %cst_857 = arith.constant dense<0.000000e+00> : vector<16x8xf32>
    %896 = tpu.matmul %886, %895, %cst_857 {dimension_numbers = #tpu.dot_dimension_numbers<[1], [0], [0], [1], [0, 0, 1, 1], [], []>} : vector<16x32xf32>, vector<32x8xf32>, vector<16x8xf32> -> vector<16x8xf32>
    %c1_858 = arith.constant 1 : index
    %c1_859 = arith.constant 1 : index
    %c0_860 = arith.constant 0 : index
    %c0_861 = arith.constant 0 : index
    %c0_862 = arith.constant 0 : index
    %897 = vector.load %arg16[%c1_858, %c1_859, %c0_860, %c0_861, %c0_862] : memref<2x3x4x1x8xf32, #tpu.memory_space<vmem>>, vector<1x1x1x1x8xf32>
    %898 = vector.shape_cast %897 : vector<1x1x1x1x8xf32> to vector<1x8xf32>
    %899 = vector.broadcast %898 : vector<1x8xf32> to vector<16x8xf32>
    %900 = arith.addf %896, %899 : vector<16x8xf32>
    %c1_863 = arith.constant 1 : index
    %c2_864 = arith.constant 2 : index
    %c0_865 = arith.constant 0 : index
    %c0_866 = arith.constant 0 : index
    %c0_867 = arith.constant 0 : index
    %901 = vector.load %arg15[%c1_863, %c2_864, %c0_865, %c0_866, %c0_867] : memref<2x3x4x32x8xf32, #tpu.memory_space<vmem>>, vector<1x1x1x32x8xf32>
    %902 = vector.shape_cast %901 : vector<1x1x1x32x8xf32> to vector<32x8xf32>
    %cst_868 = arith.constant dense<0.000000e+00> : vector<16x8xf32>
    %903 = tpu.matmul %886, %902, %cst_868 {dimension_numbers = #tpu.dot_dimension_numbers<[1], [0], [0], [1], [0, 0, 1, 1], [], []>} : vector<16x32xf32>, vector<32x8xf32>, vector<16x8xf32> -> vector<16x8xf32>
    %c1_869 = arith.constant 1 : index
    %c2_870 = arith.constant 2 : index
    %c0_871 = arith.constant 0 : index
    %c0_872 = arith.constant 0 : index
    %c0_873 = arith.constant 0 : index
    %904 = vector.load %arg16[%c1_869, %c2_870, %c0_871, %c0_872, %c0_873] : memref<2x3x4x1x8xf32, #tpu.memory_space<vmem>>, vector<1x1x1x1x8xf32>
    %905 = vector.shape_cast %904 : vector<1x1x1x1x8xf32> to vector<1x8xf32>
    %906 = vector.broadcast %905 : vector<1x8xf32> to vector<16x8xf32>
    %907 = arith.addf %903, %906 : vector<16x8xf32>
    %cst_874 = arith.constant dense<0.000000e+00> : vector<16x16xf32>
    %908 = tpu.matmul %893, %900, %cst_874 {dimension_numbers = #tpu.dot_dimension_numbers<[1], [1], [0], [0], [0, 0, 1, 0], [], []>} : vector<16x8xf32>, vector<16x8xf32>, vector<16x16xf32> -> vector<16x16xf32>
    %cst_875 = arith.constant 0.353553385 : f32
    %909 = vector.broadcast %cst_875 : f32 to vector<16x16xf32>
    %910 = arith.mulf %908, %909 : vector<16x16xf32>
    %911 = arith.addf %910, %3 : vector<16x16xf32>
    %cst_876 = arith.constant dense<0xFF800000> : vector<16xf32>
    %912 = vector.multi_reduction <maximumf>, %911, %cst_876 [1] : vector<16x16xf32> to vector<16xf32>
    %913 = vector.shape_cast %912 : vector<16xf32> to vector<16x1xf32>
    %914 = vector.broadcast %913 : vector<16x1xf32> to vector<16x16xf32>
    %915 = arith.subf %911, %914 : vector<16x16xf32>
    %916 = math.exp %915 : vector<16x16xf32>
    %cst_877 = arith.constant dense<0.000000e+00> : vector<16xf32>
    %917 = vector.multi_reduction <add>, %916, %cst_877 [1] : vector<16x16xf32> to vector<16xf32>
    %918 = vector.shape_cast %917 : vector<16xf32> to vector<16x1xf32>
    %919 = tpu.reciprocal %918 {approx = true} : vector<16x1xf32> -> vector<16x1xf32>
    %920 = vector.broadcast %919 : vector<16x1xf32> to vector<16x16xf32>
    %921 = arith.mulf %916, %920 : vector<16x16xf32>
    %cst_878 = arith.constant dense<0.000000e+00> : vector<16x8xf32>
    %922 = tpu.matmul %921, %907, %cst_878 {dimension_numbers = #tpu.dot_dimension_numbers<[1], [0], [0], [1], [0, 0, 1, 1], [], []>} : vector<16x16xf32>, vector<16x8xf32>, vector<16x8xf32> -> vector<16x8xf32>
    %c1_879 = arith.constant 1 : index
    %c0_880 = arith.constant 0 : index
    %c0_881 = arith.constant 0 : index
    %c0_882 = arith.constant 0 : index
    %923 = vector.load %arg17[%c1_879, %c0_880, %c0_881, %c0_882] : memref<2x4x8x32xf32, #tpu.memory_space<vmem>>, vector<1x1x8x32xf32>
    %924 = vector.shape_cast %923 : vector<1x1x8x32xf32> to vector<8x32xf32>
    %cst_883 = arith.constant dense<0.000000e+00> : vector<16x32xf32>
    %925 = tpu.matmul %922, %924, %cst_883 {dimension_numbers = #tpu.dot_dimension_numbers<[1], [0], [0], [1], [0, 0, 1, 1], [], []>} : vector<16x8xf32>, vector<8x32xf32>, vector<16x32xf32> -> vector<16x32xf32>
    %c1_884 = arith.constant 1 : index
    %c0_885 = arith.constant 0 : index
    %c1_886 = arith.constant 1 : index
    %c0_887 = arith.constant 0 : index
    %c0_888 = arith.constant 0 : index
    %926 = vector.load %arg15[%c1_884, %c0_885, %c1_886, %c0_887, %c0_888] : memref<2x3x4x32x8xf32, #tpu.memory_space<vmem>>, vector<1x1x1x32x8xf32>
    %927 = vector.shape_cast %926 : vector<1x1x1x32x8xf32> to vector<32x8xf32>
    %cst_889 = arith.constant dense<0.000000e+00> : vector<16x8xf32>
    %928 = tpu.matmul %886, %927, %cst_889 {dimension_numbers = #tpu.dot_dimension_numbers<[1], [0], [0], [1], [0, 0, 1, 1], [], []>} : vector<16x32xf32>, vector<32x8xf32>, vector<16x8xf32> -> vector<16x8xf32>
    %c1_890 = arith.constant 1 : index
    %c0_891 = arith.constant 0 : index
    %c1_892 = arith.constant 1 : index
    %c0_893 = arith.constant 0 : index
    %c0_894 = arith.constant 0 : index
    %929 = vector.load %arg16[%c1_890, %c0_891, %c1_892, %c0_893, %c0_894] : memref<2x3x4x1x8xf32, #tpu.memory_space<vmem>>, vector<1x1x1x1x8xf32>
    %930 = vector.shape_cast %929 : vector<1x1x1x1x8xf32> to vector<1x8xf32>
    %931 = vector.broadcast %930 : vector<1x8xf32> to vector<16x8xf32>
    %932 = arith.addf %928, %931 : vector<16x8xf32>
    %c1_895 = arith.constant 1 : index
    %c1_896 = arith.constant 1 : index
    %c1_897 = arith.constant 1 : index
    %c0_898 = arith.constant 0 : index
    %c0_899 = arith.constant 0 : index
    %933 = vector.load %arg15[%c1_895, %c1_896, %c1_897, %c0_898, %c0_899] : memref<2x3x4x32x8xf32, #tpu.memory_space<vmem>>, vector<1x1x1x32x8xf32>
    %934 = vector.shape_cast %933 : vector<1x1x1x32x8xf32> to vector<32x8xf32>
    %cst_900 = arith.constant dense<0.000000e+00> : vector<16x8xf32>
    %935 = tpu.matmul %886, %934, %cst_900 {dimension_numbers = #tpu.dot_dimension_numbers<[1], [0], [0], [1], [0, 0, 1, 1], [], []>} : vector<16x32xf32>, vector<32x8xf32>, vector<16x8xf32> -> vector<16x8xf32>
    %c1_901 = arith.constant 1 : index
    %c1_902 = arith.constant 1 : index
    %c1_903 = arith.constant 1 : index
    %c0_904 = arith.constant 0 : index
    %c0_905 = arith.constant 0 : index
    %936 = vector.load %arg16[%c1_901, %c1_902, %c1_903, %c0_904, %c0_905] : memref<2x3x4x1x8xf32, #tpu.memory_space<vmem>>, vector<1x1x1x1x8xf32>
    %937 = vector.shape_cast %936 : vector<1x1x1x1x8xf32> to vector<1x8xf32>
    %938 = vector.broadcast %937 : vector<1x8xf32> to vector<16x8xf32>
    %939 = arith.addf %935, %938 : vector<16x8xf32>
    %c1_906 = arith.constant 1 : index
    %c2_907 = arith.constant 2 : index
    %c1_908 = arith.constant 1 : index
    %c0_909 = arith.constant 0 : index
    %c0_910 = arith.constant 0 : index
    %940 = vector.load %arg15[%c1_906, %c2_907, %c1_908, %c0_909, %c0_910] : memref<2x3x4x32x8xf32, #tpu.memory_space<vmem>>, vector<1x1x1x32x8xf32>
    %941 = vector.shape_cast %940 : vector<1x1x1x32x8xf32> to vector<32x8xf32>
    %cst_911 = arith.constant dense<0.000000e+00> : vector<16x8xf32>
    %942 = tpu.matmul %886, %941, %cst_911 {dimension_numbers = #tpu.dot_dimension_numbers<[1], [0], [0], [1], [0, 0, 1, 1], [], []>} : vector<16x32xf32>, vector<32x8xf32>, vector<16x8xf32> -> vector<16x8xf32>
    %c1_912 = arith.constant 1 : index
    %c2_913 = arith.constant 2 : index
    %c1_914 = arith.constant 1 : index
    %c0_915 = arith.constant 0 : index
    %c0_916 = arith.constant 0 : index
    %943 = vector.load %arg16[%c1_912, %c2_913, %c1_914, %c0_915, %c0_916] : memref<2x3x4x1x8xf32, #tpu.memory_space<vmem>>, vector<1x1x1x1x8xf32>
    %944 = vector.shape_cast %943 : vector<1x1x1x1x8xf32> to vector<1x8xf32>
    %945 = vector.broadcast %944 : vector<1x8xf32> to vector<16x8xf32>
    %946 = arith.addf %942, %945 : vector<16x8xf32>
    %cst_917 = arith.constant dense<0.000000e+00> : vector<16x16xf32>
    %947 = tpu.matmul %932, %939, %cst_917 {dimension_numbers = #tpu.dot_dimension_numbers<[1], [1], [0], [0], [0, 0, 1, 0], [], []>} : vector<16x8xf32>, vector<16x8xf32>, vector<16x16xf32> -> vector<16x16xf32>
    %cst_918 = arith.constant 0.353553385 : f32
    %948 = vector.broadcast %cst_918 : f32 to vector<16x16xf32>
    %949 = arith.mulf %947, %948 : vector<16x16xf32>
    %950 = arith.addf %949, %3 : vector<16x16xf32>
    %cst_919 = arith.constant dense<0xFF800000> : vector<16xf32>
    %951 = vector.multi_reduction <maximumf>, %950, %cst_919 [1] : vector<16x16xf32> to vector<16xf32>
    %952 = vector.shape_cast %951 : vector<16xf32> to vector<16x1xf32>
    %953 = vector.broadcast %952 : vector<16x1xf32> to vector<16x16xf32>
    %954 = arith.subf %950, %953 : vector<16x16xf32>
    %955 = math.exp %954 : vector<16x16xf32>
    %cst_920 = arith.constant dense<0.000000e+00> : vector<16xf32>
    %956 = vector.multi_reduction <add>, %955, %cst_920 [1] : vector<16x16xf32> to vector<16xf32>
    %957 = vector.shape_cast %956 : vector<16xf32> to vector<16x1xf32>
    %958 = tpu.reciprocal %957 {approx = true} : vector<16x1xf32> -> vector<16x1xf32>
    %959 = vector.broadcast %958 : vector<16x1xf32> to vector<16x16xf32>
    %960 = arith.mulf %955, %959 : vector<16x16xf32>
    %cst_921 = arith.constant dense<0.000000e+00> : vector<16x8xf32>
    %961 = tpu.matmul %960, %946, %cst_921 {dimension_numbers = #tpu.dot_dimension_numbers<[1], [0], [0], [1], [0, 0, 1, 1], [], []>} : vector<16x16xf32>, vector<16x8xf32>, vector<16x8xf32> -> vector<16x8xf32>
    %c1_922 = arith.constant 1 : index
    %c1_923 = arith.constant 1 : index
    %c0_924 = arith.constant 0 : index
    %c0_925 = arith.constant 0 : index
    %962 = vector.load %arg17[%c1_922, %c1_923, %c0_924, %c0_925] : memref<2x4x8x32xf32, #tpu.memory_space<vmem>>, vector<1x1x8x32xf32>
    %963 = vector.shape_cast %962 : vector<1x1x8x32xf32> to vector<8x32xf32>
    %cst_926 = arith.constant dense<0.000000e+00> : vector<16x32xf32>
    %964 = tpu.matmul %961, %963, %cst_926 {dimension_numbers = #tpu.dot_dimension_numbers<[1], [0], [0], [1], [0, 0, 1, 1], [], []>} : vector<16x8xf32>, vector<8x32xf32>, vector<16x32xf32> -> vector<16x32xf32>
    %965 = arith.addf %925, %964 : vector<16x32xf32>
    %c1_927 = arith.constant 1 : index
    %c0_928 = arith.constant 0 : index
    %c2_929 = arith.constant 2 : index
    %c0_930 = arith.constant 0 : index
    %c0_931 = arith.constant 0 : index
    %966 = vector.load %arg15[%c1_927, %c0_928, %c2_929, %c0_930, %c0_931] : memref<2x3x4x32x8xf32, #tpu.memory_space<vmem>>, vector<1x1x1x32x8xf32>
    %967 = vector.shape_cast %966 : vector<1x1x1x32x8xf32> to vector<32x8xf32>
    %cst_932 = arith.constant dense<0.000000e+00> : vector<16x8xf32>
    %968 = tpu.matmul %886, %967, %cst_932 {dimension_numbers = #tpu.dot_dimension_numbers<[1], [0], [0], [1], [0, 0, 1, 1], [], []>} : vector<16x32xf32>, vector<32x8xf32>, vector<16x8xf32> -> vector<16x8xf32>
    %c1_933 = arith.constant 1 : index
    %c0_934 = arith.constant 0 : index
    %c2_935 = arith.constant 2 : index
    %c0_936 = arith.constant 0 : index
    %c0_937 = arith.constant 0 : index
    %969 = vector.load %arg16[%c1_933, %c0_934, %c2_935, %c0_936, %c0_937] : memref<2x3x4x1x8xf32, #tpu.memory_space<vmem>>, vector<1x1x1x1x8xf32>
    %970 = vector.shape_cast %969 : vector<1x1x1x1x8xf32> to vector<1x8xf32>
    %971 = vector.broadcast %970 : vector<1x8xf32> to vector<16x8xf32>
    %972 = arith.addf %968, %971 : vector<16x8xf32>
    %c1_938 = arith.constant 1 : index
    %c1_939 = arith.constant 1 : index
    %c2_940 = arith.constant 2 : index
    %c0_941 = arith.constant 0 : index
    %c0_942 = arith.constant 0 : index
    %973 = vector.load %arg15[%c1_938, %c1_939, %c2_940, %c0_941, %c0_942] : memref<2x3x4x32x8xf32, #tpu.memory_space<vmem>>, vector<1x1x1x32x8xf32>
    %974 = vector.shape_cast %973 : vector<1x1x1x32x8xf32> to vector<32x8xf32>
    %cst_943 = arith.constant dense<0.000000e+00> : vector<16x8xf32>
    %975 = tpu.matmul %886, %974, %cst_943 {dimension_numbers = #tpu.dot_dimension_numbers<[1], [0], [0], [1], [0, 0, 1, 1], [], []>} : vector<16x32xf32>, vector<32x8xf32>, vector<16x8xf32> -> vector<16x8xf32>
    %c1_944 = arith.constant 1 : index
    %c1_945 = arith.constant 1 : index
    %c2_946 = arith.constant 2 : index
    %c0_947 = arith.constant 0 : index
    %c0_948 = arith.constant 0 : index
    %976 = vector.load %arg16[%c1_944, %c1_945, %c2_946, %c0_947, %c0_948] : memref<2x3x4x1x8xf32, #tpu.memory_space<vmem>>, vector<1x1x1x1x8xf32>
    %977 = vector.shape_cast %976 : vector<1x1x1x1x8xf32> to vector<1x8xf32>
    %978 = vector.broadcast %977 : vector<1x8xf32> to vector<16x8xf32>
    %979 = arith.addf %975, %978 : vector<16x8xf32>
    %c1_949 = arith.constant 1 : index
    %c2_950 = arith.constant 2 : index
    %c2_951 = arith.constant 2 : index
    %c0_952 = arith.constant 0 : index
    %c0_953 = arith.constant 0 : index
    %980 = vector.load %arg15[%c1_949, %c2_950, %c2_951, %c0_952, %c0_953] : memref<2x3x4x32x8xf32, #tpu.memory_space<vmem>>, vector<1x1x1x32x8xf32>
    %981 = vector.shape_cast %980 : vector<1x1x1x32x8xf32> to vector<32x8xf32>
    %cst_954 = arith.constant dense<0.000000e+00> : vector<16x8xf32>
    %982 = tpu.matmul %886, %981, %cst_954 {dimension_numbers = #tpu.dot_dimension_numbers<[1], [0], [0], [1], [0, 0, 1, 1], [], []>} : vector<16x32xf32>, vector<32x8xf32>, vector<16x8xf32> -> vector<16x8xf32>
    %c1_955 = arith.constant 1 : index
    %c2_956 = arith.constant 2 : index
    %c2_957 = arith.constant 2 : index
    %c0_958 = arith.constant 0 : index
    %c0_959 = arith.constant 0 : index
    %983 = vector.load %arg16[%c1_955, %c2_956, %c2_957, %c0_958, %c0_959] : memref<2x3x4x1x8xf32, #tpu.memory_space<vmem>>, vector<1x1x1x1x8xf32>
    %984 = vector.shape_cast %983 : vector<1x1x1x1x8xf32> to vector<1x8xf32>
    %985 = vector.broadcast %984 : vector<1x8xf32> to vector<16x8xf32>
    %986 = arith.addf %982, %985 : vector<16x8xf32>
    %cst_960 = arith.constant dense<0.000000e+00> : vector<16x16xf32>
    %987 = tpu.matmul %972, %979, %cst_960 {dimension_numbers = #tpu.dot_dimension_numbers<[1], [1], [0], [0], [0, 0, 1, 0], [], []>} : vector<16x8xf32>, vector<16x8xf32>, vector<16x16xf32> -> vector<16x16xf32>
    %cst_961 = arith.constant 0.353553385 : f32
    %988 = vector.broadcast %cst_961 : f32 to vector<16x16xf32>
    %989 = arith.mulf %987, %988 : vector<16x16xf32>
    %990 = arith.addf %989, %3 : vector<16x16xf32>
    %cst_962 = arith.constant dense<0xFF800000> : vector<16xf32>
    %991 = vector.multi_reduction <maximumf>, %990, %cst_962 [1] : vector<16x16xf32> to vector<16xf32>
    %992 = vector.shape_cast %991 : vector<16xf32> to vector<16x1xf32>
    %993 = vector.broadcast %992 : vector<16x1xf32> to vector<16x16xf32>
    %994 = arith.subf %990, %993 : vector<16x16xf32>
    %995 = math.exp %994 : vector<16x16xf32>
    %cst_963 = arith.constant dense<0.000000e+00> : vector<16xf32>
    %996 = vector.multi_reduction <add>, %995, %cst_963 [1] : vector<16x16xf32> to vector<16xf32>
    %997 = vector.shape_cast %996 : vector<16xf32> to vector<16x1xf32>
    %998 = tpu.reciprocal %997 {approx = true} : vector<16x1xf32> -> vector<16x1xf32>
    %999 = vector.broadcast %998 : vector<16x1xf32> to vector<16x16xf32>
    %1000 = arith.mulf %995, %999 : vector<16x16xf32>
    %cst_964 = arith.constant dense<0.000000e+00> : vector<16x8xf32>
    %1001 = tpu.matmul %1000, %986, %cst_964 {dimension_numbers = #tpu.dot_dimension_numbers<[1], [0], [0], [1], [0, 0, 1, 1], [], []>} : vector<16x16xf32>, vector<16x8xf32>, vector<16x8xf32> -> vector<16x8xf32>
    %c1_965 = arith.constant 1 : index
    %c2_966 = arith.constant 2 : index
    %c0_967 = arith.constant 0 : index
    %c0_968 = arith.constant 0 : index
    %1002 = vector.load %arg17[%c1_965, %c2_966, %c0_967, %c0_968] : memref<2x4x8x32xf32, #tpu.memory_space<vmem>>, vector<1x1x8x32xf32>
    %1003 = vector.shape_cast %1002 : vector<1x1x8x32xf32> to vector<8x32xf32>
    %cst_969 = arith.constant dense<0.000000e+00> : vector<16x32xf32>
    %1004 = tpu.matmul %1001, %1003, %cst_969 {dimension_numbers = #tpu.dot_dimension_numbers<[1], [0], [0], [1], [0, 0, 1, 1], [], []>} : vector<16x8xf32>, vector<8x32xf32>, vector<16x32xf32> -> vector<16x32xf32>
    %1005 = arith.addf %965, %1004 : vector<16x32xf32>
    %c1_970 = arith.constant 1 : index
    %c0_971 = arith.constant 0 : index
    %c3_972 = arith.constant 3 : index
    %c0_973 = arith.constant 0 : index
    %c0_974 = arith.constant 0 : index
    %1006 = vector.load %arg15[%c1_970, %c0_971, %c3_972, %c0_973, %c0_974] : memref<2x3x4x32x8xf32, #tpu.memory_space<vmem>>, vector<1x1x1x32x8xf32>
    %1007 = vector.shape_cast %1006 : vector<1x1x1x32x8xf32> to vector<32x8xf32>
    %cst_975 = arith.constant dense<0.000000e+00> : vector<16x8xf32>
    %1008 = tpu.matmul %886, %1007, %cst_975 {dimension_numbers = #tpu.dot_dimension_numbers<[1], [0], [0], [1], [0, 0, 1, 1], [], []>} : vector<16x32xf32>, vector<32x8xf32>, vector<16x8xf32> -> vector<16x8xf32>
    %c1_976 = arith.constant 1 : index
    %c0_977 = arith.constant 0 : index
    %c3_978 = arith.constant 3 : index
    %c0_979 = arith.constant 0 : index
    %c0_980 = arith.constant 0 : index
    %1009 = vector.load %arg16[%c1_976, %c0_977, %c3_978, %c0_979, %c0_980] : memref<2x3x4x1x8xf32, #tpu.memory_space<vmem>>, vector<1x1x1x1x8xf32>
    %1010 = vector.shape_cast %1009 : vector<1x1x1x1x8xf32> to vector<1x8xf32>
    %1011 = vector.broadcast %1010 : vector<1x8xf32> to vector<16x8xf32>
    %1012 = arith.addf %1008, %1011 : vector<16x8xf32>
    %c1_981 = arith.constant 1 : index
    %c1_982 = arith.constant 1 : index
    %c3_983 = arith.constant 3 : index
    %c0_984 = arith.constant 0 : index
    %c0_985 = arith.constant 0 : index
    %1013 = vector.load %arg15[%c1_981, %c1_982, %c3_983, %c0_984, %c0_985] : memref<2x3x4x32x8xf32, #tpu.memory_space<vmem>>, vector<1x1x1x32x8xf32>
    %1014 = vector.shape_cast %1013 : vector<1x1x1x32x8xf32> to vector<32x8xf32>
    %cst_986 = arith.constant dense<0.000000e+00> : vector<16x8xf32>
    %1015 = tpu.matmul %886, %1014, %cst_986 {dimension_numbers = #tpu.dot_dimension_numbers<[1], [0], [0], [1], [0, 0, 1, 1], [], []>} : vector<16x32xf32>, vector<32x8xf32>, vector<16x8xf32> -> vector<16x8xf32>
    %c1_987 = arith.constant 1 : index
    %c1_988 = arith.constant 1 : index
    %c3_989 = arith.constant 3 : index
    %c0_990 = arith.constant 0 : index
    %c0_991 = arith.constant 0 : index
    %1016 = vector.load %arg16[%c1_987, %c1_988, %c3_989, %c0_990, %c0_991] : memref<2x3x4x1x8xf32, #tpu.memory_space<vmem>>, vector<1x1x1x1x8xf32>
    %1017 = vector.shape_cast %1016 : vector<1x1x1x1x8xf32> to vector<1x8xf32>
    %1018 = vector.broadcast %1017 : vector<1x8xf32> to vector<16x8xf32>
    %1019 = arith.addf %1015, %1018 : vector<16x8xf32>
    %c1_992 = arith.constant 1 : index
    %c2_993 = arith.constant 2 : index
    %c3_994 = arith.constant 3 : index
    %c0_995 = arith.constant 0 : index
    %c0_996 = arith.constant 0 : index
    %1020 = vector.load %arg15[%c1_992, %c2_993, %c3_994, %c0_995, %c0_996] : memref<2x3x4x32x8xf32, #tpu.memory_space<vmem>>, vector<1x1x1x32x8xf32>
    %1021 = vector.shape_cast %1020 : vector<1x1x1x32x8xf32> to vector<32x8xf32>
    %cst_997 = arith.constant dense<0.000000e+00> : vector<16x8xf32>
    %1022 = tpu.matmul %886, %1021, %cst_997 {dimension_numbers = #tpu.dot_dimension_numbers<[1], [0], [0], [1], [0, 0, 1, 1], [], []>} : vector<16x32xf32>, vector<32x8xf32>, vector<16x8xf32> -> vector<16x8xf32>
    %c1_998 = arith.constant 1 : index
    %c2_999 = arith.constant 2 : index
    %c3_1000 = arith.constant 3 : index
    %c0_1001 = arith.constant 0 : index
    %c0_1002 = arith.constant 0 : index
    %1023 = vector.load %arg16[%c1_998, %c2_999, %c3_1000, %c0_1001, %c0_1002] : memref<2x3x4x1x8xf32, #tpu.memory_space<vmem>>, vector<1x1x1x1x8xf32>
    %1024 = vector.shape_cast %1023 : vector<1x1x1x1x8xf32> to vector<1x8xf32>
    %1025 = vector.broadcast %1024 : vector<1x8xf32> to vector<16x8xf32>
    %1026 = arith.addf %1022, %1025 : vector<16x8xf32>
    %cst_1003 = arith.constant dense<0.000000e+00> : vector<16x16xf32>
    %1027 = tpu.matmul %1012, %1019, %cst_1003 {dimension_numbers = #tpu.dot_dimension_numbers<[1], [1], [0], [0], [0, 0, 1, 0], [], []>} : vector<16x8xf32>, vector<16x8xf32>, vector<16x16xf32> -> vector<16x16xf32>
    %cst_1004 = arith.constant 0.353553385 : f32
    %1028 = vector.broadcast %cst_1004 : f32 to vector<16x16xf32>
    %1029 = arith.mulf %1027, %1028 : vector<16x16xf32>
    %1030 = arith.addf %1029, %3 : vector<16x16xf32>
    %cst_1005 = arith.constant dense<0xFF800000> : vector<16xf32>
    %1031 = vector.multi_reduction <maximumf>, %1030, %cst_1005 [1] : vector<16x16xf32> to vector<16xf32>
    %1032 = vector.shape_cast %1031 : vector<16xf32> to vector<16x1xf32>
    %1033 = vector.broadcast %1032 : vector<16x1xf32> to vector<16x16xf32>
    %1034 = arith.subf %1030, %1033 : vector<16x16xf32>
    %1035 = math.exp %1034 : vector<16x16xf32>
    %cst_1006 = arith.constant dense<0.000000e+00> : vector<16xf32>
    %1036 = vector.multi_reduction <add>, %1035, %cst_1006 [1] : vector<16x16xf32> to vector<16xf32>
    %1037 = vector.shape_cast %1036 : vector<16xf32> to vector<16x1xf32>
    %1038 = tpu.reciprocal %1037 {approx = true} : vector<16x1xf32> -> vector<16x1xf32>
    %1039 = vector.broadcast %1038 : vector<16x1xf32> to vector<16x16xf32>
    %1040 = arith.mulf %1035, %1039 : vector<16x16xf32>
    %cst_1007 = arith.constant dense<0.000000e+00> : vector<16x8xf32>
    %1041 = tpu.matmul %1040, %1026, %cst_1007 {dimension_numbers = #tpu.dot_dimension_numbers<[1], [0], [0], [1], [0, 0, 1, 1], [], []>} : vector<16x16xf32>, vector<16x8xf32>, vector<16x8xf32> -> vector<16x8xf32>
    %c1_1008 = arith.constant 1 : index
    %c3_1009 = arith.constant 3 : index
    %c0_1010 = arith.constant 0 : index
    %c0_1011 = arith.constant 0 : index
    %1042 = vector.load %arg17[%c1_1008, %c3_1009, %c0_1010, %c0_1011] : memref<2x4x8x32xf32, #tpu.memory_space<vmem>>, vector<1x1x8x32xf32>
    %1043 = vector.shape_cast %1042 : vector<1x1x8x32xf32> to vector<8x32xf32>
    %cst_1012 = arith.constant dense<0.000000e+00> : vector<16x32xf32>
    %1044 = tpu.matmul %1041, %1043, %cst_1012 {dimension_numbers = #tpu.dot_dimension_numbers<[1], [0], [0], [1], [0, 0, 1, 1], [], []>} : vector<16x8xf32>, vector<8x32xf32>, vector<16x32xf32> -> vector<16x32xf32>
    %1045 = arith.addf %1005, %1044 : vector<16x32xf32>
    %c1_1013 = arith.constant 1 : index
    %c0_1014 = arith.constant 0 : index
    %c0_1015 = arith.constant 0 : index
    %1046 = vector.load %arg18[%c1_1013, %c0_1014, %c0_1015] : memref<2x1x32xf32, #tpu.memory_space<vmem>>, vector<1x1x32xf32>
    %1047 = vector.shape_cast %1046 : vector<1x1x32xf32> to vector<1x32xf32>
    %1048 = vector.broadcast %1047 : vector<1x32xf32> to vector<16x32xf32>
    %1049 = arith.addf %1045, %1048 : vector<16x32xf32>
    %1050 = arith.addf %886, %1049 : vector<16x32xf32>
    %c1_1016 = arith.constant 1 : index
    %c0_1017 = arith.constant 0 : index
    %c0_1018 = arith.constant 0 : index
    %c0_1019 = arith.constant 0 : index
    %1051 = vector.load %arg19[%c1_1016, %c0_1017, %c0_1018, %c0_1019] : memref<2x2x1x32xf32, #tpu.memory_space<vmem>>, vector<1x1x1x32xf32>
    %1052 = vector.shape_cast %1051 : vector<1x1x1x32xf32> to vector<1x32xf32>
    %c1_1020 = arith.constant 1 : index
    %c1_1021 = arith.constant 1 : index
    %c0_1022 = arith.constant 0 : index
    %c0_1023 = arith.constant 0 : index
    %1053 = vector.load %arg19[%c1_1020, %c1_1021, %c0_1022, %c0_1023] : memref<2x2x1x32xf32, #tpu.memory_space<vmem>>, vector<1x1x1x32xf32>
    %1054 = vector.shape_cast %1053 : vector<1x1x1x32xf32> to vector<1x32xf32>
    %cst_1024 = arith.constant dense<0.000000e+00> : vector<16xf32>
    %1055 = vector.multi_reduction <add>, %1050, %cst_1024 [1] : vector<16x32xf32> to vector<16xf32>
    %1056 = vector.shape_cast %1055 : vector<16xf32> to vector<16x1xf32>
    %cst_1025 = arith.constant 3.200000e+01 : f32
    %1057 = vector.broadcast %cst_1025 : f32 to vector<16x1xf32>
    %1058 = arith.divf %1056, %1057 : vector<16x1xf32>
    %1059 = vector.broadcast %1058 : vector<16x1xf32> to vector<16x32xf32>
    %1060 = arith.subf %1050, %1059 : vector<16x32xf32>
    %1061 = arith.mulf %1060, %1060 : vector<16x32xf32>
    %cst_1026 = arith.constant dense<0.000000e+00> : vector<16xf32>
    %1062 = vector.multi_reduction <add>, %1061, %cst_1026 [1] : vector<16x32xf32> to vector<16xf32>
    %1063 = vector.shape_cast %1062 : vector<16xf32> to vector<16x1xf32>
    %cst_1027 = arith.constant 0.0322580636 : f32
    %1064 = vector.broadcast %cst_1027 : f32 to vector<16x1xf32>
    %1065 = arith.mulf %1063, %1064 : vector<16x1xf32>
    %1066 = math.sqrt %1065 : vector<16x1xf32>
    %cst_1028 = arith.constant 9.99999997E-7 : f32
    %1067 = vector.broadcast %cst_1028 : f32 to vector<16x1xf32>
    %1068 = arith.addf %1066, %1067 : vector<16x1xf32>
    %1069 = tpu.reciprocal %1068 {approx = true} : vector<16x1xf32> -> vector<16x1xf32>
    %1070 = vector.broadcast %1069 : vector<16x1xf32> to vector<16x32xf32>
    %1071 = arith.mulf %1060, %1070 : vector<16x32xf32>
    %1072 = vector.broadcast %1052 : vector<1x32xf32> to vector<16x32xf32>
    %1073 = arith.mulf %1072, %1071 : vector<16x32xf32>
    %1074 = vector.broadcast %1054 : vector<1x32xf32> to vector<16x32xf32>
    %1075 = arith.addf %1073, %1074 : vector<16x32xf32>
    %c1_1029 = arith.constant 1 : index
    %c0_1030 = arith.constant 0 : index
    %c0_1031 = arith.constant 0 : index
    %c0_1032 = arith.constant 0 : index
    %c0_1033 = arith.constant 0 : index
    %1076 = vector.load %arg20[%c1_1029, %c0_1030, %c0_1031, %c0_1032, %c0_1033] : memref<2x3x4x32x8xf32, #tpu.memory_space<vmem>>, vector<1x1x1x32x8xf32>
    %1077 = vector.shape_cast %1076 : vector<1x1x1x32x8xf32> to vector<32x8xf32>
    %cst_1034 = arith.constant dense<0.000000e+00> : vector<16x8xf32>
    %1078 = tpu.matmul %1075, %1077, %cst_1034 {dimension_numbers = #tpu.dot_dimension_numbers<[1], [0], [0], [1], [0, 0, 1, 1], [], []>} : vector<16x32xf32>, vector<32x8xf32>, vector<16x8xf32> -> vector<16x8xf32>
    %c1_1035 = arith.constant 1 : index
    %c0_1036 = arith.constant 0 : index
    %c0_1037 = arith.constant 0 : index
    %c0_1038 = arith.constant 0 : index
    %c0_1039 = arith.constant 0 : index
    %1079 = vector.load %arg21[%c1_1035, %c0_1036, %c0_1037, %c0_1038, %c0_1039] : memref<2x3x4x1x8xf32, #tpu.memory_space<vmem>>, vector<1x1x1x1x8xf32>
    %1080 = vector.shape_cast %1079 : vector<1x1x1x1x8xf32> to vector<1x8xf32>
    %1081 = vector.broadcast %1080 : vector<1x8xf32> to vector<16x8xf32>
    %1082 = arith.addf %1078, %1081 : vector<16x8xf32>
    %c1_1040 = arith.constant 1 : index
    %c1_1041 = arith.constant 1 : index
    %c0_1042 = arith.constant 0 : index
    %c0_1043 = arith.constant 0 : index
    %c0_1044 = arith.constant 0 : index
    %1083 = vector.load %arg20[%c1_1040, %c1_1041, %c0_1042, %c0_1043, %c0_1044] : memref<2x3x4x32x8xf32, #tpu.memory_space<vmem>>, vector<1x1x1x32x8xf32>
    %1084 = vector.shape_cast %1083 : vector<1x1x1x32x8xf32> to vector<32x8xf32>
    %cst_1045 = arith.constant dense<0.000000e+00> : vector<32x8xf32>
    %1085 = tpu.matmul %466, %1084, %cst_1045 {dimension_numbers = #tpu.dot_dimension_numbers<[1], [0], [0], [1], [0, 0, 1, 1], [], []>} : vector<32x32xf32>, vector<32x8xf32>, vector<32x8xf32> -> vector<32x8xf32>
    %c1_1046 = arith.constant 1 : index
    %c1_1047 = arith.constant 1 : index
    %c0_1048 = arith.constant 0 : index
    %c0_1049 = arith.constant 0 : index
    %c0_1050 = arith.constant 0 : index
    %1086 = vector.load %arg21[%c1_1046, %c1_1047, %c0_1048, %c0_1049, %c0_1050] : memref<2x3x4x1x8xf32, #tpu.memory_space<vmem>>, vector<1x1x1x1x8xf32>
    %1087 = vector.shape_cast %1086 : vector<1x1x1x1x8xf32> to vector<1x8xf32>
    %1088 = vector.broadcast %1087 : vector<1x8xf32> to vector<32x8xf32>
    %1089 = arith.addf %1085, %1088 : vector<32x8xf32>
    %c1_1051 = arith.constant 1 : index
    %c2_1052 = arith.constant 2 : index
    %c0_1053 = arith.constant 0 : index
    %c0_1054 = arith.constant 0 : index
    %c0_1055 = arith.constant 0 : index
    %1090 = vector.load %arg20[%c1_1051, %c2_1052, %c0_1053, %c0_1054, %c0_1055] : memref<2x3x4x32x8xf32, #tpu.memory_space<vmem>>, vector<1x1x1x32x8xf32>
    %1091 = vector.shape_cast %1090 : vector<1x1x1x32x8xf32> to vector<32x8xf32>
    %cst_1056 = arith.constant dense<0.000000e+00> : vector<32x8xf32>
    %1092 = tpu.matmul %466, %1091, %cst_1056 {dimension_numbers = #tpu.dot_dimension_numbers<[1], [0], [0], [1], [0, 0, 1, 1], [], []>} : vector<32x32xf32>, vector<32x8xf32>, vector<32x8xf32> -> vector<32x8xf32>
    %c1_1057 = arith.constant 1 : index
    %c2_1058 = arith.constant 2 : index
    %c0_1059 = arith.constant 0 : index
    %c0_1060 = arith.constant 0 : index
    %c0_1061 = arith.constant 0 : index
    %1093 = vector.load %arg21[%c1_1057, %c2_1058, %c0_1059, %c0_1060, %c0_1061] : memref<2x3x4x1x8xf32, #tpu.memory_space<vmem>>, vector<1x1x1x1x8xf32>
    %1094 = vector.shape_cast %1093 : vector<1x1x1x1x8xf32> to vector<1x8xf32>
    %1095 = vector.broadcast %1094 : vector<1x8xf32> to vector<32x8xf32>
    %1096 = arith.addf %1092, %1095 : vector<32x8xf32>
    %cst_1062 = arith.constant dense<0.000000e+00> : vector<16x32xf32>
    %1097 = tpu.matmul %1082, %1089, %cst_1062 {dimension_numbers = #tpu.dot_dimension_numbers<[1], [1], [0], [0], [0, 0, 1, 0], [], []>} : vector<16x8xf32>, vector<32x8xf32>, vector<16x32xf32> -> vector<16x32xf32>
    %cst_1063 = arith.constant 0.353553385 : f32
    %1098 = vector.broadcast %cst_1063 : f32 to vector<16x32xf32>
    %1099 = arith.mulf %1097, %1098 : vector<16x32xf32>
    %1100 = arith.addf %1099, %4 : vector<16x32xf32>
    %cst_1064 = arith.constant dense<0xFF800000> : vector<16xf32>
    %1101 = vector.multi_reduction <maximumf>, %1100, %cst_1064 [1] : vector<16x32xf32> to vector<16xf32>
    %1102 = vector.shape_cast %1101 : vector<16xf32> to vector<16x1xf32>
    %1103 = vector.broadcast %1102 : vector<16x1xf32> to vector<16x32xf32>
    %1104 = arith.subf %1100, %1103 : vector<16x32xf32>
    %1105 = math.exp %1104 : vector<16x32xf32>
    %cst_1065 = arith.constant dense<0.000000e+00> : vector<16xf32>
    %1106 = vector.multi_reduction <add>, %1105, %cst_1065 [1] : vector<16x32xf32> to vector<16xf32>
    %1107 = vector.shape_cast %1106 : vector<16xf32> to vector<16x1xf32>
    %1108 = tpu.reciprocal %1107 {approx = true} : vector<16x1xf32> -> vector<16x1xf32>
    %1109 = vector.broadcast %1108 : vector<16x1xf32> to vector<16x32xf32>
    %1110 = arith.mulf %1105, %1109 : vector<16x32xf32>
    %cst_1066 = arith.constant dense<0.000000e+00> : vector<16x8xf32>
    %1111 = tpu.matmul %1110, %1096, %cst_1066 {dimension_numbers = #tpu.dot_dimension_numbers<[1], [0], [0], [1], [0, 0, 1, 1], [], []>} : vector<16x32xf32>, vector<32x8xf32>, vector<16x8xf32> -> vector<16x8xf32>
    %c1_1067 = arith.constant 1 : index
    %c0_1068 = arith.constant 0 : index
    %c0_1069 = arith.constant 0 : index
    %c0_1070 = arith.constant 0 : index
    %1112 = vector.load %arg22[%c1_1067, %c0_1068, %c0_1069, %c0_1070] : memref<2x4x8x32xf32, #tpu.memory_space<vmem>>, vector<1x1x8x32xf32>
    %1113 = vector.shape_cast %1112 : vector<1x1x8x32xf32> to vector<8x32xf32>
    %cst_1071 = arith.constant dense<0.000000e+00> : vector<16x32xf32>
    %1114 = tpu.matmul %1111, %1113, %cst_1071 {dimension_numbers = #tpu.dot_dimension_numbers<[1], [0], [0], [1], [0, 0, 1, 1], [], []>} : vector<16x8xf32>, vector<8x32xf32>, vector<16x32xf32> -> vector<16x32xf32>
    %c1_1072 = arith.constant 1 : index
    %c0_1073 = arith.constant 0 : index
    %c1_1074 = arith.constant 1 : index
    %c0_1075 = arith.constant 0 : index
    %c0_1076 = arith.constant 0 : index
    %1115 = vector.load %arg20[%c1_1072, %c0_1073, %c1_1074, %c0_1075, %c0_1076] : memref<2x3x4x32x8xf32, #tpu.memory_space<vmem>>, vector<1x1x1x32x8xf32>
    %1116 = vector.shape_cast %1115 : vector<1x1x1x32x8xf32> to vector<32x8xf32>
    %cst_1077 = arith.constant dense<0.000000e+00> : vector<16x8xf32>
    %1117 = tpu.matmul %1075, %1116, %cst_1077 {dimension_numbers = #tpu.dot_dimension_numbers<[1], [0], [0], [1], [0, 0, 1, 1], [], []>} : vector<16x32xf32>, vector<32x8xf32>, vector<16x8xf32> -> vector<16x8xf32>
    %c1_1078 = arith.constant 1 : index
    %c0_1079 = arith.constant 0 : index
    %c1_1080 = arith.constant 1 : index
    %c0_1081 = arith.constant 0 : index
    %c0_1082 = arith.constant 0 : index
    %1118 = vector.load %arg21[%c1_1078, %c0_1079, %c1_1080, %c0_1081, %c0_1082] : memref<2x3x4x1x8xf32, #tpu.memory_space<vmem>>, vector<1x1x1x1x8xf32>
    %1119 = vector.shape_cast %1118 : vector<1x1x1x1x8xf32> to vector<1x8xf32>
    %1120 = vector.broadcast %1119 : vector<1x8xf32> to vector<16x8xf32>
    %1121 = arith.addf %1117, %1120 : vector<16x8xf32>
    %c1_1083 = arith.constant 1 : index
    %c1_1084 = arith.constant 1 : index
    %c1_1085 = arith.constant 1 : index
    %c0_1086 = arith.constant 0 : index
    %c0_1087 = arith.constant 0 : index
    %1122 = vector.load %arg20[%c1_1083, %c1_1084, %c1_1085, %c0_1086, %c0_1087] : memref<2x3x4x32x8xf32, #tpu.memory_space<vmem>>, vector<1x1x1x32x8xf32>
    %1123 = vector.shape_cast %1122 : vector<1x1x1x32x8xf32> to vector<32x8xf32>
    %cst_1088 = arith.constant dense<0.000000e+00> : vector<32x8xf32>
    %1124 = tpu.matmul %466, %1123, %cst_1088 {dimension_numbers = #tpu.dot_dimension_numbers<[1], [0], [0], [1], [0, 0, 1, 1], [], []>} : vector<32x32xf32>, vector<32x8xf32>, vector<32x8xf32> -> vector<32x8xf32>
    %c1_1089 = arith.constant 1 : index
    %c1_1090 = arith.constant 1 : index
    %c1_1091 = arith.constant 1 : index
    %c0_1092 = arith.constant 0 : index
    %c0_1093 = arith.constant 0 : index
    %1125 = vector.load %arg21[%c1_1089, %c1_1090, %c1_1091, %c0_1092, %c0_1093] : memref<2x3x4x1x8xf32, #tpu.memory_space<vmem>>, vector<1x1x1x1x8xf32>
    %1126 = vector.shape_cast %1125 : vector<1x1x1x1x8xf32> to vector<1x8xf32>
    %1127 = vector.broadcast %1126 : vector<1x8xf32> to vector<32x8xf32>
    %1128 = arith.addf %1124, %1127 : vector<32x8xf32>
    %c1_1094 = arith.constant 1 : index
    %c2_1095 = arith.constant 2 : index
    %c1_1096 = arith.constant 1 : index
    %c0_1097 = arith.constant 0 : index
    %c0_1098 = arith.constant 0 : index
    %1129 = vector.load %arg20[%c1_1094, %c2_1095, %c1_1096, %c0_1097, %c0_1098] : memref<2x3x4x32x8xf32, #tpu.memory_space<vmem>>, vector<1x1x1x32x8xf32>
    %1130 = vector.shape_cast %1129 : vector<1x1x1x32x8xf32> to vector<32x8xf32>
    %cst_1099 = arith.constant dense<0.000000e+00> : vector<32x8xf32>
    %1131 = tpu.matmul %466, %1130, %cst_1099 {dimension_numbers = #tpu.dot_dimension_numbers<[1], [0], [0], [1], [0, 0, 1, 1], [], []>} : vector<32x32xf32>, vector<32x8xf32>, vector<32x8xf32> -> vector<32x8xf32>
    %c1_1100 = arith.constant 1 : index
    %c2_1101 = arith.constant 2 : index
    %c1_1102 = arith.constant 1 : index
    %c0_1103 = arith.constant 0 : index
    %c0_1104 = arith.constant 0 : index
    %1132 = vector.load %arg21[%c1_1100, %c2_1101, %c1_1102, %c0_1103, %c0_1104] : memref<2x3x4x1x8xf32, #tpu.memory_space<vmem>>, vector<1x1x1x1x8xf32>
    %1133 = vector.shape_cast %1132 : vector<1x1x1x1x8xf32> to vector<1x8xf32>
    %1134 = vector.broadcast %1133 : vector<1x8xf32> to vector<32x8xf32>
    %1135 = arith.addf %1131, %1134 : vector<32x8xf32>
    %cst_1105 = arith.constant dense<0.000000e+00> : vector<16x32xf32>
    %1136 = tpu.matmul %1121, %1128, %cst_1105 {dimension_numbers = #tpu.dot_dimension_numbers<[1], [1], [0], [0], [0, 0, 1, 0], [], []>} : vector<16x8xf32>, vector<32x8xf32>, vector<16x32xf32> -> vector<16x32xf32>
    %cst_1106 = arith.constant 0.353553385 : f32
    %1137 = vector.broadcast %cst_1106 : f32 to vector<16x32xf32>
    %1138 = arith.mulf %1136, %1137 : vector<16x32xf32>
    %1139 = arith.addf %1138, %4 : vector<16x32xf32>
    %cst_1107 = arith.constant dense<0xFF800000> : vector<16xf32>
    %1140 = vector.multi_reduction <maximumf>, %1139, %cst_1107 [1] : vector<16x32xf32> to vector<16xf32>
    %1141 = vector.shape_cast %1140 : vector<16xf32> to vector<16x1xf32>
    %1142 = vector.broadcast %1141 : vector<16x1xf32> to vector<16x32xf32>
    %1143 = arith.subf %1139, %1142 : vector<16x32xf32>
    %1144 = math.exp %1143 : vector<16x32xf32>
    %cst_1108 = arith.constant dense<0.000000e+00> : vector<16xf32>
    %1145 = vector.multi_reduction <add>, %1144, %cst_1108 [1] : vector<16x32xf32> to vector<16xf32>
    %1146 = vector.shape_cast %1145 : vector<16xf32> to vector<16x1xf32>
    %1147 = tpu.reciprocal %1146 {approx = true} : vector<16x1xf32> -> vector<16x1xf32>
    %1148 = vector.broadcast %1147 : vector<16x1xf32> to vector<16x32xf32>
    %1149 = arith.mulf %1144, %1148 : vector<16x32xf32>
    %cst_1109 = arith.constant dense<0.000000e+00> : vector<16x8xf32>
    %1150 = tpu.matmul %1149, %1135, %cst_1109 {dimension_numbers = #tpu.dot_dimension_numbers<[1], [0], [0], [1], [0, 0, 1, 1], [], []>} : vector<16x32xf32>, vector<32x8xf32>, vector<16x8xf32> -> vector<16x8xf32>
    %c1_1110 = arith.constant 1 : index
    %c1_1111 = arith.constant 1 : index
    %c0_1112 = arith.constant 0 : index
    %c0_1113 = arith.constant 0 : index
    %1151 = vector.load %arg22[%c1_1110, %c1_1111, %c0_1112, %c0_1113] : memref<2x4x8x32xf32, #tpu.memory_space<vmem>>, vector<1x1x8x32xf32>
    %1152 = vector.shape_cast %1151 : vector<1x1x8x32xf32> to vector<8x32xf32>
    %cst_1114 = arith.constant dense<0.000000e+00> : vector<16x32xf32>
    %1153 = tpu.matmul %1150, %1152, %cst_1114 {dimension_numbers = #tpu.dot_dimension_numbers<[1], [0], [0], [1], [0, 0, 1, 1], [], []>} : vector<16x8xf32>, vector<8x32xf32>, vector<16x32xf32> -> vector<16x32xf32>
    %1154 = arith.addf %1114, %1153 : vector<16x32xf32>
    %c1_1115 = arith.constant 1 : index
    %c0_1116 = arith.constant 0 : index
    %c2_1117 = arith.constant 2 : index
    %c0_1118 = arith.constant 0 : index
    %c0_1119 = arith.constant 0 : index
    %1155 = vector.load %arg20[%c1_1115, %c0_1116, %c2_1117, %c0_1118, %c0_1119] : memref<2x3x4x32x8xf32, #tpu.memory_space<vmem>>, vector<1x1x1x32x8xf32>
    %1156 = vector.shape_cast %1155 : vector<1x1x1x32x8xf32> to vector<32x8xf32>
    %cst_1120 = arith.constant dense<0.000000e+00> : vector<16x8xf32>
    %1157 = tpu.matmul %1075, %1156, %cst_1120 {dimension_numbers = #tpu.dot_dimension_numbers<[1], [0], [0], [1], [0, 0, 1, 1], [], []>} : vector<16x32xf32>, vector<32x8xf32>, vector<16x8xf32> -> vector<16x8xf32>
    %c1_1121 = arith.constant 1 : index
    %c0_1122 = arith.constant 0 : index
    %c2_1123 = arith.constant 2 : index
    %c0_1124 = arith.constant 0 : index
    %c0_1125 = arith.constant 0 : index
    %1158 = vector.load %arg21[%c1_1121, %c0_1122, %c2_1123, %c0_1124, %c0_1125] : memref<2x3x4x1x8xf32, #tpu.memory_space<vmem>>, vector<1x1x1x1x8xf32>
    %1159 = vector.shape_cast %1158 : vector<1x1x1x1x8xf32> to vector<1x8xf32>
    %1160 = vector.broadcast %1159 : vector<1x8xf32> to vector<16x8xf32>
    %1161 = arith.addf %1157, %1160 : vector<16x8xf32>
    %c1_1126 = arith.constant 1 : index
    %c1_1127 = arith.constant 1 : index
    %c2_1128 = arith.constant 2 : index
    %c0_1129 = arith.constant 0 : index
    %c0_1130 = arith.constant 0 : index
    %1162 = vector.load %arg20[%c1_1126, %c1_1127, %c2_1128, %c0_1129, %c0_1130] : memref<2x3x4x32x8xf32, #tpu.memory_space<vmem>>, vector<1x1x1x32x8xf32>
    %1163 = vector.shape_cast %1162 : vector<1x1x1x32x8xf32> to vector<32x8xf32>
    %cst_1131 = arith.constant dense<0.000000e+00> : vector<32x8xf32>
    %1164 = tpu.matmul %466, %1163, %cst_1131 {dimension_numbers = #tpu.dot_dimension_numbers<[1], [0], [0], [1], [0, 0, 1, 1], [], []>} : vector<32x32xf32>, vector<32x8xf32>, vector<32x8xf32> -> vector<32x8xf32>
    %c1_1132 = arith.constant 1 : index
    %c1_1133 = arith.constant 1 : index
    %c2_1134 = arith.constant 2 : index
    %c0_1135 = arith.constant 0 : index
    %c0_1136 = arith.constant 0 : index
    %1165 = vector.load %arg21[%c1_1132, %c1_1133, %c2_1134, %c0_1135, %c0_1136] : memref<2x3x4x1x8xf32, #tpu.memory_space<vmem>>, vector<1x1x1x1x8xf32>
    %1166 = vector.shape_cast %1165 : vector<1x1x1x1x8xf32> to vector<1x8xf32>
    %1167 = vector.broadcast %1166 : vector<1x8xf32> to vector<32x8xf32>
    %1168 = arith.addf %1164, %1167 : vector<32x8xf32>
    %c1_1137 = arith.constant 1 : index
    %c2_1138 = arith.constant 2 : index
    %c2_1139 = arith.constant 2 : index
    %c0_1140 = arith.constant 0 : index
    %c0_1141 = arith.constant 0 : index
    %1169 = vector.load %arg20[%c1_1137, %c2_1138, %c2_1139, %c0_1140, %c0_1141] : memref<2x3x4x32x8xf32, #tpu.memory_space<vmem>>, vector<1x1x1x32x8xf32>
    %1170 = vector.shape_cast %1169 : vector<1x1x1x32x8xf32> to vector<32x8xf32>
    %cst_1142 = arith.constant dense<0.000000e+00> : vector<32x8xf32>
    %1171 = tpu.matmul %466, %1170, %cst_1142 {dimension_numbers = #tpu.dot_dimension_numbers<[1], [0], [0], [1], [0, 0, 1, 1], [], []>} : vector<32x32xf32>, vector<32x8xf32>, vector<32x8xf32> -> vector<32x8xf32>
    %c1_1143 = arith.constant 1 : index
    %c2_1144 = arith.constant 2 : index
    %c2_1145 = arith.constant 2 : index
    %c0_1146 = arith.constant 0 : index
    %c0_1147 = arith.constant 0 : index
    %1172 = vector.load %arg21[%c1_1143, %c2_1144, %c2_1145, %c0_1146, %c0_1147] : memref<2x3x4x1x8xf32, #tpu.memory_space<vmem>>, vector<1x1x1x1x8xf32>
    %1173 = vector.shape_cast %1172 : vector<1x1x1x1x8xf32> to vector<1x8xf32>
    %1174 = vector.broadcast %1173 : vector<1x8xf32> to vector<32x8xf32>
    %1175 = arith.addf %1171, %1174 : vector<32x8xf32>
    %cst_1148 = arith.constant dense<0.000000e+00> : vector<16x32xf32>
    %1176 = tpu.matmul %1161, %1168, %cst_1148 {dimension_numbers = #tpu.dot_dimension_numbers<[1], [1], [0], [0], [0, 0, 1, 0], [], []>} : vector<16x8xf32>, vector<32x8xf32>, vector<16x32xf32> -> vector<16x32xf32>
    %cst_1149 = arith.constant 0.353553385 : f32
    %1177 = vector.broadcast %cst_1149 : f32 to vector<16x32xf32>
    %1178 = arith.mulf %1176, %1177 : vector<16x32xf32>
    %1179 = arith.addf %1178, %4 : vector<16x32xf32>
    %cst_1150 = arith.constant dense<0xFF800000> : vector<16xf32>
    %1180 = vector.multi_reduction <maximumf>, %1179, %cst_1150 [1] : vector<16x32xf32> to vector<16xf32>
    %1181 = vector.shape_cast %1180 : vector<16xf32> to vector<16x1xf32>
    %1182 = vector.broadcast %1181 : vector<16x1xf32> to vector<16x32xf32>
    %1183 = arith.subf %1179, %1182 : vector<16x32xf32>
    %1184 = math.exp %1183 : vector<16x32xf32>
    %cst_1151 = arith.constant dense<0.000000e+00> : vector<16xf32>
    %1185 = vector.multi_reduction <add>, %1184, %cst_1151 [1] : vector<16x32xf32> to vector<16xf32>
    %1186 = vector.shape_cast %1185 : vector<16xf32> to vector<16x1xf32>
    %1187 = tpu.reciprocal %1186 {approx = true} : vector<16x1xf32> -> vector<16x1xf32>
    %1188 = vector.broadcast %1187 : vector<16x1xf32> to vector<16x32xf32>
    %1189 = arith.mulf %1184, %1188 : vector<16x32xf32>
    %cst_1152 = arith.constant dense<0.000000e+00> : vector<16x8xf32>
    %1190 = tpu.matmul %1189, %1175, %cst_1152 {dimension_numbers = #tpu.dot_dimension_numbers<[1], [0], [0], [1], [0, 0, 1, 1], [], []>} : vector<16x32xf32>, vector<32x8xf32>, vector<16x8xf32> -> vector<16x8xf32>
    %c1_1153 = arith.constant 1 : index
    %c2_1154 = arith.constant 2 : index
    %c0_1155 = arith.constant 0 : index
    %c0_1156 = arith.constant 0 : index
    %1191 = vector.load %arg22[%c1_1153, %c2_1154, %c0_1155, %c0_1156] : memref<2x4x8x32xf32, #tpu.memory_space<vmem>>, vector<1x1x8x32xf32>
    %1192 = vector.shape_cast %1191 : vector<1x1x8x32xf32> to vector<8x32xf32>
    %cst_1157 = arith.constant dense<0.000000e+00> : vector<16x32xf32>
    %1193 = tpu.matmul %1190, %1192, %cst_1157 {dimension_numbers = #tpu.dot_dimension_numbers<[1], [0], [0], [1], [0, 0, 1, 1], [], []>} : vector<16x8xf32>, vector<8x32xf32>, vector<16x32xf32> -> vector<16x32xf32>
    %1194 = arith.addf %1154, %1193 : vector<16x32xf32>
    %c1_1158 = arith.constant 1 : index
    %c0_1159 = arith.constant 0 : index
    %c3_1160 = arith.constant 3 : index
    %c0_1161 = arith.constant 0 : index
    %c0_1162 = arith.constant 0 : index
    %1195 = vector.load %arg20[%c1_1158, %c0_1159, %c3_1160, %c0_1161, %c0_1162] : memref<2x3x4x32x8xf32, #tpu.memory_space<vmem>>, vector<1x1x1x32x8xf32>
    %1196 = vector.shape_cast %1195 : vector<1x1x1x32x8xf32> to vector<32x8xf32>
    %cst_1163 = arith.constant dense<0.000000e+00> : vector<16x8xf32>
    %1197 = tpu.matmul %1075, %1196, %cst_1163 {dimension_numbers = #tpu.dot_dimension_numbers<[1], [0], [0], [1], [0, 0, 1, 1], [], []>} : vector<16x32xf32>, vector<32x8xf32>, vector<16x8xf32> -> vector<16x8xf32>
    %c1_1164 = arith.constant 1 : index
    %c0_1165 = arith.constant 0 : index
    %c3_1166 = arith.constant 3 : index
    %c0_1167 = arith.constant 0 : index
    %c0_1168 = arith.constant 0 : index
    %1198 = vector.load %arg21[%c1_1164, %c0_1165, %c3_1166, %c0_1167, %c0_1168] : memref<2x3x4x1x8xf32, #tpu.memory_space<vmem>>, vector<1x1x1x1x8xf32>
    %1199 = vector.shape_cast %1198 : vector<1x1x1x1x8xf32> to vector<1x8xf32>
    %1200 = vector.broadcast %1199 : vector<1x8xf32> to vector<16x8xf32>
    %1201 = arith.addf %1197, %1200 : vector<16x8xf32>
    %c1_1169 = arith.constant 1 : index
    %c1_1170 = arith.constant 1 : index
    %c3_1171 = arith.constant 3 : index
    %c0_1172 = arith.constant 0 : index
    %c0_1173 = arith.constant 0 : index
    %1202 = vector.load %arg20[%c1_1169, %c1_1170, %c3_1171, %c0_1172, %c0_1173] : memref<2x3x4x32x8xf32, #tpu.memory_space<vmem>>, vector<1x1x1x32x8xf32>
    %1203 = vector.shape_cast %1202 : vector<1x1x1x32x8xf32> to vector<32x8xf32>
    %cst_1174 = arith.constant dense<0.000000e+00> : vector<32x8xf32>
    %1204 = tpu.matmul %466, %1203, %cst_1174 {dimension_numbers = #tpu.dot_dimension_numbers<[1], [0], [0], [1], [0, 0, 1, 1], [], []>} : vector<32x32xf32>, vector<32x8xf32>, vector<32x8xf32> -> vector<32x8xf32>
    %c1_1175 = arith.constant 1 : index
    %c1_1176 = arith.constant 1 : index
    %c3_1177 = arith.constant 3 : index
    %c0_1178 = arith.constant 0 : index
    %c0_1179 = arith.constant 0 : index
    %1205 = vector.load %arg21[%c1_1175, %c1_1176, %c3_1177, %c0_1178, %c0_1179] : memref<2x3x4x1x8xf32, #tpu.memory_space<vmem>>, vector<1x1x1x1x8xf32>
    %1206 = vector.shape_cast %1205 : vector<1x1x1x1x8xf32> to vector<1x8xf32>
    %1207 = vector.broadcast %1206 : vector<1x8xf32> to vector<32x8xf32>
    %1208 = arith.addf %1204, %1207 : vector<32x8xf32>
    %c1_1180 = arith.constant 1 : index
    %c2_1181 = arith.constant 2 : index
    %c3_1182 = arith.constant 3 : index
    %c0_1183 = arith.constant 0 : index
    %c0_1184 = arith.constant 0 : index
    %1209 = vector.load %arg20[%c1_1180, %c2_1181, %c3_1182, %c0_1183, %c0_1184] : memref<2x3x4x32x8xf32, #tpu.memory_space<vmem>>, vector<1x1x1x32x8xf32>
    %1210 = vector.shape_cast %1209 : vector<1x1x1x32x8xf32> to vector<32x8xf32>
    %cst_1185 = arith.constant dense<0.000000e+00> : vector<32x8xf32>
    %1211 = tpu.matmul %466, %1210, %cst_1185 {dimension_numbers = #tpu.dot_dimension_numbers<[1], [0], [0], [1], [0, 0, 1, 1], [], []>} : vector<32x32xf32>, vector<32x8xf32>, vector<32x8xf32> -> vector<32x8xf32>
    %c1_1186 = arith.constant 1 : index
    %c2_1187 = arith.constant 2 : index
    %c3_1188 = arith.constant 3 : index
    %c0_1189 = arith.constant 0 : index
    %c0_1190 = arith.constant 0 : index
    %1212 = vector.load %arg21[%c1_1186, %c2_1187, %c3_1188, %c0_1189, %c0_1190] : memref<2x3x4x1x8xf32, #tpu.memory_space<vmem>>, vector<1x1x1x1x8xf32>
    %1213 = vector.shape_cast %1212 : vector<1x1x1x1x8xf32> to vector<1x8xf32>
    %1214 = vector.broadcast %1213 : vector<1x8xf32> to vector<32x8xf32>
    %1215 = arith.addf %1211, %1214 : vector<32x8xf32>
    %cst_1191 = arith.constant dense<0.000000e+00> : vector<16x32xf32>
    %1216 = tpu.matmul %1201, %1208, %cst_1191 {dimension_numbers = #tpu.dot_dimension_numbers<[1], [1], [0], [0], [0, 0, 1, 0], [], []>} : vector<16x8xf32>, vector<32x8xf32>, vector<16x32xf32> -> vector<16x32xf32>
    %cst_1192 = arith.constant 0.353553385 : f32
    %1217 = vector.broadcast %cst_1192 : f32 to vector<16x32xf32>
    %1218 = arith.mulf %1216, %1217 : vector<16x32xf32>
    %1219 = arith.addf %1218, %4 : vector<16x32xf32>
    %cst_1193 = arith.constant dense<0xFF800000> : vector<16xf32>
    %1220 = vector.multi_reduction <maximumf>, %1219, %cst_1193 [1] : vector<16x32xf32> to vector<16xf32>
    %1221 = vector.shape_cast %1220 : vector<16xf32> to vector<16x1xf32>
    %1222 = vector.broadcast %1221 : vector<16x1xf32> to vector<16x32xf32>
    %1223 = arith.subf %1219, %1222 : vector<16x32xf32>
    %1224 = math.exp %1223 : vector<16x32xf32>
    %cst_1194 = arith.constant dense<0.000000e+00> : vector<16xf32>
    %1225 = vector.multi_reduction <add>, %1224, %cst_1194 [1] : vector<16x32xf32> to vector<16xf32>
    %1226 = vector.shape_cast %1225 : vector<16xf32> to vector<16x1xf32>
    %1227 = tpu.reciprocal %1226 {approx = true} : vector<16x1xf32> -> vector<16x1xf32>
    %1228 = vector.broadcast %1227 : vector<16x1xf32> to vector<16x32xf32>
    %1229 = arith.mulf %1224, %1228 : vector<16x32xf32>
    %cst_1195 = arith.constant dense<0.000000e+00> : vector<16x8xf32>
    %1230 = tpu.matmul %1229, %1215, %cst_1195 {dimension_numbers = #tpu.dot_dimension_numbers<[1], [0], [0], [1], [0, 0, 1, 1], [], []>} : vector<16x32xf32>, vector<32x8xf32>, vector<16x8xf32> -> vector<16x8xf32>
    %c1_1196 = arith.constant 1 : index
    %c3_1197 = arith.constant 3 : index
    %c0_1198 = arith.constant 0 : index
    %c0_1199 = arith.constant 0 : index
    %1231 = vector.load %arg22[%c1_1196, %c3_1197, %c0_1198, %c0_1199] : memref<2x4x8x32xf32, #tpu.memory_space<vmem>>, vector<1x1x8x32xf32>
    %1232 = vector.shape_cast %1231 : vector<1x1x8x32xf32> to vector<8x32xf32>
    %cst_1200 = arith.constant dense<0.000000e+00> : vector<16x32xf32>
    %1233 = tpu.matmul %1230, %1232, %cst_1200 {dimension_numbers = #tpu.dot_dimension_numbers<[1], [0], [0], [1], [0, 0, 1, 1], [], []>} : vector<16x8xf32>, vector<8x32xf32>, vector<16x32xf32> -> vector<16x32xf32>
    %1234 = arith.addf %1194, %1233 : vector<16x32xf32>
    %c1_1201 = arith.constant 1 : index
    %c0_1202 = arith.constant 0 : index
    %c0_1203 = arith.constant 0 : index
    %1235 = vector.load %arg23[%c1_1201, %c0_1202, %c0_1203] : memref<2x1x32xf32, #tpu.memory_space<vmem>>, vector<1x1x32xf32>
    %1236 = vector.shape_cast %1235 : vector<1x1x32xf32> to vector<1x32xf32>
    %1237 = vector.broadcast %1236 : vector<1x32xf32> to vector<16x32xf32>
    %1238 = arith.addf %1234, %1237 : vector<16x32xf32>
    %1239 = arith.addf %1075, %1238 : vector<16x32xf32>
    %c1_1204 = arith.constant 1 : index
    %c0_1205 = arith.constant 0 : index
    %c0_1206 = arith.constant 0 : index
    %c0_1207 = arith.constant 0 : index
    %1240 = vector.load %arg24[%c1_1204, %c0_1205, %c0_1206, %c0_1207] : memref<2x2x1x32xf32, #tpu.memory_space<vmem>>, vector<1x1x1x32xf32>
    %1241 = vector.shape_cast %1240 : vector<1x1x1x32xf32> to vector<1x32xf32>
    %c1_1208 = arith.constant 1 : index
    %c1_1209 = arith.constant 1 : index
    %c0_1210 = arith.constant 0 : index
    %c0_1211 = arith.constant 0 : index
    %1242 = vector.load %arg24[%c1_1208, %c1_1209, %c0_1210, %c0_1211] : memref<2x2x1x32xf32, #tpu.memory_space<vmem>>, vector<1x1x1x32xf32>
    %1243 = vector.shape_cast %1242 : vector<1x1x1x32xf32> to vector<1x32xf32>
    %cst_1212 = arith.constant dense<0.000000e+00> : vector<16xf32>
    %1244 = vector.multi_reduction <add>, %1239, %cst_1212 [1] : vector<16x32xf32> to vector<16xf32>
    %1245 = vector.shape_cast %1244 : vector<16xf32> to vector<16x1xf32>
    %cst_1213 = arith.constant 3.200000e+01 : f32
    %1246 = vector.broadcast %cst_1213 : f32 to vector<16x1xf32>
    %1247 = arith.divf %1245, %1246 : vector<16x1xf32>
    %1248 = vector.broadcast %1247 : vector<16x1xf32> to vector<16x32xf32>
    %1249 = arith.subf %1239, %1248 : vector<16x32xf32>
    %1250 = arith.mulf %1249, %1249 : vector<16x32xf32>
    %cst_1214 = arith.constant dense<0.000000e+00> : vector<16xf32>
    %1251 = vector.multi_reduction <add>, %1250, %cst_1214 [1] : vector<16x32xf32> to vector<16xf32>
    %1252 = vector.shape_cast %1251 : vector<16xf32> to vector<16x1xf32>
    %cst_1215 = arith.constant 0.0322580636 : f32
    %1253 = vector.broadcast %cst_1215 : f32 to vector<16x1xf32>
    %1254 = arith.mulf %1252, %1253 : vector<16x1xf32>
    %1255 = math.sqrt %1254 : vector<16x1xf32>
    %cst_1216 = arith.constant 9.99999997E-7 : f32
    %1256 = vector.broadcast %cst_1216 : f32 to vector<16x1xf32>
    %1257 = arith.addf %1255, %1256 : vector<16x1xf32>
    %1258 = tpu.reciprocal %1257 {approx = true} : vector<16x1xf32> -> vector<16x1xf32>
    %1259 = vector.broadcast %1258 : vector<16x1xf32> to vector<16x32xf32>
    %1260 = arith.mulf %1249, %1259 : vector<16x32xf32>
    %1261 = vector.broadcast %1241 : vector<1x32xf32> to vector<16x32xf32>
    %1262 = arith.mulf %1261, %1260 : vector<16x32xf32>
    %1263 = vector.broadcast %1243 : vector<1x32xf32> to vector<16x32xf32>
    %1264 = arith.addf %1262, %1263 : vector<16x32xf32>
    %c1_1217 = arith.constant 1 : index
    %c0_1218 = arith.constant 0 : index
    %c0_1219 = arith.constant 0 : index
    %1265 = vector.load %arg25[%c1_1217, %c0_1218, %c0_1219] : memref<2x32x64xf32, #tpu.memory_space<vmem>>, vector<1x32x64xf32>
    %1266 = vector.shape_cast %1265 : vector<1x32x64xf32> to vector<32x64xf32>
    %cst_1220 = arith.constant dense<0.000000e+00> : vector<16x64xf32>
    %1267 = tpu.matmul %1264, %1266, %cst_1220 {dimension_numbers = #tpu.dot_dimension_numbers<[1], [0], [0], [1], [0, 0, 1, 1], [], []>} : vector<16x32xf32>, vector<32x64xf32>, vector<16x64xf32> -> vector<16x64xf32>
    %c1_1221 = arith.constant 1 : index
    %c0_1222 = arith.constant 0 : index
    %c0_1223 = arith.constant 0 : index
    %1268 = vector.load %arg26[%c1_1221, %c0_1222, %c0_1223] : memref<2x1x64xf32, #tpu.memory_space<vmem>>, vector<1x1x64xf32>
    %1269 = vector.shape_cast %1268 : vector<1x1x64xf32> to vector<1x64xf32>
    %1270 = vector.broadcast %1269 : vector<1x64xf32> to vector<16x64xf32>
    %1271 = arith.addf %1267, %1270 : vector<16x64xf32>
    %cst_1224 = arith.constant 0.000000e+00 : f32
    %1272 = vector.broadcast %cst_1224 : f32 to vector<16x64xf32>
    %1273 = arith.maximumf %1271, %1272 : vector<16x64xf32>
    %c1_1225 = arith.constant 1 : index
    %c0_1226 = arith.constant 0 : index
    %c0_1227 = arith.constant 0 : index
    %1274 = vector.load %arg27[%c1_1225, %c0_1226, %c0_1227] : memref<2x64x32xf32, #tpu.memory_space<vmem>>, vector<1x64x32xf32>
    %1275 = vector.shape_cast %1274 : vector<1x64x32xf32> to vector<64x32xf32>
    %cst_1228 = arith.constant dense<0.000000e+00> : vector<16x32xf32>
    %1276 = tpu.matmul %1273, %1275, %cst_1228 {dimension_numbers = #tpu.dot_dimension_numbers<[1], [0], [0], [1], [0, 0, 1, 1], [], []>} : vector<16x64xf32>, vector<64x32xf32>, vector<16x32xf32> -> vector<16x32xf32>
    %c1_1229 = arith.constant 1 : index
    %c0_1230 = arith.constant 0 : index
    %c0_1231 = arith.constant 0 : index
    %1277 = vector.load %arg28[%c1_1229, %c0_1230, %c0_1231] : memref<2x1x32xf32, #tpu.memory_space<vmem>>, vector<1x1x32xf32>
    %1278 = vector.shape_cast %1277 : vector<1x1x32xf32> to vector<1x32xf32>
    %1279 = vector.broadcast %1278 : vector<1x32xf32> to vector<16x32xf32>
    %1280 = arith.addf %1276, %1279 : vector<16x32xf32>
    %1281 = arith.addf %1264, %1280 : vector<16x32xf32>
    %c1_1232 = arith.constant 1 : index
    %c0_1233 = arith.constant 0 : index
    %c0_1234 = arith.constant 0 : index
    %c0_1235 = arith.constant 0 : index
    %1282 = vector.load %arg29[%c1_1232, %c0_1233, %c0_1234, %c0_1235] : memref<2x2x1x32xf32, #tpu.memory_space<vmem>>, vector<1x1x1x32xf32>
    %1283 = vector.shape_cast %1282 : vector<1x1x1x32xf32> to vector<1x32xf32>
    %c1_1236 = arith.constant 1 : index
    %c1_1237 = arith.constant 1 : index
    %c0_1238 = arith.constant 0 : index
    %c0_1239 = arith.constant 0 : index
    %1284 = vector.load %arg29[%c1_1236, %c1_1237, %c0_1238, %c0_1239] : memref<2x2x1x32xf32, #tpu.memory_space<vmem>>, vector<1x1x1x32xf32>
    %1285 = vector.shape_cast %1284 : vector<1x1x1x32xf32> to vector<1x32xf32>
    %cst_1240 = arith.constant dense<0.000000e+00> : vector<16xf32>
    %1286 = vector.multi_reduction <add>, %1281, %cst_1240 [1] : vector<16x32xf32> to vector<16xf32>
    %1287 = vector.shape_cast %1286 : vector<16xf32> to vector<16x1xf32>
    %cst_1241 = arith.constant 3.200000e+01 : f32
    %1288 = vector.broadcast %cst_1241 : f32 to vector<16x1xf32>
    %1289 = arith.divf %1287, %1288 : vector<16x1xf32>
    %1290 = vector.broadcast %1289 : vector<16x1xf32> to vector<16x32xf32>
    %1291 = arith.subf %1281, %1290 : vector<16x32xf32>
    %1292 = arith.mulf %1291, %1291 : vector<16x32xf32>
    %cst_1242 = arith.constant dense<0.000000e+00> : vector<16xf32>
    %1293 = vector.multi_reduction <add>, %1292, %cst_1242 [1] : vector<16x32xf32> to vector<16xf32>
    %1294 = vector.shape_cast %1293 : vector<16xf32> to vector<16x1xf32>
    %cst_1243 = arith.constant 0.0322580636 : f32
    %1295 = vector.broadcast %cst_1243 : f32 to vector<16x1xf32>
    %1296 = arith.mulf %1294, %1295 : vector<16x1xf32>
    %1297 = math.sqrt %1296 : vector<16x1xf32>
    %cst_1244 = arith.constant 9.99999997E-7 : f32
    %1298 = vector.broadcast %cst_1244 : f32 to vector<16x1xf32>
    %1299 = arith.addf %1297, %1298 : vector<16x1xf32>
    %1300 = tpu.reciprocal %1299 {approx = true} : vector<16x1xf32> -> vector<16x1xf32>
    %1301 = vector.broadcast %1300 : vector<16x1xf32> to vector<16x32xf32>
    %1302 = arith.mulf %1291, %1301 : vector<16x32xf32>
    %1303 = vector.broadcast %1283 : vector<1x32xf32> to vector<16x32xf32>
    %1304 = arith.mulf %1303, %1302 : vector<16x32xf32>
    %1305 = vector.broadcast %1285 : vector<1x32xf32> to vector<16x32xf32>
    %1306 = arith.addf %1304, %1305 : vector<16x32xf32>
    %c0_1245 = arith.constant 0 : index
    %c0_1246 = arith.constant 0 : index
    %1307 = vector.load %arg30[%c0_1245, %c0_1246] : memref<32x32xf32, #tpu.memory_space<vmem>>, vector<32x32xf32>
    tpu.vector_store %arg30[%c0_1245, %c0_1246], %466 {strides = array<i32>} : memref<32x32xf32, #tpu.memory_space<vmem>>, vector<32x32xf32>,
    %c0_1247 = arith.constant 0 : index
    %c0_1248 = arith.constant 0 : index
    %1308 = vector.load %arg31[%c0_1247, %c0_1248] : memref<16x32xf32, #tpu.memory_space<vmem>>, vector<16x32xf32>
    tpu.vector_store %arg31[%c0_1247, %c0_1248], %1306 {strides = array<i32>} : memref<16x32xf32, #tpu.memory_space<vmem>>, vector<16x32xf32>,
    return
  }
}

</mosaic_0001>

<bundles_post_ra>
// kernel: ne.29
= control target key start
LH: loop header
LB: loop body
LE: loop exit
PB: predicated region body
PF: predicated region fallthrough
CT: control target
= control target key end

     0   :  { %vm7_vm0 = vcmask 64512   ;;  %vm13_vm1 = vcmask 130112   ;;  %s39_s0 = inlined_call_operand.vmem [shape: s32[2,8], index: 0, kind: input, shape index: {}]   ;;  %s40_s1 = inlined_call_operand.vmem [shape: s32[16], index: 1, kind: output, shape index: {}]  }
   0x1   :  { %v4_v0 = vld [vmem:[%s39_s0] sm:$0x3]  ;;  %s22_s0 = smov 8  }
   0x2   :  { %5 = vst [vmem:[#allocation1] sm:$0x3] %v4_v0 }
   0x9   :  { %v10_v1 = vld [vmem:[#allocation1 + $0x1] sm:$0x1]   ;;  %v6_v2 = vld [vmem:[#allocation1] sm:$0x1]  }
   0xa   :  { %11 = vrot.lane.b32.xlu0 %v10_v1, %s22_s0  ;;  %8 = vst.msk [vmem:[#allocation0] sm:$0x1] %vm7_vm0, %v6_v2  }
  0x7c   :  { %v12_v3 = vpop.permute.xlu0 %11  }
  0x7d   :  { %14 = vst.msk [vmem:[#allocation0] sm:$0x1] %vm13_vm1, %v12_v3  }
  0x84   :  { %v18_v4 = vld [vmem:[#allocation0] sm:$0x1] }
  0x85   :  { %20 = vst [vmem:[%s40_s1] sm:$0x1] %v18_v4 }

// kernel: ne.22
= control target key start
LH: loop header
LB: loop body
LE: loop exit
PB: predicated region body
PF: predicated region fallthrough
CT: control target
= control target key end

     0   :  { %vm7_vm0 = vcmask 130048   ;;  %vm13_vm1 = vcmask 261248   ;;  %s39_s0 = inlined_call_operand.vmem [shape: s32[2,16], index: 0, kind: input, shape index: {}]   ;;  %s40_s1 = inlined_call_operand.vmem [shape: s32[32], index: 1, kind: output, shape index: {}]  }
   0x1   :  { %v4_v0 = vld [vmem:[%s39_s0] sm:$0x3]  ;;  %s22_s0 = smov 16  }
   0x2   :  { %5 = vst [vmem:[#allocation1] sm:$0x3] %v4_v0 }
   0x9   :  { %v10_v1 = vld [vmem:[#allocation1 + $0x1] sm:$0x1]   ;;  %v6_v2 = vld [vmem:[#allocation1] sm:$0x1]  }
   0xa   :  { %11 = vrot.lane.b32.xlu0 %v10_v1, %s22_s0  ;;  %8 = vst.msk [vmem:[#allocation0] sm:$0x1] %vm7_vm0, %v6_v2  }
  0x7c   :  { %v12_v3 = vpop.permute.xlu0 %11  }
  0x7d   :  { %14 = vst.msk [vmem:[#allocation0] sm:$0x1] %vm13_vm1, %v12_v3  }
  0x84   :  { %v18_v4 = vld [vmem:[#allocation0] sm:$0x1] }
  0x85   :  { %20 = vst [vmem:[%s40_s1] sm:$0x1] %v18_v4 }

// kernel: mca_ed_forward.1
= control target key start
LH: loop header
LB: loop body
LE: loop exit
PB: predicated region body
PF: predicated region fallthrough
CT: control target
= control target key end

     0   :  { %s21353_s6 = smov 1   ;;  %s21354_s10 = smov 2   ;;  %s23539_s0 = inlined_call_operand.smem [shape: u32[32], index: -1, kind: input, shape index: {}] }
   0x1   :  { %s21396_s5 = sld [smem:[%s23539_s0]]   ;;  %s21355_s14 = smov 3  }
   0x2   :  { %s21401_s9 = sld [smem:[%s23539_s0 + %s21353_s6]]   ;;  %s21356_s18 = smov 4  }
   0x3   :  { %s21406_s13 = sld [smem:[%s23539_s0 + %s21354_s10]]   ;;  %s21357_s22 = smov 5  }
   0x4   :  { %s21411_s17 = sld [smem:[%s23539_s0 + %s21355_s14]]   ;;  %s21358_s26 = smov 6  }
   0x5   :  { %s21416_s21 = sld [smem:[%s23539_s0 + %s21356_s18]]   ;;  %s21359_s30 = smov 7  }
   0x6   :  { %s21421_s25 = sld [smem:[%s23539_s0 + %s21357_s22]]   ;;  %s21360_s4 = smov 8  }
   0x7   :  { %s21426_s29 = sld [smem:[%s23539_s0 + %s21358_s26]]   ;;  %s21361_s10 = smov 9  }
   0x8   :  { %s21431_s3 = sld [smem:[%s23539_s0 + %s21359_s30]]   ;;  %s21362_s15 = smov 10  }
   0x9   :  { %s21436_s8 = sld [smem:[%s23539_s0 + %s21360_s4]]   ;;  %s21363_s20 = smov 11  }
   0xa   :  { %23554 = sst [smem:[#allocation8_spill]] %s21411_s17  ;;  %s21364_s26 = smov 12  }
   0xb   :  { %23555 = sst [smem:[#allocation9_spill]] %s21416_s21  ;;  %s21365_s1 = smov 13  }
   0xc   :  { %s21441_s14 = sld [smem:[%s23539_s0 + %s21361_s10]]   ;;  %s21366_s7 = smov 14  }
   0xd   :  { %s21446_s19 = sld [smem:[%s23539_s0 + %s21362_s15]]   ;;  %s21367_s15 = smov 15  }
   0xe   :  { %s21451_s24 = sld [smem:[%s23539_s0 + %s21363_s20]]   ;;  %s21368_s22 = smov 16  }
   0xf   :  { %s21456_s30 = sld [smem:[%s23539_s0 + %s21364_s26]]   ;;  %s21369_s28 = smov 17  }
  0x10   :  { %s21461_s6 = sld [smem:[%s23539_s0 + %s21365_s1]]  }
  0x11   :  { %s21466_s12 = sld [smem:[%s23539_s0 + %s21366_s7]]   ;;  %s21370_s7 = smov 18  }
  0x12   :  { %s21471_s20 = sld [smem:[%s23539_s0 + %s21367_s15]]   ;;  %s21371_s15 = smov 19  }
  0x13   :  { %s21476_s27 = sld [smem:[%s23539_s0 + %s21368_s22]]   ;;  %s21372_s22 = smov 20  }
  0x14   :  { %s21481_s4 = sld [smem:[%s23539_s0 + %s21369_s28]]   ;;  %s21373_s28 = smov 21  }
  0x15   :  { %s21486_s21 = sld [smem:[%s23539_s0 + %s21370_s7]]   ;;  %s21374_s7 = smov 22  }
  0x16   :  { %s21491_s17 = sld [smem:[%s23539_s0 + %s21371_s15]]   ;;  %s21375_s15 = smov 23  }
  0x19   :  { %23556 = sst [smem:[#allocation10_spill]] %s21476_s27 }
  0x1a   :  { %23557 = sst [smem:[#allocation11_spill]] %s21481_s4 }
  0x1b   :  { %23558 = sst [smem:[#allocation12_spill]] %s21486_s21 }
  0x1c   :  { %23559 = sst [smem:[#allocation13_spill]] %s21491_s17 }
  0x1d   :  { %s21496_s27 = sld [smem:[%s23539_s0 + %s21372_s22]]   ;;  %s21376_s22 = smov 24  }
  0x1e   :  { %s21501_s4 = sld [smem:[%s23539_s0 + %s21373_s28]]   ;;  %s21377_s28 = smov 25  }
  0x1f   :  { %s21506_s21 = sld [smem:[%s23539_s0 + %s21374_s7]]   ;;  %s21378_s7 = smov 26  }
  0x20   :  { %s21511_s17 = sld [smem:[%s23539_s0 + %s21375_s15]]   ;;  %s21379_s15 = smov 27  }
  0x23   :  { %23560 = sst [smem:[#allocation14_spill]] %s21496_s27 }
  0x24   :  { %23561 = sst [smem:[#allocation15_spill]] %s21501_s4 }
  0x25   :  { %23562 = sst [smem:[#allocation16_spill]] %s21506_s21 }
  0x26   :  { %23563 = sst [smem:[#allocation17_spill]] %s21511_s17 }
  0x27   :  { %s21516_s27 = sld [smem:[%s23539_s0 + %s21376_s22]]   ;;  %s21380_s22 = smov 28  }
  0x28   :  { %s21521_s4 = sld [smem:[%s23539_s0 + %s21377_s28]]   ;;  %s21381_s28 = smov 29  }
  0x29   :  { %s21526_s21 = sld [smem:[%s23539_s0 + %s21378_s7]]   ;;  %s21382_s7 = smov 30  }
  0x2a   :  { %s21531_s17 = sld [smem:[%s23539_s0 + %s21379_s15]]   ;;  %s21383_s15 = smov 31  }
  0x2d   :  { %23564 = sst [smem:[#allocation18_spill]] %s21516_s27 }
  0x2e   :  { %23565 = sst [smem:[#allocation19_spill]] %s21521_s4 }
  0x2f   :  { %23566 = sst [smem:[#allocation20_spill]] %s21526_s21 }
  0x30   :  { %23567 = sst [smem:[#allocation21_spill]] %s21531_s17 }
  0x31   :  { %s21536_s27 = sld [smem:[%s23539_s0 + %s21380_s22]]  }
  0x32   :  { %s21541_s4 = sld [smem:[%s23539_s0 + %s21381_s28]]  }
  0x33   :  { %s21546_s21 = sld [smem:[%s23539_s0 + %s21382_s7]]  }
  0x34   :  { %s21551_s17 = sld [smem:[%s23539_s0 + %s21383_s15]]  }
  0x35   :  { %69 = vsyncpa [#allocation3], 0  ;;  %v145_v0 = vld [vmem:[%s21421_s25] sm:$0xff]  ;;  %v146_v1 = vld [vmem:[%s21421_s25 + $0x8] sm:$0xff]  ;;  %vm156_vm0 = vcmask 261120  }
  0x36   :  { %v147_v2 = vld [vmem:[%s21421_s25 + $0x10] sm:$0xff]  ;;  %v19768_v3 = vpack.c.bf16 %v146_v1, %v145_v0  ;;  %v148_v4 = vld [vmem:[%s21421_s25 + $0x18] sm:$0xff]  ;;  %v21558_v5 = vld [vmem:[%s21396_s5] sm:$0xff] }
  0x37   :  { %v19772_v6 = vpack.c.bf16 %v148_v4, %v147_v2  ;;  %18076 = vmatprep.mubr.msk.f32.mxu1 %vm156_vm0, %v21558_v5  ;;  %v16075_v7 = vld [vmem:[%s21421_s25 + $0x80] sm:$0xff]  ;;  %v16076_v8 = vld [vmem:[%s21421_s25 + $0x88] sm:$0xff]  ;;  %18104 = vmatprep.mubr.msk.f32.mxu0 %vm156_vm0, %v21558_v5 }
  0x38   :  { %19769 = vmatprep.subr.bf16.mxu1 %v19768_v3 }
  0x39   :  { %19771 = vmatpush3.bf16.msra.mxu1 %v19768_v3 }
  0x3a   :  { %70 = vsyncpa [#allocation5], 0  ;;  %19773 = vmatprep.subr.bf16.mxu1 %v19772_v6  ;;  %v19776_v9 = vpack.c.bf16 %v16076_v8, %v16075_v7  ;;  %v16077_v10 = vld [vmem:[%s21421_s25 + $0x90] sm:$0xff]  ;;  %v16078_v11 = vld [vmem:[%s21421_s25 + $0x98] sm:$0xff]  ;;  %vm450_vm1 = vcmask 64512   ;;  %vm3014_vm11 = vcmask 523264  }
  0x3b   :  { %v21569_v12 = vld [vmem:[%s21396_s5 + $0x8] sm:$0xff]  ;;  %v21572_v13 = vld [vmem:[%s21396_s5 + $0x10] sm:$0xff]  ;;  %v19780_v14 = vpack.c.bf16 %v16078_v11, %v16077_v10  ;;  %v21579_v15 = vld [vmem:[%s21396_s5 + $0x18] sm:$0xff]  ;;  %s23570_s0 = sld [smem:[#allocation10_spill]] }
  0x3c   :  { %v16070_v16 = vld [vmem:[%s21426_s29] ss:$0 sm:$0xff]  ;;  %v16080_v22 = vld [vmem:[%s21426_s29 + $0x4] ss:$0 sm:$0xff]  ;;  %vm21596_vm2 = vmpackc.low %vm450_vm1, %vm450_vm1 }
  0x3d   :  { %19775 = vmatpush3.bf16.msra.mxu1 %v19772_v6  ;;  %v16085_v37 = vld [vmem:[%s21421_s25 + $0x100] sm:$0xff]  ;;  %v16086_v38 = vld [vmem:[%s21421_s25 + $0x108] sm:$0xff]  ;;  %v16087_v39 = vld [vmem:[%s21421_s25 + $0x110] sm:$0xff] }
  0x3e   :  { %19777 = vmatprep.subr.bf16.mxu1 %v19776_v9  ;;  %v19784_v40 = vpack.c.bf16 %v16086_v38, %v16085_v37  ;;  %v16088_v41 = vld [vmem:[%s21421_s25 + $0x118] sm:$0xff]  ;;  %v21624_v45 = vld [vmem:[%s21406_s13] sm:$0xff]  ;;  %v21627_v48 = vld [vmem:[%s21406_s13 + $0x8] sm:$0xff] }
  0x3f   :  { %v19788_v42 = vpack.c.bf16 %v16088_v41, %v16087_v39  ;;  %v21631_v52 = vld [vmem:[%s21406_s13 + $0x10] sm:$0xff]  ;;  %v21636_v57 = vld [vmem:[%s21406_s13 + $0x18] sm:$0xff]  ;;  %v16117_v63 = vld [vmem:[%s21421_s25 + $0xa0] sm:$0xff] }
  0x40   :  { %18077 = vmatmul.mubr.msk.f32.vlgmr.msra.gmra.mrb[0].mxu1 %vm156_vm0, %v21569_v12  ;;  %19785 = vmatprep.subr.bf16.mxu0 %v19784_v40  ;;  %v16118_v0 = vld [vmem:[%s21421_s25 + $0xa8] sm:$0xff]  ;;  %v16107_v41 = vld [vmem:[%s21421_s25 + $0x20] sm:$0xff] }
  0x41   :  { %19779 = vmatpush3.bf16.msra.mxu1 %v19776_v9  ;;  %18079 = vmatprep.mubr.msk.f32.mxu1 %vm156_vm0, %v21572_v13  ;;  %v19820_v1 = vpack.c.bf16 %v16118_v0, %v16117_v63  ;;  %v16122_v63 = vld [vmem:[%s21426_s29 + $0x5] ss:$0 sm:$0xff] }
  0x42   :  { %19781 = vmatprep.subr.bf16.mxu1 %v19780_v14  ;;  %19787 = vmatpush3.bf16.msra.mxu0 %v19784_v40 }
  0x43   :  { %19789 = vmatprep.subr.bf16.mxu0 %v19788_v42 }
  0x44   :  { %18080 = vmatmul.mubr.msk.f32.gmra.mrb[2].mxu1 %vm156_vm0, %v21579_v15 }
  0x45   :  { %19783 = vmatpush3.bf16.msra.mxu1 %v19780_v14  ;;  %18090 = vmatprep.mubr.msk.f32.mxu1 %vm156_vm0, %v21558_v5 }
  0x46   :  { %19791 = vmatpush3.bf16.msra.mxu0 %v19788_v42  ;;  %v16108_v42 = vld [vmem:[%s21421_s25 + $0x28] sm:$0xff] }
  0x48   :  { %18091 = vmatmul.mubr.msk.f32.vlgmr.msra.gmra.mrb[4].mxu1 %vm156_vm0, %v21569_v12 }
  0x49   :  { %18093 = vmatprep.mubr.msk.f32.mxu1 %vm156_vm0, %v21572_v13  ;;  %18105 = vmatmul.mubr.msk.f32.vlgmr.msra.gmra.mrb[0].mxu0 %vm156_vm0, %v21569_v12 }
  0x4a   :  { %18107 = vmatprep.mubr.msk.f32.mxu0 %vm156_vm0, %v21572_v13 }
  0x4c   :  { %18094 = vmatmul.mubr.msk.f32.gmra.mrb[6].mxu1 %vm156_vm0, %v21579_v15 }
  0x4d   :  { %18108 = vmatmul.mubr.msk.f32.gmra.mrb[2].mxu0 %vm156_vm0, %v21579_v15 }
 0x113   :  { %v18078_v17 = vpop.f32.mrb[0].mxu1 }
 0x114   :  { %v235_v18 = vpop.f32.mrb[1].mxu1  ;;  %v241_v34 = vadd.f32 %v18078_v17, %v16070_v16 }
 0x115   :  { %v236_v19 = vadd.f32 %v16070_v16, %v235_v18 }
 0x117   :  { %v18081_v20 = vpop.f32.mrb[2].mxu1  ;;  %18118 = vmatprep.mubr.msk.f32.mxu1 %vm450_vm1, %v236_v19 }
 0x118   :  { %v245_v21 = vpop.f32.mrb[3].mxu1  ;;  %v251_v36 = vadd.f32 %v18081_v20, %v16070_v16 }
 0x119   :  { %v246_v35 = vadd.f32 %v16070_v16, %v245_v21 }
 0x11b   :  { %v18092_v23 = vpop.f32.mrb[4].mxu1 }
 0x11c   :  { %v339_v24 = vadd.f32 %v18092_v23, %v16080_v22  ;;  %v333_v25 = vpop.f32.mrb[5].mxu1 }
 0x11d   :  { %v334_v26 = vadd.f32 %v16080_v22, %v333_v25 }
 0x11f   :  { %v19792_v28 = vpack.c.bf16 %v339_v24, %v334_v26  ;;  %v18095_v29 = vpop.f32.mrb[6].mxu1  ;;  %v18106_v26 = vpop.f32.mrb[0].mxu0 }
 0x120   :  { %v349_v30 = vadd.f32 %v18095_v29, %v16080_v22  ;;  %v343_v31 = vpop.f32.mrb[7].mxu1  ;;  %v16119_v29 = vld [vmem:[%s21421_s25 + $0xb0] sm:$0xff] }
 0x121   :  { %19794 = vmatprep.subr.msk.bf16.mxu1 %vm21596_vm2, %v19792_v28  ;;  %v344_v32 = vadd.f32 %v16080_v22, %v343_v31 }
 0x122   :  { %19797 = vmatpush3.bf16.xpose.msk.msra.mxu1 %vm21596_vm2, %v19792_v28  ;;  %v16090_v28 = vld [vmem:[%s21426_s29 + $0x8] ss:$0 sm:$0xff] }
 0x123   :  { %v19798_v33 = vpack.c.bf16 %v349_v30, %v344_v32  ;;  %v16120_v30 = vld [vmem:[%s21421_s25 + $0xb8] sm:$0xff]  ;;  %v437_v31 = vadd.f32 %v18106_v26, %v16090_v28  ;;  %v431_v32 = vpop.f32.mrb[1].mxu0 }
 0x125   :  { %19800 = vmatprep.subr.msk.bf16.mxu1 %vm21596_vm2, %v19798_v33 }
 0x12a   :  { %19803 = vmatpush3.bf16.xpose.msk.msra.mxu1 %vm21596_vm2, %v19798_v33  ;;  %v19824_v33 = vpack.c.bf16 %v16120_v30, %v16119_v29 }
 0x12b   :  { %19821 = vmatprep.subr.bf16.mxu1 %v19820_v1 }
 0x131   :  { %18119 = vmatmul.mubr.msk.f32.vlgmr.msra.gmra.mrb[8].mxu1 %vm450_vm1, %v241_v34  ;;  %v432_v34 = vadd.f32 %v16090_v28, %v431_v32  ;;  %v16169_v32 = vld [vmem:[%s21421_s25 + $0xc8] sm:$0xff] }
 0x132   :  { %18121 = vmatprep.mubr.msk.f32.mxu1 %vm450_vm1, %v246_v35  ;;  %19823 = vmatpush3.bf16.msra.mxu1 %v19820_v1 }
 0x133   :  { %19825 = vmatprep.subr.bf16.mxu1 %v19824_v33  ;;  %v19804_v35 = vpack.c.bf16 %v437_v31, %v432_v34  ;;  %v16168_v31 = vld [vmem:[%s21421_s25 + $0xc0] sm:$0xff] }
 0x135   :  { %18122 = vmatmul.mubr.msk.f32.gmra.mrb[10].mxu1 %vm450_vm1, %v251_v36  ;;  %v18109_v36 = vpop.f32.mrb[2].mxu0  ;;  %19805 = vmatprep.subr.bf16.mxu0 %v19804_v35 }
 0x136   :  { %18160 = vmatprep.mubr.msk.f32.mxu1 %vm156_vm0, %v21558_v5  ;;  %19827 = vmatpush3.bf16.msra.mxu1 %v19824_v33  ;;  %v441_v37 = vpop.f32.mrb[3].mxu0  ;;  %v447_v38 = vadd.f32 %v18109_v36, %v16090_v28  ;;  %v19864_v36 = vpack.c.bf16 %v16169_v32, %v16168_v31 }
 0x137   :  { %19807 = vmatpush3.bf16.msra.mxu0 %v19804_v35  ;;  %v442_v39 = vadd.f32 %v16090_v28, %v441_v37  ;;  %v16170_v37 = vld [vmem:[%s21421_s25 + $0xd0] sm:$0xff] }
 0x139   :  { %18161 = vmatmul.mubr.msk.f32.vlgmr.msra.gmra.mrb[12].mxu1 %vm156_vm0, %v21569_v12  ;;  %v19808_v40 = vpack.c.bf16 %v447_v38, %v442_v39  ;;  %v16171_v38 = vld [vmem:[%s21421_s25 + $0xd8] sm:$0xff] }
 0x13a   :  { %18163 = vmatprep.mubr.msk.f32.mxu1 %vm156_vm0, %v21572_v13  ;;  %v19868_v39 = vpack.c.bf16 %v16171_v38, %v16170_v37 }
 0x13b   :  { %19809 = vmatprep.subr.bf16.mxu0 %v19808_v40 }
 0x13c   :  { %19811 = vmatpush3.bf16.msra.mxu0 %v19808_v40  ;;  %v16127_v40 = vld [vmem:[%s21421_s25 + $0x120] sm:$0xff] }
 0x13d   :  { %18164 = vmatmul.mubr.msk.f32.gmra.mrb[14].mxu1 %vm156_vm0, %v21579_v15 }
 0x204   :  { %v18120_v43 = vpop.f32.mrb[8].mxu1 }
 0x205   :  { %v541_v44 = vpop.f32.mrb[9].mxu1  ;;  %v561_v46 = vmul.f32 0.35355338, %v18120_v43  ;;  %v19812_v43 = vpack.c.bf16 %v16108_v42, %v16107_v41  ;;  %v16128_v41 = vld [vmem:[%s21421_s25 + $0x128] sm:$0xff]  ;;  %v16129_v42 = vld [vmem:[%s21421_s25 + $0x130] sm:$0xff] }
 0x206   :  { %v560_v47 = vmul.f32 0.35355338, %v541_v44 }
 0x207   :  { %v565_v56 = vadd.f32 %v561_v46, %v21627_v48  ;;  %19813 = vmatprep.subr.bf16.mxu0 %v19812_v43 }
 0x208   :  { %v18123_v49 = vpop.f32.mrb[10].mxu1  ;;  %v564_v50 = vadd.f32 %v560_v47, %v21624_v45 }
 0x209   :  { %v551_v51 = vpop.f32.mrb[11].mxu1  ;;  %v563_v53 = vmul.f32 0.35355338, %v18123_v49  ;;  %v571_v59 = vsel %vm156_vm0, %v565_v56, -inf }
 0x20a   :  { %v562_v54 = vmul.f32 0.35355338, %v551_v51  ;;  %v568_v55 = vsel %vm156_vm0, %v564_v50, -inf }
 0x20b   :  { %569 = vmax.xlane.f32.xlu0 %v568_v55  ;;  %v567_v61 = vadd.f32 %v563_v53, %v21636_v57  ;;  %v16109_v53 = vld [vmem:[%s21421_s25 + $0x30] sm:$0xff] }
 0x20c   :  { %v566_v58 = vadd.f32 %v562_v54, %v21631_v52  ;;  %v16110_v54 = vld [vmem:[%s21421_s25 + $0x38] sm:$0xff]  ;;  %v18162_v0 = vpop.f32.mrb[12].mxu1 }
 0x20d   :  { %v577_v62 = vsel %vm156_vm0, %v567_v61, -inf  ;;  %v893_v1 = vadd.f32 %v18162_v0, %v16122_v63 }
 0x20e   :  { %v574_v60 = vsel %vm156_vm0, %v566_v58, -inf }
 0x20f   :  { %572 = vmax.xlane.f32.xlu0 %v571_v59  ;;  %575 = vmax.xlane.f32.xlu1 %v574_v60  ;;  %v19816_v59 = vpack.c.bf16 %v16110_v54, %v16109_v53 }
 0x213   :  { %578 = vmax.xlane.f32.xlu1 %v577_v62 }
 0x298   :  { %v570_v2 = vpop.xlane.xlu0 %569 }
 0x299   :  { %v580_v3 = vsub.f32 %v564_v50, %v570_v2  ;;  %v887_v2 = vpop.f32.mrb[13].mxu1 }
 0x29b   :  { %v584_v4 = vmul.f32 1.442695, %v580_v3  ;;  %v888_v3 = vadd.f32 %v16122_v63, %v887_v2 }
 0x29c   :  { %v573_v6 = vpop.xlane.xlu0 %572  ;;  %v576_v7 = vpop.xlane.xlu1 %575 }
 0x29d   :  { %20923 = vpow2.f32 %v584_v4  ;;  %v581_v8 = vsub.f32 %v565_v56, %v573_v6  ;;  %v582_v9 = vsub.f32 %v566_v58, %v576_v7  ;;  %v19836_v4 = vpack.c.bf16 %v893_v1, %v888_v3  ;;  %v18165_v6 = vpop.f32.mrb[14].mxu1 }
 0x29e   :  { %v903_v7 = vadd.f32 %v18165_v6, %v16122_v63 }
 0x29f   :  { %v586_v10 = vmul.f32 1.442695, %v581_v8  ;;  %v588_v11 = vmul.f32 1.442695, %v582_v9  ;;  %v897_v8 = vpop.f32.mrb[15].mxu1  ;;  %19838 = vmatprep.subr.msk.bf16.mxu1 %vm21596_vm2, %v19836_v4 }
 0x2a0   :  { %v579_v14 = vpop.xlane.xlu1 %578  ;;  %v898_v9 = vadd.f32 %v16122_v63, %v897_v8  ;;  %19841 = vmatpush3.bf16.xpose.msk.msra.mxu1 %vm21596_vm2, %v19836_v4  ;;  %v16163_v63 = vld [vmem:[%s21426_s29 + $0x2] ss:$0 sm:$0xff] }
 0x2a1   :  { %20925 = vpow2.f32 %v586_v10  ;;  %v583_v16 = vsub.f32 %v567_v61, %v579_v14  ;;  %v16159_v14 = vld [vmem:[%s21421_s25 + $0x48] sm:$0xff] }
 0x2a2   :  { %20927 = vpow2.f32 %v588_v11  ;;  %v19842_v10 = vpack.c.bf16 %v903_v7, %v898_v9  ;;  %v16158_v11 = vld [vmem:[%s21421_s25 + $0x40] sm:$0xff] }
 0x2a3   :  { %v590_v17 = vmul.f32 1.442695, %v583_v16  ;;  %v19856_v16 = vpack.c.bf16 %v16159_v14, %v16158_v11  ;;  %v16173_v9 = vld [vmem:[%s21426_s29 + $0x6] ss:$0 sm:$0xff] }
 0x2a4   :  { %19844 = vmatprep.subr.msk.bf16.mxu1 %vm21596_vm2, %v19842_v10 }
 0x2a5   :  { %20929 = vpow2.f32 %v590_v17 }
 0x2a7   :  { %v20924_v18 = vpop.eup %20923 }
 0x2a8   :  { %v592_v19 = vsel %vm156_vm0, %v20924_v18, 0.0  ;;  %19847 = vmatpush3.bf16.xpose.msk.msra.mxu1 %vm21596_vm2, %v19842_v10 }
 0x2a9   :  { %593 = vadd.xlane.f32.xlu0 %v592_v19  ;;  %19857 = vmatprep.subr.bf16.mxu1 %v19856_v16 }
 0x2ab   :  { %v20926_v20 = vpop.eup %20925 }
 0x2ac   :  { %v20928_v21 = vpop.eup %20927  ;;  %v595_v22 = vsel %vm156_vm0, %v20926_v20, 0.0 }
 0x2ad   :  { %596 = vadd.xlane.f32.xlu1 %v595_v22  ;;  %v598_v23 = vsel %vm156_vm0, %v20928_v21, 0.0 }
 0x2ae   :  { %599 = vadd.xlane.f32.xlu0 %v598_v23  ;;  %v16160_v23 = vld [vmem:[%s21421_s25 + $0x50] sm:$0xff] }
 0x2af   :  { %v20930_v24 = vpop.eup %20929 }
 0x2b0   :  { %v601_v25 = vsel %vm156_vm0, %v20930_v24, 0.0 }
 0x2b1   :  { %602 = vadd.xlane.f32.xlu1 %v601_v25 }
 0x336   :  { %v594_v44 = vpop.xlane.xlu0 %593 }
 0x337   :  { %20931 = vrcp.f32 %v594_v44  ;;  %v16130_v44 = vld [vmem:[%s21421_s25 + $0x138] sm:$0xff] }
 0x33a   :  { %v597_v46 = vpop.xlane.xlu1 %596 }
 0x33b   :  { %v600_v47 = vpop.xlane.xlu0 %599  ;;  %20933 = vrcp.f32 %v597_v46  ;;  %v19832_v46 = vpack.c.bf16 %v16130_v44, %v16129_v42 }
 0x33c   :  { %20935 = vrcp.f32 %v600_v47 }
 0x33e   :  { %v603_v49 = vpop.xlane.xlu1 %602 }
 0x33f   :  { %20937 = vrcp.f32 %v603_v49 }
 0x341   :  { %v20932_v50 = vpop.eup %20931 }
 0x342   :  { %v608_v51 = vmul.f32 %v20932_v50, %v20924_v18 }
 0x344   :  { %18132 = vmatprep.mubr.msk.f32.mxu0 %vm156_vm0, %v608_v51 }
 0x345   :  { %v20934_v55 = vpop.eup %20933 }
 0x346   :  { %v20936_v56 = vpop.eup %20935  ;;  %v609_v58 = vmul.f32 %v20934_v55, %v20926_v20 }
 0x347   :  { %v610_v60 = vmul.f32 %v20936_v56, %v20928_v21  ;;  %v16112_v21 = vld [vmem:[%s21426_s29 + $0x1] ss:$0 sm:$0xff] }
 0x348   :  { %18133 = vmatmul.mubr.msk.f32.vlgmr.msra.gmra.mrb[4].mxu0 %vm156_vm0, %v609_v58 }
 0x349   :  { %v20938_v61 = vpop.eup %20937  ;;  %18135 = vmatprep.mubr.msk.f32.mxu0 %vm156_vm0, %v610_v60  ;;  %19815 = vmatpush3.bf16.msra.mxu0 %v19812_v43  ;;  %v19828_v43 = vpack.c.bf16 %v16128_v41, %v16127_v40 }
 0x34a   :  { %v611_v62 = vmul.f32 %v20938_v61, %v20930_v24  ;;  %19817 = vmatprep.subr.bf16.mxu0 %v19816_v59  ;;  %v16161_v24 = vld [vmem:[%s21421_s25 + $0x58] sm:$0xff] }
 0x34b   :  { %v19860_v29 = vpack.c.bf16 %v16161_v24, %v16160_v23 }
 0x34c   :  { %18136 = vmatmul.mubr.msk.f32.gmra.mrb[6].mxu0 %vm156_vm0, %v611_v62 }
 0x34d   :  { %19819 = vmatpush3.bf16.msra.mxu0 %v19816_v59  ;;  %18146 = vmatprep.mubr.msk.f32.mxu0 %vm156_vm0, %v21558_v5 }
 0x34e   :  { %19829 = vmatprep.subr.bf16.mxu0 %v19828_v43 }
 0x350   :  { %18147 = vmatmul.mubr.msk.f32.vlgmr.msra.gmra.mrb[8].mxu0 %vm156_vm0, %v21569_v12 }
 0x351   :  { %18149 = vmatprep.mubr.msk.f32.mxu0 %vm156_vm0, %v21572_v13  ;;  %19831 = vmatpush3.bf16.msra.mxu0 %v19828_v43 }
 0x352   :  { %19833 = vmatprep.subr.bf16.mxu0 %v19832_v46 }
 0x354   :  { %18150 = vmatmul.mubr.msk.f32.gmra.mrb[10].mxu0 %vm156_vm0, %v21579_v15 }
 0x355   :  { %18174 = vmatprep.mubr.msk.f32.mxu0 %vm156_vm0, %v21558_v5  ;;  %19835 = vmatpush3.bf16.msra.mxu0 %v19832_v46 }
 0x358   :  { %18175 = vmatmul.mubr.msk.f32.vlgmr.msra.gmra.mrb[12].mxu0 %vm156_vm0, %v21569_v12 }
 0x359   :  { %18177 = vmatprep.mubr.msk.f32.mxu0 %vm156_vm0, %v21572_v13 }
 0x35c   :  { %18178 = vmatmul.mubr.msk.f32.gmra.mrb[14].mxu0 %vm156_vm0, %v21579_v15 }
 0x41b   :  { %v21687_v17 = vpop.f32.mrb[4].mxu0 }
 0x41c   :  { %v21689_v18 = vpop.f32.mrb[5].mxu0 }
 0x41f   :  { %v21691_v19 = vpop.f32.mrb[6].mxu0 }
 0x420   :  { %v21693_v20 = vpop.f32.mrb[7].mxu0 }
 0x423   :  { %v18148_v22 = vpop.f32.mrb[8].mxu0 }
 0x424   :  { %v789_v25 = vpop.f32.mrb[9].mxu0  ;;  %v795_v28 = vadd.f32 %v18148_v22, %v16112_v21 }
 0x425   :  { %v790_v26 = vadd.f32 %v16112_v21, %v789_v25 }
 0x427   :  { %v18151_v30 = vpop.f32.mrb[10].mxu0  ;;  %18188 = vmatprep.mubr.msk.f32.mxu1 %vm450_vm1, %v790_v26 }
 0x428   :  { %v799_v33 = vpop.f32.mrb[11].mxu0  ;;  %18189 = vmatmul.mubr.msk.f32.vlgmr.msra.gmra.mrb[16].mxu1 %vm450_vm1, %v795_v28  ;;  %v805_v35 = vadd.f32 %v18151_v30, %v16112_v21 }
 0x429   :  { %v800_v34 = vadd.f32 %v16112_v21, %v799_v33  ;;  %19859 = vmatpush3.bf16.msra.mxu1 %v19856_v16 }
 0x42a   :  { %19861 = vmatprep.subr.bf16.mxu1 %v19860_v29 }
 0x42b   :  { %18191 = vmatprep.mubr.msk.f32.mxu1 %vm450_vm1, %v800_v34  ;;  %v18176_v31 = vpop.f32.mrb[12].mxu0 }
 0x42c   :  { %18192 = vmatmul.mubr.msk.f32.gmra.mrb[18].mxu1 %vm450_vm1, %v805_v35 }
 0x42d   :  { %19863 = vmatpush3.bf16.msra.mxu1 %v19860_v29  ;;  %18232 = vmatprep.mubr.msk.f32.mxu1 %vm156_vm0, %v21558_v5 }
 0x42e   :  { %19865 = vmatprep.subr.bf16.mxu1 %v19864_v36 }
 0x430   :  { %18233 = vmatmul.mubr.msk.f32.vlgmr.msra.gmra.mrb[20].mxu1 %vm156_vm0, %v21569_v12 }
 0x431   :  { %19867 = vmatpush3.bf16.msra.mxu1 %v19864_v36  ;;  %18235 = vmatprep.mubr.msk.f32.mxu1 %vm156_vm0, %v21572_v13 }
 0x432   :  { %19869 = vmatprep.subr.bf16.mxu1 %v19868_v39 }
 0x434   :  { %18236 = vmatmul.mubr.msk.f32.gmra.mrb[22].mxu1 %vm156_vm0, %v21579_v15 }
 0x435   :  { %19871 = vmatpush3.bf16.msra.mxu1 %v19868_v39  ;;  %18246 = vmatprep.mubr.msk.f32.mxu1 %vm156_vm0, %v21558_v5 }
 0x438   :  { %18247 = vmatmul.mubr.msk.f32.vlgmr.msra.gmra.mrb[24].mxu1 %vm156_vm0, %v21569_v12 }
 0x439   :  { %18249 = vmatprep.mubr.msk.f32.mxu1 %vm156_vm0, %v21572_v13 }
 0x43c   :  { %18250 = vmatmul.mubr.msk.f32.gmra.mrb[26].mxu1 %vm156_vm0, %v21579_v15 }
 0x4fb   :  { %v18190_v47 = vpop.f32.mrb[16].mxu1 }
 0x4fc   :  { %v1114_v49 = vmul.f32 0.35355338, %v18190_v47  ;;  %v1094_v50 = vpop.f32.mrb[17].mxu1 }
 0x4fd   :  { %v1113_v51 = vmul.f32 0.35355338, %v1094_v50 }
 0x4fe   :  { %v1118_v53 = vadd.f32 %v1114_v49, %v21627_v48 }
 0x4ff   :  { %v18193_v54 = vpop.f32.mrb[18].mxu1  ;;  %v1117_v55 = vadd.f32 %v1113_v51, %v21624_v45 }
 0x500   :  { %v1116_v56 = vmul.f32 0.35355338, %v18193_v54  ;;  %v1104_v58 = vpop.f32.mrb[19].mxu1  ;;  %v1124_v59 = vsel %vm156_vm0, %v1118_v53, -inf }
 0x501   :  { %v1115_v60 = vmul.f32 0.35355338, %v1104_v58  ;;  %1125 = vmax.xlane.f32.xlu1 %v1124_v59  ;;  %v1121_v61 = vsel %vm156_vm0, %v1117_v55, -inf  ;;  %v985_v58 = vpop.f32.mrb[13].mxu0 }
 0x502   :  { %1122 = vmax.xlane.f32.xlu0 %v1121_v61  ;;  %v1120_v62 = vadd.f32 %v1116_v56, %v21636_v57  ;;  %v18179_v61 = vpop.f32.mrb[14].mxu0 }
 0x503   :  { %v1119_v0 = vadd.f32 %v1115_v60, %v21631_v52  ;;  %v18234_v1 = vpop.f32.mrb[20].mxu1 }
 0x504   :  { %v1130_v2 = vsel %vm156_vm0, %v1120_v62, -inf  ;;  %v1537_v3 = vpop.f32.mrb[21].mxu1  ;;  %v1543_v28 = vadd.f32 %v18234_v1, %v16163_v63 }
 0x505   :  { %1131 = vmax.xlane.f32.xlu1 %v1130_v2  ;;  %v1127_v4 = vsel %vm156_vm0, %v1119_v0, -inf  ;;  %v1538_v6 = vadd.f32 %v16163_v63, %v1537_v3 }
 0x506   :  { %1128 = vmax.xlane.f32.xlu0 %v1127_v4 }
 0x507   :  { %v18237_v7 = vpop.f32.mrb[22].mxu1  ;;  %18274 = vmatprep.mubr.msk.f32.mxu1 %vm450_vm1, %v1538_v6 }
 0x508   :  { %v1547_v8 = vpop.f32.mrb[23].mxu1  ;;  %v1553_v30 = vadd.f32 %v18237_v7, %v16163_v63 }
 0x509   :  { %v1548_v29 = vadd.f32 %v16163_v63, %v1547_v8 }
 0x50b   :  { %v18248_v10 = vpop.f32.mrb[24].mxu1 }
 0x50c   :  { %v1641_v11 = vadd.f32 %v18248_v10, %v16173_v9  ;;  %v1635_v14 = vpop.f32.mrb[25].mxu1 }
 0x50d   :  { %v1636_v16 = vadd.f32 %v16173_v9, %v1635_v14 }
 0x50f   :  { %v19880_v21 = vpack.c.bf16 %v1641_v11, %v1636_v16  ;;  %v18251_v22 = vpop.f32.mrb[26].mxu1 }
 0x510   :  { %v1651_v23 = vadd.f32 %v18251_v22, %v16173_v9  ;;  %v1645_v24 = vpop.f32.mrb[27].mxu1 }
 0x511   :  { %19882 = vmatprep.subr.msk.bf16.mxu1 %vm21596_vm2, %v19880_v21  ;;  %v1646_v25 = vadd.f32 %v16173_v9, %v1645_v24 }
 0x512   :  { %19885 = vmatpush3.bf16.xpose.msk.msra.mxu1 %vm21596_vm2, %v19880_v21 }
 0x513   :  { %v19886_v26 = vpack.c.bf16 %v1651_v23, %v1646_v25 }
 0x515   :  { %19888 = vmatprep.subr.msk.bf16.mxu1 %vm21596_vm2, %v19886_v26 }
 0x51a   :  { %19891 = vmatpush3.bf16.xpose.msk.msra.mxu1 %vm21596_vm2, %v19886_v26  ;;  %v16149_v26 = vld [vmem:[%s21431_s3 + $0x8] sm:$0xff] }
 0x521   :  { %18275 = vmatmul.mubr.msk.f32.vlgmr.msra.gmra.mrb[28].mxu1 %vm450_vm1, %v1543_v28 }
 0x522   :  { %18277 = vmatprep.mubr.msk.f32.mxu1 %vm450_vm1, %v1548_v29 }
 0x525   :  { %18278 = vmatmul.mubr.msk.f32.gmra.mrb[30].mxu1 %vm450_vm1, %v1553_v30 }
 0x526   :  { %18310 = vmatprep.mubr.msk.f32.mxu1 %vm156_vm0, %v21558_v5 }
 0x58e   :  { %v1126_v32 = vpop.xlane.xlu1 %1125 }
 0x58f   :  { %v1134_v33 = vsub.f32 %v1118_v53, %v1126_v32  ;;  %v1123_v34 = vpop.xlane.xlu0 %1122 }
 0x590   :  { %v1133_v35 = vsub.f32 %v1117_v55, %v1123_v34  ;;  %v16132_v55 = vld [vmem:[%s21426_s29 + $0x9] ss:$0 sm:$0xff] }
 0x591   :  { %v1139_v36 = vmul.f32 1.442695, %v1134_v33  ;;  %v991_v56 = vadd.f32 %v18176_v31, %v16132_v55  ;;  %v986_v59 = vadd.f32 %v16132_v55, %v985_v58  ;;  %v1001_v63 = vadd.f32 %v18179_v61, %v16132_v55 }
 0x592   :  { %v1137_v37 = vmul.f32 1.442695, %v1133_v35  ;;  %v1132_v38 = vpop.xlane.xlu1 %1131 }
 0x593   :  { %20939 = vpow2.f32 %v1139_v36  ;;  %v1136_v39 = vsub.f32 %v1120_v62, %v1132_v38  ;;  %v1129_v40 = vpop.xlane.xlu0 %1128  ;;  %v19848_v60 = vpack.c.bf16 %v991_v56, %v986_v59  ;;  %v995_v62 = vpop.f32.mrb[15].mxu0 }
 0x594   :  { %20941 = vpow2.f32 %v1137_v37  ;;  %v1135_v41 = vsub.f32 %v1119_v0, %v1129_v40  ;;  %v996_v0 = vadd.f32 %v16132_v55, %v995_v62 }
 0x595   :  { %v1143_v42 = vmul.f32 1.442695, %v1136_v39  ;;  %19849 = vmatprep.subr.bf16.mxu0 %v19848_v60 }
 0x596   :  { %v1141_v43 = vmul.f32 1.442695, %v1135_v41  ;;  %19851 = vmatpush3.bf16.msra.mxu0 %v19848_v60  ;;  %v19852_v1 = vpack.c.bf16 %v1001_v63, %v996_v0 }
 0x597   :  { %20943 = vpow2.f32 %v1143_v42 }
 0x598   :  { %20945 = vpow2.f32 %v1141_v43  ;;  %19853 = vmatprep.subr.bf16.mxu0 %v19852_v1 }
 0x59a   :  { %19855 = vmatpush3.bf16.msra.mxu0 %v19852_v1  ;;  %v16178_v1 = vld [vmem:[%s21421_s25 + $0x140] sm:$0xff] }
 0x59b   :  { %18208 = vmatprep.subr.mxu0 %v16149_v26 }
 0x59d   :  { %v20940_v44 = vpop.eup %20939 }
 0x59e   :  { %v20942_v46 = vpop.eup %20941  ;;  %v1148_v47 = vsel %vm156_vm0, %v20940_v44, 0.0 }
 0x59f   :  { %1149 = vadd.xlane.f32.xlu1 %v1148_v47  ;;  %v1145_v49 = vsel %vm156_vm0, %v20942_v46, 0.0 }
 0x5a0   :  { %1146 = vadd.xlane.f32.xlu0 %v1145_v49 }
 0x5a1   :  { %v20944_v50 = vpop.eup %20943 }
 0x5a2   :  { %v20946_v51 = vpop.eup %20945  ;;  %v1154_v53 = vsel %vm156_vm0, %v20944_v50, 0.0 }
 0x5a3   :  { %1155 = vadd.xlane.f32.xlu1 %v1154_v53  ;;  %v1151_v54 = vsel %vm156_vm0, %v20946_v51, 0.0 }
 0x5a4   :  { %1152 = vadd.xlane.f32.xlu0 %v1151_v54 }
 0x5f4   :  { %v18276_v2 = vpop.f32.mrb[28].mxu1 }
 0x5f5   :  { %v1862_v3 = vmul.f32 0.35355338, %v18276_v2  ;;  %v1842_v4 = vpop.f32.mrb[29].mxu1  ;;  %v16179_v2 = vld [vmem:[%s21421_s25 + $0x148] sm:$0xff] }
 0x5f6   :  { %v1861_v6 = vmul.f32 0.35355338, %v1842_v4 }
 0x5f7   :  { %v1866_v7 = vadd.f32 %v1862_v3, %v21627_v48 }
 0x5f8   :  { %v18279_v8 = vpop.f32.mrb[30].mxu1  ;;  %v1865_v9 = vadd.f32 %v1861_v6, %v21624_v45  ;;  %v19872_v6 = vpack.c.bf16 %v16179_v2, %v16178_v1 }
 0x5f9   :  { %v1864_v10 = vmul.f32 0.35355338, %v18279_v8  ;;  %v1852_v11 = vpop.f32.mrb[31].mxu1  ;;  %v1872_v14 = vsel %vm156_vm0, %v1866_v7, -inf }
 0x5fa   :  { %v1863_v16 = vmul.f32 0.35355338, %v1852_v11  ;;  %1873 = vmax.xlane.f32.xlu1 %v1872_v14  ;;  %v1869_v21 = vsel %vm156_vm0, %v1865_v9, -inf }
 0x5fb   :  { %1870 = vmax.xlane.f32.xlu0 %v1869_v21  ;;  %v1868_v22 = vadd.f32 %v1864_v10, %v21636_v57  ;;  %v16181_v10 = vld [vmem:[%s21421_s25 + $0x158] sm:$0xff] }
 0x5fc   :  { %v1867_v23 = vadd.f32 %v1863_v16, %v21631_v52  ;;  %v16183_v16 = vld [vmem:[%s21426_s29 + $0xa] ss:$0 sm:$0xff] }
 0x5fd   :  { %v1878_v24 = vsel %vm156_vm0, %v1868_v22, -inf }
 0x5fe   :  { %1879 = vmax.xlane.f32.xlu1 %v1878_v24  ;;  %v1875_v25 = vsel %vm156_vm0, %v1867_v23, -inf }
 0x5ff   :  { %1876 = vmax.xlane.f32.xlu0 %v1875_v25 }
 0x62c   :  { %v1150_v28 = vpop.xlane.xlu1 %1149 }
 0x62d   :  { %20947 = vrcp.f32 %v1150_v28  ;;  %v1147_v29 = vpop.xlane.xlu0 %1146 }
 0x62e   :  { %20949 = vrcp.f32 %v1147_v29 }
 0x630   :  { %v1156_v30 = vpop.xlane.xlu1 %1155 }
 0x631   :  { %20951 = vrcp.f32 %v1156_v30  ;;  %v1153_v31 = vpop.xlane.xlu0 %1152 }
 0x632   :  { %20953 = vrcp.f32 %v1153_v31 }
 0x637   :  { %v20948_v32 = vpop.eup %20947 }
 0x638   :  { %v20950_v33 = vpop.eup %20949  ;;  %v1162_v35 = vmul.f32 %v20948_v32, %v20940_v44 }
 0x639   :  { %v1161_v34 = vmul.f32 %v20950_v33, %v20942_v46 }
 0x63b   :  { %v20952_v36 = vpop.eup %20951  ;;  %18202 = vmatprep.mubr.msk.f32.mxu0 %vm156_vm0, %v1161_v34  ;;  %v16200_v34 = vld [vmem:[%s21431_s3 + $0x10] sm:$0xff] }
 0x63c   :  { %v20954_v37 = vpop.eup %20953  ;;  %18203 = vmatmul.mubr.msk.f32.vlgmr.msra.gmra.mrb[16].mxu0 %vm156_vm0, %v1162_v35  ;;  %v1164_v39 = vmul.f32 %v20952_v36, %v20944_v50  ;;  %v709_v50 = vld [vmem:[%s21431_s3] sm:$0xff] }
 0x63d   :  { %v1163_v38 = vmul.f32 %v20954_v37, %v20946_v51  ;;  %18209 = vmatpush3.msra.mxu0 %v16149_v26 }
 0x63e   :  { %18216 = vmatprep.subr.mxu0 %v709_v50 }
 0x63f   :  { %18205 = vmatprep.mubr.msk.f32.mxu0 %vm156_vm0, %v1163_v38 }
 0x640   :  { %18206 = vmatmul.mubr.msk.f32.gmra.mrb[18].mxu0 %vm156_vm0, %v1164_v39 }
 0x687   :  { %v1874_v40 = vpop.xlane.xlu1 %1873 }
 0x688   :  { %v1882_v41 = vsub.f32 %v1866_v7, %v1874_v40  ;;  %v1871_v42 = vpop.xlane.xlu0 %1870  ;;  %v16215_v40 = vld [vmem:[%s21421_s25 + $0xe0] sm:$0xff] }
 0x689   :  { %v1881_v43 = vsub.f32 %v1865_v9, %v1871_v42  ;;  %v16180_v9 = vld [vmem:[%s21421_s25 + $0x150] sm:$0xff] }
 0x68a   :  { %v1887_v46 = vmul.f32 1.442695, %v1882_v41  ;;  %v19876_v11 = vpack.c.bf16 %v16181_v10, %v16180_v9  ;;  %v16216_v41 = vld [vmem:[%s21421_s25 + $0xe8] sm:$0xff] }
 0x68b   :  { %v1885_v44 = vmul.f32 1.442695, %v1881_v43  ;;  %v1880_v47 = vpop.xlane.xlu1 %1879  ;;  %v19908_v42 = vpack.c.bf16 %v16216_v41, %v16215_v40  ;;  %v16205_v43 = vld [vmem:[%s21421_s25 + $0x60] sm:$0xff] }
 0x68c   :  { %20955 = vpow2.f32 %v1887_v46  ;;  %v1884_v49 = vsub.f32 %v1868_v22, %v1880_v47  ;;  %v1877_v53 = vpop.xlane.xlu0 %1876  ;;  %v16206_v46 = vld [vmem:[%s21421_s25 + $0x68] sm:$0xff] }
 0x68d   :  { %20957 = vpow2.f32 %v1885_v44  ;;  %v1883_v54 = vsub.f32 %v1867_v23, %v1877_v53  ;;  %v16207_v44 = vld [vmem:[%s21421_s25 + $0x70] sm:$0xff]  ;;  %v19900_v47 = vpack.c.bf16 %v16206_v46, %v16205_v43 }
 0x68e   :  { %v1891_v51 = vmul.f32 1.442695, %v1884_v49  ;;  %v16208_v49 = vld [vmem:[%s21421_s25 + $0x78] sm:$0xff] }
 0x68f   :  { %v1889_v55 = vmul.f32 1.442695, %v1883_v54  ;;  %v19904_v53 = vpack.c.bf16 %v16208_v49, %v16207_v44  ;;  %19901 = vmatprep.subr.bf16.mxu1 %v19900_v47  ;;  %v16217_v54 = vld [vmem:[%s21421_s25 + $0xf0] sm:$0xff] }
 0x690   :  { %20959 = vpow2.f32 %v1891_v51  ;;  %19903 = vmatpush3.bf16.msra.mxu1 %v19900_v47  ;;  %v16218_v51 = vld [vmem:[%s21421_s25 + $0xf8] sm:$0xff] }
 0x691   :  { %20961 = vpow2.f32 %v1889_v55  ;;  %19905 = vmatprep.subr.bf16.mxu1 %v19904_v53 }
 0x694   :  { %19907 = vmatpush3.bf16.msra.mxu1 %v19904_v53 }
 0x696   :  { %v21775_v56 = vpop.eup %20955 }
 0x697   :  { %v20958_v58 = vpop.eup %20957  ;;  %v1896_v59 = vsel %vm156_vm0, %v21775_v56, 0.0  ;;  %18311 = vmatmul.mubr.msk.f32.vlgmr.msra.gmra.mrb[32].mxu1 %vm156_vm0, %v21569_v12 }
 0x698   :  { %1897 = vadd.xlane.f32.xlu1 %v1896_v59  ;;  %v1893_v60 = vsel %vm156_vm0, %v20958_v58, 0.0  ;;  %18313 = vmatprep.mubr.msk.f32.mxu1 %vm156_vm0, %v21572_v13 }
 0x699   :  { %1894 = vadd.xlane.f32.xlu0 %v1893_v60 }
 0x69a   :  { %v21780_v61 = vpop.eup %20959 }
 0x69b   :  { %v21782_v62 = vpop.eup %20961  ;;  %v1902_v63 = vsel %vm156_vm0, %v21780_v61, 0.0  ;;  %18314 = vmatmul.mubr.msk.f32.gmra.mrb[34].mxu1 %vm156_vm0, %v21579_v15 }
 0x69c   :  { %1903 = vadd.xlane.f32.xlu1 %v1902_v63  ;;  %v1899_v0 = vsel %vm156_vm0, %v21782_v62, 0.0  ;;  %18338 = vmatprep.mubr.msk.f32.mxu1 %vm156_vm0, %v21558_v5 }
 0x69d   :  { %1900 = vadd.xlane.f32.xlu0 %v1899_v0 }
 0x70f   :  { %v18204_v3 = vpop.f32.mrb[16].mxu0 }
 0x710   :  { %v1243_v4 = vpop.f32.mrb[17].mxu0 }
 0x711   :  { %18210 = vmatprep.mubr.msk.f32.mxu0 %vm450_vm1, %v1243_v4 }
 0x712   :  { %18211 = vmatmul.mubr.msk.f32.vlgmr.msra.gmra.mrb[20].mxu0 %vm450_vm1, %v18204_v3 }
 0x713   :  { %v18207_v7 = vpop.f32.mrb[18].mxu0  ;;  %18217 = vmatpush3.msra.mxu0 %v709_v50 }
 0x714   :  { %v1253_v8 = vpop.f32.mrb[19].mxu0  ;;  %19873 = vmatprep.subr.bf16.mxu0 %v19872_v6 }
 0x715   :  { %18213 = vmatprep.mubr.msk.f32.mxu0 %vm450_vm1, %v1253_v8 }
 0x716   :  { %18214 = vmatmul.mubr.msk.f32.gmra.mrb[22].mxu0 %vm450_vm1, %v18207_v7 }
 0x717   :  { %18218 = vmatprep.mubr.msk.f32.mxu0 %vm450_vm1, %v21689_v18 }
 0x71a   :  { %18219 = vmatmul.mubr.msk.f32.vlgmr.msra.gmra.mrb[20].mxu0 %vm450_vm1, %v21687_v17 }
 0x71b   :  { %18221 = vmatprep.mubr.msk.f32.mxu0 %vm450_vm1, %v21693_v20  ;;  %19875 = vmatpush3.bf16.msra.mxu0 %v19872_v6  ;;  %v16220_v6 = vld [vmem:[%s21426_s29 + $0x7] ss:$0 sm:$0xff] }
 0x71c   :  { %19877 = vmatprep.subr.bf16.mxu0 %v19876_v11 }
 0x71e   :  { %18222 = vmatmul.mubr.msk.f32.gmra.mrb[22].mxu0 %vm450_vm1, %v21691_v19 }
 0x71f   :  { %19879 = vmatpush3.bf16.msra.mxu0 %v19876_v11  ;;  %18260 = vmatprep.mubr.msk.f32.mxu0 %vm156_vm0, %v21558_v5  ;;  %v21842_v5 = vld [vmem:[%s21396_s5] sm:$0xff] }
 0x722   :  { %18261 = vmatmul.mubr.msk.f32.vlgmr.msra.gmra.mrb[24].mxu0 %vm156_vm0, %v21569_v12 }
 0x723   :  { %18263 = vmatprep.mubr.msk.f32.mxu0 %vm156_vm0, %v21572_v13 }
 0x725   :  { %v1898_v19 = vpop.xlane.xlu1 %1897 }
 0x726   :  { %18264 = vmatmul.mubr.msk.f32.gmra.mrb[26].mxu0 %vm156_vm0, %v21579_v15  ;;  %v1895_v17 = vpop.xlane.xlu0 %1894 }
 0x727   :  { %20963 = vrcp.f32 %v1895_v17 }
 0x728   :  { %20965 = vrcp.f32 %v1898_v19  ;;  %v16226_v19 = vld [vmem:[%s21421_s25 + $0x168] sm:$0xff] }
 0x729   :  { %v1904_v21 = vpop.xlane.xlu1 %1903 }
 0x72a   :  { %v1901_v14 = vpop.xlane.xlu0 %1900 }
 0x72b   :  { %20967 = vrcp.f32 %v1901_v14  ;;  %v16227_v14 = vld [vmem:[%s21421_s25 + $0x170] sm:$0xff] }
 0x72c   :  { %20969 = vrcp.f32 %v1904_v21  ;;  %v16228_v21 = vld [vmem:[%s21421_s25 + $0x178] sm:$0xff] }
 0x731   :  { %v20964_v18 = vpop.eup %20963 }
 0x732   :  { %v1909_v20 = vmul.f32 %v20964_v18, %v20958_v58  ;;  %v20966_v33 = vpop.eup %20965 }
 0x733   :  { %v1910_v36 = vmul.f32 %v20966_v33, %v21775_v56  ;;  %v19912_v56 = vpack.c.bf16 %v16218_v51, %v16217_v54 }
 0x734   :  { %18288 = vmatprep.mubr.msk.f32.mxu0 %vm156_vm0, %v1909_v20  ;;  %v16225_v20 = vld [vmem:[%s21421_s25 + $0x160] sm:$0xff] }
 0x735   :  { %v20968_v35 = vpop.eup %20967 }
 0x736   :  { %v20970_v37 = vpop.eup %20969  ;;  %v1911_v38 = vmul.f32 %v20968_v35, %v21782_v62 }
 0x737   :  { %v1912_v39 = vmul.f32 %v20970_v37, %v21780_v61  ;;  %v16210_v61 = vld [vmem:[%s21426_s29 + $0x3] ss:$0 sm:$0xff] }
 0x76a   :  { %v18312_v60 = vpop.f32.mrb[32].mxu1 }
 0x76b   :  { %v2198_v62 = vadd.f32 %v18312_v60, %v16210_v61  ;;  %v2192_v63 = vpop.f32.mrb[33].mxu1 }
 0x76c   :  { %v2193_v0 = vadd.f32 %v16210_v61, %v2192_v63 }
 0x76e   :  { %v18315_v1 = vpop.f32.mrb[34].mxu1 }
 0x76f   :  { %v2208_v2 = vadd.f32 %v18315_v1, %v16210_v61  ;;  %v2202_v3 = vpop.f32.mrb[35].mxu1 }
 0x770   :  { %v2203_v4 = vadd.f32 %v16210_v61, %v2202_v3 }
 0x7f5   :  { %v18262_v22 = vpop.f32.mrb[24].mxu0 }
 0x7f6   :  { %v1739_v23 = vadd.f32 %v18262_v22, %v16183_v16  ;;  %v1733_v24 = vpop.f32.mrb[25].mxu0  ;;  %v19920_v22 = vpack.c.bf16 %v16228_v21, %v16227_v14 }
 0x7f7   :  { %v1734_v25 = vadd.f32 %v16183_v16, %v1733_v24  ;;  %v21876_v24 = vld [vmem:[%s21396_s5 + $0x10] sm:$0xff] }
 0x7f9   :  { %v19892_v26 = vpack.c.bf16 %v1739_v23, %v1734_v25  ;;  %v18265_v28 = vpop.f32.mrb[26].mxu0  ;;  %v21871_v23 = vld [vmem:[%s21396_s5 + $0x8] sm:$0xff]  ;;  %v21881_v25 = vld [vmem:[%s21396_s5 + $0x18] sm:$0xff]  ;;  %s23571_s5 = sld [smem:[#allocation8_spill]] }
 0x7fa   :  { %v1749_v29 = vadd.f32 %v18265_v28, %v16183_v16  ;;  %v1743_v30 = vpop.f32.mrb[27].mxu0 }
 0x7fb   :  { %v1744_v31 = vadd.f32 %v16183_v16, %v1743_v30  ;;  %19893 = vmatprep.subr.bf16.mxu0 %v19892_v26  ;;  %v19916_v16 = vpack.c.bf16 %v16226_v19, %v16225_v20 }
 0x7fc   :  { %19895 = vmatpush3.bf16.msra.mxu0 %v19892_v26 }
 0x7fd   :  { %v19896_v32 = vpack.c.bf16 %v1749_v29, %v1744_v31  ;;  %19917 = vmatprep.subr.bf16.mxu1 %v19916_v16 }
 0x7fe   :  { %19919 = vmatpush3.bf16.msra.mxu1 %v19916_v16 }
 0x7ff   :  { %19897 = vmatprep.subr.bf16.mxu0 %v19896_v32  ;;  %19921 = vmatprep.subr.bf16.mxu1 %v19920_v22 }
 0x800   :  { %19899 = vmatpush3.bf16.msra.mxu0 %v19896_v32 }
 0x801   :  { %18294 = vmatprep.subr.mxu0 %v16200_v34 }
 0x802   :  { %19923 = vmatpush3.bf16.msra.mxu1 %v19920_v22 }
 0x803   :  { %18289 = vmatmul.mubr.msk.f32.vlgmr.msra.gmra.mrb[28].mxu0 %vm156_vm0, %v1910_v36 }
 0x804   :  { %18291 = vmatprep.mubr.msk.f32.mxu0 %vm156_vm0, %v1911_v38  ;;  %18295 = vmatpush3.msra.mxu0 %v16200_v34 }
 0x805   :  { %19909 = vmatprep.subr.bf16.mxu0 %v19908_v42  ;;  %18339 = vmatmul.mubr.msk.f32.vlgmr.msra.gmra.mrb[36].mxu1 %vm156_vm0, %v21871_v23 }
 0x806   :  { %18341 = vmatprep.mubr.msk.f32.mxu1 %vm156_vm0, %v21876_v24 }
 0x807   :  { %18292 = vmatmul.mubr.msk.f32.gmra.mrb[30].mxu0 %vm156_vm0, %v1912_v39 }
 0x809   :  { %18342 = vmatmul.mubr.msk.f32.gmra.mrb[38].mxu1 %vm156_vm0, %v21881_v25 }
 0x8d6   :  { %v18290_v55 = vpop.f32.mrb[28].mxu0 }
 0x8d7   :  { %v1991_v50 = vpop.f32.mrb[29].mxu0 }
 0x8d8   :  { %18296 = vmatprep.mubr.msk.f32.mxu0 %vm450_vm1, %v1991_v50 }
 0x8d9   :  { %18297 = vmatmul.mubr.msk.f32.vlgmr.msra.gmra.mrb[20].mxu0 %vm450_vm1, %v18290_v55 }
 0x8da   :  { %v18293_v58 = vpop.f32.mrb[30].mxu0  ;;  %19911 = vmatpush3.bf16.msra.mxu0 %v19908_v42 }
 0x8db   :  { %v2001_v59 = vpop.f32.mrb[31].mxu0  ;;  %19913 = vmatprep.subr.bf16.mxu0 %v19912_v56 }
 0x8dc   :  { %18299 = vmatprep.mubr.msk.f32.mxu0 %vm450_vm1, %v2001_v59 }
 0x8dd   :  { %18300 = vmatmul.mubr.msk.f32.gmra.mrb[22].mxu0 %vm450_vm1, %v18293_v58 }
 0x8de   :  { %19915 = vmatpush3.bf16.msra.mxu0 %v19912_v56  ;;  %18324 = vmatprep.mubr.msk.f32.mxu0 %vm156_vm0, %v21842_v5 }
 0x8e1   :  { %18325 = vmatmul.mubr.msk.f32.vlgmr.msra.gmra.mrb[32].mxu0 %vm156_vm0, %v21569_v12 }
 0x8e2   :  { %18327 = vmatprep.mubr.msk.f32.mxu0 %vm156_vm0, %v21572_v13 }
 0x8e5   :  { %18328 = vmatmul.mubr.msk.f32.gmra.mrb[34].mxu0 %vm156_vm0, %v21579_v15 }
 0x8e6   :  { %18352 = vmatprep.mubr.msk.f32.mxu0 %vm450_vm1, %v2193_v0  ;;  %v16230_v0 = vld [vmem:[%s21426_s29 + $0xb] ss:$0 sm:$0xff] }
 0x9b4   :  { %v18326_v7 = vpop.f32.mrb[32].mxu0 }
 0x9b5   :  { %v2296_v12 = vadd.f32 %v18326_v7, %v16220_v6  ;;  %v2290_v8 = vpop.f32.mrb[33].mxu0 }
 0x9b6   :  { %v2291_v13 = vadd.f32 %v16220_v6, %v2290_v8 }
 0x9b8   :  { %v19924_v15 = vpack.c.bf16 %v2296_v12, %v2291_v13  ;;  %v18329_v9 = vpop.f32.mrb[34].mxu0 }
 0x9b9   :  { %v2306_v10 = vadd.f32 %v18329_v9, %v16220_v6  ;;  %v2300_v11 = vpop.f32.mrb[35].mxu0 }
 0x9ba   :  { %19926 = vmatprep.subr.msk.bf16.mxu0 %vm21596_vm2, %v19924_v15  ;;  %v2301_v17 = vadd.f32 %v16220_v6, %v2300_v11 }
 0x9bb   :  { %19929 = vmatpush3.bf16.xpose.msk.msra.mxu0 %vm21596_vm2, %v19924_v15  ;;  %v16247_v15 = vld [vmem:[%s21431_s3 + $0x18] sm:$0xff] }
 0x9bc   :  { %v19930_v18 = vpack.c.bf16 %v2306_v10, %v2301_v17 }
 0x9be   :  { %19932 = vmatprep.subr.msk.bf16.mxu0 %vm21596_vm2, %v19930_v18 }
 0x9c3   :  { %19935 = vmatpush3.bf16.xpose.msk.msra.mxu0 %vm21596_vm2, %v19930_v18 }
 0x9c4   :  { %18372 = vmatprep.subr.mxu0 %v16247_v15 }
 0x9ca   :  { %18353 = vmatmul.mubr.msk.f32.vlgmr.msra.gmra.mrb[36].mxu0 %vm450_vm1, %v2198_v62 }
 0x9cb   :  { %18355 = vmatprep.mubr.msk.f32.mxu0 %vm450_vm1, %v2203_v4  ;;  %18373 = vmatpush3.msra.mxu0 %v16247_v15 }
 0x9ce   :  { %18356 = vmatmul.mubr.msk.f32.gmra.mrb[38].mxu0 %vm450_vm1, %v2208_v2 }
 0xa9d   :  { %v18354_v26 = vpop.f32.mrb[36].mxu0 }
 0xa9e   :  { %v2517_v28 = vmul.f32 0.35355338, %v18354_v26  ;;  %v2497_v29 = vpop.f32.mrb[37].mxu0 }
 0xa9f   :  { %v2516_v30 = vmul.f32 0.35355338, %v2497_v29 }
 0xaa0   :  { %v2521_v31 = vadd.f32 %v2517_v28, %v21627_v48 }
 0xaa1   :  { %v18357_v32 = vpop.f32.mrb[38].mxu0  ;;  %v2520_v33 = vadd.f32 %v2516_v30, %v21624_v45  ;;  %v18340_v45 = vpop.f32.mrb[36].mxu1 }
 0xaa2   :  { %v2519_v34 = vmul.f32 0.35355338, %v18357_v32  ;;  %v2507_v35 = vpop.f32.mrb[39].mxu0  ;;  %v2527_v36 = vsel %vm156_vm0, %v2521_v31, -inf  ;;  %v2394_v1 = vadd.f32 %v18340_v45, %v16230_v0  ;;  %v2388_v2 = vpop.f32.mrb[37].mxu1 }
 0xaa3   :  { %v2518_v37 = vmul.f32 0.35355338, %v2507_v35  ;;  %2528 = vmax.xlane.f32.xlu1 %v2527_v36  ;;  %v2524_v38 = vsel %vm156_vm0, %v2520_v33, -inf  ;;  %v2389_v3 = vadd.f32 %v16230_v0, %v2388_v2  ;;  %v18343_v6 = vpop.f32.mrb[38].mxu1  ;;  %v16252_v32 = vld [vmem:[%s21436_s8] ss:$0 sm:$0xff] }
 0xaa4   :  { %2525 = vmax.xlane.f32.xlu0 %v2524_v38  ;;  %v2523_v39 = vadd.f32 %v2519_v34, %v21636_v57  ;;  %v2398_v7 = vpop.f32.mrb[39].mxu1  ;;  %v2404_v12 = vadd.f32 %v18343_v6, %v16230_v0  ;;  %v2888_v2 = vld [vmem:[%s21446_s19 + $0x8] sm:$0xff]  ;;  %v2890_v6 = vld [vmem:[%s21446_s19 + $0x18] sm:$0xff] }
 0xaa5   :  { %v2522_v40 = vadd.f32 %v2518_v37, %v21631_v52  ;;  %v19936_v4 = vpack.c.bf16 %v2394_v1, %v2389_v3  ;;  %v2399_v8 = vadd.f32 %v16230_v0, %v2398_v7  ;;  %v2887_v1 = vld [vmem:[%s21446_s19] sm:$0xff]  ;;  %v2889_v3 = vld [vmem:[%s21446_s19 + $0x10] sm:$0xff] }
 0xaa6   :  { %v2533_v41 = vsel %vm156_vm0, %v2523_v39, -inf  ;;  %v19948_v7 = vpack.c.bf16 %v2890_v6, %v2889_v3 }
 0xaa7   :  { %2534 = vmax.xlane.f32.xlu1 %v2533_v41  ;;  %v2530_v48 = vsel %vm156_vm0, %v2522_v40, -inf  ;;  %19937 = vmatprep.subr.bf16.mxu1 %v19936_v4  ;;  %v19940_v13 = vpack.c.bf16 %v2404_v12, %v2399_v8  ;;  %v2999_v12 = vld [vmem:[%s21456_s30] sm:$0xff]  ;;  %v3000_v8 = vld [vmem:[%s21456_s30 + $0x8] sm:$0xff] }
 0xaa8   :  { %2531 = vmax.xlane.f32.xlu0 %v2530_v48  ;;  %19939 = vmatpush3.bf16.msra.mxu1 %v19936_v4  ;;  %v19944_v4 = vpack.c.bf16 %v2888_v2, %v2887_v1  ;;  %v3004_v1 = vld [vmem:[%s21456_s30 + $0x28] sm:$0xff] }
 0xaa9   :  { %19941 = vmatprep.subr.bf16.mxu1 %v19940_v13 }
 0xaac   :  { %19943 = vmatpush3.bf16.msra.mxu1 %v19940_v13  ;;  %v21942_v13 = vpack.c.bf16 %v3000_v8, %v2999_v12 }
 0xaad   :  { %19945 = vmatprep.subr.bf16.mxu1 %v19944_v4 }
 0xb30   :  { %v2529_v42 = vpop.xlane.xlu1 %2528 }
 0xb31   :  { %v2537_v43 = vsub.f32 %v2521_v31, %v2529_v42  ;;  %v2526_v46 = vpop.xlane.xlu0 %2525 }
 0xb32   :  { %v2536_v44 = vsub.f32 %v2520_v33, %v2526_v46 }
 0xb33   :  { %v2542_v47 = vmul.f32 1.442695, %v2537_v43 }
 0xb34   :  { %v2540_v49 = vmul.f32 1.442695, %v2536_v44  ;;  %v2535_v53 = vpop.xlane.xlu1 %2534 }
 0xb35   :  { %20971 = vpow2.f32 %v2542_v47  ;;  %v2539_v54 = vsub.f32 %v2523_v39, %v2535_v53  ;;  %v2532_v51 = vpop.xlane.xlu0 %2531 }
 0xb36   :  { %20973 = vpow2.f32 %v2540_v49  ;;  %v2538_v57 = vsub.f32 %v2522_v40, %v2532_v51 }
 0xb37   :  { %v2546_v52 = vmul.f32 1.442695, %v2539_v54 }
 0xb38   :  { %v2544_v55 = vmul.f32 1.442695, %v2538_v57 }
 0xb39   :  { %20975 = vpow2.f32 %v2546_v52 }
 0xb3a   :  { %20977 = vpow2.f32 %v2544_v55 }
 0xb3f   :  { %v20972_v50 = vpop.eup %20971 }
 0xb40   :  { %v20974_v56 = vpop.eup %20973  ;;  %v2551_v58 = vsel %vm156_vm0, %v20972_v50, 0.0 }
 0xb41   :  { %2552 = vadd.xlane.f32.xlu1 %v2551_v58  ;;  %v2548_v59 = vsel %vm156_vm0, %v20974_v56, 0.0 }
 0xb42   :  { %2549 = vadd.xlane.f32.xlu0 %v2548_v59 }
 0xb43   :  { %v20976_v60 = vpop.eup %20975 }
 0xb44   :  { %v20978_v61 = vpop.eup %20977  ;;  %v2557_v62 = vsel %vm156_vm0, %v20976_v60, 0.0 }
 0xb45   :  { %2558 = vadd.xlane.f32.xlu1 %v2557_v62  ;;  %v2554_v63 = vsel %vm156_vm0, %v20978_v61, 0.0 }
 0xb46   :  { %2555 = vadd.xlane.f32.xlu0 %v2554_v63 }
 0xbce   :  { %v2553_v9 = vpop.xlane.xlu1 %2552 }
 0xbcf   :  { %20979 = vrcp.f32 %v2553_v9  ;;  %v2550_v10 = vpop.xlane.xlu0 %2549 }
 0xbd0   :  { %20981 = vrcp.f32 %v2550_v10 }
 0xbd2   :  { %v2559_v11 = vpop.xlane.xlu1 %2558 }
 0xbd3   :  { %20983 = vrcp.f32 %v2559_v11  ;;  %v2556_v17 = vpop.xlane.xlu0 %2555 }
 0xbd4   :  { %20985 = vrcp.f32 %v2556_v17 }
 0xbd9   :  { %v20980_v18 = vpop.eup %20979 }
 0xbda   :  { %v20982_v20 = vpop.eup %20981  ;;  %v2565_v14 = vmul.f32 %v20980_v18, %v20972_v50 }
 0xbdb   :  { %v2564_v19 = vmul.f32 %v20982_v20, %v20974_v56 }
 0xbdd   :  { %v20984_v16 = vpop.eup %20983  ;;  %18366 = vmatprep.mubr.msk.f32.mxu1 %vm156_vm0, %v2564_v19 }
 0xbde   :  { %v20986_v21 = vpop.eup %20985  ;;  %18367 = vmatmul.mubr.msk.f32.vlgmr.msra.gmra.mrb[40].mxu1 %vm156_vm0, %v2565_v14  ;;  %v2567_v26 = vmul.f32 %v20984_v16, %v20976_v60 }
 0xbdf   :  { %v2566_v22 = vmul.f32 %v20986_v21, %v20978_v61  ;;  %19947 = vmatpush3.bf16.msra.mxu1 %v19944_v4  ;;  %v3006_v4 = vld [vmem:[%s21456_s30 + $0x38] sm:$0xff] }
 0xbe0   :  { %19949 = vmatprep.subr.bf16.mxu1 %v19948_v7 }
 0xbe1   :  { %18369 = vmatprep.mubr.msk.f32.mxu1 %vm156_vm0, %v2566_v22 }
 0xbe2   :  { %18370 = vmatmul.mubr.msk.f32.gmra.mrb[42].mxu1 %vm156_vm0, %v2567_v26 }
 0xbe3   :  { %19951 = vmatpush3.bf16.msra.mxu1 %v19948_v7  ;;  %v16256_v7 = vld [vmem:[%s21451_s24] ss:$0 sm:$0xff] }
 0xbe4   :  { %19953 = vmatprep.subr.bf16.mxu1 %v21942_v13 }
 0xcb1   :  { %v18368_v28 = vpop.f32.mrb[40].mxu1 }
 0xcb2   :  { %v2646_v29 = vpop.f32.mrb[41].mxu1 }
 0xcb3   :  { %18374 = vmatprep.mubr.msk.f32.mxu0 %vm450_vm1, %v2646_v29 }
 0xcb4   :  { %18375 = vmatmul.mubr.msk.f32.vlgmr.msra.gmra.mrb[20].mxu0 %vm450_vm1, %v18368_v28 }
 0xcb5   :  { %v18371_v30 = vpop.f32.mrb[42].mxu1 }
 0xcb6   :  { %v2656_v31 = vpop.f32.mrb[43].mxu1 }
 0xcb7   :  { %18377 = vmatprep.mubr.msk.f32.mxu0 %vm450_vm1, %v2656_v31 }
 0xcb8   :  { %18378 = vmatmul.mubr.msk.f32.gmra.mrb[22].mxu0 %vm450_vm1, %v18371_v30 }
 0xd87   :  { %v18376_v33 = vpop.f32.mrb[20].mxu0 }
 0xd88   :  { %v2776_v34 = vadd.f32 %v18376_v33, %v16252_v32  ;;  %v2745_v35 = vpop.f32.mrb[21].mxu0 }
 0xd89   :  { %v2775_v36 = vadd.f32 %v16252_v32, %v2745_v35 }
 0xd8a   :  { %v2780_v37 = vadd.f32 %v21871_v23, %v2776_v34 }
 0xd8b   :  { %v18379_v38 = vpop.f32.mrb[22].mxu0  ;;  %v2779_v39 = vadd.f32 %v21842_v5, %v2775_v36 }
 0xd8c   :  { %v2778_v40 = vadd.f32 %v18379_v38, %v16252_v32  ;;  %v2755_v41 = vpop.f32.mrb[23].mxu0  ;;  %v2789_v48 = vsel %vm156_vm0, %v2780_v37, 0.0 }
 0xd8d   :  { %v2777_v45 = vadd.f32 %v16252_v32, %v2755_v41  ;;  %2790 = vadd.xlane.f32.xlu1 %v2789_v48  ;;  %v2786_v42 = vsel %vm156_vm0, %v2779_v39, 0.0 }
 0xd8e   :  { %2787 = vadd.xlane.f32.xlu0 %v2786_v42  ;;  %v2782_v43 = vadd.f32 %v21881_v25, %v2778_v40 }
 0xd8f   :  { %v2781_v46 = vadd.f32 %v21876_v24, %v2777_v45 }
 0xd90   :  { %v2795_v44 = vsel %vm156_vm0, %v2782_v43, 0.0 }
 0xd91   :  { %2796 = vadd.xlane.f32.xlu1 %v2795_v44  ;;  %v2792_v23 = vsel %vm156_vm0, %v2781_v46, 0.0 }
 0xd92   :  { %2793 = vadd.xlane.f32.xlu0 %v2792_v23  ;;  %v16254_v23 = vld [vmem:[%s21441_s14] ss:$0 sm:$0xff] }
 0xe1a   :  { %v2791_v5 = vpop.xlane.xlu1 %2790 }
 0xe1b   :  { %v2800_v47 = vmul.f32 0.03125, %v2791_v5  ;;  %v2788_v49 = vpop.xlane.xlu0 %2787 }
 0xe1c   :  { %v2799_v53 = vmul.f32 0.03125, %v2788_v49 }
 0xe1d   :  { %v21916_v54 = vsub.f32 %v2780_v37, %v2800_v47 }
 0xe1e   :  { %v21918_v51 = vsub.f32 %v2779_v39, %v2799_v53  ;;  %v2797_v57 = vpop.xlane.xlu1 %2796  ;;  %v16255_v53 = vld [vmem:[%s21441_s14 + $0x1] ss:$0 sm:$0xff] }
 0xe1f   :  { %v2802_v52 = vmul.f32 0.03125, %v2797_v57  ;;  %v2794_v55 = vpop.xlane.xlu0 %2793  ;;  %v2808_v24 = vmul.f32 %v21916_v54, %v21916_v54 }
 0xe20   :  { %v2801_v25 = vmul.f32 0.03125, %v2794_v55  ;;  %v2807_v50 = vmul.f32 %v21918_v51, %v21918_v51 }
 0xe21   :  { %v21924_v56 = vsub.f32 %v2782_v43, %v2802_v52  ;;  %v2814_v58 = vsel %vm156_vm0, %v2808_v24, 0.0  ;;  %v3001_v24 = vld [vmem:[%s21456_s30 + $0x10] sm:$0xff] }
 0xe22   :  { %v21927_v59 = vsub.f32 %v2781_v46, %v2801_v25  ;;  %2815 = vadd.xlane.f32.xlu1 %v2814_v58  ;;  %v2811_v60 = vsel %vm156_vm0, %v2807_v50, 0.0  ;;  %v3002_v25 = vld [vmem:[%s21456_s30 + $0x18] sm:$0xff] }
 0xe23   :  { %2812 = vadd.xlane.f32.xlu0 %v2811_v60  ;;  %v2810_v61 = vmul.f32 %v21924_v56, %v21924_v56 }
 0xe24   :  { %v2809_v62 = vmul.f32 %v21927_v59, %v21927_v59 }
 0xe25   :  { %v2820_v63 = vsel %vm156_vm0, %v2810_v61, 0.0 }
 0xe26   :  { %2821 = vadd.xlane.f32.xlu1 %v2820_v63  ;;  %v2817_v0 = vsel %vm156_vm0, %v2809_v62, 0.0 }
 0xe27   :  { %2818 = vadd.xlane.f32.xlu0 %v2817_v0  ;;  %v19956_v0 = vpack.c.bf16 %v3002_v25, %v3001_v24 }
 0xeaf   :  { %v2816_v15 = vpop.xlane.xlu1 %2815 }
 0xeb0   :  { %v2824_v9 = vmul.f32 0.032258064, %v2816_v15  ;;  %v2813_v10 = vpop.xlane.xlu0 %2812 }
 0xeb1   :  { %v2823_v11 = vmul.f32 0.032258064, %v2813_v10 }
 0xeb2   :  { %20987 = vrsqrt.f32 %v2824_v9  ;;  %vm2836_vm3 = vcmp.eq.f32.partialorder %v2824_v9, inf  ;;  %v2839_v22 = vand.u32 2147483648, %v2824_v9  ;;  %vm2838_vm4 = vcmp.eq.f32.partialorder %v2824_v9, 0.0 }
 0xeb3   :  { %20989 = vrsqrt.f32 %v2823_v11  ;;  %v2822_v17 = vpop.xlane.xlu1 %2821  ;;  %vm2829_vm5 = vcmp.eq.f32.partialorder %v2823_v11, inf  ;;  %v2832_v29 = vand.u32 2147483648, %v2823_v11  ;;  %vm2831_vm6 = vcmp.eq.f32.partialorder %v2823_v11, 0.0 }
 0xeb4   :  { %v2826_v18 = vmul.f32 0.032258064, %v2822_v17  ;;  %v2819_v20 = vpop.xlane.xlu0 %2818 }
 0xeb5   :  { %v2825_v19 = vmul.f32 0.032258064, %v2819_v20 }
 0xeb6   :  { %20991 = vrsqrt.f32 %v2826_v18  ;;  %vm2850_vm7 = vcmp.eq.f32.partialorder %v2826_v18, inf  ;;  %vm2852_vm8 = vcmp.eq.f32.partialorder %v2826_v18, 0.0  ;;  %v2853_v38 = vand.u32 2147483648, %v2826_v18 }
 0xeb7   :  { %20993 = vrsqrt.f32 %v2825_v19  ;;  %vm2843_vm9 = vcmp.eq.f32.partialorder %v2825_v19, inf  ;;  %v2846_v41 = vand.u32 2147483648, %v2825_v19  ;;  %vm2845_vm10 = vcmp.eq.f32.partialorder %v2825_v19, 0.0 }
 0xebc   :  { %v20988_v14 = vpop.eup %20987 }
 0xebd   :  { %v20990_v16 = vpop.eup %20989  ;;  %v2835_v21 = vmul.f32 %v20988_v14, %v2824_v9 }
 0xebe   :  { %v2828_v26 = vmul.f32 %v20990_v16, %v2823_v11  ;;  %v16261_v16 = vld [vmem:[%s21461_s6] ss:$0 sm:$0xff] }
 0xebf   :  { %v2837_v28 = vsel %vm2836_vm3, %v2824_v9, %v2835_v21 }
 0xec0   :  { %v20992_v30 = vpop.eup %20991  ;;  %v2840_v31 = vsel %vm2838_vm4, %v2839_v22, %v2837_v28  ;;  %v2830_v32 = vsel %vm2829_vm5, %v2823_v11, %v2828_v26 }
 0xec1   :  { %v20994_v33 = vpop.eup %20993  ;;  %v2856_v34 = vadd.f32 1e-06, %v2840_v31  ;;  %v2833_v35 = vsel %vm2831_vm6, %v2832_v29, %v2830_v32  ;;  %v2849_v36 = vmul.f32 %v20992_v30, %v2826_v18 }
 0xec2   :  { %v2855_v37 = vadd.f32 1e-06, %v2833_v35  ;;  %v2842_v39 = vmul.f32 %v20994_v33, %v2825_v19 }
 0xec3   :  { %20995 = vrcp.f32 %v2856_v34  ;;  %v2851_v40 = vsel %vm2850_vm7, %v2826_v18, %v2849_v36  ;;  %vm6658_vm7 = vcmask 130048  }
 0xec4   :  { %v2854_v48 = vsel %vm2852_vm8, %v2853_v38, %v2851_v40  ;;  %v2844_v45 = vsel %vm2843_vm9, %v2825_v19, %v2842_v39  ;;  %20997 = vrcp.f32 %v2855_v37 }
 0xec5   :  { %v2858_v42 = vadd.f32 1e-06, %v2854_v48  ;;  %v2847_v43 = vsel %vm2845_vm10, %v2846_v41, %v2844_v45 }
 0xec6   :  { %v2857_v46 = vadd.f32 1e-06, %v2847_v43 }
 0xec7   :  { %20999 = vrcp.f32 %v2858_v42 }
 0xec8   :  { %21001 = vrcp.f32 %v2857_v46 }
 0xecd   :  { %v20996_v44 = vpop.eup %20995 }
 0xece   :  { %v20998_v5 = vpop.eup %20997  ;;  %v2864_v47 = vmul.f32 %v20996_v44, %v21916_v54 }
 0xecf   :  { %v2863_v49 = vmul.f32 %v20998_v5, %v21918_v51  ;;  %v3003_v51 = vld [vmem:[%s21456_s30 + $0x20] sm:$0xff] }
 0xed0   :  { %v2874_v57 = vmul.f32 %v16254_v23, %v2864_v47  ;;  %v19960_v3 = vpack.c.bf16 %v3004_v1, %v3003_v51  ;;  %v16271_v1 = vld [vmem:[%s21421_s25 + $0x190] sm:$0xff] }
 0xed1   :  { %v21000_v52 = vpop.eup %20999  ;;  %v2873_v55 = vmul.f32 %v16254_v23, %v2863_v49 }
 0xed2   :  { %v21002_v50 = vpop.eup %21001  ;;  %v2866_v58 = vmul.f32 %v21000_v52, %v21924_v56  ;;  %v2884_v62 = vadd.f32 %v16255_v53, %v2874_v57 }
 0xed3   :  { %v2883_v60 = vadd.f32 %v16255_v53, %v2873_v55  ;;  %v2865_v61 = vmul.f32 %v21002_v50, %v21927_v59  ;;  %v3005_v59 = vld [vmem:[%s21456_s30 + $0x30] sm:$0xff] }
 0xed4   :  { %v2876_v63 = vmul.f32 %v16254_v23, %v2866_v58  ;;  %v19964_v6 = vpack.c.bf16 %v3006_v4, %v3005_v59  ;;  %v16292_v59 = vld [vmem:[%s21421_s25 + $0x298] sm:$0xff] }
 0xed5   :  { %18388 = vmatprep.mubr.msk.f32.mxu1 %vm156_vm0, %v2883_v60  ;;  %v2875_v54 = vmul.f32 %v16254_v23, %v2865_v61  ;;  %v16269_v61 = vld [vmem:[%s21421_s25 + $0x180] sm:$0xff] }
 0xed6   :  { %18389 = vmatmul.mubr.msk.f32.vlgmr.msra.gmra.mrb[44].mxu1 %vm156_vm0, %v2884_v62  ;;  %v2886_v56 = vadd.f32 %v16255_v53, %v2876_v63  ;;  %v16289_v63 = vld [vmem:[%s21421_s25 + $0x280] sm:$0xff] }
 0xed7   :  { %v2885_v2 = vadd.f32 %v16255_v53, %v2875_v54  ;;  %19955 = vmatpush3.bf16.msra.mxu1 %v21942_v13  ;;  %v16290_v54 = vld [vmem:[%s21421_s25 + $0x288] sm:$0xff] }
 0xed8   :  { %19957 = vmatprep.subr.bf16.mxu1 %v19956_v0  ;;  %v19984_v51 = vpack.c.bf16 %v16290_v54, %v16289_v63 }
 0xed9   :  { %18391 = vmatprep.mubr.msk.f32.mxu1 %vm156_vm0, %v2885_v2 }
 0xeda   :  { %18392 = vmatmul.mubr.msk.f32.gmra.mrb[46].mxu1 %vm156_vm0, %v2886_v56 }
 0xedb   :  { %19959 = vmatpush3.bf16.msra.mxu1 %v19956_v0 }
 0xedc   :  { %19961 = vmatprep.subr.bf16.mxu1 %v19960_v3 }
 0xedf   :  { %19963 = vmatpush3.bf16.msra.mxu1 %v19960_v3 }
 0xee0   :  { %19965 = vmatprep.subr.bf16.mxu1 %v19964_v6 }
 0xee3   :  { %19967 = vmatpush3.bf16.msra.mxu1 %v19964_v6  ;;  %v16279_v6 = vld [vmem:[%s21421_s25 + $0x200] sm:$0xff] }
 0xee4   :  { %19985 = vmatprep.subr.bf16.mxu1 %v19984_v51 }
 0xfa9   :  { %v18390_v12 = vpop.f32.mrb[44].mxu1 }
 0xfaa   :  { %v2982_v8 = vadd.f32 %v18390_v12, %v16256_v7  ;;  %v2976_v13 = vpop.f32.mrb[45].mxu1 }
 0xfab   :  { %v2977_v15 = vadd.f32 %v16256_v7, %v2976_v13 }
 0xfac   :  { %v2996_v11 = vmax.f32 %v2982_v8, 0.0 }
 0xfad   :  { %v2995_v9 = vmax.f32 %v2977_v15, 0.0  ;;  %v18393_v10 = vpop.f32.mrb[46].mxu1 }
 0xfae   :  { %v2992_v17 = vadd.f32 %v18393_v10, %v16256_v7  ;;  %v2986_v18 = vpop.f32.mrb[47].mxu1 }
 0xfaf   :  { %v2987_v20 = vadd.f32 %v16256_v7, %v2986_v18  ;;  %18410 = vmatprep.mubr.msk.f32.mxu1 %vm3014_vm11, %v2995_v9  ;;  %v16280_v7 = vld [vmem:[%s21421_s25 + $0x208] sm:$0xff] }
 0xfb0   :  { %18411 = vmatmul.mubr.msk.f32.vlgmr.msra.gmra.mrb[48].mxu1 %vm3014_vm11, %v2996_v11  ;;  %v2998_v14 = vmax.f32 %v2992_v17, 0.0  ;;  %v22002_v12 = vpack.c.bf16 %v16280_v7, %v16279_v6 }
 0xfb1   :  { %v2997_v19 = vmax.f32 %v2987_v20, 0.0  ;;  %19987 = vmatpush3.bf16.msra.mxu1 %v19984_v51 }
 0xfb3   :  { %18413 = vmatprep.mubr.msk.f32.mxu1 %vm3014_vm11, %v2997_v19 }
 0xfb4   :  { %18414 = vmatmul.mubr.msk.f32.gmra.mrb[50].mxu1 %vm3014_vm11, %v2998_v14 }
0x1083   :  { %v18412_v21 = vpop.f32.mrb[48].mxu1 }
0x1084   :  { %v3099_v22 = vadd.f32 %v18412_v21, %v16261_v16  ;;  %v3093_v26 = vpop.f32.mrb[49].mxu1 }
0x1085   :  { %v3094_v28 = vadd.f32 %v16261_v16, %v3093_v26 }
0x1086   :  { %v3113_v29 = vadd.f32 %v3099_v22, %v2884_v62  ;;  %v16270_v62 = vld [vmem:[%s21421_s25 + $0x188] sm:$0xff] }
0x1087   :  { %v18415_v30 = vpop.f32.mrb[50].mxu1  ;;  %v3112_v31 = vadd.f32 %v3094_v28, %v2883_v60  ;;  %v19968_v0 = vpack.c.bf16 %v16270_v62, %v16269_v61 }
0x1088   :  { %v3109_v32 = vadd.f32 %v18415_v30, %v16261_v16  ;;  %v3103_v33 = vpop.f32.mrb[51].mxu1  ;;  %v3122_v34 = vsel %vm156_vm0, %v3113_v29, 0.0 }
0x1089   :  { %v3104_v35 = vadd.f32 %v16261_v16, %v3103_v33  ;;  %3123 = vadd.xlane.f32.xlu1 %v3122_v34  ;;  %v3119_v36 = vsel %vm156_vm0, %v3112_v31, 0.0  ;;  %19969 = vmatprep.subr.bf16.mxu0 %v19968_v0 }
0x108a   :  { %3120 = vadd.xlane.f32.xlu0 %v3119_v36  ;;  %v3115_v37 = vadd.f32 %v3109_v32, %v2886_v56  ;;  %19971 = vmatpush3.bf16.msra.mxu0 %v19968_v0  ;;  %v16291_v56 = vld [vmem:[%s21421_s25 + $0x290] sm:$0xff] }
0x108b   :  { %v3114_v38 = vadd.f32 %v3104_v35, %v2885_v2  ;;  %v16272_v2 = vld [vmem:[%s21421_s25 + $0x198] sm:$0xff]  ;;  %v19988_v4 = vpack.c.bf16 %v16292_v59, %v16291_v56 }
0x108c   :  { %v3128_v39 = vsel %vm156_vm0, %v3115_v37, 0.0  ;;  %v19972_v3 = vpack.c.bf16 %v16272_v2, %v16271_v1  ;;  %v16274_v1 = vld [vmem:[%s21426_s29 + $0xc] ss:$0 sm:$0xff] }
0x108d   :  { %3129 = vadd.xlane.f32.xlu1 %v3128_v39  ;;  %v3125_v40 = vsel %vm156_vm0, %v3114_v38, 0.0  ;;  %19989 = vmatprep.subr.bf16.mxu1 %v19988_v4 }
0x108e   :  { %3126 = vadd.xlane.f32.xlu0 %v3125_v40  ;;  %19973 = vmatprep.subr.bf16.mxu0 %v19972_v3 }
0x108f   :  { %19975 = vmatpush3.bf16.msra.mxu0 %v19972_v3  ;;  %19991 = vmatpush3.bf16.msra.mxu1 %v19988_v4 }
0x1090   :  { %19977 = vmatprep.subr.bf16.mxu0 %v22002_v12 }
0x1116   :  { %v3124_v41 = vpop.xlane.xlu1 %3123 }
0x1117   :  { %v3132_v48 = vmul.f32 0.03125, %v3124_v41  ;;  %v3121_v45 = vpop.xlane.xlu0 %3120 }
0x1118   :  { %v3131_v42 = vmul.f32 0.03125, %v3121_v45 }
0x1119   :  { %v21972_v43 = vsub.f32 %v3113_v29, %v3132_v48 }
0x111a   :  { %v21974_v46 = vsub.f32 %v3112_v31, %v3131_v42  ;;  %v3130_v44 = vpop.xlane.xlu1 %3129 }
0x111b   :  { %v3134_v23 = vmul.f32 0.03125, %v3130_v44  ;;  %v3127_v5 = vpop.xlane.xlu0 %3126  ;;  %v3140_v47 = vmul.f32 %v21972_v43, %v21972_v43 }
0x111c   :  { %v3133_v49 = vmul.f32 0.03125, %v3127_v5  ;;  %v3139_v53 = vmul.f32 %v21974_v46, %v21974_v46 }
0x111d   :  { %v21980_v57 = vsub.f32 %v3115_v37, %v3134_v23  ;;  %v3146_v52 = vsel %vm156_vm0, %v3140_v47, 0.0  ;;  %v16267_v23 = vld [vmem:[%s21466_s12] ss:$0 sm:$0xff] }
0x111e   :  { %v21983_v55 = vsub.f32 %v3114_v38, %v3133_v49  ;;  %3147 = vadd.xlane.f32.xlu1 %v3146_v52  ;;  %v3143_v24 = vsel %vm156_vm0, %v3139_v53, 0.0  ;;  %v16268_v53 = vld [vmem:[%s21466_s12 + $0x1] ss:$0 sm:$0xff] }
0x111f   :  { %3144 = vadd.xlane.f32.xlu0 %v3143_v24  ;;  %v3142_v25 = vmul.f32 %v21980_v57, %v21980_v57 }
0x1120   :  { %v3141_v50 = vmul.f32 %v21983_v55, %v21983_v55 }
0x1121   :  { %v3152_v58 = vsel %vm156_vm0, %v3142_v25, 0.0 }
0x1122   :  { %3153 = vadd.xlane.f32.xlu1 %v3152_v58  ;;  %v3149_v60 = vsel %vm156_vm0, %v3141_v50, 0.0  ;;  %v16281_v50 = vld [vmem:[%s21421_s25 + $0x210] sm:$0xff]  ;;  %v16282_v58 = vld [vmem:[%s21421_s25 + $0x218] sm:$0xff] }
0x1123   :  { %3150 = vadd.xlane.f32.xlu0 %v3149_v60  ;;  %v19980_v51 = vpack.c.bf16 %v16282_v58, %v16281_v50  ;;  %v16327_v50 = vld [vmem:[%s21426_s29 + $0x11] ss:$0 sm:$0xff]  ;;  %v22085_v58 = vld [vmem:[%s21406_s13 + $0x18] sm:$0xff] }
0x11ab   :  { %v3148_v8 = vpop.xlane.xlu1 %3147 }
0x11ac   :  { %v3156_v13 = vmul.f32 0.032258064, %v3148_v8  ;;  %v3145_v15 = vpop.xlane.xlu0 %3144 }
0x11ad   :  { %v3155_v9 = vmul.f32 0.032258064, %v3145_v15 }
0x11ae   :  { %21003 = vrsqrt.f32 %v3156_v13  ;;  %vm3168_vm12 = vcmp.eq.f32.partialorder %v3156_v13, inf  ;;  %v3171_v16 = vand.u32 2147483648, %v3156_v13  ;;  %vm3170_vm13 = vcmp.eq.f32.partialorder %v3156_v13, 0.0 }
0x11af   :  { %21005 = vrsqrt.f32 %v3155_v9  ;;  %v3154_v10 = vpop.xlane.xlu1 %3153  ;;  %vm3161_vm14 = vcmp.eq.f32.partialorder %v3155_v9, inf  ;;  %v3164_v26 = vand.u32 2147483648, %v3155_v9  ;;  %vm3163_vm15 = vcmp.eq.f32.partialorder %v3155_v9, 0.0 }
0x11b0   :  { %v3158_v11 = vmul.f32 0.032258064, %v3154_v10  ;;  %v3151_v17 = vpop.xlane.xlu0 %3150 }
0x11b1   :  { %v3157_v18 = vmul.f32 0.032258064, %v3151_v17  ;;  %v16284_v17 = vld [vmem:[%s21426_s29 + $0x10] ss:$0 sm:$0xff] }
0x11b2   :  { %21007 = vrsqrt.f32 %v3158_v11  ;;  %vm3182_vm3 = vcmp.eq.f32.partialorder %v3158_v11, inf  ;;  %vm3184_vm4 = vcmp.eq.f32.partialorder %v3158_v11, 0.0  ;;  %v3185_v36 = vand.u32 2147483648, %v3158_v11 }
0x11b3   :  { %21009 = vrsqrt.f32 %v3157_v18  ;;  %vm3175_vm5 = vcmp.eq.f32.partialorder %v3157_v18, inf  ;;  %v3178_v39 = vand.u32 2147483648, %v3157_v18  ;;  %vm3177_vm6 = vcmp.eq.f32.partialorder %v3157_v18, 0.0 }
0x11b8   :  { %v21004_v20 = vpop.eup %21003 }
0x11b9   :  { %v21006_v19 = vpop.eup %21005  ;;  %v3167_v14 = vmul.f32 %v21004_v20, %v3156_v13 }
0x11ba   :  { %v3160_v21 = vmul.f32 %v21006_v19, %v3155_v9 }
0x11bb   :  { %v3169_v22 = vsel %vm3168_vm12, %v3156_v13, %v3167_v14 }
0x11bc   :  { %v21008_v28 = vpop.eup %21007  ;;  %v3172_v29 = vsel %vm3170_vm13, %v3171_v16, %v3169_v22  ;;  %v3162_v30 = vsel %vm3161_vm14, %v3155_v9, %v3160_v21 }
0x11bd   :  { %v21010_v31 = vpop.eup %21009  ;;  %v3188_v32 = vadd.f32 1e-06, %v3172_v29  ;;  %v3165_v33 = vsel %vm3163_vm15, %v3164_v26, %v3162_v30  ;;  %v3181_v34 = vmul.f32 %v21008_v28, %v3158_v11 }
0x11be   :  { %v3187_v35 = vadd.f32 1e-06, %v3165_v33  ;;  %v3174_v37 = vmul.f32 %v21010_v31, %v3157_v18  ;;  %v16322_v31 = vld [vmem:[%s21421_s25 + $0x220] sm:$0xff] }
0x11bf   :  { %21011 = vrcp.f32 %v3188_v32  ;;  %v3183_v38 = vsel %vm3182_vm3, %v3158_v11, %v3181_v34  ;;  %v16323_v32 = vld [vmem:[%s21421_s25 + $0x228] sm:$0xff]  ;;  %v16324_v34 = vld [vmem:[%s21421_s25 + $0x230] sm:$0xff] }
0x11c0   :  { %21013 = vrcp.f32 %v3187_v35  ;;  %v3186_v40 = vsel %vm3184_vm4, %v3185_v36, %v3183_v38  ;;  %v3176_v41 = vsel %vm3175_vm5, %v3157_v18, %v3174_v37  ;;  %v20020_v33 = vpack.c.bf16 %v16323_v32, %v16322_v31  ;;  %v16325_v35 = vld [vmem:[%s21421_s25 + $0x238] sm:$0xff]  ;;  %v16312_v32 = vld [vmem:[%s21421_s25 + $0x1a0] sm:$0xff] }
0x11c1   :  { %v3190_v48 = vadd.f32 1e-06, %v3186_v40  ;;  %v3179_v45 = vsel %vm3177_vm6, %v3178_v39, %v3176_v41  ;;  %v20024_v37 = vpack.c.bf16 %v16325_v35, %v16324_v34 }
0x11c2   :  { %v3189_v42 = vadd.f32 1e-06, %v3179_v45 }
0x11c3   :  { %21015 = vrcp.f32 %v3190_v48 }
0x11c4   :  { %21017 = vrcp.f32 %v3189_v42  ;;  %v22074_v42 = vld [vmem:[%s21406_s13 + $0x8] sm:$0xff] }
0x11c9   :  { %v21012_v44 = vpop.eup %21011 }
0x11ca   :  { %v21014_v5 = vpop.eup %21013  ;;  %v3196_v47 = vmul.f32 %v21012_v44, %v21972_v43 }
0x11cb   :  { %v3195_v49 = vmul.f32 %v21014_v5, %v21974_v46  ;;  %v22078_v5 = vld [vmem:[%s21406_s13] sm:$0xff] }
0x11cc   :  { %v3206_v52 = vmul.f32 %v16267_v23, %v3196_v47 }
0x11cd   :  { %v21016_v24 = vpop.eup %21015  ;;  %v3205_v25 = vmul.f32 %v16267_v23, %v3195_v49 }
0x11ce   :  { %v21018_v60 = vpop.eup %21017  ;;  %v3198_v61 = vmul.f32 %v21016_v24, %v21980_v57  ;;  %v22015_v0 = vadd.f32 %v16268_v53, %v3206_v52 }
0x11cf   :  { %v22012_v62 = vadd.f32 %v16268_v53, %v3205_v25  ;;  %v3197_v63 = vmul.f32 %v21018_v60, %v21983_v55  ;;  %v16294_v55 = vld [vmem:[%s21426_s29 + $0x14] ss:$0 sm:$0xff] }
0x11d0   :  { %v3208_v54 = vmul.f32 %v16267_v23, %v3198_v61 }
0x11d1   :  { %v3207_v43 = vmul.f32 %v16267_v23, %v3197_v63  ;;  %18424 = vmatprep.mubr.msk.f32.mxu0 %vm156_vm0, %v22012_v62  ;;  %18452 = vmatprep.mubr.msk.f32.mxu1 %vm156_vm0, %v22012_v62  ;;  %v22089_v63 = vld [vmem:[%s21406_s13 + $0x10] sm:$0xff]  ;;  %s23572_s13 = sld [smem:[#allocation11_spill]] }
0x11d2   :  { %18425 = vmatmul.mubr.msk.f32.vlgmr.msra.gmra.mrb[40].mxu0 %vm156_vm0, %v22015_v0  ;;  %18453 = vmatmul.mubr.msk.f32.vlgmr.msra.gmra.mrb[52].mxu1 %vm156_vm0, %v22015_v0  ;;  %v22028_v57 = vadd.f32 %v16268_v53, %v3208_v54 }
0x11d3   :  { %v22025_v46 = vadd.f32 %v16268_v53, %v3207_v43  ;;  %19979 = vmatpush3.bf16.msra.mxu0 %v22002_v12 }
0x11d4   :  { %19981 = vmatprep.subr.bf16.mxu0 %v19980_v51 }
0x11d5   :  { %18427 = vmatprep.mubr.msk.f32.mxu0 %vm156_vm0, %v22025_v46  ;;  %18455 = vmatprep.mubr.msk.f32.mxu1 %vm156_vm0, %v22025_v46 }
0x11d6   :  { %18428 = vmatmul.mubr.msk.f32.gmra.mrb[42].mxu0 %vm156_vm0, %v22028_v57  ;;  %18456 = vmatmul.mubr.msk.f32.gmra.mrb[54].mxu1 %vm156_vm0, %v22028_v57 }
0x11d7   :  { %19983 = vmatpush3.bf16.msra.mxu0 %v19980_v51  ;;  %18438 = vmatprep.mubr.msk.f32.mxu0 %vm156_vm0, %v22012_v62 }
0x11da   :  { %18439 = vmatmul.mubr.msk.f32.vlgmr.msra.gmra.mrb[44].mxu0 %vm156_vm0, %v22015_v0 }
0x11db   :  { %18441 = vmatprep.mubr.msk.f32.mxu0 %vm156_vm0, %v22025_v46 }
0x11de   :  { %18442 = vmatmul.mubr.msk.f32.gmra.mrb[46].mxu0 %vm156_vm0, %v22028_v57 }
0x12a5   :  { %v18426_v2 = vpop.f32.mrb[40].mxu0  ;;  %v18454_v56 = vpop.f32.mrb[52].mxu1 }
0x12a6   :  { %v3512_v3 = vadd.f32 %v18454_v56, %v16294_v55  ;;  %v3310_v59 = vpop.f32.mrb[41].mxu0  ;;  %v3506_v4 = vpop.f32.mrb[53].mxu1  ;;  %v3316_v36 = vadd.f32 %v18426_v2, %v16274_v1 }
0x12a7   :  { %v3311_v6 = vadd.f32 %v16274_v1, %v3310_v59  ;;  %v3507_v7 = vadd.f32 %v16294_v55, %v3506_v4 }
0x12a9   :  { %v20004_v12 = vpack.c.bf16 %v3512_v3, %v3507_v7  ;;  %v18429_v8 = vpop.f32.mrb[42].mxu0  ;;  %v18457_v13 = vpop.f32.mrb[54].mxu1  ;;  %18466 = vmatprep.mubr.msk.f32.mxu0 %vm450_vm1, %v3311_v6 }
0x12aa   :  { %v3522_v15 = vadd.f32 %v18457_v13, %v16294_v55  ;;  %v3320_v9 = vpop.f32.mrb[43].mxu0  ;;  %v3516_v10 = vpop.f32.mrb[55].mxu1  ;;  %v3326_v39 = vadd.f32 %v18429_v8, %v16274_v1 }
0x12ab   :  { %v3517_v11 = vadd.f32 %v16294_v55, %v3516_v10  ;;  %20005 = vmatprep.subr.bf16.mxu1 %v20004_v12  ;;  %v3321_v38 = vadd.f32 %v16274_v1, %v3320_v9 }
0x12ac   :  { %20007 = vmatpush3.bf16.msra.mxu1 %v20004_v12 }
0x12ad   :  { %v20008_v18 = vpack.c.bf16 %v3522_v15, %v3517_v11  ;;  %v18440_v20 = vpop.f32.mrb[44].mxu0 }
0x12ae   :  { %v3414_v19 = vadd.f32 %v18440_v20, %v16284_v17  ;;  %v3408_v14 = vpop.f32.mrb[45].mxu0 }
0x12af   :  { %v3409_v16 = vadd.f32 %v16284_v17, %v3408_v14  ;;  %20009 = vmatprep.subr.bf16.mxu1 %v20008_v18 }
0x12b0   :  { %20011 = vmatpush3.bf16.msra.mxu1 %v20008_v18 }
0x12b1   :  { %v19992_v21 = vpack.c.bf16 %v3414_v19, %v3409_v16  ;;  %v18443_v22 = vpop.f32.mrb[46].mxu0 }
0x12b2   :  { %v3424_v26 = vadd.f32 %v18443_v22, %v16284_v17  ;;  %v3418_v28 = vpop.f32.mrb[47].mxu0 }
0x12b3   :  { %v3419_v29 = vadd.f32 %v16284_v17, %v3418_v28  ;;  %19994 = vmatprep.subr.msk.bf16.mxu0 %vm21596_vm2, %v19992_v21 }
0x12b4   :  { %19997 = vmatpush3.bf16.xpose.msk.msra.mxu0 %vm21596_vm2, %v19992_v21 }
0x12b5   :  { %v19998_v30 = vpack.c.bf16 %v3424_v26, %v3419_v29 }
0x12b7   :  { %20000 = vmatprep.subr.msk.bf16.mxu0 %vm21596_vm2, %v19998_v30 }
0x12bc   :  { %20003 = vmatpush3.bf16.xpose.msk.msra.mxu0 %vm21596_vm2, %v19998_v30 }
0x12bd   :  { %20021 = vmatprep.subr.bf16.mxu0 %v20020_v33 }
0x12c3   :  { %18467 = vmatmul.mubr.msk.f32.vlgmr.msra.gmra.mrb[48].mxu0 %vm450_vm1, %v3316_v36 }
0x12c4   :  { %18469 = vmatprep.mubr.msk.f32.mxu0 %vm450_vm1, %v3321_v38  ;;  %20023 = vmatpush3.bf16.msra.mxu0 %v20020_v33  ;;  %v16313_v33 = vld [vmem:[%s21421_s25 + $0x1a8] sm:$0xff] }
0x12c5   :  { %20025 = vmatprep.subr.bf16.mxu0 %v20024_v37  ;;  %v20012_v34 = vpack.c.bf16 %v16313_v33, %v16312_v32 }
0x12c7   :  { %18470 = vmatmul.mubr.msk.f32.gmra.mrb[50].mxu0 %vm450_vm1, %v3326_v39  ;;  %20013 = vmatprep.subr.bf16.mxu1 %v20012_v34 }
0x12c8   :  { %20027 = vmatpush3.bf16.msra.mxu0 %v20024_v37  ;;  %18508 = vmatprep.mubr.msk.f32.mxu0 %vm156_vm0, %v22012_v62 }
0x12cb   :  { %18509 = vmatmul.mubr.msk.f32.vlgmr.msra.gmra.mrb[52].mxu0 %vm156_vm0, %v22015_v0 }
0x12cc   :  { %18511 = vmatprep.mubr.msk.f32.mxu0 %vm156_vm0, %v22025_v46 }
0x12cf   :  { %18512 = vmatmul.mubr.msk.f32.gmra.mrb[54].mxu0 %vm156_vm0, %v22028_v57 }
0x1396   :  { %v18468_v40 = vpop.f32.mrb[48].mxu0 }
0x1397   :  { %v3635_v41 = vmul.f32 0.35355338, %v18468_v40  ;;  %v3615_v48 = vpop.f32.mrb[49].mxu0  ;;  %v16314_v40 = vld [vmem:[%s21421_s25 + $0x1b0] sm:$0xff] }
0x1398   :  { %v3634_v45 = vmul.f32 0.35355338, %v3615_v48 }
0x1399   :  { %v3639_v44 = vadd.f32 %v22074_v42, %v3635_v41  ;;  %v16315_v41 = vld [vmem:[%s21421_s25 + $0x1b8] sm:$0xff] }
0x139a   :  { %v18471_v23 = vpop.f32.mrb[50].mxu0  ;;  %v3638_v47 = vadd.f32 %v22078_v5, %v3634_v45 }
0x139b   :  { %v3637_v49 = vmul.f32 0.35355338, %v18471_v23  ;;  %v3625_v53 = vpop.f32.mrb[51].mxu0  ;;  %v3645_v52 = vsel %vm156_vm0, %v3639_v44, -inf  ;;  %v20016_v23 = vpack.c.bf16 %v16315_v41, %v16314_v40 }
0x139c   :  { %v3636_v24 = vmul.f32 0.35355338, %v3625_v53  ;;  %3646 = vmax.xlane.f32.xlu1 %v3645_v52  ;;  %v3642_v25 = vsel %vm156_vm0, %v3638_v47, -inf  ;;  %v16333_v53 = vld [vmem:[%s21421_s25 + $0x2a8] sm:$0xff] }
0x139d   :  { %3643 = vmax.xlane.f32.xlu0 %v3642_v25  ;;  %v3641_v60 = vadd.f32 %v22085_v58, %v3637_v49  ;;  %v16332_v49 = vld [vmem:[%s21421_s25 + $0x2a0] sm:$0xff] }
0x139e   :  { %v18510_v61 = vpop.f32.mrb[52].mxu0  ;;  %v3640_v54 = vadd.f32 %v22089_v63, %v3636_v24 }
0x139f   :  { %v3968_v51 = vadd.f32 %v18510_v61, %v16327_v50  ;;  %v3962_v43 = vpop.f32.mrb[53].mxu0  ;;  %v3651_v55 = vsel %vm156_vm0, %v3641_v60, -inf  ;;  %v16335_v61 = vld [vmem:[%s21421_s25 + $0x2b8] sm:$0xff] }
0x13a0   :  { %v3963_v1 = vadd.f32 %v16327_v50, %v3962_v43  ;;  %3652 = vmax.xlane.f32.xlu1 %v3651_v55  ;;  %v3648_v2 = vsel %vm156_vm0, %v3640_v54, -inf  ;;  %v16364_v43 = vld [vmem:[%s21421_s25 + $0x1c8] sm:$0xff] }
0x13a1   :  { %3649 = vmax.xlane.f32.xlu0 %v3648_v2 }
0x13a2   :  { %v20036_v56 = vpack.c.bf16 %v3968_v51, %v3963_v1  ;;  %v18513_v3 = vpop.f32.mrb[54].mxu0  ;;  %v16363_v51 = vld [vmem:[%s21421_s25 + $0x1c0] sm:$0xff] }
0x13a3   :  { %v3978_v59 = vadd.f32 %v18513_v3, %v16327_v50  ;;  %v3972_v4 = vpop.f32.mrb[55].mxu0  ;;  %v20056_v55 = vpack.c.bf16 %v16364_v43, %v16363_v51 }
0x13a4   :  { %v3973_v6 = vadd.f32 %v16327_v50, %v3972_v4  ;;  %20038 = vmatprep.subr.msk.bf16.mxu0 %vm21596_vm2, %v20036_v56  ;;  %v20028_v50 = vpack.c.bf16 %v16333_v53, %v16332_v49 }
0x13a5   :  { %20041 = vmatpush3.bf16.xpose.msk.msra.mxu0 %vm21596_vm2, %v20036_v56 }
0x13a6   :  { %v20042_v7 = vpack.c.bf16 %v3978_v59, %v3973_v6  ;;  %v16317_v59 = vld [vmem:[%s21426_s29 + $0xd] ss:$0 sm:$0xff]  ;;  %v16365_v6 = vld [vmem:[%s21421_s25 + $0x1d0] sm:$0xff] }
0x13a8   :  { %20044 = vmatprep.subr.msk.bf16.mxu0 %vm21596_vm2, %v20042_v7 }
0x13ad   :  { %20047 = vmatpush3.bf16.xpose.msk.msra.mxu0 %vm21596_vm2, %v20042_v7  ;;  %v16366_v7 = vld [vmem:[%s21421_s25 + $0x1d8] sm:$0xff] }
0x13ae   :  { %20057 = vmatprep.subr.bf16.mxu0 %v20056_v55 }
0x1429   :  { %v3647_v12 = vpop.xlane.xlu1 %3646 }
0x142a   :  { %v3655_v8 = vsub.f32 %v3639_v44, %v3647_v12  ;;  %v3644_v13 = vpop.xlane.xlu0 %3643 }
0x142b   :  { %v3654_v15 = vsub.f32 %v3638_v47, %v3644_v13 }
0x142c   :  { %v3660_v9 = vmul.f32 1.442695, %v3655_v8 }
0x142d   :  { %v3658_v10 = vmul.f32 1.442695, %v3654_v15  ;;  %v3653_v11 = vpop.xlane.xlu1 %3652  ;;  %v20060_v15 = vpack.c.bf16 %v16366_v7, %v16365_v6 }
0x142e   :  { %21019 = vpow2.f32 %v3660_v9  ;;  %v3657_v17 = vsub.f32 %v3641_v60, %v3653_v11  ;;  %v3650_v18 = vpop.xlane.xlu0 %3649  ;;  %v16334_v60 = vld [vmem:[%s21421_s25 + $0x2b0] sm:$0xff]  ;;  %v16374_v11 = vld [vmem:[%s21421_s25 + $0x248] sm:$0xff] }
0x142f   :  { %21021 = vpow2.f32 %v3658_v10  ;;  %v3656_v20 = vsub.f32 %v3640_v54, %v3650_v18  ;;  %v20032_v54 = vpack.c.bf16 %v16335_v61, %v16334_v60  ;;  %v16373_v10 = vld [vmem:[%s21421_s25 + $0x240] sm:$0xff] }
0x1430   :  { %v3664_v19 = vmul.f32 1.442695, %v3657_v17 }
0x1431   :  { %v3662_v14 = vmul.f32 1.442695, %v3656_v20  ;;  %v16337_v20 = vld [vmem:[%s21426_s29 + $0x15] ss:$0 sm:$0xff] }
0x1432   :  { %21023 = vpow2.f32 %v3664_v19 }
0x1433   :  { %21025 = vpow2.f32 %v3662_v14  ;;  %v20064_v14 = vpack.c.bf16 %v16374_v11, %v16373_v10 }
0x1438   :  { %v21020_v16 = vpop.eup %21019 }
0x1439   :  { %v21022_v21 = vpop.eup %21021  ;;  %v3669_v22 = vsel %vm156_vm0, %v21020_v16, 0.0 }
0x143a   :  { %3670 = vadd.xlane.f32.xlu1 %v3669_v22  ;;  %v3666_v26 = vsel %vm156_vm0, %v21022_v21, 0.0 }
0x143b   :  { %3667 = vadd.xlane.f32.xlu0 %v3666_v26  ;;  %v16375_v26 = vld [vmem:[%s21421_s25 + $0x250] sm:$0xff] }
0x143c   :  { %v21024_v28 = vpop.eup %21023 }
0x143d   :  { %v21026_v29 = vpop.eup %21025  ;;  %v3675_v30 = vsel %vm156_vm0, %v21024_v28, 0.0 }
0x143e   :  { %3676 = vadd.xlane.f32.xlu1 %v3675_v30  ;;  %v3672_v31 = vsel %vm156_vm0, %v21026_v29, 0.0 }
0x143f   :  { %3673 = vadd.xlane.f32.xlu0 %v3672_v31 }
0x14c7   :  { %v3671_v35 = vpop.xlane.xlu1 %3670 }
0x14c8   :  { %21027 = vrcp.f32 %v3671_v35  ;;  %v3668_v36 = vpop.xlane.xlu0 %3667 }
0x14c9   :  { %21029 = vrcp.f32 %v3668_v36 }
0x14cb   :  { %v3677_v37 = vpop.xlane.xlu1 %3676 }
0x14cc   :  { %21031 = vrcp.f32 %v3677_v37  ;;  %v3674_v38 = vpop.xlane.xlu0 %3673 }
0x14cd   :  { %21033 = vrcp.f32 %v3674_v38 }
0x14d2   :  { %v21028_v39 = vpop.eup %21027 }
0x14d3   :  { %v21030_v48 = vpop.eup %21029  ;;  %v3683_v44 = vmul.f32 %v21028_v39, %v21020_v16 }
0x14d4   :  { %v3682_v45 = vmul.f32 %v21030_v48, %v21022_v21 }
0x14d6   :  { %v21032_v47 = vpop.eup %21031  ;;  %18480 = vmatprep.mubr.msk.f32.mxu1 %vm156_vm0, %v3682_v45 }
0x14d7   :  { %v21034_v52 = vpop.eup %21033  ;;  %18481 = vmatmul.mubr.msk.f32.vlgmr.msra.gmra.mrb[56].mxu1 %vm156_vm0, %v3683_v44  ;;  %v3685_v25 = vmul.f32 %v21032_v47, %v21024_v28  ;;  %v16376_v28 = vld [vmem:[%s21421_s25 + $0x258] sm:$0xff] }
0x14d8   :  { %20015 = vmatpush3.bf16.msra.mxu1 %v20012_v34  ;;  %v3684_v24 = vmul.f32 %v21034_v52, %v21026_v29  ;;  %v20068_v32 = vpack.c.bf16 %v16376_v28, %v16375_v26  ;;  %v16368_v52 = vld [vmem:[%s21426_s29 + $0xe] ss:$0 sm:$0xff]  ;;  %v16430_v26 = vld [vmem:[%s21421_s25 + $0x2e0] sm:$0xff] }
0x14d9   :  { %20017 = vmatprep.subr.bf16.mxu1 %v20016_v23  ;;  %v16431_v28 = vld [vmem:[%s21421_s25 + $0x2e8] sm:$0xff] }
0x14da   :  { %18483 = vmatprep.mubr.msk.f32.mxu1 %vm156_vm0, %v3684_v24 }
0x14db   :  { %18484 = vmatmul.mubr.msk.f32.gmra.mrb[58].mxu1 %vm156_vm0, %v3685_v25 }
0x14dc   :  { %20019 = vmatpush3.bf16.msra.mxu1 %v20016_v23  ;;  %18494 = vmatprep.mubr.msk.f32.mxu1 %vm156_vm0, %v22012_v62 }
0x14dd   :  { %20029 = vmatprep.subr.bf16.mxu1 %v20028_v50 }
0x14df   :  { %18495 = vmatmul.mubr.msk.f32.vlgmr.msra.gmra.mrb[60].mxu1 %vm156_vm0, %v22015_v0 }
0x14e0   :  { %18497 = vmatprep.mubr.msk.f32.mxu1 %vm156_vm0, %v22025_v46  ;;  %20031 = vmatpush3.bf16.msra.mxu1 %v20028_v50 }
0x14e1   :  { %20033 = vmatprep.subr.bf16.mxu1 %v20032_v54 }
0x14e3   :  { %18498 = vmatmul.mubr.msk.f32.gmra.mrb[62].mxu1 %vm156_vm0, %v22028_v57 }
0x14e4   :  { %20035 = vmatpush3.bf16.msra.mxu1 %v20032_v54  ;;  %18522 = vmatprep.mubr.msk.f32.mxu1 %vm156_vm0, %v22012_v62 }
0x14e7   :  { %18523 = vmatmul.mubr.msk.f32.vlgmr.msra.gmra.mrb[64].mxu1 %vm156_vm0, %v22015_v0 }
0x14e8   :  { %18525 = vmatprep.mubr.msk.f32.mxu1 %vm156_vm0, %v22025_v46 }
0x14eb   :  { %18526 = vmatmul.mubr.msk.f32.gmra.mrb[66].mxu1 %vm156_vm0, %v22028_v57 }
0x15aa   :  { %v22136_v1 = vpop.f32.mrb[56].mxu1 }
0x15ab   :  { %v22138_v2 = vpop.f32.mrb[57].mxu1 }
0x15ae   :  { %v22140_v56 = vpop.f32.mrb[58].mxu1 }
0x15af   :  { %v22142_v3 = vpop.f32.mrb[59].mxu1 }
0x15b2   :  { %v18496_v4 = vpop.f32.mrb[60].mxu1 }
0x15b3   :  { %v3864_v12 = vpop.f32.mrb[61].mxu1  ;;  %v3870_v13 = vadd.f32 %v18496_v4, %v16317_v59 }
0x15b4   :  { %v3865_v8 = vadd.f32 %v16317_v59, %v3864_v12 }
0x15b6   :  { %v18499_v9 = vpop.f32.mrb[62].mxu1  ;;  %18536 = vmatprep.mubr.msk.f32.mxu0 %vm450_vm1, %v3865_v8 }
0x15b7   :  { %v3874_v17 = vpop.f32.mrb[63].mxu1  ;;  %18537 = vmatmul.mubr.msk.f32.vlgmr.msra.gmra.mrb[56].mxu0 %vm450_vm1, %v3870_v13  ;;  %v3880_v19 = vadd.f32 %v18499_v9, %v16317_v59 }
0x15b8   :  { %v3875_v18 = vadd.f32 %v16317_v59, %v3874_v17  ;;  %20059 = vmatpush3.bf16.msra.mxu0 %v20056_v55  ;;  %v16378_v59 = vld [vmem:[%s21426_s29 + $0x12] ss:$0 sm:$0xff]  ;;  %v16410_v17 = vld [vmem:[%s21421_s25 + $0x1e0] sm:$0xff] }
0x15b9   :  { %20061 = vmatprep.subr.bf16.mxu0 %v20060_v15 }
0x15ba   :  { %v18524_v16 = vpop.f32.mrb[64].mxu1  ;;  %18539 = vmatprep.mubr.msk.f32.mxu0 %vm450_vm1, %v3875_v18  ;;  %v16411_v18 = vld [vmem:[%s21421_s25 + $0x1e8] sm:$0xff] }
0x15bb   :  { %v4066_v21 = vadd.f32 %v18524_v16, %v16337_v20  ;;  %v4060_v22 = vpop.f32.mrb[65].mxu1  ;;  %18540 = vmatmul.mubr.msk.f32.gmra.mrb[58].mxu0 %vm450_vm1, %v3880_v19  ;;  %v16412_v19 = vld [vmem:[%s21421_s25 + $0x1f0] sm:$0xff] }
0x15bc   :  { %v4061_v29 = vadd.f32 %v16337_v20, %v4060_v22  ;;  %20063 = vmatpush3.bf16.msra.mxu0 %v20060_v15  ;;  %18580 = vmatprep.mubr.msk.f32.mxu0 %vm156_vm0, %v22012_v62 }
0x15bd   :  { %20065 = vmatprep.subr.bf16.mxu0 %v20064_v14 }
0x15be   :  { %v20048_v30 = vpack.c.bf16 %v4066_v21, %v4061_v29  ;;  %v18527_v31 = vpop.f32.mrb[66].mxu1 }
0x15bf   :  { %v4076_v33 = vadd.f32 %v18527_v31, %v16337_v20  ;;  %v4070_v34 = vpop.f32.mrb[67].mxu1  ;;  %18581 = vmatmul.mubr.msk.f32.vlgmr.msra.gmra.mrb[60].mxu0 %vm156_vm0, %v22015_v0  ;;  %v16432_v31 = vld [vmem:[%s21421_s25 + $0x2f0] sm:$0xff] }
0x15c0   :  { %v4071_v35 = vadd.f32 %v16337_v20, %v4070_v34  ;;  %20049 = vmatprep.subr.bf16.mxu1 %v20048_v30  ;;  %18583 = vmatprep.mubr.msk.f32.mxu0 %vm156_vm0, %v22025_v46  ;;  %v20100_v20 = vpack.c.bf16 %v16411_v18, %v16410_v17 }
0x15c1   :  { %20067 = vmatpush3.bf16.msra.mxu0 %v20064_v14  ;;  %20051 = vmatpush3.bf16.msra.mxu1 %v20048_v30  ;;  %v16413_v14 = vld [vmem:[%s21421_s25 + $0x1f8] sm:$0xff]  ;;  %v20116_v30 = vpack.c.bf16 %v16431_v28, %v16430_v26  ;;  %v16435_v26 = vld [vmem:[%s21426_s29 + $0x17] ss:$0 sm:$0xff] }
0x15c2   :  { %v20052_v36 = vpack.c.bf16 %v4076_v33, %v4071_v35  ;;  %20069 = vmatprep.subr.bf16.mxu0 %v20068_v32  ;;  %v20104_v21 = vpack.c.bf16 %v16413_v14, %v16412_v19 }
0x15c3   :  { %18584 = vmatmul.mubr.msk.f32.gmra.mrb[62].mxu0 %vm156_vm0, %v22028_v57 }
0x15c4   :  { %20053 = vmatprep.subr.bf16.mxu1 %v20052_v36  ;;  %18594 = vmatprep.mubr.msk.f32.mxu0 %vm156_vm0, %v22012_v62 }
0x15c5   :  { %20071 = vmatpush3.bf16.msra.mxu0 %v20068_v32  ;;  %20055 = vmatpush3.bf16.msra.mxu1 %v20052_v36  ;;  %v16433_v32 = vld [vmem:[%s21421_s25 + $0x2f8] sm:$0xff] }
0x15c6   :  { %v20120_v33 = vpack.c.bf16 %v16433_v32, %v16432_v31 }
0x15c8   :  { %18595 = vmatmul.mubr.msk.f32.vlgmr.msra.gmra.mrb[64].mxu0 %vm156_vm0, %v22015_v0 }
0x15c9   :  { %18597 = vmatprep.mubr.msk.f32.mxu0 %vm156_vm0, %v22025_v46 }
0x15cc   :  { %18598 = vmatmul.mubr.msk.f32.gmra.mrb[66].mxu0 %vm156_vm0, %v22028_v57 }
0x168a   :  { %v18538_v37 = vpop.f32.mrb[56].mxu0 }
0x168b   :  { %v4189_v38 = vmul.f32 0.35355338, %v18538_v37  ;;  %v4169_v39 = vpop.f32.mrb[57].mxu0 }
0x168c   :  { %v4188_v40 = vmul.f32 0.35355338, %v4169_v39 }
0x168d   :  { %v22173_v41 = vadd.f32 %v22074_v42, %v4189_v38 }
0x168e   :  { %v18541_v48 = vpop.f32.mrb[58].mxu0  ;;  %v22176_v45 = vadd.f32 %v22078_v5, %v4188_v40 }
0x168f   :  { %v4191_v44 = vmul.f32 0.35355338, %v18541_v48  ;;  %v4179_v23 = vpop.f32.mrb[59].mxu0  ;;  %v4199_v47 = vsel %vm156_vm0, %v22173_v41, -inf }
0x1690   :  { %v4190_v49 = vmul.f32 0.35355338, %v4179_v23  ;;  %4200 = vmax.xlane.f32.xlu1 %v4199_v47  ;;  %v4196_v53 = vsel %vm156_vm0, %v22176_v45, -inf }
0x1691   :  { %4197 = vmax.xlane.f32.xlu0 %v4196_v53  ;;  %v22184_v24 = vadd.f32 %v22085_v58, %v4191_v44 }
0x1692   :  { %v18582_v25 = vpop.f32.mrb[60].mxu0  ;;  %v22187_v50 = vadd.f32 %v22089_v63, %v4190_v49 }
0x1693   :  { %v4612_v60 = vpop.f32.mrb[61].mxu0  ;;  %v4205_v61 = vsel %vm156_vm0, %v22184_v24, -inf  ;;  %v4618_v16 = vadd.f32 %v18582_v25, %v16368_v52 }
0x1694   :  { %v4613_v54 = vadd.f32 %v16368_v52, %v4612_v60  ;;  %4206 = vmax.xlane.f32.xlu1 %v4205_v61  ;;  %v4202_v51 = vsel %vm156_vm0, %v22187_v50, -inf }
0x1695   :  { %4203 = vmax.xlane.f32.xlu0 %v4202_v51 }
0x1696   :  { %v18585_v43 = vpop.f32.mrb[62].mxu0  ;;  %18622 = vmatprep.mubr.msk.f32.mxu0 %vm450_vm1, %v4613_v54 }
0x1697   :  { %v4622_v55 = vpop.f32.mrb[63].mxu0  ;;  %v4628_v29 = vadd.f32 %v18585_v43, %v16368_v52 }
0x1698   :  { %v4623_v22 = vadd.f32 %v16368_v52, %v4622_v55 }
0x169b   :  { %v18596_v4 = vpop.f32.mrb[64].mxu0 }
0x169c   :  { %v4716_v6 = vadd.f32 %v18596_v4, %v16378_v59  ;;  %v4710_v7 = vpop.f32.mrb[65].mxu0 }
0x169d   :  { %v4711_v12 = vadd.f32 %v16378_v59, %v4710_v7 }
0x169f   :  { %v20080_v8 = vpack.c.bf16 %v4716_v6, %v4711_v12  ;;  %v18599_v13 = vpop.f32.mrb[66].mxu0 }
0x16a0   :  { %v4726_v15 = vadd.f32 %v18599_v13, %v16378_v59  ;;  %v4720_v9 = vpop.f32.mrb[67].mxu0 }
0x16a1   :  { %v4721_v10 = vadd.f32 %v16378_v59, %v4720_v9  ;;  %20082 = vmatprep.subr.msk.bf16.mxu0 %vm21596_vm2, %v20080_v8 }
0x16a2   :  { %20085 = vmatpush3.bf16.xpose.msk.msra.mxu0 %vm21596_vm2, %v20080_v8 }
0x16a3   :  { %v20086_v11 = vpack.c.bf16 %v4726_v15, %v4721_v10  ;;  %v22261_v15 = vld [vmem:[%s21426_s29 + $0xf] ss:$0 sm:$0xff] }
0x16a5   :  { %20088 = vmatprep.subr.msk.bf16.mxu0 %vm21596_vm2, %v20086_v11 }
0x16aa   :  { %20091 = vmatpush3.bf16.xpose.msk.msra.mxu0 %vm21596_vm2, %v20086_v11 }
0x16ab   :  { %20101 = vmatprep.subr.bf16.mxu0 %v20100_v20 }
0x16b1   :  { %18623 = vmatmul.mubr.msk.f32.vlgmr.msra.gmra.mrb[68].mxu0 %vm450_vm1, %v4618_v16 }
0x16b2   :  { %18625 = vmatprep.mubr.msk.f32.mxu0 %vm450_vm1, %v4623_v22  ;;  %20103 = vmatpush3.bf16.msra.mxu0 %v20100_v20 }
0x16b3   :  { %20105 = vmatprep.subr.bf16.mxu0 %v20104_v21 }
0x16b5   :  { %18626 = vmatmul.mubr.msk.f32.gmra.mrb[70].mxu0 %vm450_vm1, %v4628_v29 }
0x16b6   :  { %20107 = vmatpush3.bf16.msra.mxu0 %v20104_v21  ;;  %18658 = vmatprep.mubr.msk.f32.mxu0 %vm156_vm0, %v22012_v62 }
0x16b7   :  { %20117 = vmatprep.subr.bf16.mxu0 %v20116_v30 }
0x16b9   :  { %18659 = vmatmul.mubr.msk.f32.vlgmr.msra.gmra.mrb[72].mxu0 %vm156_vm0, %v22015_v0 }
0x16ba   :  { %18661 = vmatprep.mubr.msk.f32.mxu0 %vm156_vm0, %v22025_v46  ;;  %20119 = vmatpush3.bf16.msra.mxu0 %v20116_v30 }
0x16bb   :  { %20121 = vmatprep.subr.bf16.mxu0 %v20120_v33 }
0x16bd   :  { %18662 = vmatmul.mubr.msk.f32.gmra.mrb[74].mxu0 %vm156_vm0, %v22028_v57 }
0x16be   :  { %20123 = vmatpush3.bf16.msra.mxu0 %v20120_v33  ;;  %18686 = vmatprep.mubr.msk.f32.mxu0 %vm156_vm0, %v22012_v62 }
0x16c1   :  { %18687 = vmatmul.mubr.msk.f32.vlgmr.msra.gmra.mrb[76].mxu0 %vm156_vm0, %v22015_v0 }
0x16c2   :  { %18689 = vmatprep.mubr.msk.f32.mxu0 %vm156_vm0, %v22025_v46 }
0x16c5   :  { %18690 = vmatmul.mubr.msk.f32.gmra.mrb[78].mxu0 %vm156_vm0, %v22028_v57 }
0x171d   :  { %v4201_v34 = vpop.xlane.xlu1 %4200 }
0x171e   :  { %v4209_v35 = vsub.f32 %v22173_v41, %v4201_v34  ;;  %v4198_v36 = vpop.xlane.xlu0 %4197 }
0x171f   :  { %v4208_v37 = vsub.f32 %v22176_v45, %v4198_v36 }
0x1720   :  { %v4214_v38 = vmul.f32 1.442695, %v4209_v35 }
0x1721   :  { %v4212_v39 = vmul.f32 1.442695, %v4208_v37  ;;  %v4207_v40 = vpop.xlane.xlu1 %4206 }
0x1722   :  { %21035 = vpow2.f32 %v4214_v38  ;;  %v4211_v48 = vsub.f32 %v22184_v24, %v4207_v40  ;;  %v4204_v44 = vpop.xlane.xlu0 %4203  ;;  %v16354_v38 = vld [vmem:[%s21431_s3 + $0x28] sm:$0xff] }
0x1723   :  { %21037 = vpow2.f32 %v4212_v39  ;;  %v4210_v23 = vsub.f32 %v22187_v50, %v4204_v44  ;;  %18556 = vmatprep.subr.mxu1 %v16354_v38 }
0x1724   :  { %v4218_v47 = vmul.f32 1.442695, %v4211_v48 }
0x1725   :  { %v4216_v49 = vmul.f32 1.442695, %v4210_v23 }
0x1726   :  { %21039 = vpow2.f32 %v4218_v47 }
0x1727   :  { %21041 = vpow2.f32 %v4216_v49 }
0x172c   :  { %v22234_v53 = vpop.eup %21035 }
0x172d   :  { %v22236_v41 = vpop.eup %21037  ;;  %v4223_v45 = vsel %vm156_vm0, %v22234_v53, 0.0 }
0x172e   :  { %4224 = vadd.xlane.f32.xlu1 %v4223_v45  ;;  %v4220_v52 = vsel %vm156_vm0, %v22236_v41, 0.0 }
0x172f   :  { %4221 = vadd.xlane.f32.xlu0 %v4220_v52 }
0x1730   :  { %v22242_v24 = vpop.eup %21039 }
0x1731   :  { %v22244_v25 = vpop.eup %21041  ;;  %v4229_v50 = vsel %vm156_vm0, %v22242_v24, 0.0 }
0x1732   :  { %4230 = vadd.xlane.f32.xlu1 %v4229_v50  ;;  %v4226_v60 = vsel %vm156_vm0, %v22244_v25, 0.0 }
0x1733   :  { %4227 = vadd.xlane.f32.xlu0 %v4226_v60 }
0x1784   :  { %v18624_v61 = vpop.f32.mrb[68].mxu0 }
0x1785   :  { %v4937_v54 = vmul.f32 0.35355338, %v18624_v61  ;;  %v4917_v51 = vpop.f32.mrb[69].mxu0 }
0x1786   :  { %v4936_v43 = vmul.f32 0.35355338, %v4917_v51 }
0x1787   :  { %v22251_v55 = vadd.f32 %v22074_v42, %v4937_v54 }
0x1788   :  { %v18627_v59 = vpop.f32.mrb[70].mxu0  ;;  %v22254_v4 = vadd.f32 %v22078_v5, %v4936_v43 }
0x1789   :  { %v4939_v6 = vmul.f32 0.35355338, %v18627_v59  ;;  %v4927_v7 = vpop.f32.mrb[71].mxu0  ;;  %v4947_v12 = vsel %vm156_vm0, %v22251_v55, -inf }
0x178a   :  { %v4938_v8 = vmul.f32 0.35355338, %v4927_v7  ;;  %4948 = vmax.xlane.f32.xlu1 %v4947_v12  ;;  %v4944_v13 = vsel %vm156_vm0, %v22254_v4, -inf }
0x178b   :  { %4945 = vmax.xlane.f32.xlu0 %v4944_v13  ;;  %v22264_v9 = vadd.f32 %v22085_v58, %v4939_v6  ;;  %v16311_v13 = vld [vmem:[%s21431_s3 + $0x20] sm:$0xff] }
0x178c   :  { %v18660_v10 = vpop.f32.mrb[72].mxu0  ;;  %v4942_v11 = vadd.f32 %v22089_v63, %v4938_v8 }
0x178d   :  { %v22268_v17 = vadd.f32 %v18660_v10, %v22261_v15  ;;  %v22270_v18 = vpop.f32.mrb[73].mxu0  ;;  %v4953_v20 = vsel %vm156_vm0, %v22264_v9, -inf }
0x178e   :  { %4954 = vmax.xlane.f32.xlu1 %v4953_v20  ;;  %v4950_v19 = vsel %vm156_vm0, %v4942_v11, -inf }
0x178f   :  { %4951 = vmax.xlane.f32.xlu0 %v4950_v19 }
0x1790   :  { %v18663_v14 = vpop.f32.mrb[74].mxu0 }
0x1791   :  { %v22276_v16 = vadd.f32 %v18663_v14, %v22261_v15  ;;  %v5277_v21 = vpop.f32.mrb[75].mxu0 }
0x1792   :  { %v22279_v22 = vadd.f32 %v22261_v15, %v5277_v21  ;;  %v16383_v21 = vld [vmem:[%s21421_s25 + $0x2c0] sm:$0xff] }
0x1794   :  { %v18688_v28 = vpop.f32.mrb[76].mxu0 }
0x1795   :  { %v5469_v29 = vadd.f32 %v18688_v28, %v16435_v26  ;;  %v5463_v30 = vpop.f32.mrb[77].mxu0 }
0x1796   :  { %v5464_v31 = vadd.f32 %v16435_v26, %v5463_v30 }
0x1798   :  { %v20136_v32 = vpack.c.bf16 %v5469_v29, %v5464_v31  ;;  %v18691_v33 = vpop.f32.mrb[78].mxu0 }
0x1799   :  { %v5479_v34 = vadd.f32 %v18691_v33, %v16435_v26  ;;  %v5473_v35 = vpop.f32.mrb[79].mxu0  ;;  %v16385_v33 = vld [vmem:[%s21421_s25 + $0x2d0] sm:$0xff] }
0x179a   :  { %v5474_v36 = vadd.f32 %v16435_v26, %v5473_v35  ;;  %20137 = vmatprep.subr.bf16.mxu0 %v20136_v32  ;;  %v16384_v26 = vld [vmem:[%s21421_s25 + $0x2c8] sm:$0xff] }
0x179b   :  { %20139 = vmatpush3.bf16.msra.mxu0 %v20136_v32  ;;  %v20072_v30 = vpack.c.bf16 %v16384_v26, %v16383_v21 }
0x179c   :  { %v20140_v37 = vpack.c.bf16 %v5479_v34, %v5474_v36  ;;  %v16386_v34 = vld [vmem:[%s21421_s25 + $0x2d8] sm:$0xff] }
0x179d   :  { %v20076_v35 = vpack.c.bf16 %v16386_v34, %v16385_v33 }
0x179e   :  { %20141 = vmatprep.subr.bf16.mxu0 %v20140_v37 }
0x179f   :  { %20143 = vmatpush3.bf16.msra.mxu0 %v20140_v37  ;;  %v16388_v37 = vld [vmem:[%s21426_s29 + $0x16] ss:$0 sm:$0xff] }
0x17bb   :  { %v4225_v39 = vpop.xlane.xlu1 %4224 }
0x17bc   :  { %21043 = vrcp.f32 %v4225_v39  ;;  %v4222_v40 = vpop.xlane.xlu0 %4221 }
0x17bd   :  { %21045 = vrcp.f32 %v4222_v40 }
0x17bf   :  { %v4231_v48 = vpop.xlane.xlu1 %4230 }
0x17c0   :  { %21047 = vrcp.f32 %v4231_v48  ;;  %v4228_v44 = vpop.xlane.xlu0 %4227 }
0x17c1   :  { %21049 = vrcp.f32 %v4228_v44 }
0x17c6   :  { %v21044_v23 = vpop.eup %21043 }
0x17c7   :  { %v21046_v47 = vpop.eup %21045  ;;  %v4237_v45 = vmul.f32 %v21044_v23, %v22234_v53 }
0x17c8   :  { %v4236_v49 = vmul.f32 %v21046_v47, %v22236_v41 }
0x17ca   :  { %v21048_v52 = vpop.eup %21047  ;;  %18550 = vmatprep.mubr.msk.f32.mxu1 %vm156_vm0, %v4236_v49 }
0x17cb   :  { %v21050_v50 = vpop.eup %21049  ;;  %18551 = vmatmul.mubr.msk.f32.vlgmr.msra.gmra.mrb[68].mxu1 %vm156_vm0, %v4237_v45  ;;  %v4239_v61 = vmul.f32 %v21048_v52, %v22242_v24 }
0x17cc   :  { %v4238_v60 = vmul.f32 %v21050_v50, %v22244_v25  ;;  %18557 = vmatpush3.msra.mxu1 %v16354_v38 }
0x17cd   :  { %18564 = vmatprep.subr.mxu1 %v16311_v13 }
0x17ce   :  { %18553 = vmatprep.mubr.msk.f32.mxu1 %vm156_vm0, %v4238_v60 }
0x17cf   :  { %18554 = vmatmul.mubr.msk.f32.gmra.mrb[70].mxu1 %vm156_vm0, %v4239_v61  ;;  %v16405_v61 = vld [vmem:[%s21431_s3 + $0x30] sm:$0xff] }
0x1817   :  { %v4949_v54 = vpop.xlane.xlu1 %4948 }
0x1818   :  { %v4957_v41 = vsub.f32 %v22251_v55, %v4949_v54  ;;  %v4946_v53 = vpop.xlane.xlu0 %4945 }
0x1819   :  { %v4956_v51 = vsub.f32 %v22254_v4, %v4946_v53 }
0x181a   :  { %v4962_v43 = vmul.f32 1.442695, %v4957_v41 }
0x181b   :  { %v4960_v59 = vmul.f32 1.442695, %v4956_v51  ;;  %v4955_v6 = vpop.xlane.xlu1 %4954 }
0x181c   :  { %21051 = vpow2.f32 %v4962_v43  ;;  %v4959_v25 = vsub.f32 %v22264_v9, %v4955_v6  ;;  %v4952_v7 = vpop.xlane.xlu0 %4951  ;;  %v16421_v6 = vld [vmem:[%s21421_s25 + $0x268] sm:$0xff] }
0x181d   :  { %21053 = vpow2.f32 %v4960_v59  ;;  %v4958_v24 = vsub.f32 %v4942_v11, %v4952_v7  ;;  %v16420_v59 = vld [vmem:[%s21421_s25 + $0x260] sm:$0xff]  ;;  %v16422_v7 = vld [vmem:[%s21421_s25 + $0x270] sm:$0xff] }
0x181e   :  { %v4966_v12 = vmul.f32 1.442695, %v4959_v25  ;;  %v20108_v25 = vpack.c.bf16 %v16421_v6, %v16420_v59 }
0x181f   :  { %v4964_v8 = vmul.f32 1.442695, %v4958_v24  ;;  %v16423_v24 = vld [vmem:[%s21421_s25 + $0x278] sm:$0xff]  ;;  %s23573_s25 = sld [smem:[#allocation12_spill]] }
0x1820   :  { %21055 = vpow2.f32 %v4966_v12 }
0x1821   :  { %21057 = vpow2.f32 %v4964_v8 }
0x1826   :  { %v22295_v55 = vpop.eup %21051 }
0x1827   :  { %v21054_v4 = vpop.eup %21053  ;;  %v4971_v10 = vsel %vm156_vm0, %v22295_v55, 0.0 }
0x1828   :  { %4972 = vadd.xlane.f32.xlu1 %v4971_v10  ;;  %v4968_v9 = vsel %vm156_vm0, %v21054_v4, 0.0  ;;  %v5268_v10 = vadd.f32 %v22261_v15, %v22270_v18 }
0x1829   :  { %4969 = vadd.xlane.f32.xlu0 %v4968_v9  ;;  %v16425_v9 = vld [vmem:[%s21426_s29 + $0x13] ss:$0 sm:$0xff]  ;;  %s23574_s29 = sld [smem:[#allocation14_spill]] }
0x182a   :  { %v22300_v20 = vpop.eup %21055 }
0x182b   :  { %v22302_v11 = vpop.eup %21057  ;;  %v4977_v19 = vsel %vm156_vm0, %v22300_v20, 0.0 }
0x182c   :  { %4978 = vadd.xlane.f32.xlu1 %v4977_v19  ;;  %v4974_v14 = vsel %vm156_vm0, %v22302_v11, 0.0 }
0x182d   :  { %4975 = vadd.xlane.f32.xlu0 %v4974_v14 }
0x189e   :  { %v18552_v28 = vpop.f32.mrb[68].mxu1 }
0x189f   :  { %v4318_v29 = vpop.f32.mrb[69].mxu1 }
0x18a0   :  { %18558 = vmatprep.mubr.msk.f32.mxu1 %vm450_vm1, %v4318_v29 }
0x18a1   :  { %18559 = vmatmul.mubr.msk.f32.vlgmr.msra.gmra.mrb[72].mxu1 %vm450_vm1, %v18552_v28 }
0x18a2   :  { %v18555_v31 = vpop.f32.mrb[70].mxu1  ;;  %18565 = vmatpush3.msra.mxu1 %v16311_v13  ;;  %v20112_v13 = vpack.c.bf16 %v16423_v24, %v16422_v7 }
0x18a3   :  { %v4328_v32 = vpop.f32.mrb[71].mxu1  ;;  %20073 = vmatprep.subr.bf16.mxu1 %v20072_v30 }
0x18a4   :  { %18561 = vmatprep.mubr.msk.f32.mxu1 %vm450_vm1, %v4328_v32 }
0x18a5   :  { %18562 = vmatmul.mubr.msk.f32.gmra.mrb[74].mxu1 %vm450_vm1, %v18555_v31 }
0x18a6   :  { %18566 = vmatprep.mubr.msk.f32.mxu1 %vm450_vm1, %v22138_v2 }
0x18a9   :  { %18567 = vmatmul.mubr.msk.f32.vlgmr.msra.gmra.mrb[72].mxu1 %vm450_vm1, %v22136_v1 }
0x18aa   :  { %18569 = vmatprep.mubr.msk.f32.mxu1 %vm450_vm1, %v22142_v3  ;;  %20075 = vmatpush3.bf16.msra.mxu1 %v20072_v30 }
0x18ab   :  { %20077 = vmatprep.subr.bf16.mxu1 %v20076_v35 }
0x18ad   :  { %18570 = vmatmul.mubr.msk.f32.gmra.mrb[74].mxu1 %vm450_vm1, %v22140_v56 }
0x18ae   :  { %20079 = vmatpush3.bf16.msra.mxu1 %v20076_v35  ;;  %18608 = vmatprep.mubr.msk.f32.mxu1 %vm156_vm0, %v22012_v62 }
0x18b1   :  { %18609 = vmatmul.mubr.msk.f32.vlgmr.msra.gmra.mrb[76].mxu1 %vm156_vm0, %v22015_v0 }
0x18b2   :  { %18611 = vmatprep.mubr.msk.f32.mxu1 %vm156_vm0, %v22025_v46 }
0x18b5   :  { %18612 = vmatmul.mubr.msk.f32.gmra.mrb[78].mxu1 %vm156_vm0, %v22028_v57  ;;  %v4973_v56 = vpop.xlane.xlu1 %4972 }
0x18b6   :  { %v4970_v1 = vpop.xlane.xlu0 %4969 }
0x18b7   :  { %21059 = vrcp.f32 %v4970_v1 }
0x18b8   :  { %21061 = vrcp.f32 %v4973_v56 }
0x18b9   :  { %v4979_v38 = vpop.xlane.xlu1 %4978 }
0x18ba   :  { %v4976_v36 = vpop.xlane.xlu0 %4975 }
0x18bb   :  { %21063 = vrcp.f32 %v4976_v36 }
0x18bc   :  { %21065 = vrcp.f32 %v4979_v38 }
0x18c1   :  { %v21060_v2 = vpop.eup %21059 }
0x18c2   :  { %v4984_v3 = vmul.f32 %v21060_v2, %v21054_v4  ;;  %v21062_v60 = vpop.eup %21061 }
0x18c3   :  { %v4985_v41 = vmul.f32 %v21062_v60, %v22295_v55 }
0x18c4   :  { %18636 = vmatprep.mubr.msk.f32.mxu1 %vm156_vm0, %v4984_v3 }
0x18c5   :  { %v21064_v54 = vpop.eup %21063 }
0x18c6   :  { %v21066_v53 = vpop.eup %21065  ;;  %v4986_v51 = vmul.f32 %v21064_v54, %v22302_v11 }
0x18c7   :  { %v4987_v43 = vmul.f32 %v21066_v53, %v22300_v20 }
0x1984   :  { %v18610_v39 = vpop.f32.mrb[76].mxu1 }
0x1985   :  { %v4814_v40 = vadd.f32 %v18610_v39, %v16388_v37  ;;  %v4808_v48 = vpop.f32.mrb[77].mxu1 }
0x1986   :  { %v4809_v44 = vadd.f32 %v16388_v37, %v4808_v48 }
0x1988   :  { %v20092_v23 = vpack.c.bf16 %v4814_v40, %v4809_v44  ;;  %v18613_v47 = vpop.f32.mrb[78].mxu1 }
0x1989   :  { %v4824_v49 = vadd.f32 %v18613_v47, %v16388_v37  ;;  %v4818_v45 = vpop.f32.mrb[79].mxu1 }
0x198a   :  { %v4819_v52 = vadd.f32 %v16388_v37, %v4818_v45  ;;  %20093 = vmatprep.subr.bf16.mxu1 %v20092_v23 }
0x198b   :  { %20095 = vmatpush3.bf16.msra.mxu1 %v20092_v23 }
0x198c   :  { %v20096_v50 = vpack.c.bf16 %v4824_v49, %v4819_v52 }
0x198e   :  { %20097 = vmatprep.subr.bf16.mxu1 %v20096_v50 }
0x198f   :  { %20099 = vmatpush3.bf16.msra.mxu1 %v20096_v50 }
0x1990   :  { %18642 = vmatprep.subr.mxu1 %v16405_v61 }
0x1992   :  { %18637 = vmatmul.mubr.msk.f32.vlgmr.msra.gmra.mrb[80].mxu1 %vm156_vm0, %v4985_v41 }
0x1993   :  { %18639 = vmatprep.mubr.msk.f32.mxu1 %vm156_vm0, %v4986_v51  ;;  %18643 = vmatpush3.msra.mxu1 %v16405_v61 }
0x1994   :  { %20109 = vmatprep.subr.bf16.mxu1 %v20108_v25 }
0x1996   :  { %18640 = vmatmul.mubr.msk.f32.gmra.mrb[82].mxu1 %vm156_vm0, %v4987_v43  ;;  %v16452_v43 = vld [vmem:[%s21431_s3 + $0x38] sm:$0xff]  ;;  %s23576_s3 = sld [smem:[#allocation15_spill]] }
0x1a65   :  { %v18638_v12 = vpop.f32.mrb[80].mxu1 }
0x1a66   :  { %v5066_v8 = vpop.f32.mrb[81].mxu1 }
0x1a67   :  { %18644 = vmatprep.mubr.msk.f32.mxu1 %vm450_vm1, %v5066_v8 }
0x1a68   :  { %18645 = vmatmul.mubr.msk.f32.vlgmr.msra.gmra.mrb[72].mxu1 %vm450_vm1, %v18638_v12 }
0x1a69   :  { %v18641_v55 = vpop.f32.mrb[82].mxu1  ;;  %20111 = vmatpush3.bf16.msra.mxu1 %v20108_v25 }
0x1a6a   :  { %v5076_v4 = vpop.f32.mrb[83].mxu1  ;;  %20113 = vmatprep.subr.bf16.mxu1 %v20112_v13 }
0x1a6b   :  { %18647 = vmatprep.mubr.msk.f32.mxu1 %vm450_vm1, %v5076_v4 }
0x1a6c   :  { %18648 = vmatmul.mubr.msk.f32.gmra.mrb[74].mxu1 %vm450_vm1, %v18641_v55 }
0x1a6d   :  { %20115 = vmatpush3.bf16.msra.mxu1 %v20112_v13  ;;  %18672 = vmatprep.mubr.msk.f32.mxu1 %vm156_vm0, %v22012_v62 }
0x1a70   :  { %18673 = vmatmul.mubr.msk.f32.vlgmr.msra.gmra.mrb[84].mxu1 %vm156_vm0, %v22015_v0 }
0x1a71   :  { %18675 = vmatprep.mubr.msk.f32.mxu1 %vm156_vm0, %v22025_v46 }
0x1a74   :  { %18676 = vmatmul.mubr.msk.f32.gmra.mrb[86].mxu1 %vm156_vm0, %v22028_v57 }
0x1a75   :  { %18700 = vmatprep.mubr.msk.f32.mxu1 %vm450_vm1, %v5268_v10 }
0x1b43   :  { %v18674_v20 = vpop.f32.mrb[84].mxu1 }
0x1b44   :  { %v5371_v11 = vadd.f32 %v18674_v20, %v16425_v9  ;;  %v5365_v19 = vpop.f32.mrb[85].mxu1  ;;  %v6299_v20 = vld [vmem:[%s21471_s20] sm:$0xff] }
0x1b45   :  { %v5366_v14 = vadd.f32 %v16425_v9, %v5365_v19 }
0x1b47   :  { %v20124_v21 = vpack.c.bf16 %v5371_v11, %v5366_v14  ;;  %v18677_v26 = vpop.f32.mrb[86].mxu1  ;;  %v6300_v11 = vld [vmem:[%s21471_s20 + $0x8] sm:$0xff]  ;;  %v6301_v14 = vld [vmem:[%s21471_s20 + $0x10] sm:$0xff] }
0x1b48   :  { %v5381_v28 = vadd.f32 %v18677_v26, %v16425_v9  ;;  %v5375_v29 = vpop.f32.mrb[87].mxu1  ;;  %v20168_v19 = vpack.c.bf16 %v6300_v11, %v6299_v20 }
0x1b49   :  { %v5376_v30 = vadd.f32 %v16425_v9, %v5375_v29  ;;  %20126 = vmatprep.subr.msk.bf16.mxu1 %vm21596_vm2, %v20124_v21 }
0x1b4a   :  { %20129 = vmatpush3.bf16.xpose.msk.msra.mxu1 %vm21596_vm2, %v20124_v21  ;;  %v6302_v21 = vld [vmem:[%s21471_s20 + $0x18] sm:$0xff] }
0x1b4b   :  { %v20130_v15 = vpack.c.bf16 %v5381_v28, %v5376_v30  ;;  %v20172_v29 = vpack.c.bf16 %v6302_v21, %v6301_v14  ;;  %v16494_v30 = vld [vmem:[%s21471_s20 + $0x80] sm:$0xff]  ;;  %v16464_v21 = vld [vmem:[%s21446_s19 + $0x28] sm:$0xff] }
0x1b4c   :  { %v16463_v14 = vld [vmem:[%s21446_s19 + $0x20] sm:$0xff] }
0x1b4d   :  { %20132 = vmatprep.subr.msk.bf16.mxu1 %vm21596_vm2, %v20130_v15 }
0x1b52   :  { %20135 = vmatpush3.bf16.xpose.msk.msra.mxu1 %vm21596_vm2, %v20130_v15  ;;  %v16495_v15 = vld [vmem:[%s21471_s20 + $0x88] sm:$0xff] }
0x1b53   :  { %18720 = vmatprep.subr.mxu1 %v16452_v43 }
0x1b59   :  { %18701 = vmatmul.mubr.msk.f32.vlgmr.msra.gmra.mrb[88].mxu1 %vm450_vm1, %v22268_v17 }
0x1b5a   :  { %18703 = vmatprep.mubr.msk.f32.mxu1 %vm450_vm1, %v22279_v22  ;;  %18721 = vmatpush3.msra.mxu1 %v16452_v43 }
0x1b5b   :  { %20169 = vmatprep.subr.bf16.mxu1 %v20168_v19 }
0x1b5d   :  { %18704 = vmatmul.mubr.msk.f32.gmra.mrb[90].mxu1 %vm450_vm1, %v22276_v16 }
0x1c2c   :  { %v18702_v18 = vpop.f32.mrb[88].mxu1 }
0x1c2d   :  { %v5592_v31 = vmul.f32 0.35355338, %v18702_v18  ;;  %v5572_v32 = vpop.f32.mrb[89].mxu1 }
0x1c2e   :  { %v5591_v33 = vmul.f32 0.35355338, %v5572_v32  ;;  %v22401_v32 = vld [vmem:[%s21401_s9] sm:$0xff] }
0x1c2f   :  { %v5596_v34 = vadd.f32 %v22074_v42, %v5592_v31 }
0x1c30   :  { %v18705_v35 = vpop.f32.mrb[90].mxu1  ;;  %v5595_v1 = vadd.f32 %v22078_v5, %v5591_v33  ;;  %v20176_v33 = vpack.c.bf16 %v16495_v15, %v16494_v30 }
0x1c31   :  { %v5594_v2 = vmul.f32 0.35355338, %v18705_v35  ;;  %v5582_v3 = vpop.f32.mrb[91].mxu1  ;;  %v5602_v56 = vsel %vm156_vm0, %v5596_v34, -inf  ;;  %v16497_v35 = vld [vmem:[%s21471_s20 + $0x98] sm:$0xff] }
0x1c32   :  { %v5593_v17 = vmul.f32 0.35355338, %v5582_v3  ;;  %5603 = vmax.xlane.f32.xlu1 %v5602_v56  ;;  %v5599_v22 = vsel %vm156_vm0, %v5595_v1, -inf  ;;  %v16458_v3 = vld [vmem:[%s21436_s8 + $0x1] ss:$0 sm:$0xff]  ;;  %s23577_s8 = sld [smem:[#allocation9_spill]] }
0x1c33   :  { %5600 = vmax.xlane.f32.xlu0 %v5599_v22  ;;  %v5598_v16 = vadd.f32 %v22085_v58, %v5594_v2 }
0x1c34   :  { %v5597_v36 = vadd.f32 %v22089_v63, %v5593_v17 }
0x1c35   :  { %v5608_v37 = vsel %vm156_vm0, %v5598_v16, -inf }
0x1c36   :  { %5609 = vmax.xlane.f32.xlu1 %v5608_v37  ;;  %v5605_v42 = vsel %vm156_vm0, %v5597_v36, -inf }
0x1c37   :  { %5606 = vmax.xlane.f32.xlu0 %v5605_v42 }
0x1cbf   :  { %v5604_v5 = vpop.xlane.xlu1 %5603 }
0x1cc0   :  { %v5612_v38 = vsub.f32 %v5596_v34, %v5604_v5  ;;  %v5601_v39 = vpop.xlane.xlu0 %5600  ;;  %v16496_v34 = vld [vmem:[%s21471_s20 + $0x90] sm:$0xff] }
0x1cc1   :  { %v5611_v40 = vsub.f32 %v5595_v1, %v5601_v39  ;;  %v22410_v1 = vld [vmem:[%s21401_s9 + $0x8] sm:$0xff]  ;;  %v20180_v2 = vpack.c.bf16 %v16497_v35, %v16496_v34  ;;  %v22465_v34 = vld [vmem:[%s23571_s5] sm:$0xff] }
0x1cc2   :  { %v5617_v48 = vmul.f32 1.442695, %v5612_v38 }
0x1cc3   :  { %v5615_v44 = vmul.f32 1.442695, %v5611_v40  ;;  %v5610_v23 = vpop.xlane.xlu1 %5609 }
0x1cc4   :  { %21067 = vpow2.f32 %v5617_v48  ;;  %v5614_v47 = vsub.f32 %v5598_v16, %v5610_v23  ;;  %v5607_v49 = vpop.xlane.xlu0 %5606  ;;  %v16491_v23 = vld [vmem:[%s23570_s0] ss:$0 sm:$0xff] }
0x1cc5   :  { %21069 = vpow2.f32 %v5615_v44  ;;  %v5613_v58 = vsub.f32 %v5597_v36, %v5607_v49 }
0x1cc6   :  { %v5621_v45 = vmul.f32 1.442695, %v5614_v47 }
0x1cc7   :  { %v5619_v63 = vmul.f32 1.442695, %v5613_v58 }
0x1cc8   :  { %21071 = vpow2.f32 %v5621_v45 }
0x1cc9   :  { %21073 = vpow2.f32 %v5619_v63  ;;  %v16499_v63 = vld [vmem:[%s23570_s0 + $0x4] ss:$0 sm:$0xff] }
0x1cce   :  { %v21068_v52 = vpop.eup %21067 }
0x1ccf   :  { %v21070_v50 = vpop.eup %21069  ;;  %v5626_v60 = vsel %vm156_vm0, %v21068_v52, 0.0 }
0x1cd0   :  { %5627 = vadd.xlane.f32.xlu1 %v5626_v60  ;;  %v5623_v61 = vsel %vm156_vm0, %v21070_v50, 0.0 }
0x1cd1   :  { %5624 = vadd.xlane.f32.xlu0 %v5623_v61 }
0x1cd2   :  { %v21072_v54 = vpop.eup %21071 }
0x1cd3   :  { %v21074_v41 = vpop.eup %21073  ;;  %v5632_v53 = vsel %vm156_vm0, %v21072_v54, 0.0 }
0x1cd4   :  { %5633 = vadd.xlane.f32.xlu1 %v5632_v53  ;;  %v5629_v51 = vsel %vm156_vm0, %v21074_v41, 0.0 }
0x1cd5   :  { %5630 = vadd.xlane.f32.xlu0 %v5629_v51 }
0x1d5d   :  { %v5628_v59 = vpop.xlane.xlu1 %5627 }
0x1d5e   :  { %21075 = vrcp.f32 %v5628_v59  ;;  %v5625_v6 = vpop.xlane.xlu0 %5624 }
0x1d5f   :  { %21077 = vrcp.f32 %v5625_v6 }
0x1d61   :  { %v5634_v25 = vpop.xlane.xlu1 %5633 }
0x1d62   :  { %21079 = vrcp.f32 %v5634_v25  ;;  %v5631_v7 = vpop.xlane.xlu0 %5630 }
0x1d63   :  { %21081 = vrcp.f32 %v5631_v7 }
0x1d68   :  { %v21076_v24 = vpop.eup %21075 }
0x1d69   :  { %v21078_v12 = vpop.eup %21077  ;;  %v5640_v13 = vmul.f32 %v21076_v24, %v21068_v52 }
0x1d6a   :  { %v5639_v8 = vmul.f32 %v21078_v12, %v21070_v50 }
0x1d6c   :  { %v21080_v55 = vpop.eup %21079  ;;  %18714 = vmatprep.mubr.msk.f32.mxu0 %vm156_vm0, %v5639_v8 }
0x1d6d   :  { %v21082_v4 = vpop.eup %21081  ;;  %18715 = vmatmul.mubr.msk.f32.vlgmr.msra.gmra.mrb[80].mxu0 %vm156_vm0, %v5640_v13  ;;  %v5642_v9 = vmul.f32 %v21080_v55, %v21072_v54 }
0x1d6e   :  { %v5641_v10 = vmul.f32 %v21082_v4, %v21074_v41 }
0x1d70   :  { %18717 = vmatprep.mubr.msk.f32.mxu0 %vm156_vm0, %v5641_v10 }
0x1d71   :  { %18718 = vmatmul.mubr.msk.f32.gmra.mrb[82].mxu0 %vm156_vm0, %v5642_v9 }
0x1e40   :  { %v18716_v26 = vpop.f32.mrb[80].mxu0 }
0x1e41   :  { %v5721_v28 = vpop.f32.mrb[81].mxu0 }
0x1e42   :  { %18722 = vmatprep.mubr.msk.f32.mxu1 %vm450_vm1, %v5721_v28  ;;  %v20144_v28 = vpack.c.bf16 %v16464_v21, %v16463_v14 }
0x1e43   :  { %18723 = vmatmul.mubr.msk.f32.vlgmr.msra.gmra.mrb[72].mxu1 %vm450_vm1, %v18716_v26  ;;  %v16465_v26 = vld [vmem:[%s21446_s19 + $0x30] sm:$0xff] }
0x1e44   :  { %20171 = vmatpush3.bf16.msra.mxu1 %v20168_v19  ;;  %v18719_v18 = vpop.f32.mrb[82].mxu0  ;;  %20145 = vmatprep.subr.bf16.mxu0 %v20144_v28 }
0x1e45   :  { %v5731_v31 = vpop.f32.mrb[83].mxu0  ;;  %20173 = vmatprep.subr.bf16.mxu1 %v20172_v29  ;;  %20147 = vmatpush3.bf16.msra.mxu0 %v20144_v28  ;;  %v16475_v28 = vld [vmem:[%s21456_s30 + $0x50] sm:$0xff] }
0x1e46   :  { %18725 = vmatprep.mubr.msk.f32.mxu1 %vm450_vm1, %v5731_v31 }
0x1e47   :  { %18726 = vmatmul.mubr.msk.f32.gmra.mrb[74].mxu1 %vm450_vm1, %v18719_v18  ;;  %v22462_v18 = vld [vmem:[%s23571_s5 + $0x8] sm:$0xff] }
0x1e48   :  { %20175 = vmatpush3.bf16.msra.mxu1 %v20172_v29  ;;  %18772 = vmatprep.mubr.msk.f32.mxu1 %vm156_vm0, %v22401_v32  ;;  %v16466_v29 = vld [vmem:[%s21446_s19 + $0x38] sm:$0xff]  ;;  %s23579_s19 = sld [smem:[#allocation17_spill]] }
0x1e49   :  { %20177 = vmatprep.subr.bf16.mxu1 %v20176_v33  ;;  %v20148_v30 = vpack.c.bf16 %v16466_v29, %v16465_v26  ;;  %v16476_v29 = vld [vmem:[%s21456_s30 + $0x58] sm:$0xff] }
0x1e4b   :  { %18773 = vmatmul.mubr.msk.f32.vlgmr.msra.gmra.mrb[92].mxu1 %vm156_vm0, %v22410_v1  ;;  %20149 = vmatprep.subr.bf16.mxu0 %v20148_v30 }
0x1e4c   :  { %20179 = vmatpush3.bf16.msra.mxu1 %v20176_v33  ;;  %18783 = vmatprep.mubr.msk.f32.mxu1 %vm156_vm0, %v22401_v32 }
0x1e4d   :  { %20181 = vmatprep.subr.bf16.mxu1 %v20180_v2  ;;  %20151 = vmatpush3.bf16.msra.mxu0 %v20148_v30 }
0x1e50   :  { %20183 = vmatpush3.bf16.msra.mxu1 %v20180_v2 }
0x1e53   :  { %18784 = vmatmul.mubr.msk.f32.vlgmr.msra.gmra.mrb[94].mxu1 %vm156_vm0, %v22410_v1 }
0x1f16   :  { %v18724_v56 = vpop.f32.mrb[72].mxu1 }
0x1f17   :  { %v5852_v17 = vadd.f32 %v18724_v56, %v16458_v3  ;;  %v5820_v22 = vpop.f32.mrb[73].mxu1 }
0x1f18   :  { %v5851_v16 = vadd.f32 %v16458_v3, %v5820_v22  ;;  %v16473_v22 = vld [vmem:[%s21456_s30 + $0x40] sm:$0xff] }
0x1f19   :  { %v5856_v36 = vadd.f32 %v5852_v17, %v22015_v0 }
0x1f1a   :  { %v18727_v37 = vpop.f32.mrb[74].mxu1  ;;  %v5855_v42 = vadd.f32 %v5851_v16, %v22012_v62  ;;  %v16474_v16 = vld [vmem:[%s21456_s30 + $0x48] sm:$0xff] }
0x1f1b   :  { %v5854_v5 = vadd.f32 %v18727_v37, %v16458_v3  ;;  %v5830_v38 = vpop.f32.mrb[75].mxu1  ;;  %v5866_v39 = vsel %vm156_vm0, %v5856_v36, 0.0 }
0x1f1c   :  { %v5853_v40 = vadd.f32 %v16458_v3, %v5830_v38  ;;  %5867 = vadd.xlane.f32.xlu1 %v5866_v39  ;;  %v5863_v48 = vsel %vm156_vm0, %v5855_v42, 0.0 }
0x1f1d   :  { %5864 = vadd.xlane.f32.xlu0 %v5863_v48  ;;  %v5858_v44 = vadd.f32 %v5854_v5, %v22028_v57 }
0x1f1e   :  { %v5857_v47 = vadd.f32 %v5853_v40, %v22025_v46  ;;  %v18774_v49 = vpop.f32.mrb[92].mxu1 }
0x1f1f   :  { %v5872_v0 = vsel %vm156_vm0, %v5858_v44, 0.0  ;;  %v6382_v58 = vpop.f32.mrb[93].mxu1  ;;  %v6388_v46 = vadd.f32 %v18774_v49, %v16491_v23 }
0x1f20   :  { %5873 = vadd.xlane.f32.xlu1 %v5872_v0  ;;  %v5869_v62 = vsel %vm156_vm0, %v5857_v47, 0.0  ;;  %v6383_v45 = vadd.f32 %v16491_v23, %v6382_v58 }
0x1f21   :  { %5870 = vadd.xlane.f32.xlu0 %v5869_v62 }
0x1f22   :  { %18801 = vmatprep.mubr.msk.f32.mxu1 %vm450_vm1, %v6383_v45 }
0x1f26   :  { %v18785_v52 = vpop.f32.mrb[94].mxu1 }
0x1f27   :  { %v6476_v50 = vadd.f32 %v18785_v52, %v16499_v63  ;;  %v6470_v60 = vpop.f32.mrb[95].mxu1 }
0x1f28   :  { %v6471_v61 = vadd.f32 %v16499_v63, %v6470_v60 }
0x1f2a   :  { %v20192_v57 = vpack.c.bf16 %v6476_v50, %v6471_v61 }
0x1f2c   :  { %20194 = vmatprep.subr.msk.bf16.mxu1 %vm21596_vm2, %v20192_v57 }
0x1f2d   :  { %20197 = vmatpush3.bf16.xpose.msk.msra.mxu1 %vm21596_vm2, %v20192_v57 }
0x1f34   :  { %18802 = vmatmul.mubr.msk.f32.vlgmr.msra.gmra.mrb[96].mxu1 %vm450_vm1, %v6388_v46 }
0x1f35   :  { %18819 = vmatprep.mubr.msk.f32.mxu1 %vm156_vm0, %v22401_v32 }
0x1fa9   :  { %v5868_v54 = vpop.xlane.xlu1 %5867 }
0x1faa   :  { %v5876_v41 = vmul.f32 0.03125, %v5868_v54  ;;  %v5865_v53 = vpop.xlane.xlu0 %5864 }
0x1fab   :  { %v5875_v51 = vmul.f32 0.03125, %v5865_v53 }
0x1fac   :  { %v22437_v43 = vsub.f32 %v5856_v36, %v5876_v41  ;;  %v22479_v36 = vpack.c.bf16 %v16474_v16, %v16473_v22 }
0x1fad   :  { %v22439_v59 = vsub.f32 %v5855_v42, %v5875_v51  ;;  %v5874_v6 = vpop.xlane.xlu1 %5873 }
0x1fae   :  { %v5878_v25 = vmul.f32 0.03125, %v5874_v6  ;;  %v5871_v7 = vpop.xlane.xlu0 %5870  ;;  %v5884_v24 = vmul.f32 %v22437_v43, %v22437_v43  ;;  %20153 = vmatprep.subr.bf16.mxu0 %v22479_v36 }
0x1faf   :  { %v5877_v12 = vmul.f32 0.03125, %v5871_v7  ;;  %v5883_v8 = vmul.f32 %v22439_v59, %v22439_v59 }
0x1fb0   :  { %v22445_v13 = vsub.f32 %v5858_v44, %v5878_v25  ;;  %v5890_v55 = vsel %vm156_vm0, %v5884_v24, 0.0 }
0x1fb1   :  { %v22448_v4 = vsub.f32 %v5857_v47, %v5877_v12  ;;  %5891 = vadd.xlane.f32.xlu1 %v5890_v55  ;;  %v5887_v10 = vsel %vm156_vm0, %v5883_v8, 0.0 }
0x1fb2   :  { %5888 = vadd.xlane.f32.xlu0 %v5887_v10  ;;  %v5886_v9 = vmul.f32 %v22445_v13, %v22445_v13  ;;  %v16461_v10 = vld [vmem:[%s21441_s14 + $0x2] ss:$0 sm:$0xff] }
0x1fb3   :  { %v5885_v20 = vmul.f32 %v22448_v4, %v22448_v4 }
0x1fb4   :  { %v5896_v11 = vsel %vm156_vm0, %v5886_v9, 0.0 }
0x1fb5   :  { %5897 = vadd.xlane.f32.xlu1 %v5896_v11  ;;  %v5893_v19 = vsel %vm156_vm0, %v5885_v20, 0.0 }
0x1fb6   :  { %5894 = vadd.xlane.f32.xlu0 %v5893_v19  ;;  %v16462_v19 = vld [vmem:[%s21441_s14 + $0x3] ss:$0 sm:$0xff]  ;;  %s23578_s14 = sld [smem:[#allocation16_spill]] }
0x2007   :  { %v18803_v15 = vpop.f32.mrb[96].mxu1 }
0x2008   :  { %v6655_v31 = vmul.f32 0.35355338, %v18803_v15  ;;  %v6645_v33 = vpop.f32.mrb[97].mxu1 }
0x2009   :  { %v6654_v35 = vmul.f32 0.35355338, %v6645_v33 }
0x200a   :  { %v22468_v2 = vadd.f32 %v6655_v31, %v22462_v18 }
0x200b   :  { %v22471_v3 = vadd.f32 %v6654_v35, %v22465_v34 }
0x200c   :  { %v6662_v56 = vsel %vm6658_vm7, %v22468_v2, -inf }
0x200d   :  { %6663 = vmax.xlane.f32.xlu1 %v6662_v56  ;;  %v6659_v17 = vsel %vm6658_vm7, %v22471_v3, -inf }
0x200e   :  { %6660 = vmax.xlane.f32.xlu0 %v6659_v17  ;;  %v20156_v17 = vpack.c.bf16 %v16476_v29, %v16475_v28 }
0x203e   :  { %v5892_v37 = vpop.xlane.xlu1 %5891 }
0x203f   :  { %v5900_v42 = vmul.f32 0.032258064, %v5892_v37  ;;  %v5889_v5 = vpop.xlane.xlu0 %5888 }
0x2040   :  { %v5899_v38 = vmul.f32 0.032258064, %v5889_v5 }
0x2041   :  { %21083 = vrsqrt.f32 %v5900_v42  ;;  %vm5912_vm8 = vcmp.eq.f32.partialorder %v5900_v42, inf  ;;  %v5915_v0 = vand.u32 2147483648, %v5900_v42  ;;  %vm5914_vm9 = vcmp.eq.f32.partialorder %v5900_v42, 0.0 }
0x2042   :  { %21085 = vrsqrt.f32 %v5899_v38  ;;  %v5898_v39 = vpop.xlane.xlu1 %5897  ;;  %vm5905_vm10 = vcmp.eq.f32.partialorder %v5899_v38, inf  ;;  %v5908_v45 = vand.u32 2147483648, %v5899_v38  ;;  %vm5907_vm12 = vcmp.eq.f32.partialorder %v5899_v38, 0.0 }
0x2043   :  { %v5902_v40 = vmul.f32 0.032258064, %v5898_v39  ;;  %v5895_v48 = vpop.xlane.xlu0 %5894 }
0x2044   :  { %v5901_v44 = vmul.f32 0.032258064, %v5895_v48 }
0x2045   :  { %21087 = vrsqrt.f32 %v5902_v40  ;;  %vm5926_vm13 = vcmp.eq.f32.partialorder %v5902_v40, inf  ;;  %vm5928_vm14 = vcmp.eq.f32.partialorder %v5902_v40, 0.0  ;;  %v5929_v41 = vand.u32 2147483648, %v5902_v40 }
0x2046   :  { %21089 = vrsqrt.f32 %v5901_v44  ;;  %vm5919_vm15 = vcmp.eq.f32.partialorder %v5901_v44, inf  ;;  %v5922_v6 = vand.u32 2147483648, %v5901_v44  ;;  %vm5921_vm3 = vcmp.eq.f32.partialorder %v5901_v44, 0.0 }
0x204b   :  { %v21084_v23 = vpop.eup %21083 }
0x204c   :  { %v21086_v47 = vpop.eup %21085  ;;  %v5911_v49 = vmul.f32 %v21084_v23, %v5900_v42  ;;  %v16480_v23 = vld [vmem:[%s21456_s30 + $0x78] sm:$0xff] }
0x204d   :  { %v5904_v58 = vmul.f32 %v21086_v47, %v5899_v38 }
0x204e   :  { %v5913_v62 = vsel %vm5912_vm8, %v5900_v42, %v5911_v49  ;;  %v16502_v49 = vld [vmem:[%s21471_s20 + $0x100] sm:$0xff] }
0x204f   :  { %v21088_v63 = vpop.eup %21087  ;;  %v5916_v52 = vsel %vm5914_vm9, %v5915_v0, %v5913_v62  ;;  %v5906_v50 = vsel %vm5905_vm10, %v5899_v38, %v5904_v58  ;;  %v16503_v0 = vld [vmem:[%s21471_s20 + $0x108] sm:$0xff]  ;;  %v16468_v62 = vld [vmem:[%s21451_s24 + $0x1] ss:$0 sm:$0xff]  ;;  %s23580_s24 = sld [smem:[#allocation19_spill]] }
0x2050   :  { %v21090_v60 = vpop.eup %21089  ;;  %v5932_v61 = vadd.f32 1e-06, %v5916_v52  ;;  %v5909_v57 = vsel %vm5907_vm12, %v5908_v45, %v5906_v50  ;;  %v5925_v46 = vmul.f32 %v21088_v63, %v5902_v40  ;;  %v20184_v58 = vpack.c.bf16 %v16503_v0, %v16502_v49 }
0x2051   :  { %v5931_v54 = vadd.f32 1e-06, %v5909_v57  ;;  %v5918_v53 = vmul.f32 %v21090_v60, %v5901_v44  ;;  %v16505_v57 = vld [vmem:[%s21471_s20 + $0x118] sm:$0xff] }
0x2052   :  { %21091 = vrcp.f32 %v5932_v61  ;;  %v5927_v51 = vsel %vm5926_vm13, %v5902_v40, %v5925_v46  ;;  %v16478_v40 = vld [vmem:[%s21456_s30 + $0x68] sm:$0xff]  ;;  %v16504_v61 = vld [vmem:[%s21471_s20 + $0x110] sm:$0xff] }
0x2053   :  { %v5930_v25 = vsel %vm5928_vm14, %v5929_v41, %v5927_v51  ;;  %v5920_v7 = vsel %vm5919_vm15, %v5901_v44, %v5918_v53  ;;  %21093 = vrcp.f32 %v5931_v54  ;;  %v16479_v44 = vld [vmem:[%s21456_s30 + $0x70] sm:$0xff] }
0x2054   :  { %v5934_v24 = vadd.f32 1e-06, %v5930_v25  ;;  %v5923_v12 = vsel %vm5921_vm3, %v5922_v6, %v5920_v7  ;;  %v20164_v47 = vpack.c.bf16 %v16480_v23, %v16479_v44  ;;  %v20188_v6 = vpack.c.bf16 %v16505_v57, %v16504_v61  ;;  %v16535_v61 = vld [vmem:[%s21471_s20 + $0x138] sm:$0xff] }
0x2055   :  { %v5933_v8 = vadd.f32 1e-06, %v5923_v12 }
0x2056   :  { %21095 = vrcp.f32 %v5934_v24 }
0x2057   :  { %21097 = vrcp.f32 %v5933_v8 }
0x205c   :  { %v21092_v55 = vpop.eup %21091 }
0x205d   :  { %v21094_v9 = vpop.eup %21093  ;;  %v5940_v20 = vmul.f32 %v21092_v55, %v22437_v43  ;;  %v16516_v55 = vld [vmem:[%s21471_s20 + $0x20] sm:$0xff] }
0x205e   :  { %v5939_v11 = vmul.f32 %v21094_v9, %v22439_v59 }
0x205f   :  { %v5950_v14 = vmul.f32 %v16461_v10, %v5940_v20  ;;  %v16518_v20 = vld [vmem:[%s21471_s20 + $0x30] sm:$0xff] }
0x2060   :  { %v21096_v21 = vpop.eup %21095  ;;  %v5949_v26 = vmul.f32 %v16461_v10, %v5939_v11  ;;  %v16519_v11 = vld [vmem:[%s21471_s20 + $0x38] sm:$0xff] }
0x2061   :  { %v21098_v30 = vpop.eup %21097  ;;  %v5942_v15 = vmul.f32 %v21096_v21, %v22445_v13  ;;  %v22492_v35 = vadd.f32 %v16462_v19, %v5950_v14 }
0x2062   :  { %v22489_v31 = vadd.f32 %v16462_v19, %v5949_v26  ;;  %v5941_v33 = vmul.f32 %v21098_v30, %v22448_v4  ;;  %v16507_v30 = vld [vmem:[%s23570_s0 + $0x8] ss:$0 sm:$0xff] }
0x2063   :  { %v5952_v56 = vmul.f32 %v16461_v10, %v5942_v15 }
0x2064   :  { %18736 = vmatprep.mubr.msk.f32.mxu0 %vm156_vm0, %v22489_v31  ;;  %v5951_v43 = vmul.f32 %v16461_v10, %v5941_v33  ;;  %v16517_v10 = vld [vmem:[%s21471_s20 + $0x28] sm:$0xff] }
0x2065   :  { %18737 = vmatmul.mubr.msk.f32.vlgmr.msra.gmra.mrb[84].mxu0 %vm156_vm0, %v22492_v35  ;;  %v22501_v13 = vadd.f32 %v16462_v19, %v5952_v56  ;;  %v20202_v9 = vpack.c.bf16 %v16517_v10, %v16516_v55 }
0x2066   :  { %v22498_v59 = vadd.f32 %v16462_v19, %v5951_v43  ;;  %20155 = vmatpush3.bf16.msra.mxu0 %v22479_v36  ;;  %v20206_v19 = vpack.c.bf16 %v16519_v11, %v16518_v20  ;;  %v16525_v43 = vld [vmem:[%s21471_s20 + $0xa8] sm:$0xff] }
0x2067   :  { %20157 = vmatprep.subr.bf16.mxu0 %v20156_v17  ;;  %20203 = vmatprep.subr.bf16.mxu1 %v20202_v9 }
0x2068   :  { %18739 = vmatprep.mubr.msk.f32.mxu0 %vm156_vm0, %v22498_v59  ;;  %20205 = vmatpush3.bf16.msra.mxu1 %v20202_v9 }
0x2069   :  { %18740 = vmatmul.mubr.msk.f32.gmra.mrb[86].mxu0 %vm156_vm0, %v22501_v13  ;;  %20207 = vmatprep.subr.bf16.mxu1 %v20206_v19 }
0x206a   :  { %20159 = vmatpush3.bf16.msra.mxu0 %v20156_v17  ;;  %v16524_v17 = vld [vmem:[%s21471_s20 + $0xa0] sm:$0xff] }
0x206c   :  { %20209 = vmatpush3.bf16.msra.mxu1 %v20206_v19 }
0x206f   :  { %18820 = vmatmul.mubr.msk.f32.vlgmr.msra.gmra.mrb[98].mxu1 %vm156_vm0, %v22410_v1 }
0x2070   :  { %18841 = vmatprep.mubr.msk.f32.mxu1 %vm156_vm0, %v22401_v32 }
0x209a   :  { %v6664_v4 = vpop.xlane.xlu1 %6663 }
0x209b   :  { %v6666_v22 = vsub.f32 %v22468_v2, %v6664_v4  ;;  %v6661_v16 = vpop.xlane.xlu0 %6660 }
0x209c   :  { %v6665_v37 = vsub.f32 %v22471_v3, %v6661_v16  ;;  %v16477_v3 = vld [vmem:[%s21456_s30 + $0x60] sm:$0xff]  ;;  %v20210_v16 = vpack.c.bf16 %v16525_v43, %v16524_v17  ;;  %s23581_s30 = sld [smem:[#allocation21_spill]] }
0x209d   :  { %v6669_v36 = vmul.f32 1.442695, %v6666_v22  ;;  %v20160_v48 = vpack.c.bf16 %v16478_v40, %v16477_v3 }
0x209e   :  { %v6667_v42 = vmul.f32 1.442695, %v6665_v37 }
0x209f   :  { %21099 = vpow2.f32 %v6669_v36  ;;  %20161 = vmatprep.subr.bf16.mxu0 %v20160_v48  ;;  %v16526_v36 = vld [vmem:[%s21471_s20 + $0xb0] sm:$0xff] }
0x20a0   :  { %21101 = vpow2.f32 %v6667_v42  ;;  %20163 = vmatpush3.bf16.msra.mxu0 %v20160_v48  ;;  %v16527_v42 = vld [vmem:[%s21471_s20 + $0xb8] sm:$0xff] }
0x20a1   :  { %20165 = vmatprep.subr.bf16.mxu0 %v20164_v47 }
0x20a4   :  { %20167 = vmatpush3.bf16.msra.mxu0 %v20164_v47  ;;  %v16529_v47 = vld [vmem:[%s23570_s0 + $0x5] ss:$0 sm:$0xff] }
0x20a5   :  { %20185 = vmatprep.subr.bf16.mxu0 %v20184_v58 }
0x20a9   :  { %v22509_v5 = vpop.eup %21099 }
0x20aa   :  { %v21102_v38 = vpop.eup %21101  ;;  %v6674_v39 = vsel %vm6658_vm7, %v22509_v5, 0.0 }
0x20ab   :  { %6675 = vadd.xlane.f32.xlu1 %v6674_v39  ;;  %v6671_v2 = vsel %vm6658_vm7, %v21102_v38, 0.0  ;;  %v20214_v39 = vpack.c.bf16 %v16527_v42, %v16526_v36 }
0x20ac   :  { %6672 = vadd.xlane.f32.xlu0 %v6671_v2  ;;  %v16521_v2 = vld [vmem:[%s23570_s0 + $0x1] ss:$0 sm:$0xff] }
0x2138   :  { %v18738_v45 = vpop.f32.mrb[84].mxu0  ;;  %v6676_v14 = vpop.xlane.xlu1 %6675 }
0x2139   :  { %v6060_v63 = vadd.f32 %v18738_v45, %v16468_v62  ;;  %v6673_v52 = vpop.xlane.xlu0 %6672  ;;  %v6054_v50 = vpop.f32.mrb[85].mxu0 }
0x213a   :  { %21103 = vrcp.f32 %v6673_v52  ;;  %v6055_v60 = vadd.f32 %v16468_v62, %v6054_v50  ;;  %v16533_v52 = vld [vmem:[%s21471_s20 + $0x128] sm:$0xff]  ;;  %v16534_v50 = vld [vmem:[%s21471_s20 + $0x130] sm:$0xff] }
0x213b   :  { %v6074_v41 = vmax.f32 %v6060_v63, 0.0  ;;  %21105 = vrcp.f32 %v6676_v14  ;;  %v16532_v63 = vld [vmem:[%s21471_s20 + $0x120] sm:$0xff]  ;;  %v20222_v57 = vpack.c.bf16 %v16535_v61, %v16534_v50 }
0x213c   :  { %v6073_v46 = vmax.f32 %v6055_v60, 0.0  ;;  %v18741_v54 = vpop.f32.mrb[86].mxu0  ;;  %v20218_v60 = vpack.c.bf16 %v16533_v52, %v16532_v63  ;;  %v16561_v63 = vld [vmem:[%s21471_s20 + $0xd0] sm:$0xff]  ;;  %v16562_v52 = vld [vmem:[%s21471_s20 + $0xd8] sm:$0xff] }
0x213d   :  { %v6070_v53 = vadd.f32 %v18741_v54, %v16468_v62  ;;  %v6064_v51 = vpop.f32.mrb[87].mxu0  ;;  %v20248_v50 = vpack.c.bf16 %v16562_v52, %v16561_v63  ;;  %v16592_v63 = vld [vmem:[%s21471_s20 + $0xe0] sm:$0xff]  ;;  %v16593_v52 = vld [vmem:[%s21471_s20 + $0xe8] sm:$0xff] }
0x213e   :  { %v6065_v25 = vadd.f32 %v16468_v62, %v6064_v51  ;;  %18758 = vmatprep.mubr.msk.f32.mxu0 %vm3014_vm11, %v6073_v46  ;;  %20219 = vmatprep.subr.bf16.mxu1 %v20218_v60 }
0x213f   :  { %18759 = vmatmul.mubr.msk.f32.vlgmr.msra.gmra.mrb[88].mxu0 %vm3014_vm11, %v6074_v41  ;;  %v6076_v24 = vmax.f32 %v6070_v53, 0.0  ;;  %20221 = vmatpush3.bf16.msra.mxu1 %v20218_v60  ;;  %v16556_v60 = vld [vmem:[%s23570_s0 + $0x2] ss:$0 sm:$0xff] }
0x2140   :  { %v6075_v7 = vmax.f32 %v6065_v25, 0.0  ;;  %20187 = vmatpush3.bf16.msra.mxu0 %v20184_v58  ;;  %20223 = vmatprep.subr.bf16.mxu1 %v20222_v57 }
0x2141   :  { %20189 = vmatprep.subr.bf16.mxu0 %v20188_v6 }
0x2142   :  { %18761 = vmatprep.mubr.msk.f32.mxu0 %vm3014_vm11, %v6075_v7  ;;  %v18821_v3 = vpop.f32.mrb[98].mxu1 }
0x2143   :  { %18762 = vmatmul.mubr.msk.f32.gmra.mrb[90].mxu0 %vm3014_vm11, %v6076_v24  ;;  %v6848_v40 = vadd.f32 %v18821_v3, %v16521_v2  ;;  %20225 = vmatpush3.bf16.msra.mxu1 %v20222_v57  ;;  %v16552_v3 = vld [vmem:[%s21471_s20 + $0x48] sm:$0xff] }
0x2144   :  { %v21104_v12 = vpop.eup %21103  ;;  %20191 = vmatpush3.bf16.msra.mxu0 %v20188_v6  ;;  %18794 = vmatprep.mubr.msk.f32.mxu0 %vm156_vm0, %v22401_v32 }
0x2145   :  { %v6679_v8 = vmul.f32 %v21104_v12, %v21102_v38  ;;  %v21106_v37 = vpop.eup %21105 }
0x2146   :  { %v6680_v38 = vmul.f32 %v21106_v37, %v22509_v5  ;;  %v6842_v5 = vpop.f32.mrb[99].mxu1  ;;  %18842 = vmatmul.mubr.msk.f32.vlgmr.msra.gmra.mrb[100].mxu1 %vm156_vm0, %v22410_v1 }
0x2147   :  { %18795 = vmatmul.mubr.msk.f32.vlgmr.msra.gmra.mrb[92].mxu0 %vm156_vm0, %v22410_v1  ;;  %v6843_v48 = vadd.f32 %v16521_v2, %v6842_v5  ;;  %v16551_v2 = vld [vmem:[%s21471_s20 + $0x40] sm:$0xff]  ;;  %v16553_v5 = vld [vmem:[%s21471_s20 + $0x50] sm:$0xff] }
0x2148   :  { %18808 = vmatprep.mubr.msk.f32.mxu0 %vm6658_vm7, %v6679_v8 }
0x2212   :  { %v22540_v21 = vpop.f32.mrb[88].mxu0 }
0x2213   :  { %v22542_v26 = vpop.f32.mrb[89].mxu0 }
0x2216   :  { %v22544_v28 = vpop.f32.mrb[90].mxu0 }
0x2217   :  { %v22546_v29 = vpop.f32.mrb[91].mxu0 }
0x221a   :  { %v18796_v15 = vpop.f32.mrb[92].mxu0 }
0x221b   :  { %v6564_v33 = vadd.f32 %v18796_v15, %v16507_v30  ;;  %v6558_v56 = vpop.f32.mrb[93].mxu0  ;;  %v16537_v15 = vld [vmem:[%s23570_s0 + $0x9] ss:$0 sm:$0xff] }
0x221c   :  { %v6559_v4 = vadd.f32 %v16507_v30, %v6558_v56  ;;  %v18843_v30 = vpop.f32.mrb[100].mxu1 }
0x221d   :  { %v7024_v56 = vadd.f32 %v18843_v30, %v16537_v15 }
0x221e   :  { %v20198_v22 = vpack.c.bf16 %v6564_v33, %v6559_v4  ;;  %v7018_v33 = vpop.f32.mrb[101].mxu1  ;;  %v16546_v4 = vld [vmem:[%s23572_s13 + $0x8] sm:$0xff] }
0x221f   :  { %v7019_v17 = vadd.f32 %v16537_v15, %v7018_v33 }
0x2220   :  { %20199 = vmatprep.subr.bf16.mxu0 %v20198_v22 }
0x2221   :  { %20201 = vmatpush3.bf16.msra.mxu0 %v20198_v22  ;;  %v20232_v43 = vpack.c.bf16 %v7024_v56, %v7019_v17 }
0x2222   :  { %20211 = vmatprep.subr.bf16.mxu0 %v20210_v16 }
0x2223   :  { %20233 = vmatprep.subr.bf16.mxu1 %v20232_v43 }
0x2224   :  { %18809 = vmatmul.mubr.msk.f32.vlgmr.msra.gmra.mrb[94].mxu0 %vm6658_vm7, %v6680_v38  ;;  %20235 = vmatpush3.bf16.msra.mxu1 %v20232_v43 }
0x2225   :  { %20213 = vmatpush3.bf16.msra.mxu0 %v20210_v16  ;;  %18830 = vmatprep.mubr.msk.f32.mxu0 %vm156_vm0, %v22401_v32 }
0x2226   :  { %20215 = vmatprep.subr.bf16.mxu0 %v20214_v39 }
0x2229   :  { %20217 = vmatpush3.bf16.msra.mxu0 %v20214_v39  ;;  %v6762_v39 = vld [vmem:[%s23572_s13] sm:$0xff] }
0x222c   :  { %18831 = vmatmul.mubr.msk.f32.vlgmr.msra.gmra.mrb[96].mxu0 %vm156_vm0, %v22410_v1 }
0x222d   :  { %18848 = vmatprep.mubr.msk.f32.mxu0 %vm450_vm1, %v6843_v48  ;;  %v16554_v48 = vld [vmem:[%s21471_s20 + $0x58] sm:$0xff] }
0x22f7   :  { %v22561_v44 = vpop.f32.mrb[94].mxu0 }
0x22f8   :  { %v22563_v23 = vpop.f32.mrb[95].mxu0 }
0x22ff   :  { %v18832_v49 = vpop.f32.mrb[96].mxu0 }
0x2300   :  { %v6936_v0 = vadd.f32 %v18832_v49, %v16529_v47  ;;  %v6930_v58 = vpop.f32.mrb[97].mxu0  ;;  %v16559_v49 = vld [vmem:[%s21471_s20 + $0xc0] sm:$0xff] }
0x2301   :  { %v6931_v62 = vadd.f32 %v16529_v47, %v6930_v58  ;;  %v20240_v47 = vpack.c.bf16 %v16554_v48, %v16553_v5  ;;  %v16581_v48 = vld [vmem:[%s23572_s13 + $0x10] sm:$0xff] }
0x2303   :  { %v20226_v45 = vpack.c.bf16 %v6936_v0, %v6931_v62  ;;  %v16560_v0 = vld [vmem:[%s21471_s20 + $0xc8] sm:$0xff] }
0x2305   :  { %20228 = vmatprep.subr.msk.bf16.mxu0 %vm21596_vm2, %v20226_v45 }
0x2306   :  { %20231 = vmatpush3.bf16.xpose.msk.msra.mxu0 %vm21596_vm2, %v20226_v45  ;;  %v20244_v45 = vpack.c.bf16 %v16560_v0, %v16559_v49 }
0x2307   :  { %18858 = vmatprep.subr.mxu0 %v16546_v4 }
0x230d   :  { %18849 = vmatmul.mubr.msk.f32.vlgmr.msra.gmra.mrb[98].mxu0 %vm450_vm1, %v6848_v40  ;;  %v20236_v40 = vpack.c.bf16 %v16552_v3, %v16551_v2 }
0x230e   :  { %18859 = vmatpush3.msra.mxu0 %v16546_v4 }
0x230f   :  { %18863 = vmatprep.subr.mxu0 %v6762_v39  ;;  %20237 = vmatprep.subr.bf16.mxu1 %v20236_v40 }
0x23e0   :  { %v18850_v46 = vpop.f32.mrb[98].mxu0 }
0x23e1   :  { %v7115_v54 = vmul.f32 0.35355338, %v18850_v46  ;;  %v7105_v41 = vpop.f32.mrb[99].mxu0 }
0x23e2   :  { %v7114_v53 = vmul.f32 0.35355338, %v7105_v41 }
0x23e3   :  { %v7117_v51 = vadd.f32 %v7115_v54, %v22462_v18 }
0x23e4   :  { %v7116_v6 = vadd.f32 %v7114_v53, %v22465_v34 }
0x23e5   :  { %v7121_v25 = vsel %vm6658_vm7, %v7117_v51, -inf }
0x23e6   :  { %7122 = vmax.xlane.f32.xlu1 %v7121_v25  ;;  %v7118_v7 = vsel %vm6658_vm7, %v7116_v6, -inf  ;;  %v16567_v25 = vld [vmem:[%s21471_s20 + $0x140] sm:$0xff] }
0x23e7   :  { %7119 = vmax.xlane.f32.xlu0 %v7118_v7  ;;  %v16568_v7 = vld [vmem:[%s21471_s20 + $0x148] sm:$0xff] }
0x2473   :  { %v7123_v24 = vpop.xlane.xlu1 %7122 }
0x2474   :  { %v7125_v12 = vsub.f32 %v7117_v51, %v7123_v24  ;;  %v7120_v8 = vpop.xlane.xlu0 %7119  ;;  %v16569_v24 = vld [vmem:[%s21471_s20 + $0x150] sm:$0xff] }
0x2475   :  { %v7124_v55 = vsub.f32 %v7116_v6, %v7120_v8  ;;  %v16570_v8 = vld [vmem:[%s21471_s20 + $0x158] sm:$0xff] }
0x2476   :  { %v7128_v10 = vmul.f32 1.442695, %v7125_v12  ;;  %v20252_v12 = vpack.c.bf16 %v16568_v7, %v16567_v25  ;;  %v16589_v25 = vld [vmem:[%s23570_s0 + $0x3] ss:$0 sm:$0xff] }
0x2477   :  { %v7126_v9 = vmul.f32 1.442695, %v7124_v55  ;;  %v20256_v55 = vpack.c.bf16 %v16570_v8, %v16569_v24 }
0x2478   :  { %21107 = vpow2.f32 %v7128_v10 }
0x2479   :  { %21109 = vpow2.f32 %v7126_v9 }
0x2482   :  { %v21108_v20 = vpop.eup %21107 }
0x2483   :  { %v21110_v11 = vpop.eup %21109  ;;  %v7133_v19 = vsel %vm6658_vm7, %v21108_v20, 0.0 }
0x2484   :  { %7134 = vadd.xlane.f32.xlu1 %v7133_v19  ;;  %v7130_v14 = vsel %vm6658_vm7, %v21110_v11, 0.0 }
0x2485   :  { %7131 = vadd.xlane.f32.xlu0 %v7130_v14 }
0x2511   :  { %v7135_v22 = vpop.xlane.xlu1 %7134 }
0x2512   :  { %21111 = vrcp.f32 %v7135_v22  ;;  %v7132_v16 = vpop.xlane.xlu0 %7131 }
0x2513   :  { %21113 = vrcp.f32 %v7132_v16 }
0x251c   :  { %v21112_v37 = vpop.eup %21111 }
0x251d   :  { %v21114_v36 = vpop.eup %21113  ;;  %v7139_v38 = vmul.f32 %v21112_v37, %v21108_v20 }
0x251e   :  { %v7138_v42 = vmul.f32 %v21114_v36, %v21110_v11 }
0x2520   :  { %18855 = vmatprep.mubr.msk.f32.mxu1 %vm6658_vm7, %v7138_v42 }
0x2521   :  { %18856 = vmatmul.mubr.msk.f32.vlgmr.msra.gmra.mrb[102].mxu1 %vm6658_vm7, %v7139_v38 }
0x2522   :  { %18876 = vmatprep.mubr.msk.f32.mxu1 %vm156_vm0, %v22401_v32  ;;  %20239 = vmatpush3.bf16.msra.mxu1 %v20236_v40 }
0x2523   :  { %20241 = vmatprep.subr.bf16.mxu1 %v20240_v47 }
0x2526   :  { %20243 = vmatpush3.bf16.msra.mxu1 %v20240_v47 }
0x2527   :  { %20253 = vmatprep.subr.bf16.mxu1 %v20252_v12 }
0x2529   :  { %18877 = vmatmul.mubr.msk.f32.vlgmr.msra.gmra.mrb[104].mxu1 %vm156_vm0, %v22410_v1 }
0x252a   :  { %18898 = vmatprep.mubr.msk.f32.mxu1 %vm156_vm0, %v22401_v32  ;;  %20255 = vmatpush3.bf16.msra.mxu1 %v20252_v12 }
0x252b   :  { %20257 = vmatprep.subr.bf16.mxu1 %v20256_v55 }
0x252e   :  { %20259 = vmatpush3.bf16.msra.mxu1 %v20256_v55  ;;  %v16597_v55 = vld [vmem:[%s23570_s0 + $0x7] ss:$0 sm:$0xff] }
0x2531   :  { %18899 = vmatmul.mubr.msk.f32.vlgmr.msra.gmra.mrb[106].mxu1 %vm156_vm0, %v22410_v1 }
0x25f4   :  { %v18857_v58 = vpop.f32.mrb[102].mxu1 }
0x25f5   :  { %v7212_v62 = vpop.f32.mrb[103].mxu1 }
0x25f6   :  { %18860 = vmatprep.mubr.msk.f32.mxu0 %vm450_vm1, %v7212_v62 }
0x25f7   :  { %18861 = vmatmul.mubr.msk.f32.vlgmr.msra.gmra.mrb[100].mxu0 %vm450_vm1, %v18857_v58 }
0x25f8   :  { %18864 = vmatpush3.msra.mxu0 %v6762_v39  ;;  %18865 = vmatprep.mubr.msk.f32.mxu0 %vm450_vm1, %v22563_v23  ;;  %v16572_v39 = vld [vmem:[%s23570_s0 + $0xa] ss:$0 sm:$0xff] }
0x25f9   :  { %20245 = vmatprep.subr.bf16.mxu0 %v20244_v45 }
0x25fc   :  { %v18878_v23 = vpop.f32.mrb[104].mxu1 }
0x25fd   :  { %v7470_v61 = vadd.f32 %v18878_v23, %v16556_v60  ;;  %v7464_v57 = vpop.f32.mrb[105].mxu1  ;;  %v16585_v23 = vld [vmem:[%s21471_s20 + $0x68] sm:$0xff] }
0x25fe   :  { %v7465_v46 = vadd.f32 %v16556_v60, %v7464_v57  ;;  %v16584_v60 = vld [vmem:[%s21471_s20 + $0x60] sm:$0xff]  ;;  %v16586_v57 = vld [vmem:[%s21471_s20 + $0x70] sm:$0xff] }
0x25ff   :  { %18866 = vmatmul.mubr.msk.f32.vlgmr.msra.gmra.mrb[100].mxu0 %vm450_vm1, %v22561_v44  ;;  %v16564_v44 = vld [vmem:[%s23570_s0 + $0x6] ss:$0 sm:$0xff] }
0x2600   :  { %20247 = vmatpush3.bf16.msra.mxu0 %v20244_v45  ;;  %18887 = vmatprep.mubr.msk.f32.mxu0 %vm156_vm0, %v22401_v32 }
0x2601   :  { %20249 = vmatprep.subr.bf16.mxu0 %v20248_v50 }
0x2604   :  { %20251 = vmatpush3.bf16.msra.mxu0 %v20248_v50  ;;  %v18900_v38 = vpop.f32.mrb[106].mxu1  ;;  %v20278_v50 = vpack.c.bf16 %v16593_v52, %v16592_v63 }
0x2605   :  { %v7640_v2 = vpop.f32.mrb[107].mxu1  ;;  %v7646_v3 = vadd.f32 %v18900_v38, %v16572_v39 }
0x2606   :  { %v7641_v40 = vadd.f32 %v16572_v39, %v7640_v2 }
0x2607   :  { %18888 = vmatmul.mubr.msk.f32.vlgmr.msra.gmra.mrb[102].mxu0 %vm156_vm0, %v22410_v1 }
0x2608   :  { %18905 = vmatprep.mubr.msk.f32.mxu0 %vm450_vm1, %v7465_v46  ;;  %v20266_v5 = vpack.c.bf16 %v7646_v3, %v7641_v40  ;;  %v16587_v46 = vld [vmem:[%s21471_s20 + $0x78] sm:$0xff] }
0x260a   :  { %20267 = vmatprep.subr.bf16.mxu1 %v20266_v5 }
0x260b   :  { %20269 = vmatpush3.bf16.msra.mxu1 %v20266_v5  ;;  %v16482_v5 = vld [vmem:[%s21461_s6 + $0x1] ss:$0 sm:$0xff]  ;;  %s23582_s6 = sld [smem:[#allocation18_spill]] }
0x26da   :  { %v18889_v54 = vpop.f32.mrb[102].mxu0 }
0x26db   :  { %v7558_v41 = vadd.f32 %v18889_v54, %v16564_v44  ;;  %v7552_v53 = vpop.f32.mrb[103].mxu0  ;;  %v16594_v54 = vld [vmem:[%s21471_s20 + $0xf0] sm:$0xff] }
0x26dc   :  { %v7553_v51 = vadd.f32 %v16564_v44, %v7552_v53  ;;  %v20274_v44 = vpack.c.bf16 %v16587_v46, %v16586_v57 }
0x26de   :  { %v20260_v6 = vpack.c.bf16 %v7558_v41, %v7553_v51  ;;  %v16595_v41 = vld [vmem:[%s21471_s20 + $0xf8] sm:$0xff] }
0x26e0   :  { %20262 = vmatprep.subr.msk.bf16.mxu0 %vm21596_vm2, %v20260_v6 }
0x26e1   :  { %20265 = vmatpush3.bf16.xpose.msk.msra.mxu0 %vm21596_vm2, %v20260_v6  ;;  %v20282_v6 = vpack.c.bf16 %v16595_v41, %v16594_v54 }
0x26e2   :  { %18915 = vmatprep.subr.mxu0 %v16581_v48 }
0x26e8   :  { %18906 = vmatmul.mubr.msk.f32.vlgmr.msra.gmra.mrb[104].mxu0 %vm450_vm1, %v7470_v61  ;;  %v20270_v61 = vpack.c.bf16 %v16585_v23, %v16584_v60 }
0x26e9   :  { %18916 = vmatpush3.msra.mxu0 %v16581_v48  ;;  %v6178_v48 = vadd.f32 %v22540_v21, %v16482_v5 }
0x26ea   :  { %20279 = vmatprep.subr.bf16.mxu0 %v20278_v50  ;;  %20271 = vmatprep.subr.bf16.mxu1 %v20270_v61 }
0x27bb   :  { %v18907_v10 = vpop.f32.mrb[104].mxu0 }
0x27bc   :  { %v7737_v9 = vmul.f32 0.35355338, %v18907_v10  ;;  %v7727_v20 = vpop.f32.mrb[105].mxu0 }
0x27bd   :  { %v7736_v11 = vmul.f32 0.35355338, %v7727_v20 }
0x27be   :  { %v7739_v19 = vadd.f32 %v7737_v9, %v22462_v18 }
0x27bf   :  { %v7738_v14 = vadd.f32 %v7736_v11, %v22465_v34 }
0x27c0   :  { %v7743_v30 = vsel %vm6658_vm7, %v7739_v19, -inf }
0x27c1   :  { %7744 = vmax.xlane.f32.xlu1 %v7743_v30  ;;  %v7740_v15 = vsel %vm6658_vm7, %v7738_v14, -inf  ;;  %v16602_v30 = vld [vmem:[%s21471_s20 + $0x170] sm:$0xff] }
0x27c2   :  { %7741 = vmax.xlane.f32.xlu0 %v7740_v15 }
0x284e   :  { %v7745_v33 = vpop.xlane.xlu1 %7744 }
0x284f   :  { %v7747_v56 = vsub.f32 %v7739_v19, %v7745_v33  ;;  %v7742_v17 = vpop.xlane.xlu0 %7741  ;;  %v16600_v19 = vld [vmem:[%s21471_s20 + $0x160] sm:$0xff]  ;;  %v16603_v33 = vld [vmem:[%s21471_s20 + $0x178] sm:$0xff] }
0x2850   :  { %v7746_v43 = vsub.f32 %v7738_v14, %v7742_v17  ;;  %v16601_v14 = vld [vmem:[%s21471_s20 + $0x168] sm:$0xff] }
0x2851   :  { %v7750_v4 = vmul.f32 1.442695, %v7747_v56  ;;  %v20286_v15 = vpack.c.bf16 %v16601_v14, %v16600_v19  ;;  %v20290_v56 = vpack.c.bf16 %v16603_v33, %v16602_v30  ;;  %v21299_v33 = vld [vmem:[%s21401_s9 + $0x8] sm:$0xff] }
0x2852   :  { %v7748_v22 = vmul.f32 1.442695, %v7746_v43 }
0x2853   :  { %21115 = vpow2.f32 %v7750_v4 }
0x2854   :  { %21117 = vpow2.f32 %v7748_v22 }
0x285d   :  { %v21116_v16 = vpop.eup %21115 }
0x285e   :  { %v21118_v37 = vpop.eup %21117  ;;  %v7755_v36 = vsel %vm6658_vm7, %v21116_v16, 0.0 }
0x285f   :  { %7756 = vadd.xlane.f32.xlu1 %v7755_v36  ;;  %v7752_v42 = vsel %vm6658_vm7, %v21118_v37, 0.0 }
0x2860   :  { %7753 = vadd.xlane.f32.xlu0 %v7752_v42 }
0x28ec   :  { %v7757_v47 = vpop.xlane.xlu1 %7756 }
0x28ed   :  { %21119 = vrcp.f32 %v7757_v47  ;;  %v7754_v49 = vpop.xlane.xlu0 %7753 }
0x28ee   :  { %21121 = vrcp.f32 %v7754_v49  ;;  %v6192_v49 = vadd.f32 %v6178_v48, %v22492_v35  ;;  %v16625_v48 = vld [vmem:[%s23574_s29 + $0x88] sm:$0xff] }
0x28f7   :  { %v21120_v0 = vpop.eup %21119 }
0x28f8   :  { %v21122_v58 = vpop.eup %21121  ;;  %v7761_v45 = vmul.f32 %v21120_v0, %v21116_v16  ;;  %v6188_v0 = vadd.f32 %v22544_v28, %v16482_v5 }
0x28f9   :  { %v7760_v62 = vmul.f32 %v21122_v58, %v21118_v37 }
0x28fa   :  { %v6194_v21 = vadd.f32 %v6188_v0, %v22501_v13 }
0x28fb   :  { %18912 = vmatprep.mubr.msk.f32.mxu1 %vm6658_vm7, %v7760_v62 }
0x28fc   :  { %18913 = vmatmul.mubr.msk.f32.vlgmr.msra.gmra.mrb[108].mxu1 %vm6658_vm7, %v7761_v45  ;;  %v6183_v45 = vadd.f32 %v16482_v5, %v22546_v29 }
0x28fd   :  { %18928 = vmatprep.mubr.msk.f32.mxu1 %vm156_vm0, %v22401_v32  ;;  %20273 = vmatpush3.bf16.msra.mxu1 %v20270_v61 }
0x28fe   :  { %20275 = vmatprep.subr.bf16.mxu1 %v20274_v44  ;;  %v6193_v52 = vadd.f32 %v6183_v45, %v22498_v59  ;;  %v16614_v59 = vld [vmem:[%s23572_s13 + $0x18] sm:$0xff] }
0x2900   :  { %v6205_v28 = vsel %vm156_vm0, %v6193_v52, 0.0 }
0x2901   :  { %20277 = vmatpush3.bf16.msra.mxu1 %v20274_v44 }
0x2902   :  { %20287 = vmatprep.subr.bf16.mxu1 %v20286_v15 }
0x2904   :  { %18929 = vmatmul.mubr.msk.f32.vlgmr.msra.gmra.mrb[110].mxu1 %vm156_vm0, %v22410_v1 }
0x2905   :  { %18950 = vmatprep.mubr.msk.f32.mxu1 %vm156_vm0, %v22401_v32  ;;  %20289 = vmatpush3.bf16.msra.mxu1 %v20286_v15 }
0x2906   :  { %20291 = vmatprep.subr.bf16.mxu1 %v20290_v56 }
0x2909   :  { %20293 = vmatpush3.bf16.msra.mxu1 %v20290_v56 }
0x290c   :  { %18951 = vmatmul.mubr.msk.f32.vlgmr.msra.gmra.mrb[112].mxu1 %vm156_vm0, %v22410_v1 }
0x29cf   :  { %v18914_v53 = vpop.f32.mrb[108].mxu1 }
0x29d0   :  { %v7834_v51 = vpop.f32.mrb[109].mxu1 }
0x29d1   :  { %18917 = vmatprep.mubr.msk.f32.mxu0 %vm450_vm1, %v7834_v51 }
0x29d2   :  { %18918 = vmatmul.mubr.msk.f32.vlgmr.msra.gmra.mrb[100].mxu0 %vm450_vm1, %v18914_v53 }
0x29d3   :  { %20281 = vmatpush3.bf16.msra.mxu0 %v20278_v50  ;;  %18939 = vmatprep.mubr.msk.f32.mxu0 %vm156_vm0, %v22401_v32  ;;  %v16605_v50 = vld [vmem:[%s23570_s0 + $0xb] ss:$0 sm:$0xff] }
0x29d4   :  { %20283 = vmatprep.subr.bf16.mxu0 %v20282_v6 }
0x29d7   :  { %20285 = vmatpush3.bf16.msra.mxu0 %v20282_v6  ;;  %v18930_v7 = vpop.f32.mrb[110].mxu1 }
0x29d8   :  { %v8013_v24 = vadd.f32 %v18930_v7, %v16589_v25  ;;  %v8007_v12 = vpop.f32.mrb[111].mxu1 }
0x29d9   :  { %v8008_v8 = vadd.f32 %v16589_v25, %v8007_v12 }
0x29da   :  { %18940 = vmatmul.mubr.msk.f32.vlgmr.msra.gmra.mrb[106].mxu0 %vm156_vm0, %v22410_v1 }
0x29db   :  { %18957 = vmatprep.mubr.msk.f32.mxu0 %vm450_vm1, %v8008_v8 }
0x29df   :  { %v18952_v29 = vpop.f32.mrb[112].mxu1 }
0x29e0   :  { %v8183_v60 = vpop.f32.mrb[113].mxu1  ;;  %v8189_v23 = vadd.f32 %v18952_v29, %v16605_v50 }
0x29e1   :  { %v8184_v13 = vadd.f32 %v16605_v50, %v8183_v60 }
0x29e3   :  { %v20300_v61 = vpack.c.bf16 %v8189_v23, %v8184_v13 }
0x29e5   :  { %20301 = vmatprep.subr.bf16.mxu1 %v20300_v61 }
0x29e6   :  { %20303 = vmatpush3.bf16.msra.mxu1 %v20300_v61 }
0x2aad   :  { %v18941_v10 = vpop.f32.mrb[106].mxu0 }
0x2aae   :  { %v8101_v9 = vadd.f32 %v18941_v10, %v16597_v55  ;;  %v8095_v32 = vpop.f32.mrb[107].mxu0 }
0x2aaf   :  { %v8096_v20 = vadd.f32 %v16597_v55, %v8095_v32  ;;  %v16617_v55 = vld [vmem:[%s23573_s25] ss:$0 sm:$0xff] }
0x2ab1   :  { %v20294_v11 = vpack.c.bf16 %v8101_v9, %v8096_v20 }
0x2ab3   :  { %20296 = vmatprep.subr.msk.bf16.mxu0 %vm21596_vm2, %v20294_v11 }
0x2ab4   :  { %20299 = vmatpush3.bf16.xpose.msk.msra.mxu0 %vm21596_vm2, %v20294_v11 }
0x2ab5   :  { %18967 = vmatprep.subr.mxu0 %v16614_v59 }
0x2abb   :  { %18958 = vmatmul.mubr.msk.f32.vlgmr.msra.gmra.mrb[108].mxu0 %vm450_vm1, %v8013_v24 }
0x2abc   :  { %18968 = vmatpush3.msra.mxu0 %v16614_v59 }
0x2b8e   :  { %v18959_v17 = vpop.f32.mrb[108].mxu0 }
0x2b8f   :  { %v8280_v43 = vmul.f32 0.35355338, %v18959_v17  ;;  %v8270_v4 = vpop.f32.mrb[109].mxu0  ;;  %v21300_v17 = vld [vmem:[%s21401_s9] sm:$0xff]  ;;  %s23575_s9 = sld [smem:[#allocation13_spill]] }
0x2b90   :  { %v8279_v22 = vmul.f32 0.35355338, %v8270_v4 }
0x2b91   :  { %v8282_v16 = vadd.f32 %v8280_v43, %v22462_v18  ;;  %v6173_v18 = vadd.f32 %v16482_v5, %v22542_v26  ;;  %v6202_v26 = vsel %vm156_vm0, %v6192_v49, 0.0  ;;  %v16624_v5 = vld [vmem:[%s23574_s29 + $0x80] sm:$0xff] }
0x2b92   :  { %v8281_v37 = vadd.f32 %v8279_v22, %v22465_v34 }
0x2b93   :  { %v8286_v36 = vsel %vm6658_vm7, %v8282_v16, -inf  ;;  %v6191_v62 = vadd.f32 %v6173_v18, %v22489_v31  ;;  %v6208_v31 = vsel %vm156_vm0, %v6194_v21, 0.0  ;;  %v20312_v18 = vpack.c.bf16 %v16625_v48, %v16624_v5 }
0x2b94   :  { %8287 = vmax.xlane.f32.xlu1 %v8286_v36  ;;  %v8283_v42 = vsel %vm6658_vm7, %v8281_v37, -inf }
0x2b95   :  { %8284 = vmax.xlane.f32.xlu0 %v8283_v42  ;;  %v6199_v35 = vsel %vm156_vm0, %v6191_v62, 0.0  ;;  %20313 = vmatprep.subr.bf16.mxu0 %v20312_v18 }
0x2c21   :  { %v8288_v38 = vpop.xlane.xlu1 %8287 }
0x2c22   :  { %v8290_v39 = vsub.f32 %v8282_v16, %v8288_v38  ;;  %v8285_v2 = vpop.xlane.xlu0 %8284 }
0x2c23   :  { %v8289_v3 = vsub.f32 %v8281_v37, %v8285_v2 }
0x2c24   :  { %v8293_v1 = vmul.f32 1.442695, %v8290_v39 }
0x2c25   :  { %v8291_v40 = vmul.f32 1.442695, %v8289_v3 }
0x2c26   :  { %21123 = vpow2.f32 %v8293_v1 }
0x2c27   :  { %21125 = vpow2.f32 %v8291_v40 }
0x2c30   :  { %v21124_v34 = vpop.eup %21123 }
0x2c31   :  { %v21126_v47 = vpop.eup %21125  ;;  %v8298_v58 = vsel %vm6658_vm7, %v21124_v34, 0.0 }
0x2c32   :  { %8299 = vadd.xlane.f32.xlu1 %v8298_v58  ;;  %v8295_v63 = vsel %vm6658_vm7, %v21126_v47, 0.0 }
0x2c33   :  { %8296 = vadd.xlane.f32.xlu0 %v8295_v63 }
0x2c36   :  { %6203 = vadd.xlane.f32.xlu1 %v6202_v26 }
0x2c37   :  { %6200 = vadd.xlane.f32.xlu0 %v6199_v35 }
0x2c3a   :  { %6209 = vadd.xlane.f32.xlu1 %v6208_v31 }
0x2c3b   :  { %6206 = vadd.xlane.f32.xlu0 %v6205_v28 }
0x2cbf   :  { %v8300_v57 = vpop.xlane.xlu1 %8299 }
0x2cc0   :  { %21127 = vrcp.f32 %v8300_v57  ;;  %v8297_v46 = vpop.xlane.xlu0 %8296 }
0x2cc1   :  { %21129 = vrcp.f32 %v8297_v46 }
0x2cc3   :  { %v6204_v25 = vpop.xlane.xlu1 %6203 }
0x2cc4   :  { %v6201_v7 = vpop.xlane.xlu0 %6200  ;;  %v6212_v24 = vmul.f32 0.03125, %v6204_v25 }
0x2cc5   :  { %v6211_v12 = vmul.f32 0.03125, %v6201_v7 }
0x2cc6   :  { %v22696_v32 = vsub.f32 %v6192_v49, %v6212_v24 }
0x2cc7   :  { %v6210_v8 = vpop.xlane.xlu1 %6209  ;;  %v22698_v14 = vsub.f32 %v6191_v62, %v6211_v12 }
0x2cc8   :  { %v6207_v10 = vpop.xlane.xlu0 %6206  ;;  %v6214_v20 = vmul.f32 0.03125, %v6210_v8  ;;  %v6220_v16 = vmul.f32 %v22696_v32, %v22696_v32 }
0x2cc9   :  { %v6213_v30 = vmul.f32 0.03125, %v6207_v10  ;;  %v6219_v42 = vmul.f32 %v22698_v14, %v22698_v14 }
0x2cca   :  { %v21128_v44 = vpop.eup %21127  ;;  %v22702_v4 = vsub.f32 %v6194_v21, %v6214_v20  ;;  %v6226_v38 = vsel %vm156_vm0, %v6220_v16, 0.0 }
0x2ccb   :  { %v21130_v54 = vpop.eup %21129  ;;  %v8304_v53 = vmul.f32 %v21128_v44, %v21124_v34  ;;  %v22707_v37 = vsub.f32 %v6193_v52, %v6213_v30  ;;  %v6223_v2 = vsel %vm156_vm0, %v6219_v42, 0.0  ;;  %v16626_v34 = vld [vmem:[%s23574_s29 + $0x90] sm:$0xff]  ;;  %v16490_v42 = vld [vmem:[%s21466_s12 + $0x3] ss:$0 sm:$0xff] }
0x2ccc   :  { %v8303_v41 = vmul.f32 %v21130_v54, %v21126_v47  ;;  %v6222_v39 = vmul.f32 %v22702_v4, %v22702_v4  ;;  %v16627_v47 = vld [vmem:[%s23574_s29 + $0x98] sm:$0xff] }
0x2ccd   :  { %v6221_v3 = vmul.f32 %v22707_v37, %v22707_v37  ;;  %v20316_v49 = vpack.c.bf16 %v16627_v47, %v16626_v34  ;;  %v8542_v47 = vld [vmem:[%s23574_s29 + $0x8] sm:$0xff] }
0x2cce   :  { %18964 = vmatprep.mubr.msk.f32.mxu1 %vm6658_vm7, %v8303_v41  ;;  %v6232_v1 = vsel %vm156_vm0, %v6222_v39, 0.0 }
0x2ccf   :  { %18965 = vmatmul.mubr.msk.f32.vlgmr.msra.gmra.mrb[114].mxu1 %vm6658_vm7, %v8304_v53  ;;  %v6229_v40 = vsel %vm156_vm0, %v6221_v3, 0.0 }
0x2da2   :  { %v18966_v51 = vpop.f32.mrb[114].mxu1 }
0x2da3   :  { %v8377_v6 = vpop.f32.mrb[115].mxu1 }
0x2da4   :  { %18969 = vmatprep.mubr.msk.f32.mxu0 %vm450_vm1, %v8377_v6 }
0x2da5   :  { %18970 = vmatmul.mubr.msk.f32.vlgmr.msra.gmra.mrb[100].mxu0 %vm450_vm1, %v18966_v51 }
0x2da6   :  { %20315 = vmatpush3.bf16.msra.mxu0 %v20312_v18 }
0x2da7   :  { %20317 = vmatprep.subr.bf16.mxu0 %v20316_v49 }
0x2daa   :  { %20319 = vmatpush3.bf16.msra.mxu0 %v20316_v49  ;;  %v8543_v49 = vld [vmem:[%s23574_s29 + $0x10] sm:$0xff] }
0x2e78   :  { %v18971_v9 = vpop.f32.mrb[100].mxu0 }
0x2e79   :  { %v8479_v11 = vadd.f32 %v18971_v9, %v16617_v55  ;;  %v8460_v19 = vpop.f32.mrb[101].mxu0 }
0x2e7a   :  { %v8478_v15 = vadd.f32 %v16617_v55, %v8460_v19 }
0x2e7b   :  { %v8481_v56 = vadd.f32 %v21299_v33, %v8479_v11 }
0x2e7c   :  { %v8480_v43 = vadd.f32 %v21300_v17, %v8478_v15 }
0x2e7d   :  { %v8488_v22 = vsel %vm156_vm0, %v8481_v56, 0.0 }
0x2e7e   :  { %8489 = vadd.xlane.f32.xlu1 %v8488_v22  ;;  %v8485_v36 = vsel %vm156_vm0, %v8480_v43, 0.0  ;;  %v16489_v22 = vld [vmem:[%s21466_s12 + $0x2] ss:$0 sm:$0xff]  ;;  %s23583_s12 = sld [smem:[#allocation20_spill]] }
0x2e7f   :  { %8486 = vadd.xlane.f32.xlu0 %v8485_v36 }
0x2e82   :  { %6227 = vadd.xlane.f32.xlu1 %v6226_v38 }
0x2e83   :  { %6224 = vadd.xlane.f32.xlu0 %v6223_v2 }
0x2e86   :  { %6233 = vadd.xlane.f32.xlu1 %v6232_v1 }
0x2e87   :  { %6230 = vadd.xlane.f32.xlu0 %v6229_v40 }
0x2f0b   :  { %v8490_v0 = vpop.xlane.xlu1 %8489 }
0x2f0c   :  { %v8492_v58 = vmul.f32 0.03125, %v8490_v0  ;;  %v8487_v62 = vpop.xlane.xlu0 %8486 }
0x2f0d   :  { %v8491_v45 = vmul.f32 0.03125, %v8487_v62 }
0x2f0e   :  { %v22724_v63 = vsub.f32 %v8481_v56, %v8492_v58  ;;  %v8544_v58 = vld [vmem:[%s23574_s29 + $0x18] sm:$0xff] }
0x2f0f   :  { %v22726_v21 = vsub.f32 %v8480_v43, %v8491_v45  ;;  %v6228_v26 = vpop.xlane.xlu1 %6227  ;;  %v20308_v62 = vpack.c.bf16 %v8544_v58, %v8543_v49  ;;  %v16634_v45 = vld [vmem:[%s23574_s29 + $0x100] sm:$0xff] }
0x2f10   :  { %v6236_v52 = vmul.f32 0.032258064, %v6228_v26  ;;  %v6225_v35 = vpop.xlane.xlu0 %6224  ;;  %v8496_v31 = vmul.f32 %v22724_v63, %v22724_v63  ;;  %v16635_v26 = vld [vmem:[%s23574_s29 + $0x108] sm:$0xff] }
0x2f11   :  { %v6235_v28 = vmul.f32 0.032258064, %v6225_v35  ;;  %v8495_v29 = vmul.f32 %v22726_v21, %v22726_v21 }
0x2f12   :  { %21131 = vrsqrt.f32 %v6236_v52  ;;  %v8500_v60 = vsel %vm156_vm0, %v8496_v31, 0.0  ;;  %vm6248_vm4 = vcmp.eq.f32.partialorder %v6236_v52, inf  ;;  %v6251_v54 = vand.u32 2147483648, %v6236_v52 }
0x2f13   :  { %21133 = vrsqrt.f32 %v6235_v28  ;;  %v6234_v50 = vpop.xlane.xlu1 %6233  ;;  %v8497_v13 = vsel %vm156_vm0, %v8495_v29, 0.0  ;;  %8501 = vadd.xlane.f32.xlu1 %v8500_v60  ;;  %vm6250_vm5 = vcmp.eq.f32.partialorder %v6236_v52, 0.0  ;;  %vm6241_vm6 = vcmp.eq.f32.partialorder %v6235_v28, inf }
0x2f14   :  { %v6238_v23 = vmul.f32 0.032258064, %v6234_v50  ;;  %v6231_v61 = vpop.xlane.xlu0 %6230  ;;  %8498 = vadd.xlane.f32.xlu0 %v8497_v13  ;;  %v6244_v51 = vand.u32 2147483648, %v6235_v28  ;;  %vm6243_vm8 = vcmp.eq.f32.partialorder %v6235_v28, 0.0 }
0x2f15   :  { %v6237_v59 = vmul.f32 0.032258064, %v6231_v61 }
0x2f16   :  { %21135 = vrsqrt.f32 %v6238_v23  ;;  %vm6262_vm9 = vcmp.eq.f32.partialorder %v6238_v23, inf  ;;  %vm6264_vm10 = vcmp.eq.f32.partialorder %v6238_v23, 0.0  ;;  %v6265_v9 = vand.u32 2147483648, %v6238_v23 }
0x2f17   :  { %21137 = vrsqrt.f32 %v6237_v59  ;;  %vm6255_vm12 = vcmp.eq.f32.partialorder %v6237_v59, inf  ;;  %v6258_v19 = vand.u32 2147483648, %v6237_v59  ;;  %vm6257_vm13 = vcmp.eq.f32.partialorder %v6237_v59, 0.0 }
0x2f1c   :  { %v21132_v57 = vpop.eup %21131 }
0x2f1d   :  { %v21134_v46 = vpop.eup %21133  ;;  %v6247_v44 = vmul.f32 %v21132_v57, %v6236_v52 }
0x2f1e   :  { %v6240_v41 = vmul.f32 %v21134_v46, %v6235_v28 }
0x2f1f   :  { %v6249_v53 = vsel %vm6248_vm4, %v6236_v52, %v6247_v44  ;;  %v20320_v52 = vpack.c.bf16 %v16635_v26, %v16634_v45 }
0x2f20   :  { %v21136_v6 = vpop.eup %21135  ;;  %v6252_v25 = vsel %vm6250_vm5, %v6251_v54, %v6249_v53  ;;  %v6242_v7 = vsel %vm6241_vm6, %v6235_v28, %v6240_v41 }
0x2f21   :  { %v21138_v24 = vpop.eup %21137  ;;  %v6268_v12 = vadd.f32 1e-06, %v6252_v25  ;;  %v6245_v8 = vsel %vm6243_vm8, %v6244_v51, %v6242_v7  ;;  %v6261_v55 = vmul.f32 %v21136_v6, %v6238_v23  ;;  %v16619_v6 = vld [vmem:[%s23575_s9] ss:$0 sm:$0xff] }
0x2f22   :  { %v6267_v10 = vadd.f32 1e-06, %v6245_v8  ;;  %v6254_v20 = vmul.f32 %v21138_v24, %v6237_v59 }
0x2f23   :  { %21139 = vrcp.f32 %v6268_v12  ;;  %v6263_v11 = vsel %vm6262_vm9, %v6238_v23, %v6261_v55  ;;  %v16620_v12 = vld [vmem:[%s23575_s9 + $0x1] ss:$0 sm:$0xff] }
0x2f24   :  { %21141 = vrcp.f32 %v6267_v10  ;;  %v6266_v30 = vsel %vm6264_vm10, %v6265_v9, %v6263_v11  ;;  %v6256_v15 = vsel %vm6255_vm12, %v6237_v59, %v6254_v20  ;;  %v16636_v10 = vld [vmem:[%s23574_s29 + $0x110] sm:$0xff]  ;;  %v16637_v9 = vld [vmem:[%s23574_s29 + $0x118] sm:$0xff] }
0x2f25   :  { %v6270_v33 = vadd.f32 1e-06, %v6266_v30  ;;  %v6259_v56 = vsel %vm6257_vm13, %v6258_v19, %v6256_v15  ;;  %v20324_v19 = vpack.c.bf16 %v16637_v9, %v16636_v10 }
0x2f26   :  { %v6269_v17 = vadd.f32 1e-06, %v6259_v56 }
0x2f27   :  { %21143 = vrcp.f32 %v6270_v33 }
0x2f28   :  { %21145 = vrcp.f32 %v6269_v17 }
0x2f2d   :  { %v21140_v43 = vpop.eup %21139 }
0x2f2e   :  { %v21142_v16 = vpop.eup %21141  ;;  %v6276_v36 = vmul.f32 %v21140_v43, %v22696_v32 }
0x2f2f   :  { %v6275_v38 = vmul.f32 %v21142_v16, %v22698_v14 }
0x2f30   :  { %v6286_v39 = vmul.f32 %v16489_v22, %v6276_v36 }
0x2f31   :  { %v21144_v2 = vpop.eup %21143  ;;  %v6285_v3 = vmul.f32 %v16489_v22, %v6275_v38  ;;  %v16661_v38 = vld [vmem:[%s23574_s29 + $0xa8] sm:$0xff] }
0x2f32   :  { %v21146_v1 = vpop.eup %21145  ;;  %v22738_v40 = vadd.f32 %v16490_v42, %v6286_v39  ;;  %v6278_v5 = vmul.f32 %v21144_v2, %v22702_v4  ;;  %v16621_v2 = vld [vmem:[%s23576_s3] ss:$0 sm:$0xff] }
0x2f33   :  { %v22741_v48 = vadd.f32 %v16490_v42, %v6285_v3  ;;  %v6277_v18 = vmul.f32 %v21146_v1, %v22707_v37  ;;  %v8541_v37 = vld [vmem:[%s23574_s29] sm:$0xff]  ;;  %v16662_v1 = vld [vmem:[%s23574_s29 + $0xb0] sm:$0xff] }
0x2f34   :  { %16002 = vst.msk [vmem:[#allocation2 + $0x8] sm:$0xff] %vm156_vm0, %v22738_v40  ;;  %v6288_v32 = vmul.f32 %v16489_v22, %v6278_v5  ;;  %v20304_v0 = vpack.c.bf16 %v8542_v47, %v8541_v37  ;;  %v16663_v5 = vld [vmem:[%s23574_s29 + $0xb8] sm:$0xff]  ;;  %v16639_v47 = vld [vmem:[%s23576_s3 + $0x8] ss:$0 sm:$0xff] }
0x2f35   :  { %16001 = vst.msk [vmem:[#allocation2] sm:$0xff] %vm156_vm0, %v22741_v48  ;;  %v6287_v14 = vmul.f32 %v16489_v22, %v6277_v18  ;;  %18991 = vmatprep.mubr.msk.f32.mxu0 %vm156_vm0, %v22741_v48  ;;  %v20360_v37 = vpack.c.bf16 %v16663_v5, %v16662_v1 }
0x2f36   :  { %v22750_v34 = vadd.f32 %v16490_v42, %v6288_v32  ;;  %18992 = vmatmul.mubr.msk.f32.vlgmr.msra.gmra.mrb[110].mxu0 %vm156_vm0, %v22738_v40  ;;  %20305 = vmatprep.subr.bf16.mxu1 %v20304_v0 }
0x2f37   :  { %v22754_v4 = vadd.f32 %v16490_v42, %v6287_v14  ;;  %20307 = vmatpush3.bf16.msra.mxu1 %v20304_v0  ;;  %v16660_v42 = vld [vmem:[%s23574_s29 + $0xa0] sm:$0xff] }
0x2f38   :  { %16004 = vst.msk [vmem:[#allocation2 + $0x18] sm:$0xff] %vm156_vm0, %v22750_v34  ;;  %20309 = vmatprep.subr.bf16.mxu1 %v20308_v62  ;;  %v20356_v39 = vpack.c.bf16 %v16661_v38, %v16660_v42 }
0x2f39   :  { %16003 = vst.msk [vmem:[#allocation2 + $0x10] sm:$0xff] %vm156_vm0, %v22754_v4  ;;  %18994 = vmatprep.mubr.msk.f32.mxu0 %vm156_vm0, %v22754_v4 }
0x2f3a   :  { %18995 = vmatmul.mubr.msk.f32.gmra.mrb[112].mxu0 %vm156_vm0, %v22750_v34 }
0x2f3b   :  { %20311 = vmatpush3.bf16.msra.mxu1 %v20308_v62 }
0x2f3c   :  { %20321 = vmatprep.subr.bf16.mxu1 %v20320_v52 }
0x2fa0   :  { %v8502_v35 = vpop.xlane.xlu1 %8501 }
0x2fa1   :  { %v8499_v31 = vpop.xlane.xlu0 %8498  ;;  %v8504_v28 = vmul.f32 0.032258064, %v8502_v35 }
0x2fa2   :  { %v8503_v29 = vmul.f32 0.032258064, %v8499_v31 }
0x2fa3   :  { %21147 = vrsqrt.f32 %v8504_v28  ;;  %vm8514_vm14 = vcmp.eq.f32.partialorder %v8504_v28, inf  ;;  %v8517_v13 = vand.u32 2147483648, %v8504_v28  ;;  %vm8516_vm15 = vcmp.eq.f32.partialorder %v8504_v28, 0.0 }
0x2fa4   :  { %21149 = vrsqrt.f32 %v8503_v29  ;;  %vm8507_vm3 = vcmp.eq.f32.partialorder %v8503_v29, inf  ;;  %v8510_v57 = vand.u32 2147483648, %v8503_v29  ;;  %vm8509_vm4 = vcmp.eq.f32.partialorder %v8503_v29, 0.0 }
0x2fad   :  { %v21148_v50 = vpop.eup %21147 }
0x2fae   :  { %v21150_v60 = vpop.eup %21149  ;;  %v8513_v23 = vmul.f32 %v21148_v50, %v8504_v28 }
0x2faf   :  { %v8506_v61 = vmul.f32 %v21150_v60, %v8503_v29 }
0x2fb0   :  { %v8515_v59 = vsel %vm8514_vm14, %v8504_v28, %v8513_v23  ;;  %v22821_v23 = vld [vmem:[%s23577_s8] sm:$0xff] }
0x2fb1   :  { %v8518_v46 = vsel %vm8516_vm15, %v8517_v13, %v8515_v59  ;;  %v8508_v44 = vsel %vm8507_vm3, %v8503_v29, %v8506_v61  ;;  %v22818_v29 = vld [vmem:[%s23577_s8 + $0x8] sm:$0xff] }
0x2fb2   :  { %v8520_v54 = vadd.f32 1e-06, %v8518_v46  ;;  %v8511_v41 = vsel %vm8509_vm4, %v8510_v57, %v8508_v44  ;;  %v16665_v44 = vld [vmem:[%s23576_s3 + $0x5] ss:$0 sm:$0xff] }
0x2fb3   :  { %v8519_v53 = vadd.f32 1e-06, %v8511_v41 }
0x2fb4   :  { %21151 = vrcp.f32 %v8520_v54 }
0x2fb5   :  { %21153 = vrcp.f32 %v8519_v53 }
0x2fbe   :  { %v21152_v51 = vpop.eup %21151 }
0x2fbf   :  { %v21154_v25 = vpop.eup %21153  ;;  %v8524_v7 = vmul.f32 %v21152_v51, %v22724_v63  ;;  %v16629_v63 = vld [vmem:[%s23576_s3 + $0x4] ss:$0 sm:$0xff] }
0x2fc0   :  { %v8523_v24 = vmul.f32 %v21154_v25, %v22726_v21 }
0x2fc1   :  { %v8532_v8 = vmul.f32 %v16619_v6, %v8524_v7 }
0x2fc2   :  { %v8531_v55 = vmul.f32 %v16619_v6, %v8523_v24 }
0x2fc3   :  { %v22778_v11 = vadd.f32 %v16620_v12, %v8532_v8 }
0x2fc4   :  { %v22776_v20 = vadd.f32 %v16620_v12, %v8531_v55 }
0x2fc6   :  { %18980 = vmatprep.mubr.msk.f32.mxu1 %vm156_vm0, %v22776_v20 }
0x2fc7   :  { %18981 = vmatmul.mubr.msk.f32.vlgmr.msra.gmra.mrb[116].mxu1 %vm156_vm0, %v22778_v11 }
0x2fc8   :  { %20323 = vmatpush3.bf16.msra.mxu1 %v20320_v52  ;;  %19005 = vmatprep.mubr.msk.f32.mxu1 %vm156_vm0, %v22741_v48 }
0x2fc9   :  { %20325 = vmatprep.subr.bf16.mxu1 %v20324_v19 }
0x2fcc   :  { %20327 = vmatpush3.bf16.msra.mxu1 %v20324_v19 }
0x2fcf   :  { %19006 = vmatmul.mubr.msk.f32.vlgmr.msra.gmra.mrb[118].mxu1 %vm156_vm0, %v22738_v40 }
0x2fd0   :  { %19008 = vmatprep.mubr.msk.f32.mxu1 %vm156_vm0, %v22754_v4 }
0x2fd3   :  { %19009 = vmatmul.mubr.msk.f32.gmra.mrb[120].mxu1 %vm156_vm0, %v22750_v34 }
0x3009   :  { %v18993_v21 = vpop.f32.mrb[110].mxu0 }
0x300a   :  { %v8730_v30 = vadd.f32 %v18993_v21, %v16629_v63  ;;  %v8724_v15 = vpop.f32.mrb[111].mxu0 }
0x300b   :  { %v8725_v33 = vadd.f32 %v16629_v63, %v8724_v15 }
0x300d   :  { %v20328_v56 = vpack.c.bf16 %v8730_v30, %v8725_v33  ;;  %v18996_v17 = vpop.f32.mrb[112].mxu0 }
0x300e   :  { %v8740_v43 = vadd.f32 %v18996_v17, %v16629_v63  ;;  %v8734_v22 = vpop.f32.mrb[113].mxu0 }
0x300f   :  { %v8735_v16 = vadd.f32 %v16629_v63, %v8734_v22  ;;  %20330 = vmatprep.subr.msk.bf16.mxu0 %vm21596_vm2, %v20328_v56  ;;  %v16653_v22 = vld [vmem:[%s23574_s29 + $0x28] sm:$0xff] }
0x3010   :  { %20333 = vmatpush3.bf16.xpose.msk.msra.mxu0 %vm21596_vm2, %v20328_v56 }
0x3011   :  { %v20334_v36 = vpack.c.bf16 %v8740_v43, %v8735_v16  ;;  %v16652_v43 = vld [vmem:[%s23574_s29 + $0x20] sm:$0xff] }
0x3012   :  { %v20348_v16 = vpack.c.bf16 %v16653_v22, %v16652_v43  ;;  %v22892_v43 = vld [vmem:[%s23576_s3 + $0x2] ss:$0 sm:$0xff] }
0x3013   :  { %20336 = vmatprep.subr.msk.bf16.mxu0 %vm21596_vm2, %v20334_v36 }
0x3018   :  { %20339 = vmatpush3.bf16.xpose.msk.msra.mxu0 %vm21596_vm2, %v20334_v36 }
0x3019   :  { %20357 = vmatprep.subr.bf16.mxu0 %v20356_v39 }
0x309a   :  { %v18982_v3 = vpop.f32.mrb[116].mxu1 }
0x309b   :  { %v8624_v18 = vpop.f32.mrb[117].mxu1  ;;  %v8630_v14 = vadd.f32 %v18982_v3, %v16621_v2 }
0x309c   :  { %v8625_v32 = vadd.f32 %v16621_v2, %v8624_v18  ;;  %v16655_v2 = vld [vmem:[%s23574_s29 + $0x38] sm:$0xff] }
0x309e   :  { %19019 = vmatprep.mubr.msk.f32.mxu0 %vm450_vm1, %v8625_v32  ;;  %v16670_v32 = vld [vmem:[%s23574_s29 + $0x120] sm:$0xff] }
0x309f   :  { %19020 = vmatmul.mubr.msk.f32.vlgmr.msra.gmra.mrb[114].mxu0 %vm450_vm1, %v8630_v14  ;;  %v16671_v14 = vld [vmem:[%s23574_s29 + $0x128] sm:$0xff] }
0x30a0   :  { %20359 = vmatpush3.bf16.msra.mxu0 %v20356_v39  ;;  %19052 = vmatprep.mubr.msk.f32.mxu0 %vm156_vm0, %v22741_v48  ;;  %v16654_v39 = vld [vmem:[%s23574_s29 + $0x30] sm:$0xff] }
0x30a1   :  { %20361 = vmatprep.subr.bf16.mxu0 %v20360_v37  ;;  %v20352_v18 = vpack.c.bf16 %v16655_v2, %v16654_v39 }
0x30a2   :  { %v19007_v49 = vpop.f32.mrb[118].mxu1 }
0x30a3   :  { %v8828_v0 = vadd.f32 %v19007_v49, %v16639_v47  ;;  %v8822_v58 = vpop.f32.mrb[119].mxu1  ;;  %v16673_v49 = vld [vmem:[%s23574_s29 + $0x138] sm:$0xff] }
0x30a4   :  { %v8823_v62 = vadd.f32 %v16639_v47, %v8822_v58  ;;  %20363 = vmatpush3.bf16.msra.mxu0 %v20360_v37  ;;  %v20364_v37 = vpack.c.bf16 %v16671_v14, %v16670_v32  ;;  %v16693_v58 = vld [vmem:[%s23574_s29 + $0x40] sm:$0xff] }
0x30a6   :  { %v20340_v45 = vpack.c.bf16 %v8828_v0, %v8823_v62  ;;  %v19010_v26 = vpop.f32.mrb[120].mxu1  ;;  %v16694_v62 = vld [vmem:[%s23574_s29 + $0x48] sm:$0xff] }
0x30a7   :  { %v8838_v52 = vadd.f32 %v19010_v26, %v16639_v47  ;;  %v8832_v35 = vpop.f32.mrb[121].mxu1  ;;  %19053 = vmatmul.mubr.msk.f32.vlgmr.msra.gmra.mrb[116].mxu0 %vm156_vm0, %v22738_v40 }
0x30a8   :  { %v8833_v31 = vadd.f32 %v16639_v47, %v8832_v35  ;;  %20341 = vmatprep.subr.bf16.mxu1 %v20340_v45  ;;  %19055 = vmatprep.mubr.msk.f32.mxu0 %vm156_vm0, %v22754_v4  ;;  %v16672_v47 = vld [vmem:[%s23574_s29 + $0x130] sm:$0xff]  ;;  %v16657_v35 = vld [vmem:[%s23576_s3 + $0x1] ss:$0 sm:$0xff] }
0x30a9   :  { %20343 = vmatpush3.bf16.msra.mxu1 %v20340_v45  ;;  %v20368_v0 = vpack.c.bf16 %v16673_v49, %v16672_v47  ;;  %v20392_v45 = vpack.c.bf16 %v16694_v62, %v16693_v58 }
0x30aa   :  { %v20344_v28 = vpack.c.bf16 %v8838_v52, %v8833_v31 }
0x30ab   :  { %19056 = vmatmul.mubr.msk.f32.gmra.mrb[118].mxu0 %vm156_vm0, %v22750_v34 }
0x30ac   :  { %20345 = vmatprep.subr.bf16.mxu1 %v20344_v28 }
0x30ad   :  { %20347 = vmatpush3.bf16.msra.mxu1 %v20344_v28  ;;  %v16695_v28 = vld [vmem:[%s23574_s29 + $0x50] sm:$0xff] }
0x30ae   :  { %20349 = vmatprep.subr.bf16.mxu1 %v20348_v16 }
0x3172   :  { %v19021_v50 = vpop.f32.mrb[114].mxu0 }
0x3173   :  { %v8935_v60 = vmul.f32 0.35355338, %v19021_v50  ;;  %v8925_v13 = vpop.f32.mrb[115].mxu0  ;;  %v16696_v50 = vld [vmem:[%s23574_s29 + $0x58] sm:$0xff] }
0x3174   :  { %v8934_v61 = vmul.f32 0.35355338, %v8925_v13 }
0x3175   :  { %v8937_v59 = vadd.f32 %v8935_v60, %v22818_v29 }
0x3176   :  { %v8936_v57 = vadd.f32 %v8934_v61, %v22821_v23 }
0x3177   :  { %v8941_v46 = vsel %vm156_vm0, %v8937_v59, -inf }
0x3178   :  { %8942 = vmax.xlane.f32.xlu1 %v8941_v46  ;;  %v8938_v54 = vsel %vm156_vm0, %v8936_v57, -inf  ;;  %v16712_v46 = vld [vmem:[%s23574_s29 + $0x148] sm:$0xff] }
0x3179   :  { %8939 = vmax.xlane.f32.xlu0 %v8938_v54 }
0x317a   :  { %v19054_v41 = vpop.f32.mrb[116].mxu0 }
0x317b   :  { %v9215_v53 = vadd.f32 %v19054_v41, %v16665_v44  ;;  %v9209_v51 = vpop.f32.mrb[117].mxu0 }
0x317c   :  { %v9210_v6 = vadd.f32 %v16665_v44, %v9209_v51  ;;  %v16714_v51 = vld [vmem:[%s23574_s29 + $0x158] sm:$0xff] }
0x317e   :  { %v20372_v25 = vpack.c.bf16 %v9215_v53, %v9210_v6  ;;  %v19057_v7 = vpop.f32.mrb[118].mxu0  ;;  %v16713_v53 = vld [vmem:[%s23574_s29 + $0x150] sm:$0xff] }
0x317f   :  { %v9225_v24 = vadd.f32 %v19057_v7, %v16665_v44  ;;  %v9219_v12 = vpop.f32.mrb[119].mxu0 }
0x3180   :  { %v9220_v8 = vadd.f32 %v16665_v44, %v9219_v12  ;;  %20374 = vmatprep.subr.msk.bf16.mxu0 %vm21596_vm2, %v20372_v25  ;;  %v16675_v44 = vld [vmem:[%s23576_s3 + $0x9] ss:$0 sm:$0xff] }
0x3181   :  { %20377 = vmatpush3.bf16.xpose.msk.msra.mxu0 %vm21596_vm2, %v20372_v25 }
0x3182   :  { %v20378_v55 = vpack.c.bf16 %v9225_v24, %v9220_v8  ;;  %v20412_v24 = vpack.c.bf16 %v16714_v51, %v16713_v53  ;;  %v16701_v53 = vld [vmem:[%s23574_s29 + $0xc0] sm:$0xff]  ;;  %v16702_v51 = vld [vmem:[%s23574_s29 + $0xc8] sm:$0xff] }
0x3184   :  { %20380 = vmatprep.subr.msk.bf16.mxu0 %vm21596_vm2, %v20378_v55 }
0x3189   :  { %20383 = vmatpush3.bf16.xpose.msk.msra.mxu0 %vm21596_vm2, %v20378_v55 }
0x318a   :  { %20393 = vmatprep.subr.bf16.mxu0 %v20392_v45 }
0x3205   :  { %v8943_v10 = vpop.xlane.xlu1 %8942 }
0x3206   :  { %v8945_v9 = vsub.f32 %v8937_v59, %v8943_v10  ;;  %v8940_v19 = vpop.xlane.xlu0 %8939  ;;  %v20396_v59 = vpack.c.bf16 %v16696_v50, %v16695_v28 }
0x3207   :  { %v8944_v63 = vsub.f32 %v8936_v57, %v8940_v19  ;;  %v16711_v57 = vld [vmem:[%s23574_s29 + $0x140] sm:$0xff] }
0x3208   :  { %v8948_v21 = vmul.f32 1.442695, %v8945_v9  ;;  %v20408_v54 = vpack.c.bf16 %v16712_v46, %v16711_v57 }
0x3209   :  { %v8946_v30 = vmul.f32 1.442695, %v8944_v63 }
0x320a   :  { %21155 = vpow2.f32 %v8948_v21 }
0x320b   :  { %21157 = vpow2.f32 %v8946_v30 }
0x3214   :  { %v21156_v15 = vpop.eup %21155 }
0x3215   :  { %v21158_v33 = vpop.eup %21157  ;;  %v8953_v56 = vsel %vm156_vm0, %v21156_v15, 0.0 }
0x3216   :  { %8954 = vadd.xlane.f32.xlu1 %v8953_v56  ;;  %v8950_v17 = vsel %vm156_vm0, %v21158_v33, 0.0 }
0x3217   :  { %8951 = vadd.xlane.f32.xlu0 %v8950_v17 }
0x32a3   :  { %v8955_v36 = vpop.xlane.xlu1 %8954 }
0x32a4   :  { %21159 = vrcp.f32 %v8955_v36  ;;  %v8952_v42 = vpop.xlane.xlu0 %8951 }
0x32a5   :  { %21161 = vrcp.f32 %v8952_v42 }
0x32ae   :  { %v21160_v38 = vpop.eup %21159 }
0x32af   :  { %v21162_v3 = vpop.eup %21161  ;;  %v8959_v5 = vmul.f32 %v21160_v38, %v21156_v15  ;;  %v16716_v38 = vld [vmem:[%s23576_s3 + $0xa] ss:$0 sm:$0xff] }
0x32b0   :  { %v8958_v1 = vmul.f32 %v21162_v3, %v21158_v33 }
0x32b2   :  { %19030 = vmatprep.mubr.msk.f32.mxu1 %vm156_vm0, %v8958_v1 }
0x32b3   :  { %19031 = vmatmul.mubr.msk.f32.vlgmr.msra.gmra.mrb[122].mxu1 %vm156_vm0, %v8959_v5 }
0x32b4   :  { %20351 = vmatpush3.bf16.msra.mxu1 %v20348_v16  ;;  %19041 = vmatprep.mubr.msk.f32.mxu1 %vm156_vm0, %v22776_v20 }
0x32b5   :  { %20353 = vmatprep.subr.bf16.mxu1 %v20352_v18 }
0x32b8   :  { %20355 = vmatpush3.bf16.msra.mxu1 %v20352_v18 }
0x32b9   :  { %20365 = vmatprep.subr.bf16.mxu1 %v20364_v37 }
0x32bb   :  { %19042 = vmatmul.mubr.msk.f32.vlgmr.msra.gmra.mrb[124].mxu1 %vm156_vm0, %v22778_v11 }
0x32bc   :  { %20367 = vmatpush3.bf16.msra.mxu1 %v20364_v37  ;;  %19066 = vmatprep.mubr.msk.f32.mxu1 %vm156_vm0, %v22741_v48 }
0x32bd   :  { %20369 = vmatprep.subr.bf16.mxu1 %v20368_v0 }
0x32c0   :  { %20371 = vmatpush3.bf16.msra.mxu1 %v20368_v0 }
0x32c3   :  { %19067 = vmatmul.mubr.msk.f32.vlgmr.msra.gmra.mrb[126].mxu1 %vm156_vm0, %v22738_v40 }
0x32c4   :  { %19069 = vmatprep.mubr.msk.f32.mxu1 %vm156_vm0, %v22754_v4 }
0x32c7   :  { %19070 = vmatmul.mubr.msk.f32.gmra.mrb[128].mxu1 %vm156_vm0, %v22750_v34 }
0x3386   :  { %v22862_v26 = vpop.f32.mrb[122].mxu1 }
0x3387   :  { %v22864_v52 = vpop.f32.mrb[123].mxu1 }
0x338e   :  { %v19043_v31 = vpop.f32.mrb[124].mxu1 }
0x338f   :  { %v9121_v60 = vpop.f32.mrb[125].mxu1  ;;  %v9127_v61 = vadd.f32 %v19043_v31, %v16657_v35 }
0x3390   :  { %v9122_v13 = vadd.f32 %v16657_v35, %v9121_v60 }
0x3392   :  { %19080 = vmatprep.mubr.msk.f32.mxu0 %vm450_vm1, %v9122_v13  ;;  %v16688_v13 = vld [vmem:[%s23578_s14 + $0x8] sm:$0xff] }
0x3393   :  { %19081 = vmatmul.mubr.msk.f32.vlgmr.msra.gmra.mrb[120].mxu0 %vm450_vm1, %v9127_v61 }
0x3394   :  { %20395 = vmatpush3.bf16.msra.mxu0 %v20392_v45  ;;  %19112 = vmatprep.mubr.msk.f32.mxu0 %vm156_vm0, %v22776_v20 }
0x3395   :  { %20397 = vmatprep.subr.bf16.mxu0 %v20396_v59 }
0x3396   :  { %v19068_v41 = vpop.f32.mrb[126].mxu1 }
0x3397   :  { %v9313_v6 = vadd.f32 %v19068_v41, %v16675_v44  ;;  %v9307_v25 = vpop.f32.mrb[127].mxu1  ;;  %v9041_v41 = vld [vmem:[%s23578_s14] sm:$0xff] }
0x3398   :  { %v9308_v7 = vadd.f32 %v16675_v44, %v9307_v25  ;;  %20399 = vmatpush3.bf16.msra.mxu0 %v20396_v59 }
0x3399   :  { %20409 = vmatprep.subr.bf16.mxu0 %v20408_v54 }
0x339a   :  { %v20384_v12 = vpack.c.bf16 %v9313_v6, %v9308_v7  ;;  %v19071_v8 = vpop.f32.mrb[128].mxu1  ;;  %v20400_v7 = vpack.c.bf16 %v16702_v51, %v16701_v53  ;;  %v16753_v53 = vld [vmem:[%s23574_s29 + $0x178] sm:$0xff] }
0x339b   :  { %v9323_v55 = vadd.f32 %v19071_v8, %v16675_v44  ;;  %19113 = vmatmul.mubr.msk.f32.vlgmr.msra.gmra.mrb[122].mxu0 %vm156_vm0, %v22778_v11  ;;  %v9317_v10 = vpop.f32.mrb[129].mxu1 }
0x339c   :  { %v9318_v9 = vadd.f32 %v16675_v44, %v9317_v10  ;;  %20411 = vmatpush3.bf16.msra.mxu0 %v20408_v54  ;;  %19137 = vmatprep.mubr.msk.f32.mxu0 %vm156_vm0, %v22741_v48 }
0x339d   :  { %20385 = vmatprep.subr.bf16.mxu1 %v20384_v12  ;;  %20413 = vmatprep.subr.bf16.mxu0 %v20412_v24 }
0x339e   :  { %v20388_v19 = vpack.c.bf16 %v9323_v55, %v9318_v9  ;;  %20387 = vmatpush3.bf16.msra.mxu1 %v20384_v12  ;;  %v16704_v12 = vld [vmem:[%s23574_s29 + $0xd8] sm:$0xff] }
0x33a0   :  { %20415 = vmatpush3.bf16.msra.mxu0 %v20412_v24  ;;  %20389 = vmatprep.subr.bf16.mxu1 %v20388_v19  ;;  %v16703_v24 = vld [vmem:[%s23574_s29 + $0xd0] sm:$0xff] }
0x33a1   :  { %v20404_v8 = vpack.c.bf16 %v16704_v12, %v16703_v24  ;;  %v16742_v24 = vld [vmem:[%s23574_s29 + $0xf0] sm:$0xff]  ;;  %v16743_v12 = vld [vmem:[%s23574_s29 + $0xf8] sm:$0xff] }
0x33a2   :  { %20391 = vmatpush3.bf16.msra.mxu1 %v20388_v19 }
0x33a3   :  { %19138 = vmatmul.mubr.msk.f32.vlgmr.msra.gmra.mrb[124].mxu0 %vm156_vm0, %v22738_v40  ;;  %19094 = vmatprep.subr.mxu1 %v16688_v13 }
0x33a4   :  { %19140 = vmatprep.mubr.msk.f32.mxu0 %vm156_vm0, %v22754_v4 }
0x33a7   :  { %19141 = vmatmul.mubr.msk.f32.gmra.mrb[126].mxu0 %vm156_vm0, %v22750_v34 }
0x3466   :  { %v19082_v63 = vpop.f32.mrb[120].mxu0 }
0x3467   :  { %v9420_v21 = vmul.f32 0.35355338, %v19082_v63  ;;  %v9410_v30 = vpop.f32.mrb[121].mxu0 }
0x3468   :  { %v9419_v15 = vmul.f32 0.35355338, %v9410_v30 }
0x3469   :  { %v9422_v33 = vadd.f32 %v9420_v21, %v22818_v29 }
0x346a   :  { %v9421_v56 = vadd.f32 %v9419_v15, %v22821_v23 }
0x346b   :  { %v9426_v17 = vsel %vm156_vm0, %v9422_v33, -inf }
0x346c   :  { %9427 = vmax.xlane.f32.xlu1 %v9426_v17  ;;  %v9423_v22 = vsel %vm156_vm0, %v9421_v56, -inf }
0x346d   :  { %9424 = vmax.xlane.f32.xlu0 %v9423_v22 }
0x346e   :  { %v19114_v16 = vpop.f32.mrb[122].mxu0 }
0x346f   :  { %v22896_v36 = vadd.f32 %v19114_v16, %v22892_v43  ;;  %v22898_v42 = vpop.f32.mrb[123].mxu0 }
0x3476   :  { %v19139_v39 = vpop.f32.mrb[124].mxu0 }
0x3477   :  { %v9961_v2 = vadd.f32 %v19139_v39, %v16716_v38  ;;  %v9955_v3 = vpop.f32.mrb[125].mxu0 }
0x3478   :  { %v9956_v1 = vadd.f32 %v16716_v38, %v9955_v3 }
0x347a   :  { %v20428_v5 = vpack.c.bf16 %v9961_v2, %v9956_v1  ;;  %v19142_v18 = vpop.f32.mrb[126].mxu0 }
0x347b   :  { %v9971_v32 = vadd.f32 %v19142_v18, %v16716_v38  ;;  %v9965_v14 = vpop.f32.mrb[127].mxu0 }
0x347c   :  { %v9966_v37 = vadd.f32 %v16716_v38, %v9965_v14  ;;  %20429 = vmatprep.subr.bf16.mxu0 %v20428_v5 }
0x347d   :  { %20431 = vmatpush3.bf16.msra.mxu0 %v20428_v5 }
0x347e   :  { %v20432_v47 = vpack.c.bf16 %v9971_v32, %v9966_v37 }
0x3480   :  { %20433 = vmatprep.subr.bf16.mxu0 %v20432_v47 }
0x3481   :  { %20435 = vmatpush3.bf16.msra.mxu0 %v20432_v47 }
0x34f9   :  { %v9428_v49 = vpop.xlane.xlu1 %9427 }
0x34fa   :  { %v9430_v0 = vsub.f32 %v9422_v33, %v9428_v49  ;;  %v9425_v58 = vpop.xlane.xlu0 %9424 }
0x34fb   :  { %v9429_v62 = vsub.f32 %v9421_v56, %v9425_v58  ;;  %v16733_v58 = vld [vmem:[%s23574_s29 + $0x68] sm:$0xff] }
0x34fc   :  { %v9433_v45 = vmul.f32 1.442695, %v9430_v0  ;;  %v16732_v0 = vld [vmem:[%s23574_s29 + $0x60] sm:$0xff] }
0x34fd   :  { %v9431_v35 = vmul.f32 1.442695, %v9429_v62  ;;  %v20436_v62 = vpack.c.bf16 %v16733_v58, %v16732_v0 }
0x34fe   :  { %21163 = vpow2.f32 %v9433_v45  ;;  %v16729_v45 = vld [vmem:[%s23578_s14 + $0x10] sm:$0xff] }
0x34ff   :  { %21165 = vpow2.f32 %v9431_v35  ;;  %20437 = vmatprep.subr.bf16.mxu0 %v20436_v62 }
0x3508   :  { %v21164_v31 = vpop.eup %21163 }
0x3509   :  { %v21166_v28 = vpop.eup %21165  ;;  %v9438_v50 = vsel %vm156_vm0, %v21164_v31, 0.0 }
0x350a   :  { %9439 = vadd.xlane.f32.xlu1 %v9438_v50  ;;  %v9435_v60 = vsel %vm156_vm0, %v21166_v28, 0.0  ;;  %v16734_v50 = vld [vmem:[%s23574_s29 + $0x70] sm:$0xff] }
0x350b   :  { %9436 = vadd.xlane.f32.xlu0 %v9435_v60  ;;  %v16735_v60 = vld [vmem:[%s23574_s29 + $0x78] sm:$0xff] }
0x3597   :  { %v9440_v61 = vpop.xlane.xlu1 %9439 }
0x3598   :  { %21167 = vrcp.f32 %v9440_v61  ;;  %v9437_v59 = vpop.xlane.xlu0 %9436 }
0x3599   :  { %21169 = vrcp.f32 %v9437_v59 }
0x35a2   :  { %v21168_v57 = vpop.eup %21167 }
0x35a3   :  { %v21170_v46 = vpop.eup %21169  ;;  %v9444_v54 = vmul.f32 %v21168_v57, %v21164_v31  ;;  %v20440_v57 = vpack.c.bf16 %v16735_v60, %v16734_v50 }
0x35a4   :  { %v9443_v44 = vmul.f32 %v21170_v46, %v21166_v28  ;;  %v16750_v46 = vld [vmem:[%s23574_s29 + $0x160] sm:$0xff] }
0x35a6   :  { %19091 = vmatprep.mubr.msk.f32.mxu1 %vm156_vm0, %v9443_v44  ;;  %v16751_v44 = vld [vmem:[%s23574_s29 + $0x168] sm:$0xff] }
0x35a7   :  { %19092 = vmatmul.mubr.msk.f32.vlgmr.msra.gmra.mrb[130].mxu1 %vm156_vm0, %v9444_v54  ;;  %v20452_v54 = vpack.c.bf16 %v16751_v44, %v16750_v46 }
0x35a8   :  { %19095 = vmatpush3.msra.mxu1 %v16688_v13 }
0x35a9   :  { %19099 = vmatprep.subr.mxu1 %v9041_v41 }
0x367a   :  { %v19093_v6 = vpop.f32.mrb[130].mxu1 }
0x367b   :  { %v9517_v25 = vpop.f32.mrb[131].mxu1 }
0x367c   :  { %19096 = vmatprep.mubr.msk.f32.mxu1 %vm450_vm1, %v9517_v25  ;;  %v16741_v25 = vld [vmem:[%s23574_s29 + $0xe8] sm:$0xff] }
0x367d   :  { %19097 = vmatmul.mubr.msk.f32.vlgmr.msra.gmra.mrb[132].mxu1 %vm450_vm1, %v19093_v6  ;;  %v16740_v6 = vld [vmem:[%s23574_s29 + $0xe0] sm:$0xff] }
0x367e   :  { %19100 = vmatpush3.msra.mxu1 %v9041_v41  ;;  %19101 = vmatprep.mubr.msk.f32.mxu1 %vm450_vm1, %v22864_v52  ;;  %v9770_v52 = vadd.f32 %v22892_v43, %v22898_v42  ;;  %v16752_v41 = vld [vmem:[%s23574_s29 + $0x170] sm:$0xff] }
0x367f   :  { %20401 = vmatprep.subr.bf16.mxu1 %v20400_v7  ;;  %v20456_v51 = vpack.c.bf16 %v16753_v53, %v16752_v41 }
0x3685   :  { %19102 = vmatmul.mubr.msk.f32.vlgmr.msra.gmra.mrb[132].mxu1 %vm450_vm1, %v22862_v26  ;;  %v16706_v26 = vld [vmem:[%s23576_s3 + $0x6] ss:$0 sm:$0xff] }
0x3686   :  { %20403 = vmatpush3.bf16.msra.mxu1 %v20400_v7  ;;  %19123 = vmatprep.mubr.msk.f32.mxu1 %vm156_vm0, %v22741_v48  ;;  %v20444_v7 = vpack.c.bf16 %v16741_v25, %v16740_v6 }
0x3687   :  { %20405 = vmatprep.subr.bf16.mxu1 %v20404_v8 }
0x368a   :  { %20407 = vmatpush3.bf16.msra.mxu1 %v20404_v8 }
0x368d   :  { %19124 = vmatmul.mubr.msk.f32.vlgmr.msra.gmra.mrb[134].mxu1 %vm156_vm0, %v22738_v40 }
0x368e   :  { %19126 = vmatprep.mubr.msk.f32.mxu1 %vm156_vm0, %v22754_v4 }
0x3691   :  { %19127 = vmatmul.mubr.msk.f32.gmra.mrb[136].mxu1 %vm156_vm0, %v22750_v34 }
0x3692   :  { %19151 = vmatprep.mubr.msk.f32.mxu1 %vm450_vm1, %v9770_v52 }
0x3760   :  { %v19125_v55 = vpop.f32.mrb[134].mxu1 }
0x3761   :  { %v9863_v10 = vadd.f32 %v19125_v55, %v16706_v26  ;;  %v9857_v9 = vpop.f32.mrb[135].mxu1  ;;  %v16737_v55 = vld [vmem:[%s23576_s3 + $0x3] ss:$0 sm:$0xff] }
0x3762   :  { %v9858_v19 = vadd.f32 %v16706_v26, %v9857_v9 }
0x3764   :  { %v20416_v63 = vpack.c.bf16 %v9863_v10, %v9858_v19  ;;  %v19128_v21 = vpop.f32.mrb[136].mxu1 }
0x3765   :  { %v9873_v30 = vadd.f32 %v19128_v21, %v16706_v26  ;;  %v9867_v15 = vpop.f32.mrb[137].mxu1  ;;  %v16755_v21 = vld [vmem:[%s23576_s3 + $0xb] ss:$0 sm:$0xff] }
0x3766   :  { %v9868_v33 = vadd.f32 %v16706_v26, %v9867_v15  ;;  %20418 = vmatprep.subr.msk.bf16.mxu1 %vm21596_vm2, %v20416_v63  ;;  %v20448_v26 = vpack.c.bf16 %v16743_v12, %v16742_v24 }
0x3767   :  { %20421 = vmatpush3.bf16.xpose.msk.msra.mxu1 %vm21596_vm2, %v20416_v63 }
0x3768   :  { %v20422_v56 = vpack.c.bf16 %v9873_v30, %v9868_v33 }
0x376a   :  { %20424 = vmatprep.subr.msk.bf16.mxu1 %vm21596_vm2, %v20422_v56 }
0x376f   :  { %20427 = vmatpush3.bf16.xpose.msk.msra.mxu1 %vm21596_vm2, %v20422_v56 }
0x3770   :  { %19165 = vmatprep.subr.mxu1 %v16729_v45 }
0x3776   :  { %19152 = vmatmul.mubr.msk.f32.vlgmr.msra.gmra.mrb[138].mxu1 %vm450_vm1, %v22896_v36 }
0x3777   :  { %19166 = vmatpush3.msra.mxu1 %v16729_v45 }
0x3778   :  { %20445 = vmatprep.subr.bf16.mxu1 %v20444_v7 }
0x3849   :  { %v19153_v17 = vpop.f32.mrb[138].mxu1 }
0x384a   :  { %v10068_v43 = vmul.f32 0.35355338, %v19153_v17  ;;  %v10058_v22 = vpop.f32.mrb[139].mxu1 }
0x384b   :  { %v10067_v16 = vmul.f32 0.35355338, %v10058_v22 }
0x384c   :  { %v10070_v42 = vadd.f32 %v10068_v43, %v22818_v29 }
0x384d   :  { %v10069_v38 = vadd.f32 %v10067_v16, %v22821_v23 }
0x384e   :  { %v10074_v39 = vsel %vm156_vm0, %v10070_v42, -inf }
0x384f   :  { %10075 = vmax.xlane.f32.xlu1 %v10074_v39  ;;  %v10071_v2 = vsel %vm156_vm0, %v10069_v38, -inf  ;;  %v16745_v39 = vld [vmem:[%s23576_s3 + $0x7] ss:$0 sm:$0xff] }
0x3850   :  { %10072 = vmax.xlane.f32.xlu0 %v10071_v2 }
0x38dc   :  { %v10076_v3 = vpop.xlane.xlu1 %10075 }
0x38dd   :  { %v10078_v1 = vsub.f32 %v10070_v42, %v10076_v3  ;;  %v10073_v5 = vpop.xlane.xlu0 %10072 }
0x38de   :  { %v10077_v36 = vsub.f32 %v10069_v38, %v10073_v5 }
0x38df   :  { %v10081_v18 = vmul.f32 1.442695, %v10078_v1 }
0x38e0   :  { %v10079_v32 = vmul.f32 1.442695, %v10077_v36 }
0x38e1   :  { %21171 = vpow2.f32 %v10081_v18 }
0x38e2   :  { %21173 = vpow2.f32 %v10079_v32 }
0x38eb   :  { %v21172_v14 = vpop.eup %21171 }
0x38ec   :  { %v21174_v37 = vpop.eup %21173  ;;  %v10086_v47 = vsel %vm156_vm0, %v21172_v14, 0.0 }
0x38ed   :  { %10087 = vadd.xlane.f32.xlu1 %v10086_v47  ;;  %v10083_v49 = vsel %vm156_vm0, %v21174_v37, 0.0 }
0x38ee   :  { %10084 = vadd.xlane.f32.xlu0 %v10083_v49 }
0x397a   :  { %v10088_v35 = vpop.xlane.xlu1 %10087 }
0x397b   :  { %21175 = vrcp.f32 %v10088_v35  ;;  %v10085_v31 = vpop.xlane.xlu0 %10084 }
0x397c   :  { %21177 = vrcp.f32 %v10085_v31 }
0x3985   :  { %v21176_v28 = vpop.eup %21175 }
0x3986   :  { %v21178_v13 = vpop.eup %21177  ;;  %v10092_v59 = vmul.f32 %v21176_v28, %v21172_v14 }
0x3987   :  { %v10091_v61 = vmul.f32 %v21178_v13, %v21174_v37 }
0x3989   :  { %19162 = vmatprep.mubr.msk.f32.mxu0 %vm156_vm0, %v10091_v61 }
0x398a   :  { %19163 = vmatmul.mubr.msk.f32.vlgmr.msra.gmra.mrb[128].mxu0 %vm156_vm0, %v10092_v59 }
0x398b   :  { %20439 = vmatpush3.bf16.msra.mxu0 %v20436_v62  ;;  %19178 = vmatprep.mubr.msk.f32.mxu0 %vm156_vm0, %v22776_v20 }
0x398c   :  { %20441 = vmatprep.subr.bf16.mxu0 %v20440_v57 }
0x398f   :  { %20443 = vmatpush3.bf16.msra.mxu0 %v20440_v57 }
0x3990   :  { %20453 = vmatprep.subr.bf16.mxu0 %v20452_v54 }
0x3992   :  { %19179 = vmatmul.mubr.msk.f32.vlgmr.msra.gmra.mrb[130].mxu0 %vm156_vm0, %v22778_v11 }
0x3993   :  { %20455 = vmatpush3.bf16.msra.mxu0 %v20452_v54  ;;  %19203 = vmatprep.mubr.msk.f32.mxu0 %vm156_vm0, %v22741_v48  ;;  %v16768_v54 = vld [vmem:[%s23578_s14 + $0x18] sm:$0xff] }
0x3994   :  { %20457 = vmatprep.subr.bf16.mxu0 %v20456_v51 }
0x3997   :  { %20459 = vmatpush3.bf16.msra.mxu0 %v20456_v51 }
0x399a   :  { %19204 = vmatmul.mubr.msk.f32.vlgmr.msra.gmra.mrb[132].mxu0 %vm156_vm0, %v22738_v40 }
0x399b   :  { %19206 = vmatprep.mubr.msk.f32.mxu0 %vm156_vm0, %v22754_v4 }
0x399e   :  { %19207 = vmatmul.mubr.msk.f32.gmra.mrb[134].mxu0 %vm156_vm0, %v22750_v34 }
0x3a5d   :  { %v19164_v8 = vpop.f32.mrb[128].mxu0 }
0x3a5e   :  { %v10165_v52 = vpop.f32.mrb[129].mxu0 }
0x3a5f   :  { %19167 = vmatprep.mubr.msk.f32.mxu1 %vm450_vm1, %v10165_v52 }
0x3a60   :  { %19168 = vmatmul.mubr.msk.f32.vlgmr.msra.gmra.mrb[132].mxu1 %vm450_vm1, %v19164_v8  ;;  %v16771_v8 = vld [vmem:[%s23579_s19] ss:$0 sm:$0xff] }
0x3a61   :  { %20447 = vmatpush3.bf16.msra.mxu1 %v20444_v7  ;;  %19189 = vmatprep.mubr.msk.f32.mxu1 %vm156_vm0, %v22741_v48 }
0x3a62   :  { %20449 = vmatprep.subr.bf16.mxu1 %v20448_v26 }
0x3a65   :  { %v19180_v10 = vpop.f32.mrb[130].mxu0  ;;  %20451 = vmatpush3.bf16.msra.mxu1 %v20448_v26 }
0x3a66   :  { %v10344_v9 = vadd.f32 %v19180_v10, %v16737_v55  ;;  %v10338_v19 = vpop.f32.mrb[131].mxu0 }
0x3a67   :  { %v10339_v63 = vadd.f32 %v16737_v55, %v10338_v19 }
0x3a68   :  { %19190 = vmatmul.mubr.msk.f32.vlgmr.msra.gmra.mrb[140].mxu1 %vm156_vm0, %v22738_v40 }
0x3a69   :  { %19192 = vmatprep.mubr.msk.f32.mxu1 %vm156_vm0, %v22754_v4 }
0x3a6c   :  { %19193 = vmatmul.mubr.msk.f32.gmra.mrb[142].mxu1 %vm156_vm0, %v22750_v34 }
0x3a6d   :  { %v19205_v30 = vpop.f32.mrb[132].mxu0  ;;  %19217 = vmatprep.mubr.msk.f32.mxu1 %vm450_vm1, %v10339_v63 }
0x3a6e   :  { %v10530_v15 = vadd.f32 %v19205_v30, %v16755_v21  ;;  %v10524_v33 = vpop.f32.mrb[133].mxu0 }
0x3a6f   :  { %v10525_v56 = vadd.f32 %v16755_v21, %v10524_v33 }
0x3a71   :  { %v20472_v17 = vpack.c.bf16 %v10530_v15, %v10525_v56  ;;  %v19208_v43 = vpop.f32.mrb[134].mxu0 }
0x3a72   :  { %v10540_v22 = vadd.f32 %v19208_v43, %v16755_v21  ;;  %v10534_v16 = vpop.f32.mrb[135].mxu0 }
0x3a73   :  { %v10535_v42 = vadd.f32 %v16755_v21, %v10534_v16  ;;  %20473 = vmatprep.subr.bf16.mxu0 %v20472_v17 }
0x3a74   :  { %20475 = vmatpush3.bf16.msra.mxu0 %v20472_v17 }
0x3a75   :  { %v20476_v38 = vpack.c.bf16 %v10540_v22, %v10535_v42  ;;  %v10898_v42 = vld [vmem:[%s23580_s24] sm:$0xff] }
0x3a77   :  { %20477 = vmatprep.subr.bf16.mxu0 %v20476_v38 }
0x3a78   :  { %20479 = vmatpush3.bf16.msra.mxu0 %v20476_v38  ;;  %v10899_v38 = vld [vmem:[%s23580_s24 + $0x8] sm:$0xff] }
0x3b3b   :  { %v19191_v2 = vpop.f32.mrb[140].mxu1 }
0x3b3c   :  { %v10432_v3 = vadd.f32 %v19191_v2, %v16745_v39  ;;  %v10426_v1 = vpop.f32.mrb[141].mxu1  ;;  %v20480_v2 = vpack.c.bf16 %v10899_v38, %v10898_v42 }
0x3b3d   :  { %v10427_v5 = vadd.f32 %v16745_v39, %v10426_v1 }
0x3b3e   :  { %20481 = vmatprep.subr.bf16.mxu0 %v20480_v2 }
0x3b3f   :  { %v20460_v36 = vpack.c.bf16 %v10432_v3, %v10427_v5  ;;  %v19194_v18 = vpop.f32.mrb[142].mxu1  ;;  %v10901_v3 = vld [vmem:[%s23580_s24 + $0x18] sm:$0xff]  ;;  %v10992_v5 = vld [vmem:[%s23581_s30] sm:$0xff] }
0x3b40   :  { %v10442_v32 = vadd.f32 %v19194_v18, %v16745_v39  ;;  %v10436_v14 = vpop.f32.mrb[143].mxu1 }
0x3b41   :  { %v10437_v37 = vadd.f32 %v16745_v39, %v10436_v14  ;;  %20462 = vmatprep.subr.msk.bf16.mxu1 %vm21596_vm2, %v20460_v36  ;;  %v10900_v39 = vld [vmem:[%s23580_s24 + $0x10] sm:$0xff] }
0x3b42   :  { %20465 = vmatpush3.bf16.xpose.msk.msra.mxu1 %vm21596_vm2, %v20460_v36  ;;  %v20484_v1 = vpack.c.bf16 %v10901_v3, %v10900_v39  ;;  %v10993_v36 = vld [vmem:[%s23581_s30 + $0x8] sm:$0xff] }
0x3b43   :  { %v20466_v47 = vpack.c.bf16 %v10442_v32, %v10437_v37  ;;  %v20488_v18 = vpack.c.bf16 %v10993_v36, %v10992_v5 }
0x3b45   :  { %20468 = vmatprep.subr.msk.bf16.mxu1 %vm21596_vm2, %v20466_v47 }
0x3b4a   :  { %20471 = vmatpush3.bf16.xpose.msk.msra.mxu1 %vm21596_vm2, %v20466_v47 }
0x3b4b   :  { %19231 = vmatprep.subr.mxu1 %v16768_v54 }
0x3b51   :  { %19218 = vmatmul.mubr.msk.f32.vlgmr.msra.gmra.mrb[144].mxu1 %vm450_vm1, %v10344_v9 }
0x3b52   :  { %19232 = vmatpush3.msra.mxu1 %v16768_v54 }
0x3c24   :  { %v19219_v49 = vpop.f32.mrb[144].mxu1 }
0x3c25   :  { %v10637_v0 = vmul.f32 0.35355338, %v19219_v49  ;;  %v10627_v58 = vpop.f32.mrb[145].mxu1 }
0x3c26   :  { %v10636_v62 = vmul.f32 0.35355338, %v10627_v58 }
0x3c27   :  { %v10639_v45 = vadd.f32 %v10637_v0, %v22818_v29 }
0x3c28   :  { %v10638_v35 = vadd.f32 %v10636_v62, %v22821_v23 }
0x3c29   :  { %v10643_v31 = vsel %vm156_vm0, %v10639_v45, -inf }
0x3c2a   :  { %10644 = vmax.xlane.f32.xlu1 %v10643_v31  ;;  %v10640_v28 = vsel %vm156_vm0, %v10638_v35, -inf }
0x3c2b   :  { %10641 = vmax.xlane.f32.xlu0 %v10640_v28 }
0x3cb7   :  { %v10645_v50 = vpop.xlane.xlu1 %10644 }
0x3cb8   :  { %v10647_v60 = vsub.f32 %v10639_v45, %v10645_v50  ;;  %v10642_v13 = vpop.xlane.xlu0 %10641 }
0x3cb9   :  { %v10646_v61 = vsub.f32 %v10638_v35, %v10642_v13 }
0x3cba   :  { %v10650_v59 = vmul.f32 1.442695, %v10647_v60 }
0x3cbb   :  { %v10648_v57 = vmul.f32 1.442695, %v10646_v61 }
0x3cbc   :  { %21179 = vpow2.f32 %v10650_v59 }
0x3cbd   :  { %21181 = vpow2.f32 %v10648_v57  ;;  %v16773_v57 = vld [vmem:[%s23582_s6] ss:$0 sm:$0xff] }
0x3cc6   :  { %v21180_v46 = vpop.eup %21179 }
0x3cc7   :  { %v21182_v44 = vpop.eup %21181  ;;  %v10655_v29 = vsel %vm156_vm0, %v21180_v46, 0.0 }
0x3cc8   :  { %10656 = vadd.xlane.f32.xlu1 %v10655_v29  ;;  %v10652_v23 = vsel %vm156_vm0, %v21182_v44, 0.0 }
0x3cc9   :  { %10653 = vadd.xlane.f32.xlu0 %v10652_v23  ;;  %v16774_v23 = vld [vmem:[%s23582_s6 + $0x1] ss:$0 sm:$0xff] }
0x3d55   :  { %v10657_v41 = vpop.xlane.xlu1 %10656 }
0x3d56   :  { %21183 = vrcp.f32 %v10657_v41  ;;  %v10654_v53 = vpop.xlane.xlu0 %10653 }
0x3d57   :  { %21185 = vrcp.f32 %v10654_v53  ;;  %v10994_v53 = vld [vmem:[%s23581_s30 + $0x10] sm:$0xff] }
0x3d60   :  { %v21184_v51 = vpop.eup %21183 }
0x3d61   :  { %v21186_v6 = vpop.eup %21185  ;;  %v10661_v7 = vmul.f32 %v21184_v51, %v21180_v46  ;;  %v10995_v51 = vld [vmem:[%s23581_s30 + $0x18] sm:$0xff] }
0x3d62   :  { %v10660_v25 = vmul.f32 %v21186_v6, %v21182_v44 }
0x3d64   :  { %19228 = vmatprep.mubr.msk.f32.mxu0 %vm156_vm0, %v10660_v25 }
0x3d65   :  { %19229 = vmatmul.mubr.msk.f32.vlgmr.msra.gmra.mrb[136].mxu0 %vm156_vm0, %v10661_v7  ;;  %v20492_v7 = vpack.c.bf16 %v10995_v51, %v10994_v53 }
0x3d66   :  { %20483 = vmatpush3.bf16.msra.mxu0 %v20480_v2 }
0x3d67   :  { %20485 = vmatprep.subr.bf16.mxu0 %v20484_v1 }
0x3d6a   :  { %20487 = vmatpush3.bf16.msra.mxu0 %v20484_v1 }
0x3d6b   :  { %20489 = vmatprep.subr.bf16.mxu0 %v20488_v18 }
0x3e38   :  { %v19230_v24 = vpop.f32.mrb[136].mxu0 }
0x3e39   :  { %v10734_v12 = vpop.f32.mrb[137].mxu0 }
0x3e3a   :  { %19233 = vmatprep.mubr.msk.f32.mxu1 %vm450_vm1, %v10734_v12  ;;  %v10997_v12 = vld [vmem:[%s23581_s30 + $0x28] sm:$0xff] }
0x3e3b   :  { %19234 = vmatmul.mubr.msk.f32.vlgmr.msra.gmra.mrb[132].mxu1 %vm450_vm1, %v19230_v24  ;;  %v10996_v24 = vld [vmem:[%s23581_s30 + $0x20] sm:$0xff] }
0x3f0e   :  { %v19235_v52 = vpop.f32.mrb[132].mxu1 }
0x3f0f   :  { %v10836_v26 = vadd.f32 %v19235_v52, %v16771_v8  ;;  %v10817_v55 = vpop.f32.mrb[133].mxu1  ;;  %v10998_v52 = vld [vmem:[%s23581_s30 + $0x30] sm:$0xff] }
0x3f10   :  { %v10835_v10 = vadd.f32 %v16771_v8, %v10817_v55  ;;  %v20496_v8 = vpack.c.bf16 %v10997_v12, %v10996_v24 }
0x3f11   :  { %v10838_v9 = vadd.f32 %v10836_v26, %v22778_v11  ;;  %v10999_v26 = vld [vmem:[%s23581_s30 + $0x38] sm:$0xff] }
0x3f12   :  { %v10837_v19 = vadd.f32 %v10835_v10, %v22776_v20  ;;  %v20500_v55 = vpack.c.bf16 %v10999_v26, %v10998_v52  ;;  %v16775_v10 = vld [vmem:[%s23583_s12] ss:$0 sm:$0xff] }
0x3f13   :  { %v10845_v63 = vsel %vm156_vm0, %v10838_v9, 0.0 }
0x3f14   :  { %10846 = vadd.xlane.f32.xlu1 %v10845_v63  ;;  %v10842_v21 = vsel %vm156_vm0, %v10837_v19, 0.0 }
0x3f15   :  { %10843 = vadd.xlane.f32.xlu0 %v10842_v21 }
0x3fa1   :  { %v10847_v30 = vpop.xlane.xlu1 %10846 }
0x3fa2   :  { %v10849_v15 = vmul.f32 0.03125, %v10847_v30  ;;  %v10844_v33 = vpop.xlane.xlu0 %10843 }
0x3fa3   :  { %v10848_v56 = vmul.f32 0.03125, %v10844_v33  ;;  %v16778_v33 = vld [vmem:[%s21536_s27] ss:$0 sm:$0xff] }
0x3fa4   :  { %v10851_v17 = vsub.f32 %v10838_v9, %v10849_v15 }
0x3fa5   :  { %v10850_v43 = vsub.f32 %v10837_v19, %v10848_v56 }
0x3fa6   :  { %v10853_v22 = vmul.f32 %v10851_v17, %v10851_v17 }
0x3fa7   :  { %v10852_v11 = vmul.f32 %v10850_v43, %v10850_v43 }
0x3fa8   :  { %v10857_v20 = vsel %vm156_vm0, %v10853_v22, 0.0 }
0x3fa9   :  { %10858 = vadd.xlane.f32.xlu1 %v10857_v20  ;;  %v10854_v16 = vsel %vm156_vm0, %v10852_v11, 0.0 }
0x3faa   :  { %10855 = vadd.xlane.f32.xlu0 %v10854_v16 }
0x4036   :  { %v10859_v32 = vpop.xlane.xlu1 %10858 }
0x4037   :  { %v10861_v14 = vmul.f32 0.032258064, %v10859_v32  ;;  %v10856_v37 = vpop.xlane.xlu0 %10855 }
0x4038   :  { %v10860_v47 = vmul.f32 0.032258064, %v10856_v37  ;;  %v16784_v37 = vld [vmem:[%s21471_s20 + $0x180] sm:$0xff] }
0x4039   :  { %21187 = vrsqrt.f32 %v10861_v14  ;;  %vm10871_vm5 = vcmp.eq.f32.partialorder %v10861_v14, inf  ;;  %v10874_v62 = vand.u32 2147483648, %v10861_v14  ;;  %vm10873_vm6 = vcmp.eq.f32.partialorder %v10861_v14, 0.0 }
0x403a   :  { %21189 = vrsqrt.f32 %v10860_v47  ;;  %vm10864_vm8 = vcmp.eq.f32.partialorder %v10860_v47, inf  ;;  %v10867_v31 = vand.u32 2147483648, %v10860_v47  ;;  %vm10866_vm9 = vcmp.eq.f32.partialorder %v10860_v47, 0.0 }
0x4043   :  { %v21188_v49 = vpop.eup %21187 }
0x4044   :  { %v21190_v0 = vpop.eup %21189  ;;  %v10870_v58 = vmul.f32 %v21188_v49, %v10861_v14 }
0x4045   :  { %v10863_v45 = vmul.f32 %v21190_v0, %v10860_v47  ;;  %v16800_v0 = vld [vmem:[%s21471_s20 + $0x280] sm:$0xff] }
0x4046   :  { %v10872_v35 = vsel %vm10871_vm5, %v10861_v14, %v10870_v58  ;;  %v16801_v58 = vld [vmem:[%s21471_s20 + $0x288] sm:$0xff] }
0x4047   :  { %v10875_v28 = vsel %vm10873_vm6, %v10874_v62, %v10872_v35  ;;  %v10865_v50 = vsel %vm10864_vm8, %v10860_v47, %v10863_v45  ;;  %v16785_v47 = vld [vmem:[%s21471_s20 + $0x188] sm:$0xff]  ;;  %v20520_v62 = vpack.c.bf16 %v16801_v58, %v16800_v0  ;;  %v16786_v45 = vld [vmem:[%s21471_s20 + $0x190] sm:$0xff]  ;;  %v16787_v35 = vld [vmem:[%s21471_s20 + $0x198] sm:$0xff] }
0x4048   :  { %v10877_v60 = vadd.f32 1e-06, %v10875_v28  ;;  %v10868_v13 = vsel %vm10866_vm9, %v10867_v31, %v10865_v50  ;;  %v20504_v49 = vpack.c.bf16 %v16785_v47, %v16784_v37  ;;  %v20508_v31 = vpack.c.bf16 %v16787_v35, %v16786_v45  ;;  %v16802_v28 = vld [vmem:[%s21471_s20 + $0x290] sm:$0xff]  ;;  %v16803_v50 = vld [vmem:[%s21471_s20 + $0x298] sm:$0xff]  ;;  %v16816_v37 = vld [vmem:[%s21471_s20 + $0x1a8] sm:$0xff] }
0x4049   :  { %v10876_v61 = vadd.f32 1e-06, %v10868_v13  ;;  %v16792_v13 = vld [vmem:[%s21471_s20 + $0x200] sm:$0xff]  ;;  %v16817_v58 = vld [vmem:[%s21471_s20 + $0x1b0] sm:$0xff] }
0x404a   :  { %21191 = vrcp.f32 %v10877_v60  ;;  %20505 = vmatprep.subr.bf16.mxu1 %v20504_v49  ;;  %v20524_v60 = vpack.c.bf16 %v16803_v50, %v16802_v28  ;;  %v16832_v28 = vld [vmem:[%s21471_s20 + $0x2a8] sm:$0xff] }
0x404b   :  { %21193 = vrcp.f32 %v10876_v61  ;;  %20507 = vmatpush3.bf16.msra.mxu1 %v20504_v49  ;;  %v16793_v61 = vld [vmem:[%s21471_s20 + $0x208] sm:$0xff] }
0x404c   :  { %20509 = vmatprep.subr.bf16.mxu1 %v20508_v31 }
0x404f   :  { %20511 = vmatpush3.bf16.msra.mxu1 %v20508_v31  ;;  %v16831_v31 = vld [vmem:[%s21471_s20 + $0x2a0] sm:$0xff] }
0x4050   :  { %v20554_v50 = vpack.c.bf16 %v16832_v28, %v16831_v31 }
0x4054   :  { %v21192_v59 = vpop.eup %21191 }
0x4055   :  { %v21194_v46 = vpop.eup %21193  ;;  %v10881_v44 = vmul.f32 %v21192_v59, %v10851_v17  ;;  %v20512_v59 = vpack.c.bf16 %v16793_v61, %v16792_v13  ;;  %v16834_v13 = vld [vmem:[%s21471_s20 + $0x2b8] sm:$0xff] }
0x4056   :  { %v10880_v29 = vmul.f32 %v21194_v46, %v10850_v43 }
0x4057   :  { %v10889_v54 = vmul.f32 %v16773_v57, %v10881_v44  ;;  %20513 = vmatprep.subr.bf16.mxu1 %v20512_v59 }
0x4058   :  { %v10888_v41 = vmul.f32 %v16773_v57, %v10880_v29 }
0x4059   :  { %v10897_v25 = vadd.f32 %v16774_v23, %v10889_v54 }
0x405a   :  { %v10896_v6 = vadd.f32 %v16774_v23, %v10888_v41 }
0x405c   :  { %19244 = vmatprep.mubr.msk.f32.mxu0 %vm156_vm0, %v10896_v6 }
0x405d   :  { %19245 = vmatmul.mubr.msk.f32.vlgmr.msra.gmra.mrb[138].mxu0 %vm156_vm0, %v10897_v25 }
0x405e   :  { %20491 = vmatpush3.bf16.msra.mxu0 %v20488_v18 }
0x405f   :  { %20493 = vmatprep.subr.bf16.mxu0 %v20492_v7 }
0x4062   :  { %20495 = vmatpush3.bf16.msra.mxu0 %v20492_v7 }
0x4063   :  { %20497 = vmatprep.subr.bf16.mxu0 %v20496_v8 }
0x4066   :  { %20499 = vmatpush3.bf16.msra.mxu0 %v20496_v8 }
0x4067   :  { %20501 = vmatprep.subr.bf16.mxu0 %v20500_v55 }
0x406a   :  { %20503 = vmatpush3.bf16.msra.mxu0 %v20500_v55  ;;  %v16782_v55 = vld [vmem:[%s21541_s4] ss:$0 sm:$0xff] }
0x406b   :  { %20521 = vmatprep.subr.bf16.mxu0 %v20520_v62 }
0x4130   :  { %v19246_v9 = vpop.f32.mrb[138].mxu0 }
0x4131   :  { %v10987_v19 = vadd.f32 %v19246_v9, %v16775_v10  ;;  %v10981_v63 = vpop.f32.mrb[139].mxu0 }
0x4132   :  { %v10982_v21 = vadd.f32 %v16775_v10, %v10981_v63  ;;  %v16783_v63 = vld [vmem:[%s21541_s4 + $0x1] ss:$0 sm:$0xff] }
0x4133   :  { %v10991_v15 = vmax.f32 %v10987_v19, 0.0 }
0x4134   :  { %v10990_v30 = vmax.f32 %v10982_v21, 0.0 }
0x4136   :  { %19263 = vmatprep.mubr.msk.f32.mxu0 %vm3014_vm11, %v10990_v30 }
0x4137   :  { %19264 = vmatmul.mubr.msk.f32.vlgmr.msra.gmra.mrb[140].mxu0 %vm3014_vm11, %v10991_v15  ;;  %v16794_v15 = vld [vmem:[%s21471_s20 + $0x210] sm:$0xff] }
0x4138   :  { %20523 = vmatpush3.bf16.msra.mxu0 %v20520_v62  ;;  %v16818_v62 = vld [vmem:[%s21471_s20 + $0x1b8] sm:$0xff] }
0x4139   :  { %20525 = vmatprep.subr.bf16.mxu0 %v20524_v60  ;;  %v20542_v35 = vpack.c.bf16 %v16818_v62, %v16817_v58 }
0x413c   :  { %20527 = vmatpush3.bf16.msra.mxu0 %v20524_v60  ;;  %v16833_v60 = vld [vmem:[%s21471_s20 + $0x2b0] sm:$0xff] }
0x413d   :  { %v20558_v61 = vpack.c.bf16 %v16834_v13, %v16833_v60 }
0x420a   :  { %v19265_v56 = vpop.f32.mrb[140].mxu0 }
0x420b   :  { %v11085_v17 = vadd.f32 %v19265_v56, %v16778_v33  ;;  %v11079_v43 = vpop.f32.mrb[141].mxu0 }
0x420c   :  { %v11080_v22 = vadd.f32 %v16778_v33, %v11079_v43  ;;  %v16795_v33 = vld [vmem:[%s21471_s20 + $0x218] sm:$0xff] }
0x420d   :  { %v11089_v11 = vadd.f32 %v11085_v17, %v10897_v25  ;;  %v20516_v43 = vpack.c.bf16 %v16795_v33, %v16794_v15 }
0x420e   :  { %v11088_v20 = vadd.f32 %v11080_v22, %v10896_v6  ;;  %v16805_v22 = vld [vmem:[%s23570_s0 + $0x14] ss:$0 sm:$0xff] }
0x420f   :  { %v11096_v16 = vsel %vm156_vm0, %v11089_v11, 0.0 }
0x4210   :  { %11097 = vadd.xlane.f32.xlu1 %v11096_v16  ;;  %v11093_v42 = vsel %vm156_vm0, %v11088_v20, 0.0 }
0x4211   :  { %11094 = vadd.xlane.f32.xlu0 %v11093_v42 }
0x429d   :  { %v11098_v38 = vpop.xlane.xlu1 %11097 }
0x429e   :  { %v11100_v39 = vmul.f32 0.03125, %v11098_v38  ;;  %v11095_v2 = vpop.xlane.xlu0 %11094 }
0x429f   :  { %v11099_v3 = vmul.f32 0.03125, %v11095_v2 }
0x42a0   :  { %v11102_v1 = vsub.f32 %v11089_v11, %v11100_v39  ;;  %v16789_v11 = vld [vmem:[%s23570_s0 + $0xc] ss:$0 sm:$0xff] }
0x42a1   :  { %v11101_v5 = vsub.f32 %v11088_v20, %v11099_v3 }
0x42a2   :  { %v11104_v36 = vmul.f32 %v11102_v1, %v11102_v1 }
0x42a3   :  { %v11103_v18 = vmul.f32 %v11101_v5, %v11101_v5 }
0x42a4   :  { %v11108_v32 = vsel %vm156_vm0, %v11104_v36, 0.0 }
0x42a5   :  { %11109 = vadd.xlane.f32.xlu1 %v11108_v32  ;;  %v11105_v14 = vsel %vm156_vm0, %v11103_v18, 0.0 }
0x42a6   :  { %11106 = vadd.xlane.f32.xlu0 %v11105_v14  ;;  %v16815_v14 = vld [vmem:[%s21471_s20 + $0x1a0] sm:$0xff] }
0x42a7   :  { %v20538_v0 = vpack.c.bf16 %v16816_v37, %v16815_v14 }
0x4332   :  { %v11110_v57 = vpop.xlane.xlu1 %11109 }
0x4333   :  { %v11112_v46 = vmul.f32 0.032258064, %v11110_v57  ;;  %v11107_v44 = vpop.xlane.xlu0 %11106 }
0x4334   :  { %v11111_v29 = vmul.f32 0.032258064, %v11107_v44 }
0x4335   :  { %21195 = vrsqrt.f32 %v11112_v46  ;;  %vm11122_vm10 = vcmp.eq.f32.partialorder %v11112_v46, inf  ;;  %v11125_v53 = vand.u32 2147483648, %v11112_v46  ;;  %vm11124_vm12 = vcmp.eq.f32.partialorder %v11112_v46, 0.0 }
0x4336   :  { %21197 = vrsqrt.f32 %v11111_v29  ;;  %vm11115_vm13 = vcmp.eq.f32.partialorder %v11111_v29, inf  ;;  %v11118_v25 = vand.u32 2147483648, %v11111_v29  ;;  %vm11117_vm14 = vcmp.eq.f32.partialorder %v11111_v29, 0.0 }
0x433f   :  { %v21196_v23 = vpop.eup %21195 }
0x4340   :  { %v21198_v54 = vpop.eup %21197  ;;  %v11121_v41 = vmul.f32 %v21196_v23, %v11112_v46 }
0x4341   :  { %v11114_v51 = vmul.f32 %v21198_v54, %v11111_v29  ;;  %v23097_v54 = vld [vmem:[%s23571_s5] sm:$0xff] }
0x4342   :  { %v11123_v6 = vsel %vm11122_vm10, %v11112_v46, %v11121_v41 }
0x4343   :  { %v11126_v7 = vsel %vm11124_vm12, %v11125_v53, %v11123_v6  ;;  %v11116_v24 = vsel %vm11115_vm13, %v11111_v29, %v11114_v51  ;;  %v23093_v29 = vld [vmem:[%s23571_s5 + $0x8] sm:$0xff] }
0x4344   :  { %v11128_v12 = vadd.f32 1e-06, %v11126_v7  ;;  %v11119_v8 = vsel %vm11117_vm14, %v11118_v25, %v11116_v24  ;;  %v16820_v6 = vld [vmem:[%s23570_s0 + $0xd] ss:$0 sm:$0xff] }
0x4345   :  { %v11127_v52 = vadd.f32 1e-06, %v11119_v8 }
0x4346   :  { %21199 = vrcp.f32 %v11128_v12  ;;  %v16836_v12 = vld [vmem:[%s23570_s0 + $0x15] ss:$0 sm:$0xff] }
0x4347   :  { %21201 = vrcp.f32 %v11127_v52 }
0x4350   :  { %v21200_v26 = vpop.eup %21199 }
0x4351   :  { %v21202_v10 = vpop.eup %21201  ;;  %v11132_v9 = vmul.f32 %v21200_v26, %v11102_v1 }
0x4352   :  { %v11131_v19 = vmul.f32 %v21202_v10, %v11101_v5  ;;  %v16797_v5 = vld [vmem:[%s23570_s0 + $0x10] ss:$0 sm:$0xff] }
0x4353   :  { %v11140_v21 = vmul.f32 %v16782_v55, %v11132_v9 }
0x4354   :  { %v11139_v30 = vmul.f32 %v16782_v55, %v11131_v19 }
0x4355   :  { %v23053_v17 = vadd.f32 %v16783_v63, %v11140_v21 }
0x4356   :  { %v23051_v56 = vadd.f32 %v16783_v63, %v11139_v30 }
0x4358   :  { %19274 = vmatprep.mubr.msk.f32.mxu1 %vm156_vm0, %v23051_v56  ;;  %19296 = vmatprep.mubr.msk.f32.mxu0 %vm156_vm0, %v23051_v56 }
0x4359   :  { %19275 = vmatmul.mubr.msk.f32.vlgmr.msra.gmra.mrb[146].mxu1 %vm156_vm0, %v23053_v17  ;;  %19297 = vmatmul.mubr.msk.f32.vlgmr.msra.gmra.mrb[142].mxu0 %vm156_vm0, %v23053_v17 }
0x435a   :  { %20515 = vmatpush3.bf16.msra.mxu1 %v20512_v59  ;;  %19285 = vmatprep.mubr.msk.f32.mxu1 %vm156_vm0, %v23051_v56 }
0x435b   :  { %20517 = vmatprep.subr.bf16.mxu1 %v20516_v43 }
0x435e   :  { %20519 = vmatpush3.bf16.msra.mxu1 %v20516_v43 }
0x4361   :  { %19286 = vmatmul.mubr.msk.f32.vlgmr.msra.gmra.mrb[148].mxu1 %vm156_vm0, %v23053_v17 }
0x442c   :  { %v19276_v20 = vpop.f32.mrb[146].mxu1  ;;  %v19298_v16 = vpop.f32.mrb[142].mxu0 }
0x442d   :  { %v11416_v42 = vadd.f32 %v19298_v16, %v16805_v22  ;;  %v11234_v38 = vpop.f32.mrb[147].mxu1  ;;  %v11410_v39 = vpop.f32.mrb[143].mxu0  ;;  %v11240_v45 = vadd.f32 %v19276_v20, %v16789_v11  ;;  %v16823_v20 = vld [vmem:[%s21471_s20 + $0x220] sm:$0xff]  ;;  %v16824_v16 = vld [vmem:[%s21471_s20 + $0x228] sm:$0xff] }
0x442e   :  { %v11235_v2 = vadd.f32 %v16789_v11, %v11234_v38  ;;  %v11411_v3 = vadd.f32 %v16805_v22, %v11410_v39 }
0x4430   :  { %v20534_v1 = vpack.c.bf16 %v11416_v42, %v11411_v3  ;;  %19303 = vmatprep.mubr.msk.f32.mxu1 %vm450_vm1, %v11235_v2  ;;  %v20546_v42 = vpack.c.bf16 %v16824_v16, %v16823_v20  ;;  %v16825_v3 = vld [vmem:[%s21471_s20 + $0x230] sm:$0xff]  ;;  %v16869_v16 = vld [vmem:[%s21471_s20 + $0x2d8] sm:$0xff] }
0x4431   :  { %v16868_v20 = vld [vmem:[%s21471_s20 + $0x2d0] sm:$0xff] }
0x4432   :  { %20535 = vmatprep.subr.bf16.mxu0 %v20534_v1 }
0x4433   :  { %20537 = vmatpush3.bf16.msra.mxu0 %v20534_v1  ;;  %v16826_v1 = vld [vmem:[%s21471_s20 + $0x238] sm:$0xff] }
0x4434   :  { %v19287_v36 = vpop.f32.mrb[148].mxu1  ;;  %20547 = vmatprep.subr.bf16.mxu0 %v20546_v42 }
0x4435   :  { %v11328_v18 = vadd.f32 %v19287_v36, %v16797_v5  ;;  %v11322_v32 = vpop.f32.mrb[149].mxu1 }
0x4436   :  { %v11323_v47 = vadd.f32 %v16797_v5, %v11322_v32  ;;  %v20550_v32 = vpack.c.bf16 %v16826_v1, %v16825_v3 }
0x4438   :  { %v20528_v49 = vpack.c.bf16 %v11328_v18, %v11323_v47 }
0x443a   :  { %20530 = vmatprep.subr.msk.bf16.mxu1 %vm21596_vm2, %v20528_v49 }
0x443b   :  { %20533 = vmatpush3.bf16.xpose.msk.msra.mxu1 %vm21596_vm2, %v20528_v49  ;;  %v16828_v49 = vld [vmem:[%s23570_s0 + $0x11] ss:$0 sm:$0xff] }
0x443c   :  { %20539 = vmatprep.subr.bf16.mxu1 %v20538_v0 }
0x4442   :  { %19304 = vmatmul.mubr.msk.f32.vlgmr.msra.gmra.mrb[150].mxu1 %vm450_vm1, %v11240_v45 }
0x4443   :  { %20541 = vmatpush3.bf16.msra.mxu1 %v20538_v0  ;;  %19321 = vmatprep.mubr.msk.f32.mxu1 %vm156_vm0, %v23051_v56 }
0x4444   :  { %20543 = vmatprep.subr.bf16.mxu1 %v20542_v35 }
0x4447   :  { %20545 = vmatpush3.bf16.msra.mxu1 %v20542_v35 }
0x4448   :  { %20555 = vmatprep.subr.bf16.mxu1 %v20554_v50 }
0x444a   :  { %19322 = vmatmul.mubr.msk.f32.vlgmr.msra.gmra.mrb[152].mxu1 %vm156_vm0, %v23053_v17 }
0x444b   :  { %20557 = vmatpush3.bf16.msra.mxu1 %v20554_v50  ;;  %19343 = vmatprep.mubr.msk.f32.mxu1 %vm156_vm0, %v23051_v56 }
0x444c   :  { %20559 = vmatprep.subr.bf16.mxu1 %v20558_v61 }
0x444f   :  { %20561 = vmatpush3.bf16.msra.mxu1 %v20558_v61 }
0x4452   :  { %19344 = vmatmul.mubr.msk.f32.vlgmr.msra.gmra.mrb[154].mxu1 %vm156_vm0, %v23053_v17 }
0x4515   :  { %v19305_v59 = vpop.f32.mrb[150].mxu1 }
0x4516   :  { %v11507_v57 = vmul.f32 0.35355338, %v19305_v59  ;;  %v11497_v46 = vpop.f32.mrb[151].mxu1 }
0x4517   :  { %v11506_v44 = vmul.f32 0.35355338, %v11497_v46 }
0x4518   :  { %v11509_v23 = vadd.f32 %v23093_v29, %v11507_v57 }
0x4519   :  { %v11508_v41 = vadd.f32 %v23097_v54, %v11506_v44 }
0x451a   :  { %v11513_v53 = vsel %vm6658_vm7, %v11509_v23, -inf }
0x451b   :  { %11514 = vmax.xlane.f32.xlu1 %v11513_v53  ;;  %v11510_v51 = vsel %vm6658_vm7, %v11508_v41, -inf }
0x451c   :  { %11511 = vmax.xlane.f32.xlu0 %v11510_v51 }
0x451d   :  { %v19323_v25 = vpop.f32.mrb[152].mxu1 }
0x451e   :  { %v11700_v7 = vadd.f32 %v19323_v25, %v16820_v6  ;;  %v11694_v24 = vpop.f32.mrb[153].mxu1 }
0x451f   :  { %v11695_v14 = vadd.f32 %v16820_v6, %v11694_v24 }
0x4525   :  { %v19345_v8 = vpop.f32.mrb[154].mxu1 }
0x4526   :  { %v11876_v52 = vadd.f32 %v19345_v8, %v16836_v12  ;;  %v11870_v26 = vpop.f32.mrb[155].mxu1  ;;  %v16851_v8 = vld [vmem:[%s21471_s20 + $0x1c8] sm:$0xff] }
0x4527   :  { %v11871_v55 = vadd.f32 %v16836_v12, %v11870_v26  ;;  %v16850_v12 = vld [vmem:[%s21471_s20 + $0x1c0] sm:$0xff]  ;;  %v16845_v26 = vld [vmem:[%s23572_s13 + $0x28] sm:$0xff] }
0x4529   :  { %v20568_v10 = vpack.c.bf16 %v11876_v52, %v11871_v55  ;;  %v20572_v52 = vpack.c.bf16 %v16851_v8, %v16850_v12 }
0x452b   :  { %20569 = vmatprep.subr.bf16.mxu1 %v20568_v10 }
0x452c   :  { %20571 = vmatpush3.bf16.msra.mxu1 %v20568_v10 }
0x452d   :  { %20573 = vmatprep.subr.bf16.mxu1 %v20572_v52 }
0x45a8   :  { %v11515_v9 = vpop.xlane.xlu1 %11514 }
0x45a9   :  { %v11517_v19 = vsub.f32 %v11509_v23, %v11515_v9  ;;  %v11512_v63 = vpop.xlane.xlu0 %11511 }
0x45aa   :  { %v11516_v21 = vsub.f32 %v11508_v41, %v11512_v63  ;;  %v16853_v63 = vld [vmem:[%s21471_s20 + $0x1d8] sm:$0xff] }
0x45ab   :  { %v11520_v30 = vmul.f32 1.442695, %v11517_v19  ;;  %v16852_v19 = vld [vmem:[%s21471_s20 + $0x1d0] sm:$0xff] }
0x45ac   :  { %v11518_v15 = vmul.f32 1.442695, %v11516_v21 }
0x45ad   :  { %21203 = vpow2.f32 %v11520_v30 }
0x45ae   :  { %21205 = vpow2.f32 %v11518_v15 }
0x45b7   :  { %v21204_v33 = vpop.eup %21203 }
0x45b8   :  { %v21206_v43 = vpop.eup %21205  ;;  %v11525_v22 = vsel %vm6658_vm7, %v21204_v33, 0.0 }
0x45b9   :  { %11526 = vadd.xlane.f32.xlu1 %v11525_v22  ;;  %v11522_v11 = vsel %vm6658_vm7, %v21206_v43, 0.0  ;;  %v16867_v22 = vld [vmem:[%s21471_s20 + $0x2c8] sm:$0xff] }
0x45ba   :  { %11523 = vadd.xlane.f32.xlu0 %v11522_v11 }
0x4646   :  { %v11527_v38 = vpop.xlane.xlu1 %11526 }
0x4647   :  { %21207 = vrcp.f32 %v11527_v38  ;;  %v11524_v39 = vpop.xlane.xlu0 %11523  ;;  %v16814_v38 = vld [vmem:[%s23572_s13 + $0x20] sm:$0xff] }
0x4648   :  { %21209 = vrcp.f32 %v11524_v39  ;;  %v16858_v39 = vld [vmem:[%s21471_s20 + $0x240] sm:$0xff] }
0x4651   :  { %v21208_v2 = vpop.eup %21207 }
0x4652   :  { %v21210_v5 = vpop.eup %21209  ;;  %v11531_v18 = vmul.f32 %v21208_v2, %v21204_v33  ;;  %v20576_v33 = vpack.c.bf16 %v16853_v63, %v16852_v19  ;;  %v16859_v2 = vld [vmem:[%s21471_s20 + $0x248] sm:$0xff]  ;;  %v16883_v63 = vld [vmem:[%s21471_s20 + $0x1e0] sm:$0xff] }
0x4653   :  { %v11530_v36 = vmul.f32 %v21210_v5, %v21206_v43  ;;  %v16866_v43 = vld [vmem:[%s21471_s20 + $0x2c0] sm:$0xff]  ;;  %v20580_v5 = vpack.c.bf16 %v16859_v2, %v16858_v39 }
0x4654   :  { %v20588_v11 = vpack.c.bf16 %v16867_v22, %v16866_v43  ;;  %v16899_v2 = vld [vmem:[%s21471_s20 + $0x2e0] sm:$0xff] }
0x4655   :  { %19310 = vmatprep.mubr.msk.f32.mxu0 %vm6658_vm7, %v11530_v36  ;;  %v16855_v36 = vld [vmem:[%s23570_s0 + $0xe] ss:$0 sm:$0xff] }
0x4656   :  { %19311 = vmatmul.mubr.msk.f32.vlgmr.msra.gmra.mrb[144].mxu0 %vm6658_vm7, %v11531_v18  ;;  %v16860_v18 = vld [vmem:[%s21471_s20 + $0x250] sm:$0xff] }
0x4657   :  { %20549 = vmatpush3.bf16.msra.mxu0 %v20546_v42  ;;  %19332 = vmatprep.mubr.msk.f32.mxu0 %vm156_vm0, %v23051_v56  ;;  %v20592_v42 = vpack.c.bf16 %v16869_v16, %v16868_v20  ;;  %v16886_v20 = vld [vmem:[%s21471_s20 + $0x1f8] sm:$0xff] }
0x4658   :  { %20551 = vmatprep.subr.bf16.mxu0 %v20550_v32 }
0x465b   :  { %20553 = vmatpush3.bf16.msra.mxu0 %v20550_v32  ;;  %v16861_v32 = vld [vmem:[%s21471_s20 + $0x258] sm:$0xff] }
0x465e   :  { %19333 = vmatmul.mubr.msk.f32.vlgmr.msra.gmra.mrb[146].mxu0 %vm156_vm0, %v23053_v17 }
0x465f   :  { %19350 = vmatprep.mubr.msk.f32.mxu0 %vm450_vm1, %v11695_v14 }
0x4729   :  { %v23117_v37 = vpop.f32.mrb[144].mxu0 }
0x472a   :  { %v23119_v47 = vpop.f32.mrb[145].mxu0 }
0x4731   :  { %v19334_v0 = vpop.f32.mrb[146].mxu0 }
0x4732   :  { %v11788_v58 = vadd.f32 %v19334_v0, %v16828_v49  ;;  %v11782_v62 = vpop.f32.mrb[147].mxu0 }
0x4733   :  { %v11783_v45 = vadd.f32 %v16828_v49, %v11782_v62  ;;  %v16871_v62 = vld [vmem:[%s23570_s0 + $0x16] ss:$0 sm:$0xff] }
0x4735   :  { %v20562_v35 = vpack.c.bf16 %v11788_v58, %v11783_v45  ;;  %v20584_v58 = vpack.c.bf16 %v16861_v32, %v16860_v18  ;;  %v16891_v32 = vld [vmem:[%s21471_s20 + $0x260] sm:$0xff] }
0x4737   :  { %20564 = vmatprep.subr.msk.bf16.mxu0 %vm21596_vm2, %v20562_v35 }
0x4738   :  { %20567 = vmatpush3.bf16.xpose.msk.msra.mxu0 %vm21596_vm2, %v20562_v35 }
0x4739   :  { %19360 = vmatprep.subr.mxu0 %v16845_v26 }
0x473f   :  { %19351 = vmatmul.mubr.msk.f32.vlgmr.msra.gmra.mrb[148].mxu0 %vm450_vm1, %v11700_v7 }
0x4740   :  { %19361 = vmatpush3.msra.mxu0 %v16845_v26 }
0x4741   :  { %19365 = vmatprep.subr.mxu0 %v16814_v38 }
0x4812   :  { %v19352_v31 = vpop.f32.mrb[148].mxu0 }
0x4813   :  { %v11967_v28 = vmul.f32 0.35355338, %v19352_v31  ;;  %v11957_v50 = vpop.f32.mrb[149].mxu0 }
0x4814   :  { %v11966_v60 = vmul.f32 0.35355338, %v11957_v50 }
0x4815   :  { %v11969_v13 = vadd.f32 %v23093_v29, %v11967_v28 }
0x4816   :  { %v11968_v61 = vadd.f32 %v23097_v54, %v11966_v60 }
0x4817   :  { %v11973_v59 = vsel %vm6658_vm7, %v11969_v13, -inf }
0x4818   :  { %11974 = vmax.xlane.f32.xlu1 %v11973_v59  ;;  %v11970_v57 = vsel %vm6658_vm7, %v11968_v61, -inf }
0x4819   :  { %11971 = vmax.xlane.f32.xlu0 %v11970_v57 }
0x48a5   :  { %v11975_v46 = vpop.xlane.xlu1 %11974 }
0x48a6   :  { %v11977_v44 = vsub.f32 %v11969_v13, %v11975_v46  ;;  %v11972_v23 = vpop.xlane.xlu0 %11971 }
0x48a7   :  { %v11976_v41 = vsub.f32 %v11968_v61, %v11972_v23 }
0x48a8   :  { %v11980_v53 = vmul.f32 1.442695, %v11977_v44 }
0x48a9   :  { %v11978_v51 = vmul.f32 1.442695, %v11976_v41 }
0x48aa   :  { %21211 = vpow2.f32 %v11980_v53 }
0x48ab   :  { %21213 = vpow2.f32 %v11978_v51 }
0x48b4   :  { %v21212_v6 = vpop.eup %21211 }
0x48b5   :  { %v21214_v25 = vpop.eup %21213  ;;  %v11985_v7 = vsel %vm6658_vm7, %v21212_v6, 0.0 }
0x48b6   :  { %11986 = vadd.xlane.f32.xlu1 %v11985_v7  ;;  %v11982_v24 = vsel %vm6658_vm7, %v21214_v25, 0.0 }
0x48b7   :  { %11983 = vadd.xlane.f32.xlu0 %v11982_v24 }
0x4943   :  { %v11987_v55 = vpop.xlane.xlu1 %11986 }
0x4944   :  { %21215 = vrcp.f32 %v11987_v55  ;;  %v11984_v10 = vpop.xlane.xlu0 %11983 }
0x4945   :  { %21217 = vrcp.f32 %v11984_v10 }
0x494e   :  { %v21216_v9 = vpop.eup %21215 }
0x494f   :  { %v21218_v21 = vpop.eup %21217  ;;  %v11991_v15 = vmul.f32 %v21216_v9, %v21212_v6 }
0x4950   :  { %v11990_v30 = vmul.f32 %v21218_v21, %v21214_v25  ;;  %v16884_v21 = vld [vmem:[%s21471_s20 + $0x1e8] sm:$0xff] }
0x4952   :  { %19357 = vmatprep.mubr.msk.f32.mxu1 %vm6658_vm7, %v11990_v30  ;;  %v20606_v30 = vpack.c.bf16 %v16884_v21, %v16883_v63 }
0x4953   :  { %19358 = vmatmul.mubr.msk.f32.vlgmr.msra.gmra.mrb[156].mxu1 %vm6658_vm7, %v11991_v15  ;;  %v16880_v15 = vld [vmem:[%s23572_s13 + $0x30] sm:$0xff] }
0x4954   :  { %20575 = vmatpush3.bf16.msra.mxu1 %v20572_v52  ;;  %19378 = vmatprep.mubr.msk.f32.mxu1 %vm156_vm0, %v23051_v56 }
0x4955   :  { %20577 = vmatprep.subr.bf16.mxu1 %v20576_v33 }
0x4958   :  { %20579 = vmatpush3.bf16.msra.mxu1 %v20576_v33 }
0x4959   :  { %20589 = vmatprep.subr.bf16.mxu1 %v20588_v11 }
0x495b   :  { %19379 = vmatmul.mubr.msk.f32.vlgmr.msra.gmra.mrb[158].mxu1 %vm156_vm0, %v23053_v17 }
0x495c   :  { %20591 = vmatpush3.bf16.msra.mxu1 %v20588_v11  ;;  %19400 = vmatprep.mubr.msk.f32.mxu1 %vm156_vm0, %v23051_v56  ;;  %v16885_v11 = vld [vmem:[%s21471_s20 + $0x1f0] sm:$0xff] }
0x495d   :  { %20593 = vmatprep.subr.bf16.mxu1 %v20592_v42  ;;  %v20610_v39 = vpack.c.bf16 %v16886_v20, %v16885_v11 }
0x4960   :  { %20595 = vmatpush3.bf16.msra.mxu1 %v20592_v42 }
0x4963   :  { %19401 = vmatmul.mubr.msk.f32.vlgmr.msra.gmra.mrb[160].mxu1 %vm156_vm0, %v23053_v17 }
0x4a26   :  { %v19359_v3 = vpop.f32.mrb[156].mxu1 }
0x4a27   :  { %v12064_v1 = vpop.f32.mrb[157].mxu1 }
0x4a28   :  { %19362 = vmatprep.mubr.msk.f32.mxu0 %vm450_vm1, %v12064_v1 }
0x4a29   :  { %19363 = vmatmul.mubr.msk.f32.vlgmr.msra.gmra.mrb[150].mxu0 %vm450_vm1, %v19359_v3  ;;  %v16900_v3 = vld [vmem:[%s21471_s20 + $0x2e8] sm:$0xff] }
0x4a2a   :  { %19366 = vmatpush3.msra.mxu0 %v16814_v38  ;;  %19367 = vmatprep.mubr.msk.f32.mxu0 %vm450_vm1, %v23119_v47  ;;  %v20622_v1 = vpack.c.bf16 %v16900_v3, %v16899_v2  ;;  %v16931_v2 = vld [vmem:[%s23574_s29 + $0x208] sm:$0xff] }
0x4a2b   :  { %20581 = vmatprep.subr.bf16.mxu0 %v20580_v5 }
0x4a2e   :  { %v19380_v14 = vpop.f32.mrb[158].mxu1 }
0x4a2f   :  { %v12322_v49 = vadd.f32 %v19380_v14, %v16855_v36  ;;  %v12316_v0 = vpop.f32.mrb[159].mxu1  ;;  %v16892_v14 = vld [vmem:[%s21471_s20 + $0x268] sm:$0xff] }
0x4a30   :  { %v12317_v31 = vadd.f32 %v16855_v36, %v12316_v0  ;;  %v16902_v36 = vld [vmem:[%s21471_s20 + $0x2f8] sm:$0xff]  ;;  %v16893_v0 = vld [vmem:[%s21471_s20 + $0x270] sm:$0xff] }
0x4a31   :  { %19368 = vmatmul.mubr.msk.f32.vlgmr.msra.gmra.mrb[150].mxu0 %vm450_vm1, %v23117_v37  ;;  %v16863_v37 = vld [vmem:[%s23570_s0 + $0x12] ss:$0 sm:$0xff] }
0x4a32   :  { %20583 = vmatpush3.bf16.msra.mxu0 %v20580_v5  ;;  %19389 = vmatprep.mubr.msk.f32.mxu0 %vm156_vm0, %v23051_v56  ;;  %v16901_v5 = vld [vmem:[%s21471_s20 + $0x2f0] sm:$0xff] }
0x4a33   :  { %20585 = vmatprep.subr.bf16.mxu0 %v20584_v58  ;;  %v20626_v18 = vpack.c.bf16 %v16902_v36, %v16901_v5  ;;  %v16933_v5 = vld [vmem:[%s23574_s29 + $0x218] sm:$0xff] }
0x4a36   :  { %20587 = vmatpush3.bf16.msra.mxu0 %v20584_v58  ;;  %v19402_v47 = vpop.f32.mrb[160].mxu1  ;;  %v16894_v58 = vld [vmem:[%s21471_s20 + $0x278] sm:$0xff]  ;;  %s21384_s20 = smov [#allocation2]  }
0x4a37   :  { %v12498_v45 = vadd.f32 %v19402_v47, %v16871_v62  ;;  %v12492_v35 = vpop.f32.mrb[161].mxu1 }
0x4a38   :  { %v12493_v28 = vadd.f32 %v16871_v62, %v12492_v35  ;;  %v16888_v35 = vld [vmem:[%s23570_s0 + $0xf] ss:$0 sm:$0xff] }
0x4a39   :  { %19390 = vmatmul.mubr.msk.f32.vlgmr.msra.gmra.mrb[152].mxu0 %vm156_vm0, %v23053_v17 }
0x4a3a   :  { %v20602_v50 = vpack.c.bf16 %v12498_v45, %v12493_v28  ;;  %19407 = vmatprep.mubr.msk.f32.mxu0 %vm450_vm1, %v12317_v31  ;;  %v20618_v45 = vpack.c.bf16 %v16894_v58, %v16893_v0 }
0x4a3c   :  { %20603 = vmatprep.subr.bf16.mxu1 %v20602_v50 }
0x4a3d   :  { %20605 = vmatpush3.bf16.msra.mxu1 %v20602_v50 }
0x4a3e   :  { %20607 = vmatprep.subr.bf16.mxu1 %v20606_v30 }
0x4b0c   :  { %v19391_v60 = vpop.f32.mrb[152].mxu0 }
0x4b0d   :  { %v12410_v13 = vadd.f32 %v19391_v60, %v16863_v37  ;;  %v12404_v61 = vpop.f32.mrb[153].mxu0  ;;  %v16904_v60 = vld [vmem:[%s23570_s0 + $0x17] ss:$0 sm:$0xff] }
0x4b0e   :  { %v12405_v59 = vadd.f32 %v16863_v37, %v12404_v61 }
0x4b10   :  { %v20596_v57 = vpack.c.bf16 %v12410_v13, %v12405_v59 }
0x4b12   :  { %20598 = vmatprep.subr.msk.bf16.mxu0 %vm21596_vm2, %v20596_v57 }
0x4b13   :  { %20601 = vmatpush3.bf16.xpose.msk.msra.mxu0 %vm21596_vm2, %v20596_v57 }
0x4b14   :  { %19417 = vmatprep.subr.mxu0 %v16880_v15 }
0x4b1a   :  { %19408 = vmatmul.mubr.msk.f32.vlgmr.msra.gmra.mrb[154].mxu0 %vm450_vm1, %v12322_v49  ;;  %v20614_v49 = vpack.c.bf16 %v16892_v14, %v16891_v32  ;;  %v16917_v14 = vld [vmem:[%s23573_s25 + $0x1] ss:$0 sm:$0xff] }
0x4b1b   :  { %19418 = vmatpush3.msra.mxu0 %v16880_v15 }
0x4b1c   :  { %20615 = vmatprep.subr.bf16.mxu0 %v20614_v49 }
0x4bed   :  { %v19409_v46 = vpop.f32.mrb[154].mxu0 }
0x4bee   :  { %v12589_v44 = vmul.f32 0.35355338, %v19409_v46  ;;  %v12579_v23 = vpop.f32.mrb[155].mxu0 }
0x4bef   :  { %v12588_v41 = vmul.f32 0.35355338, %v12579_v23 }
0x4bf0   :  { %v12591_v53 = vadd.f32 %v23093_v29, %v12589_v44  ;;  %v16896_v44 = vld [vmem:[%s23570_s0 + $0x13] ss:$0 sm:$0xff] }
0x4bf1   :  { %v12590_v51 = vadd.f32 %v23097_v54, %v12588_v41 }
0x4bf2   :  { %v12595_v6 = vsel %vm6658_vm7, %v12591_v53, -inf }
0x4bf3   :  { %12596 = vmax.xlane.f32.xlu1 %v12595_v6  ;;  %v12592_v25 = vsel %vm6658_vm7, %v12590_v51, -inf }
0x4bf4   :  { %12593 = vmax.xlane.f32.xlu0 %v12592_v25 }
0x4c80   :  { %v12597_v7 = vpop.xlane.xlu1 %12596 }
0x4c81   :  { %v12599_v24 = vsub.f32 %v12591_v53, %v12597_v7  ;;  %v12594_v12 = vpop.xlane.xlu0 %12593 }
0x4c82   :  { %v12598_v8 = vsub.f32 %v12590_v51, %v12594_v12 }
0x4c83   :  { %v12602_v52 = vmul.f32 1.442695, %v12599_v24 }
0x4c84   :  { %v12600_v26 = vmul.f32 1.442695, %v12598_v8 }
0x4c85   :  { %21219 = vpow2.f32 %v12602_v52 }
0x4c86   :  { %21221 = vpow2.f32 %v12600_v26 }
0x4c8f   :  { %v21220_v55 = vpop.eup %21219 }
0x4c90   :  { %v21222_v10 = vpop.eup %21221  ;;  %v12607_v9 = vsel %vm6658_vm7, %v21220_v55, 0.0 }
0x4c91   :  { %12608 = vadd.xlane.f32.xlu1 %v12607_v9  ;;  %v12604_v19 = vsel %vm6658_vm7, %v21222_v10, 0.0 }
0x4c92   :  { %12605 = vadd.xlane.f32.xlu0 %v12604_v19 }
0x4d1e   :  { %v12609_v33 = vpop.xlane.xlu1 %12608 }
0x4d1f   :  { %21223 = vrcp.f32 %v12609_v33  ;;  %v12606_v43 = vpop.xlane.xlu0 %12605 }
0x4d20   :  { %21225 = vrcp.f32 %v12606_v43  ;;  %v16913_v43 = vld [vmem:[%s23572_s13 + $0x38] sm:$0xff] }
0x4d29   :  { %v21224_v22 = vpop.eup %21223 }
0x4d2a   :  { %v21226_v16 = vpop.eup %21225  ;;  %v12613_v38 = vmul.f32 %v21224_v22, %v21220_v55 }
0x4d2b   :  { %v12612_v42 = vmul.f32 %v21226_v16, %v21222_v10 }
0x4d2d   :  { %19414 = vmatprep.mubr.msk.f32.mxu1 %vm6658_vm7, %v12612_v42 }
0x4d2e   :  { %19415 = vmatmul.mubr.msk.f32.vlgmr.msra.gmra.mrb[162].mxu1 %vm6658_vm7, %v12613_v38 }
0x4d2f   :  { %20609 = vmatpush3.bf16.msra.mxu1 %v20606_v30  ;;  %19430 = vmatprep.mubr.msk.f32.mxu1 %vm156_vm0, %v23051_v56 }
0x4d30   :  { %20611 = vmatprep.subr.bf16.mxu1 %v20610_v39 }
0x4d33   :  { %20613 = vmatpush3.bf16.msra.mxu1 %v20610_v39  ;;  %v16930_v39 = vld [vmem:[%s23574_s29 + $0x200] sm:$0xff] }
0x4d34   :  { %20623 = vmatprep.subr.bf16.mxu1 %v20622_v1  ;;  %v20648_v3 = vpack.c.bf16 %v16931_v2, %v16930_v39 }
0x4d36   :  { %19431 = vmatmul.mubr.msk.f32.vlgmr.msra.gmra.mrb[164].mxu1 %vm156_vm0, %v23053_v17 }
0x4d37   :  { %20625 = vmatpush3.bf16.msra.mxu1 %v20622_v1  ;;  %19452 = vmatprep.mubr.msk.f32.mxu1 %vm156_vm0, %v23051_v56  ;;  %v16932_v1 = vld [vmem:[%s23574_s29 + $0x210] sm:$0xff] }
0x4d38   :  { %20627 = vmatprep.subr.bf16.mxu1 %v20626_v18  ;;  %v20652_v32 = vpack.c.bf16 %v16933_v5, %v16932_v1 }
0x4d3b   :  { %20629 = vmatpush3.bf16.msra.mxu1 %v20626_v18 }
0x4d3e   :  { %19453 = vmatmul.mubr.msk.f32.vlgmr.msra.gmra.mrb[166].mxu1 %vm156_vm0, %v23053_v17 }
0x4e01   :  { %v19416_v62 = vpop.f32.mrb[162].mxu1 }
0x4e02   :  { %v12686_v47 = vpop.f32.mrb[163].mxu1 }
0x4e03   :  { %19419 = vmatprep.mubr.msk.f32.mxu0 %vm450_vm1, %v12686_v47 }
0x4e04   :  { %19420 = vmatmul.mubr.msk.f32.vlgmr.msra.gmra.mrb[150].mxu0 %vm450_vm1, %v19416_v62 }
0x4e05   :  { %20617 = vmatpush3.bf16.msra.mxu0 %v20614_v49  ;;  %19441 = vmatprep.mubr.msk.f32.mxu0 %vm156_vm0, %v23051_v56 }
0x4e06   :  { %20619 = vmatprep.subr.bf16.mxu0 %v20618_v45 }
0x4e09   :  { %v19432_v31 = vpop.f32.mrb[164].mxu1  ;;  %20621 = vmatpush3.bf16.msra.mxu0 %v20618_v45 }
0x4e0a   :  { %v12865_v28 = vadd.f32 %v19432_v31, %v16888_v35  ;;  %v12859_v50 = vpop.f32.mrb[165].mxu1  ;;  %v16935_v31 = vld [vmem:[%s23576_s3 + $0x10] ss:$0 sm:$0xff] }
0x4e0b   :  { %v12860_v37 = vadd.f32 %v16888_v35, %v12859_v50 }
0x4e0c   :  { %19442 = vmatmul.mubr.msk.f32.vlgmr.msra.gmra.mrb[156].mxu0 %vm156_vm0, %v23053_v17 }
0x4e0d   :  { %19459 = vmatprep.mubr.msk.f32.mxu0 %vm450_vm1, %v12860_v37 }
0x4e11   :  { %v19454_v13 = vpop.f32.mrb[166].mxu1 }
0x4e12   :  { %v13041_v61 = vadd.f32 %v19454_v13, %v16904_v60  ;;  %v13035_v59 = vpop.f32.mrb[167].mxu1 }
0x4e13   :  { %v13036_v57 = vadd.f32 %v16904_v60, %v13035_v59 }
0x4e15   :  { %v20636_v46 = vpack.c.bf16 %v13041_v61, %v13036_v57 }
0x4e17   :  { %20637 = vmatprep.subr.bf16.mxu1 %v20636_v46 }
0x4e18   :  { %20639 = vmatpush3.bf16.msra.mxu1 %v20636_v46 }
0x4edf   :  { %v19443_v23 = vpop.f32.mrb[156].mxu0 }
0x4ee0   :  { %v12953_v41 = vadd.f32 %v19443_v23, %v16896_v44  ;;  %v12947_v53 = vpop.f32.mrb[157].mxu0 }
0x4ee1   :  { %v12948_v51 = vadd.f32 %v16896_v44, %v12947_v53 }
0x4ee3   :  { %v20630_v6 = vpack.c.bf16 %v12953_v41, %v12948_v51 }
0x4ee5   :  { %20632 = vmatprep.subr.msk.bf16.mxu0 %vm21596_vm2, %v20630_v6 }
0x4ee6   :  { %20635 = vmatpush3.bf16.xpose.msk.msra.mxu0 %vm21596_vm2, %v20630_v6 }
0x4ee7   :  { %19469 = vmatprep.subr.mxu0 %v16913_v43 }
0x4eed   :  { %19460 = vmatmul.mubr.msk.f32.vlgmr.msra.gmra.mrb[158].mxu0 %vm450_vm1, %v12865_v28 }
0x4eee   :  { %19470 = vmatpush3.msra.mxu0 %v16913_v43 }
0x4eef   :  { %20649 = vmatprep.subr.bf16.mxu0 %v20648_v3 }
0x4fc0   :  { %v19461_v25 = vpop.f32.mrb[158].mxu0 }
0x4fc1   :  { %v13132_v7 = vmul.f32 0.35355338, %v19461_v25  ;;  %v13122_v24 = vpop.f32.mrb[159].mxu0 }
0x4fc2   :  { %v13131_v12 = vmul.f32 0.35355338, %v13122_v24 }
0x4fc3   :  { %v13134_v8 = vadd.f32 %v23093_v29, %v13132_v7 }
0x4fc4   :  { %v13133_v52 = vadd.f32 %v23097_v54, %v13131_v12 }
0x4fc5   :  { %v13138_v26 = vsel %vm6658_vm7, %v13134_v8, -inf }
0x4fc6   :  { %13139 = vmax.xlane.f32.xlu1 %v13138_v26  ;;  %v13135_v55 = vsel %vm6658_vm7, %v13133_v52, -inf  ;;  %v16924_v26 = vld [vmem:[%s23574_s29 + $0x190] sm:$0xff] }
0x4fc7   :  { %13136 = vmax.xlane.f32.xlu0 %v13135_v55 }
0x5053   :  { %v13140_v10 = vpop.xlane.xlu1 %13139 }
0x5054   :  { %v13142_v9 = vsub.f32 %v13134_v8, %v13140_v10  ;;  %v13137_v19 = vpop.xlane.xlu0 %13136  ;;  %v16922_v8 = vld [vmem:[%s23574_s29 + $0x180] sm:$0xff]  ;;  %v16925_v10 = vld [vmem:[%s23574_s29 + $0x198] sm:$0xff] }
0x5055   :  { %v13141_v63 = vsub.f32 %v13133_v52, %v13137_v19  ;;  %v16923_v52 = vld [vmem:[%s23574_s29 + $0x188] sm:$0xff]  ;;  %v16940_v19 = vld [vmem:[%s23574_s29 + $0x280] sm:$0xff] }
0x5056   :  { %v13145_v21 = vmul.f32 1.442695, %v13142_v9  ;;  %v20640_v55 = vpack.c.bf16 %v16923_v52, %v16922_v8  ;;  %v20644_v9 = vpack.c.bf16 %v16925_v10, %v16924_v26 }
0x5057   :  { %v13143_v30 = vmul.f32 1.442695, %v13141_v63  ;;  %v16941_v63 = vld [vmem:[%s23574_s29 + $0x288] sm:$0xff] }
0x5058   :  { %21227 = vpow2.f32 %v13145_v21  ;;  %20641 = vmatprep.subr.bf16.mxu1 %v20640_v55  ;;  %v20656_v21 = vpack.c.bf16 %v16941_v63, %v16940_v19  ;;  %v23306_v63 = vld [vmem:[%s23577_s8] sm:$0xff] }
0x5059   :  { %21229 = vpow2.f32 %v13143_v30 }
0x5062   :  { %v21228_v15 = vpop.eup %21227 }
0x5063   :  { %v21230_v33 = vpop.eup %21229  ;;  %v13150_v29 = vsel %vm6658_vm7, %v21228_v15, 0.0 }
0x5064   :  { %13151 = vadd.xlane.f32.xlu1 %v13150_v29  ;;  %v13147_v54 = vsel %vm6658_vm7, %v21230_v33, 0.0 }
0x5065   :  { %13148 = vadd.xlane.f32.xlu0 %v13147_v54 }
0x50f1   :  { %v13152_v22 = vpop.xlane.xlu1 %13151 }
0x50f2   :  { %21231 = vrcp.f32 %v13152_v22  ;;  %v13149_v11 = vpop.xlane.xlu0 %13148 }
0x50f3   :  { %21233 = vrcp.f32 %v13149_v11 }
0x50fc   :  { %v21232_v20 = vpop.eup %21231 }
0x50fd   :  { %v21234_v16 = vpop.eup %21233  ;;  %v13156_v38 = vmul.f32 %v21232_v20, %v21228_v15 }
0x50fe   :  { %v13155_v42 = vmul.f32 %v21234_v16, %v21230_v33 }
0x5100   :  { %19466 = vmatprep.mubr.msk.f32.mxu1 %vm6658_vm7, %v13155_v42 }
0x5101   :  { %19467 = vmatmul.mubr.msk.f32.vlgmr.msra.gmra.mrb[168].mxu1 %vm6658_vm7, %v13156_v38 }
0x5102   :  { %20643 = vmatpush3.bf16.msra.mxu1 %v20640_v55 }
0x5103   :  { %20645 = vmatprep.subr.bf16.mxu1 %v20644_v9 }
0x5106   :  { %20647 = vmatpush3.bf16.msra.mxu1 %v20644_v9  ;;  %v23302_v9 = vld [vmem:[%s23577_s8 + $0x8] sm:$0xff] }
0x5107   :  { %20657 = vmatprep.subr.bf16.mxu1 %v20656_v21 }
0x51d4   :  { %v19468_v36 = vpop.f32.mrb[168].mxu1 }
0x51d5   :  { %v13229_v18 = vpop.f32.mrb[169].mxu1 }
0x51d6   :  { %19471 = vmatprep.mubr.msk.f32.mxu0 %vm450_vm1, %v13229_v18 }
0x51d7   :  { %19472 = vmatmul.mubr.msk.f32.vlgmr.msra.gmra.mrb[150].mxu0 %vm450_vm1, %v19468_v36  ;;  %v16920_v36 = vld [vmem:[%s23575_s9 + $0x2] ss:$0 sm:$0xff] }
0x51d8   :  { %20651 = vmatpush3.bf16.msra.mxu0 %v20648_v3  ;;  %19493 = vmatprep.mubr.msk.f32.mxu0 %vm156_vm0, %v22741_v48 }
0x51d9   :  { %20653 = vmatprep.subr.bf16.mxu0 %v20652_v32 }
0x51dc   :  { %20655 = vmatpush3.bf16.msra.mxu0 %v20652_v32 }
0x51df   :  { %19494 = vmatmul.mubr.msk.f32.vlgmr.msra.gmra.mrb[160].mxu0 %vm156_vm0, %v22738_v40 }
0x51e0   :  { %19496 = vmatprep.mubr.msk.f32.mxu0 %vm156_vm0, %v22754_v4 }
0x51e3   :  { %19497 = vmatmul.mubr.msk.f32.gmra.mrb[162].mxu0 %vm156_vm0, %v22750_v34 }
0x52aa   :  { %v19473_v49 = vpop.f32.mrb[150].mxu0 }
0x52ab   :  { %v13332_v0 = vadd.f32 %v19473_v49, %v16917_v14  ;;  %v13312_v58 = vpop.f32.mrb[151].mxu0  ;;  %v16921_v49 = vld [vmem:[%s23575_s9 + $0x3] ss:$0 sm:$0xff] }
0x52ac   :  { %v13331_v62 = vadd.f32 %v16917_v14, %v13312_v58 }
0x52ad   :  { %v13334_v47 = vadd.f32 %v13332_v0, %v23053_v17 }
0x52ae   :  { %v13333_v45 = vadd.f32 %v13331_v62, %v23051_v56  ;;  %v16942_v62 = vld [vmem:[%s23574_s29 + $0x290] sm:$0xff] }
0x52af   :  { %v13342_v35 = vsel %vm156_vm0, %v13334_v47, 0.0 }
0x52b0   :  { %13343 = vadd.xlane.f32.xlu1 %v13342_v35  ;;  %v13339_v28 = vsel %vm156_vm0, %v13333_v45, 0.0 }
0x52b1   :  { %13340 = vadd.xlane.f32.xlu0 %v13339_v28  ;;  %v16967_v28 = vld [vmem:[%s23574_s29 + $0x220] sm:$0xff] }
0x52b2   :  { %v19495_v50 = vpop.f32.mrb[160].mxu0 }
0x52b3   :  { %v13574_v37 = vadd.f32 %v19495_v50, %v16935_v31  ;;  %v13568_v60 = vpop.f32.mrb[161].mxu0  ;;  %v16968_v50 = vld [vmem:[%s23574_s29 + $0x228] sm:$0xff] }
0x52b4   :  { %v13569_v13 = vadd.f32 %v16935_v31, %v13568_v60  ;;  %v16927_v60 = vld [vmem:[%s23576_s3 + $0xc] ss:$0 sm:$0xff] }
0x52b6   :  { %v20664_v61 = vpack.c.bf16 %v13574_v37, %v13569_v13  ;;  %v19498_v59 = vpop.f32.mrb[162].mxu0  ;;  %v20692_v37 = vpack.c.bf16 %v16968_v50, %v16967_v28 }
0x52b7   :  { %v13584_v57 = vadd.f32 %v19498_v59, %v16935_v31  ;;  %v13578_v46 = vpop.f32.mrb[163].mxu0  ;;  %v16970_v59 = vld [vmem:[%s23574_s29 + $0x238] sm:$0xff] }
0x52b8   :  { %v13579_v44 = vadd.f32 %v16935_v31, %v13578_v46  ;;  %20666 = vmatprep.subr.msk.bf16.mxu0 %vm21596_vm2, %v20664_v61 }
0x52b9   :  { %20669 = vmatpush3.bf16.xpose.msk.msra.mxu0 %vm21596_vm2, %v20664_v61  ;;  %v16969_v61 = vld [vmem:[%s23574_s29 + $0x230] sm:$0xff] }
0x52ba   :  { %v20670_v56 = vpack.c.bf16 %v13584_v57, %v13579_v44 }
0x52bc   :  { %20672 = vmatprep.subr.msk.bf16.mxu0 %vm21596_vm2, %v20670_v56 }
0x52c1   :  { %20675 = vmatpush3.bf16.xpose.msk.msra.mxu0 %vm21596_vm2, %v20670_v56  ;;  %v20696_v56 = vpack.c.bf16 %v16970_v59, %v16969_v61 }
0x52c2   :  { %20693 = vmatprep.subr.bf16.mxu0 %v20692_v37 }
0x533d   :  { %v13344_v17 = vpop.xlane.xlu1 %13343 }
0x533e   :  { %v13346_v23 = vmul.f32 0.03125, %v13344_v17  ;;  %v13341_v41 = vpop.xlane.xlu0 %13340  ;;  %v16945_v17 = vld [vmem:[%s23576_s3 + $0x14] ss:$0 sm:$0xff] }
0x533f   :  { %v13345_v53 = vmul.f32 0.03125, %v13341_v41 }
0x5340   :  { %v13348_v51 = vsub.f32 %v13334_v47, %v13346_v23  ;;  %v16943_v47 = vld [vmem:[%s23574_s29 + $0x298] sm:$0xff] }
0x5341   :  { %v13347_v6 = vsub.f32 %v13333_v45, %v13345_v53  ;;  %v20660_v31 = vpack.c.bf16 %v16943_v47, %v16942_v62  ;;  %v16960_v62 = vld [vmem:[%s23574_s29 + $0x1a8] sm:$0xff] }
0x5342   :  { %v13350_v25 = vmul.f32 %v13348_v51, %v13348_v51 }
0x5343   :  { %v13349_v7 = vmul.f32 %v13347_v6, %v13347_v6 }
0x5344   :  { %v13354_v24 = vsel %vm156_vm0, %v13350_v25, 0.0 }
0x5345   :  { %13355 = vadd.xlane.f32.xlu1 %v13354_v24  ;;  %v13351_v12 = vsel %vm156_vm0, %v13349_v7, 0.0 }
0x5346   :  { %13352 = vadd.xlane.f32.xlu0 %v13351_v12 }
0x53d2   :  { %v13356_v30 = vpop.xlane.xlu1 %13355 }
0x53d3   :  { %v13358_v15 = vmul.f32 0.032258064, %v13356_v30  ;;  %v13353_v33 = vpop.xlane.xlu0 %13352 }
0x53d4   :  { %v13357_v29 = vmul.f32 0.032258064, %v13353_v33 }
0x53d5   :  { %21235 = vrsqrt.f32 %v13358_v15  ;;  %vm13368_vm7 = vcmp.eq.f32.partialorder %v13358_v15, inf  ;;  %v13371_v11 = vand.u32 2147483648, %v13358_v15  ;;  %vm13370_vm15 = vcmp.eq.f32.partialorder %v13358_v15, 0.0 }
0x53d6   :  { %21237 = vrsqrt.f32 %v13357_v29  ;;  %vm13361_vm3 = vcmp.eq.f32.partialorder %v13357_v29, inf  ;;  %v13364_v42 = vand.u32 2147483648, %v13357_v29  ;;  %vm13363_vm4 = vcmp.eq.f32.partialorder %v13357_v29, 0.0 }
0x53df   :  { %v21236_v54 = vpop.eup %21235 }
0x53e0   :  { %v21238_v43 = vpop.eup %21237  ;;  %v13367_v22 = vmul.f32 %v21236_v54, %v13358_v15 }
0x53e1   :  { %v13360_v20 = vmul.f32 %v21238_v43, %v13357_v29 }
0x53e2   :  { %v13369_v16 = vsel %vm13368_vm7, %v13358_v15, %v13367_v22  ;;  %v16972_v15 = vld [vmem:[%s23576_s3 + $0x11] ss:$0 sm:$0xff] }
0x53e3   :  { %v13372_v38 = vsel %vm13370_vm15, %v13371_v11, %v13369_v16  ;;  %v13362_v39 = vsel %vm13361_vm3, %v13357_v29, %v13360_v20 }
0x53e4   :  { %v13374_v2 = vadd.f32 1e-06, %v13372_v38  ;;  %v13365_v3 = vsel %vm13363_vm4, %v13364_v42, %v13362_v39 }
0x53e5   :  { %v13373_v1 = vadd.f32 1e-06, %v13365_v3 }
0x53e6   :  { %21239 = vrcp.f32 %v13374_v2 }
0x53e7   :  { %21241 = vrcp.f32 %v13373_v1 }
0x53f0   :  { %v21240_v5 = vpop.eup %21239 }
0x53f1   :  { %v21242_v18 = vpop.eup %21241  ;;  %v13378_v32 = vmul.f32 %v21240_v5, %v13348_v51 }
0x53f2   :  { %v13377_v14 = vmul.f32 %v21242_v18, %v13347_v6 }
0x53f3   :  { %v13386_v0 = vmul.f32 %v16920_v36, %v13378_v32 }
0x53f4   :  { %v13385_v58 = vmul.f32 %v16920_v36, %v13377_v14 }
0x53f5   :  { %v23271_v35 = vadd.f32 %v16921_v49, %v13386_v0 }
0x53f6   :  { %v23269_v45 = vadd.f32 %v16921_v49, %v13385_v58  ;;  %v16959_v58 = vld [vmem:[%s23574_s29 + $0x1a0] sm:$0xff] }
0x53f7   :  { %v20684_v47 = vpack.c.bf16 %v16960_v62, %v16959_v58  ;;  %v23376_v58 = vld [vmem:[%s23576_s3 + $0xe] ss:$0 sm:$0xff] }
0x53f8   :  { %19482 = vmatprep.mubr.msk.f32.mxu1 %vm156_vm0, %v23269_v45 }
0x53f9   :  { %19483 = vmatmul.mubr.msk.f32.vlgmr.msra.gmra.mrb[170].mxu1 %vm156_vm0, %v23271_v35 }
0x53fa   :  { %20659 = vmatpush3.bf16.msra.mxu1 %v20656_v21  ;;  %19507 = vmatprep.mubr.msk.f32.mxu1 %vm156_vm0, %v22741_v48 }
0x53fb   :  { %20661 = vmatprep.subr.bf16.mxu1 %v20660_v31 }
0x53fe   :  { %20663 = vmatpush3.bf16.msra.mxu1 %v20660_v31 }
0x5401   :  { %19508 = vmatmul.mubr.msk.f32.vlgmr.msra.gmra.mrb[172].mxu1 %vm156_vm0, %v22738_v40 }
0x5402   :  { %19510 = vmatprep.mubr.msk.f32.mxu1 %vm156_vm0, %v22754_v4 }
0x5405   :  { %19511 = vmatmul.mubr.msk.f32.gmra.mrb[174].mxu1 %vm156_vm0, %v22750_v34 }
0x54cc   :  { %v19484_v13 = vpop.f32.mrb[170].mxu1 }
0x54cd   :  { %v13480_v57 = vpop.f32.mrb[171].mxu1  ;;  %v13486_v44 = vadd.f32 %v19484_v13, %v16927_v60 }
0x54ce   :  { %v13481_v46 = vadd.f32 %v16927_v60, %v13480_v57  ;;  %v16962_v60 = vld [vmem:[%s23574_s29 + $0x1b8] sm:$0xff] }
0x54d0   :  { %19521 = vmatprep.mubr.msk.f32.mxu0 %vm450_vm1, %v13481_v46  ;;  %v16977_v46 = vld [vmem:[%s23574_s29 + $0x2a0] sm:$0xff] }
0x54d1   :  { %19522 = vmatmul.mubr.msk.f32.vlgmr.msra.gmra.mrb[164].mxu0 %vm450_vm1, %v13486_v44  ;;  %v16978_v44 = vld [vmem:[%s23574_s29 + $0x2a8] sm:$0xff] }
0x54d2   :  { %20695 = vmatpush3.bf16.msra.mxu0 %v20692_v37  ;;  %19554 = vmatprep.mubr.msk.f32.mxu0 %vm156_vm0, %v22741_v48  ;;  %v16961_v37 = vld [vmem:[%s23574_s29 + $0x1b0] sm:$0xff] }
0x54d3   :  { %20697 = vmatprep.subr.bf16.mxu0 %v20696_v56  ;;  %v20688_v57 = vpack.c.bf16 %v16962_v60, %v16961_v37 }
0x54d4   :  { %v19509_v23 = vpop.f32.mrb[172].mxu1 }
0x54d5   :  { %v13672_v41 = vadd.f32 %v19509_v23, %v16945_v17  ;;  %v13666_v53 = vpop.f32.mrb[173].mxu1  ;;  %v16980_v23 = vld [vmem:[%s23574_s29 + $0x2b8] sm:$0xff] }
0x54d6   :  { %v13667_v51 = vadd.f32 %v16945_v17, %v13666_v53  ;;  %20699 = vmatpush3.bf16.msra.mxu0 %v20696_v56  ;;  %v20700_v56 = vpack.c.bf16 %v16978_v44, %v16977_v46  ;;  %v17000_v53 = vld [vmem:[%s23574_s29 + $0x1c0] sm:$0xff] }
0x54d8   :  { %v20676_v6 = vpack.c.bf16 %v13672_v41, %v13667_v51  ;;  %v19512_v25 = vpop.f32.mrb[174].mxu1  ;;  %v17001_v51 = vld [vmem:[%s23574_s29 + $0x1c8] sm:$0xff] }
0x54d9   :  { %v13682_v7 = vadd.f32 %v19512_v25, %v16945_v17  ;;  %v13676_v24 = vpop.f32.mrb[175].mxu1  ;;  %19555 = vmatmul.mubr.msk.f32.vlgmr.msra.gmra.mrb[166].mxu0 %vm156_vm0, %v22738_v40 }
0x54da   :  { %v13677_v12 = vadd.f32 %v16945_v17, %v13676_v24  ;;  %20677 = vmatprep.subr.bf16.mxu1 %v20676_v6  ;;  %19557 = vmatprep.mubr.msk.f32.mxu0 %vm156_vm0, %v22754_v4  ;;  %v16979_v17 = vld [vmem:[%s23574_s29 + $0x2b0] sm:$0xff]  ;;  %v16964_v24 = vld [vmem:[%s23576_s3 + $0xd] ss:$0 sm:$0xff] }
0x54db   :  { %20679 = vmatpush3.bf16.msra.mxu1 %v20676_v6  ;;  %v20704_v41 = vpack.c.bf16 %v16980_v23, %v16979_v17  ;;  %v20728_v6 = vpack.c.bf16 %v17001_v51, %v17000_v53 }
0x54dc   :  { %v20680_v8 = vpack.c.bf16 %v13682_v7, %v13677_v12 }
0x54dd   :  { %19558 = vmatmul.mubr.msk.f32.gmra.mrb[168].mxu0 %vm156_vm0, %v22750_v34 }
0x54de   :  { %20681 = vmatprep.subr.bf16.mxu1 %v20680_v8 }
0x54df   :  { %20683 = vmatpush3.bf16.msra.mxu1 %v20680_v8  ;;  %v17002_v8 = vld [vmem:[%s23574_s29 + $0x1d0] sm:$0xff] }
0x54e0   :  { %20685 = vmatprep.subr.bf16.mxu1 %v20684_v47 }
0x55a4   :  { %v19523_v52 = vpop.f32.mrb[164].mxu0 }
0x55a5   :  { %v13779_v26 = vmul.f32 0.35355338, %v19523_v52  ;;  %v13769_v55 = vpop.f32.mrb[165].mxu0  ;;  %v17003_v52 = vld [vmem:[%s23574_s29 + $0x1d8] sm:$0xff] }
0x55a6   :  { %v13778_v10 = vmul.f32 0.35355338, %v13769_v55 }
0x55a7   :  { %v13781_v19 = vadd.f32 %v23302_v9, %v13779_v26 }
0x55a8   :  { %v13780_v21 = vadd.f32 %v23306_v63, %v13778_v10 }
0x55a9   :  { %v13785_v30 = vsel %vm156_vm0, %v13781_v19, -inf }
0x55aa   :  { %13786 = vmax.xlane.f32.xlu1 %v13785_v30  ;;  %v13782_v33 = vsel %vm156_vm0, %v13780_v21, -inf  ;;  %v17019_v30 = vld [vmem:[%s23574_s29 + $0x2c8] sm:$0xff] }
0x55ab   :  { %13783 = vmax.xlane.f32.xlu0 %v13782_v33 }
0x55ac   :  { %v19556_v29 = vpop.f32.mrb[166].mxu0 }
0x55ad   :  { %v14060_v54 = vadd.f32 %v19556_v29, %v16972_v15  ;;  %v14054_v43 = vpop.f32.mrb[167].mxu0 }
0x55ae   :  { %v14055_v22 = vadd.f32 %v16972_v15, %v14054_v43  ;;  %v17021_v43 = vld [vmem:[%s23574_s29 + $0x2d8] sm:$0xff] }
0x55b0   :  { %v20708_v11 = vpack.c.bf16 %v14060_v54, %v14055_v22  ;;  %v19559_v20 = vpop.f32.mrb[168].mxu0  ;;  %v17020_v54 = vld [vmem:[%s23574_s29 + $0x2d0] sm:$0xff] }
0x55b1   :  { %v14070_v16 = vadd.f32 %v19559_v20, %v16972_v15  ;;  %v14064_v42 = vpop.f32.mrb[169].mxu0 }
0x55b2   :  { %v14065_v38 = vadd.f32 %v16972_v15, %v14064_v42  ;;  %20710 = vmatprep.subr.msk.bf16.mxu0 %vm21596_vm2, %v20708_v11  ;;  %v16982_v15 = vld [vmem:[%s23576_s3 + $0x15] ss:$0 sm:$0xff] }
0x55b3   :  { %20713 = vmatpush3.bf16.xpose.msk.msra.mxu0 %vm21596_vm2, %v20708_v11 }
0x55b4   :  { %v20714_v39 = vpack.c.bf16 %v14070_v16, %v14065_v38  ;;  %v20748_v16 = vpack.c.bf16 %v17021_v43, %v17020_v54  ;;  %v17008_v54 = vld [vmem:[%s23574_s29 + $0x240] sm:$0xff]  ;;  %v17009_v43 = vld [vmem:[%s23574_s29 + $0x248] sm:$0xff] }
0x55b6   :  { %20716 = vmatprep.subr.msk.bf16.mxu0 %vm21596_vm2, %v20714_v39 }
0x55bb   :  { %20719 = vmatpush3.bf16.xpose.msk.msra.mxu0 %vm21596_vm2, %v20714_v39 }
0x55bc   :  { %20729 = vmatprep.subr.bf16.mxu0 %v20728_v6 }
0x5637   :  { %v13787_v2 = vpop.xlane.xlu1 %13786 }
0x5638   :  { %v13789_v3 = vsub.f32 %v13781_v19, %v13787_v2  ;;  %v13784_v1 = vpop.xlane.xlu0 %13783  ;;  %v20732_v19 = vpack.c.bf16 %v17003_v52, %v17002_v8 }
0x5639   :  { %v13788_v5 = vsub.f32 %v13780_v21, %v13784_v1  ;;  %v17018_v21 = vld [vmem:[%s23574_s29 + $0x2c0] sm:$0xff] }
0x563a   :  { %v13792_v36 = vmul.f32 1.442695, %v13789_v3  ;;  %v20744_v33 = vpack.c.bf16 %v17019_v30, %v17018_v21 }
0x563b   :  { %v13790_v18 = vmul.f32 1.442695, %v13788_v5 }
0x563c   :  { %21243 = vpow2.f32 %v13792_v36 }
0x563d   :  { %21245 = vpow2.f32 %v13790_v18 }
0x5646   :  { %v21244_v32 = vpop.eup %21243 }
0x5647   :  { %v21246_v14 = vpop.eup %21245  ;;  %v13797_v49 = vsel %vm156_vm0, %v21244_v32, 0.0 }
0x5648   :  { %13798 = vadd.xlane.f32.xlu1 %v13797_v49  ;;  %v13794_v0 = vsel %vm156_vm0, %v21246_v14, 0.0 }
0x5649   :  { %13795 = vadd.xlane.f32.xlu0 %v13794_v0 }
0x56d5   :  { %v13799_v31 = vpop.xlane.xlu1 %13798 }
0x56d6   :  { %21247 = vrcp.f32 %v13799_v31  ;;  %v13796_v28 = vpop.xlane.xlu0 %13795 }
0x56d7   :  { %21249 = vrcp.f32 %v13796_v28 }
0x56e0   :  { %v21248_v50 = vpop.eup %21247 }
0x56e1   :  { %v21250_v13 = vpop.eup %21249  ;;  %v13803_v59 = vmul.f32 %v21248_v50, %v21244_v32  ;;  %v17023_v50 = vld [vmem:[%s23576_s3 + $0x16] ss:$0 sm:$0xff] }
0x56e2   :  { %v13802_v61 = vmul.f32 %v21250_v13, %v21246_v14 }
0x56e4   :  { %19532 = vmatprep.mubr.msk.f32.mxu1 %vm156_vm0, %v13802_v61 }
0x56e5   :  { %19533 = vmatmul.mubr.msk.f32.vlgmr.msra.gmra.mrb[176].mxu1 %vm156_vm0, %v13803_v59 }
0x56e6   :  { %20687 = vmatpush3.bf16.msra.mxu1 %v20684_v47  ;;  %19543 = vmatprep.mubr.msk.f32.mxu1 %vm156_vm0, %v23269_v45 }
0x56e7   :  { %20689 = vmatprep.subr.bf16.mxu1 %v20688_v57 }
0x56ea   :  { %20691 = vmatpush3.bf16.msra.mxu1 %v20688_v57 }
0x56eb   :  { %20701 = vmatprep.subr.bf16.mxu1 %v20700_v56 }
0x56ed   :  { %19544 = vmatmul.mubr.msk.f32.vlgmr.msra.gmra.mrb[178].mxu1 %vm156_vm0, %v23271_v35 }
0x56ee   :  { %20703 = vmatpush3.bf16.msra.mxu1 %v20700_v56  ;;  %19568 = vmatprep.mubr.msk.f32.mxu1 %vm156_vm0, %v22741_v48 }
0x56ef   :  { %20705 = vmatprep.subr.bf16.mxu1 %v20704_v41 }
0x56f2   :  { %20707 = vmatpush3.bf16.msra.mxu1 %v20704_v41 }
0x56f5   :  { %19569 = vmatmul.mubr.msk.f32.vlgmr.msra.gmra.mrb[180].mxu1 %vm156_vm0, %v22738_v40 }
0x56f6   :  { %19571 = vmatprep.mubr.msk.f32.mxu1 %vm156_vm0, %v22754_v4 }
0x56f9   :  { %19572 = vmatmul.mubr.msk.f32.gmra.mrb[182].mxu1 %vm156_vm0, %v22750_v34 }
0x57b8   :  { %v23346_v25 = vpop.f32.mrb[176].mxu1 }
0x57b9   :  { %v23348_v7 = vpop.f32.mrb[177].mxu1 }
0x57c0   :  { %v19545_v12 = vpop.f32.mrb[178].mxu1 }
0x57c1   :  { %v13966_v26 = vpop.f32.mrb[179].mxu1  ;;  %v13972_v10 = vadd.f32 %v19545_v12, %v16964_v24 }
0x57c2   :  { %v13967_v55 = vadd.f32 %v16964_v24, %v13966_v26 }
0x57c4   :  { %19582 = vmatprep.mubr.msk.f32.mxu0 %vm450_vm1, %v13967_v55  ;;  %v16995_v55 = vld [vmem:[%s23578_s14 + $0x28] sm:$0xff] }
0x57c5   :  { %19583 = vmatmul.mubr.msk.f32.vlgmr.msra.gmra.mrb[170].mxu0 %vm450_vm1, %v13972_v10 }
0x57c6   :  { %20731 = vmatpush3.bf16.msra.mxu0 %v20728_v6  ;;  %19614 = vmatprep.mubr.msk.f32.mxu0 %vm156_vm0, %v23269_v45 }
0x57c7   :  { %20733 = vmatprep.subr.bf16.mxu0 %v20732_v19 }
0x57c8   :  { %v19570_v29 = vpop.f32.mrb[180].mxu1 }
0x57c9   :  { %v14158_v22 = vadd.f32 %v19570_v29, %v16982_v15  ;;  %v14152_v11 = vpop.f32.mrb[181].mxu1  ;;  %v16958_v29 = vld [vmem:[%s23578_s14 + $0x20] sm:$0xff] }
0x57ca   :  { %v14153_v20 = vadd.f32 %v16982_v15, %v14152_v11  ;;  %20735 = vmatpush3.bf16.msra.mxu0 %v20732_v19 }
0x57cb   :  { %20745 = vmatprep.subr.bf16.mxu0 %v20744_v33 }
0x57cc   :  { %v20720_v42 = vpack.c.bf16 %v14158_v22, %v14153_v20  ;;  %v19573_v38 = vpop.f32.mrb[182].mxu1  ;;  %v20736_v20 = vpack.c.bf16 %v17009_v43, %v17008_v54  ;;  %v17060_v54 = vld [vmem:[%s23574_s29 + $0x2f8] sm:$0xff] }
0x57cd   :  { %v14168_v39 = vadd.f32 %v19573_v38, %v16982_v15  ;;  %19615 = vmatmul.mubr.msk.f32.vlgmr.msra.gmra.mrb[172].mxu0 %vm156_vm0, %v23271_v35  ;;  %v14162_v2 = vpop.f32.mrb[183].mxu1 }
0x57ce   :  { %v14163_v3 = vadd.f32 %v16982_v15, %v14162_v2  ;;  %20747 = vmatpush3.bf16.msra.mxu0 %v20744_v33  ;;  %19639 = vmatprep.mubr.msk.f32.mxu0 %vm156_vm0, %v22741_v48 }
0x57cf   :  { %20721 = vmatprep.subr.bf16.mxu1 %v20720_v42  ;;  %20749 = vmatprep.subr.bf16.mxu0 %v20748_v16 }
0x57d0   :  { %v20724_v1 = vpack.c.bf16 %v14168_v39, %v14163_v3  ;;  %20723 = vmatpush3.bf16.msra.mxu1 %v20720_v42  ;;  %v17011_v42 = vld [vmem:[%s23574_s29 + $0x258] sm:$0xff] }
0x57d2   :  { %20751 = vmatpush3.bf16.msra.mxu0 %v20748_v16  ;;  %20725 = vmatprep.subr.bf16.mxu1 %v20724_v1  ;;  %v17010_v16 = vld [vmem:[%s23574_s29 + $0x250] sm:$0xff] }
0x57d3   :  { %v20740_v38 = vpack.c.bf16 %v17011_v42, %v17010_v16  ;;  %v17049_v16 = vld [vmem:[%s23574_s29 + $0x270] sm:$0xff]  ;;  %v17050_v42 = vld [vmem:[%s23574_s29 + $0x278] sm:$0xff] }
0x57d4   :  { %20727 = vmatpush3.bf16.msra.mxu1 %v20724_v1 }
0x57d5   :  { %19640 = vmatmul.mubr.msk.f32.vlgmr.msra.gmra.mrb[174].mxu0 %vm156_vm0, %v22738_v40  ;;  %19596 = vmatprep.subr.mxu1 %v16995_v55 }
0x57d6   :  { %19642 = vmatprep.mubr.msk.f32.mxu0 %vm156_vm0, %v22754_v4 }
0x57d9   :  { %19643 = vmatmul.mubr.msk.f32.gmra.mrb[176].mxu0 %vm156_vm0, %v22750_v34 }
0x5898   :  { %v19584_v5 = vpop.f32.mrb[170].mxu0 }
0x5899   :  { %v14265_v36 = vmul.f32 0.35355338, %v19584_v5  ;;  %v14255_v18 = vpop.f32.mrb[171].mxu0 }
0x589a   :  { %v14264_v32 = vmul.f32 0.35355338, %v14255_v18 }
0x589b   :  { %v14267_v14 = vadd.f32 %v23302_v9, %v14265_v36 }
0x589c   :  { %v14266_v49 = vadd.f32 %v23306_v63, %v14264_v32 }
0x589d   :  { %v14271_v0 = vsel %vm156_vm0, %v14267_v14, -inf }
0x589e   :  { %14272 = vmax.xlane.f32.xlu1 %v14271_v0  ;;  %v14268_v62 = vsel %vm156_vm0, %v14266_v49, -inf }
0x589f   :  { %14269 = vmax.xlane.f32.xlu0 %v14268_v62 }
0x58a0   :  { %v19616_v47 = vpop.f32.mrb[172].mxu0 }
0x58a1   :  { %v23380_v31 = vadd.f32 %v19616_v47, %v23376_v58  ;;  %v23382_v28 = vpop.f32.mrb[173].mxu0 }
0x58a8   :  { %v19641_v37 = vpop.f32.mrb[174].mxu0 }
0x58a9   :  { %v14806_v60 = vadd.f32 %v19641_v37, %v17023_v50  ;;  %v14800_v13 = vpop.f32.mrb[175].mxu0 }
0x58aa   :  { %v14801_v61 = vadd.f32 %v17023_v50, %v14800_v13 }
0x58ac   :  { %v20764_v59 = vpack.c.bf16 %v14806_v60, %v14801_v61  ;;  %v19644_v57 = vpop.f32.mrb[176].mxu0 }
0x58ad   :  { %v14816_v46 = vadd.f32 %v19644_v57, %v17023_v50  ;;  %v14810_v44 = vpop.f32.mrb[177].mxu0 }
0x58ae   :  { %v14811_v56 = vadd.f32 %v17023_v50, %v14810_v44  ;;  %20765 = vmatprep.subr.bf16.mxu0 %v20764_v59 }
0x58af   :  { %20767 = vmatpush3.bf16.msra.mxu0 %v20764_v59 }
0x58b0   :  { %v20768_v17 = vpack.c.bf16 %v14816_v46, %v14811_v56 }
0x58b2   :  { %20769 = vmatprep.subr.bf16.mxu0 %v20768_v17 }
0x58b3   :  { %20771 = vmatpush3.bf16.msra.mxu0 %v20768_v17 }
0x592b   :  { %v14273_v23 = vpop.xlane.xlu1 %14272 }
0x592c   :  { %v14275_v41 = vsub.f32 %v14267_v14, %v14273_v23  ;;  %v14270_v53 = vpop.xlane.xlu0 %14269 }
0x592d   :  { %v14274_v51 = vsub.f32 %v14266_v49, %v14270_v53  ;;  %v17040_v53 = vld [vmem:[%s23574_s29 + $0x1e8] sm:$0xff] }
0x592e   :  { %v14278_v6 = vmul.f32 1.442695, %v14275_v41  ;;  %v17039_v41 = vld [vmem:[%s23574_s29 + $0x1e0] sm:$0xff] }
0x592f   :  { %v14276_v24 = vmul.f32 1.442695, %v14274_v51  ;;  %v20772_v51 = vpack.c.bf16 %v17040_v53, %v17039_v41 }
0x5930   :  { %21251 = vpow2.f32 %v14278_v6  ;;  %v17036_v6 = vld [vmem:[%s23578_s14 + $0x30] sm:$0xff] }
0x5931   :  { %21253 = vpow2.f32 %v14276_v24  ;;  %20773 = vmatprep.subr.bf16.mxu0 %v20772_v51 }
0x593a   :  { %v21252_v12 = vpop.eup %21251 }
0x593b   :  { %v21254_v8 = vpop.eup %21253  ;;  %v14283_v52 = vsel %vm156_vm0, %v21252_v12, 0.0 }
0x593c   :  { %14284 = vadd.xlane.f32.xlu1 %v14283_v52  ;;  %v14280_v26 = vsel %vm156_vm0, %v21254_v8, 0.0  ;;  %v17041_v52 = vld [vmem:[%s23574_s29 + $0x1f0] sm:$0xff] }
0x593d   :  { %14281 = vadd.xlane.f32.xlu0 %v14280_v26  ;;  %v17042_v26 = vld [vmem:[%s23574_s29 + $0x1f8] sm:$0xff] }
0x59c9   :  { %v14285_v10 = vpop.xlane.xlu1 %14284 }
0x59ca   :  { %21255 = vrcp.f32 %v14285_v10  ;;  %v14282_v19 = vpop.xlane.xlu0 %14281 }
0x59cb   :  { %21257 = vrcp.f32 %v14282_v19 }
0x59d4   :  { %v21256_v21 = vpop.eup %21255 }
0x59d5   :  { %v21258_v30 = vpop.eup %21257  ;;  %v14289_v33 = vmul.f32 %v21256_v21, %v21252_v12  ;;  %v20776_v21 = vpack.c.bf16 %v17042_v26, %v17041_v52 }
0x59d6   :  { %v14288_v15 = vmul.f32 %v21258_v30, %v21254_v8  ;;  %v17057_v30 = vld [vmem:[%s23574_s29 + $0x2e0] sm:$0xff] }
0x59d8   :  { %19593 = vmatprep.mubr.msk.f32.mxu1 %vm156_vm0, %v14288_v15  ;;  %v17058_v15 = vld [vmem:[%s23574_s29 + $0x2e8] sm:$0xff] }
0x59d9   :  { %19594 = vmatmul.mubr.msk.f32.vlgmr.msra.gmra.mrb[184].mxu1 %vm156_vm0, %v14289_v33  ;;  %v20788_v33 = vpack.c.bf16 %v17058_v15, %v17057_v30 }
0x59da   :  { %19597 = vmatpush3.msra.mxu1 %v16995_v55 }
0x59db   :  { %19601 = vmatprep.subr.mxu1 %v16958_v29 }
0x5aac   :  { %v19595_v22 = vpop.f32.mrb[184].mxu1 }
0x5aad   :  { %v14362_v11 = vpop.f32.mrb[185].mxu1 }
0x5aae   :  { %19598 = vmatprep.mubr.msk.f32.mxu1 %vm450_vm1, %v14362_v11  ;;  %v17048_v11 = vld [vmem:[%s23574_s29 + $0x268] sm:$0xff] }
0x5aaf   :  { %19599 = vmatmul.mubr.msk.f32.vlgmr.msra.gmra.mrb[186].mxu1 %vm450_vm1, %v19595_v22  ;;  %v17047_v22 = vld [vmem:[%s23574_s29 + $0x260] sm:$0xff] }
0x5ab0   :  { %19602 = vmatpush3.msra.mxu1 %v16958_v29  ;;  %19603 = vmatprep.mubr.msk.f32.mxu1 %vm450_vm1, %v23348_v7  ;;  %v14615_v7 = vadd.f32 %v23376_v58, %v23382_v28  ;;  %v17059_v29 = vld [vmem:[%s23574_s29 + $0x2f0] sm:$0xff] }
0x5ab1   :  { %20737 = vmatprep.subr.bf16.mxu1 %v20736_v20  ;;  %v20792_v43 = vpack.c.bf16 %v17060_v54, %v17059_v29 }
0x5ab7   :  { %19604 = vmatmul.mubr.msk.f32.vlgmr.msra.gmra.mrb[186].mxu1 %vm450_vm1, %v23346_v25  ;;  %v17013_v25 = vld [vmem:[%s23576_s3 + $0x12] ss:$0 sm:$0xff] }
0x5ab8   :  { %20739 = vmatpush3.bf16.msra.mxu1 %v20736_v20  ;;  %19625 = vmatprep.mubr.msk.f32.mxu1 %vm156_vm0, %v22741_v48  ;;  %v20780_v20 = vpack.c.bf16 %v17048_v11, %v17047_v22  ;;  %v17079_v22 = vld [vmem:[%s23579_s19 + $0x1] ss:$0 sm:$0xff] }
0x5ab9   :  { %20741 = vmatprep.subr.bf16.mxu1 %v20740_v38 }
0x5abc   :  { %20743 = vmatpush3.bf16.msra.mxu1 %v20740_v38 }
0x5abf   :  { %19626 = vmatmul.mubr.msk.f32.vlgmr.msra.gmra.mrb[188].mxu1 %vm156_vm0, %v22738_v40 }
0x5ac0   :  { %19628 = vmatprep.mubr.msk.f32.mxu1 %vm156_vm0, %v22754_v4 }
0x5ac3   :  { %19629 = vmatmul.mubr.msk.f32.gmra.mrb[190].mxu1 %vm156_vm0, %v22750_v34 }
0x5ac4   :  { %19653 = vmatprep.mubr.msk.f32.mxu1 %vm450_vm1, %v14615_v7 }
0x5b92   :  { %v19627_v39 = vpop.f32.mrb[188].mxu1 }
0x5b93   :  { %v14708_v2 = vadd.f32 %v19627_v39, %v17013_v25  ;;  %v14702_v3 = vpop.f32.mrb[189].mxu1  ;;  %v17044_v39 = vld [vmem:[%s23576_s3 + $0xf] ss:$0 sm:$0xff] }
0x5b94   :  { %v14703_v1 = vadd.f32 %v17013_v25, %v14702_v3 }
0x5b96   :  { %v20752_v5 = vpack.c.bf16 %v14708_v2, %v14703_v1  ;;  %v19630_v36 = vpop.f32.mrb[190].mxu1 }
0x5b97   :  { %v14718_v18 = vadd.f32 %v19630_v36, %v17013_v25  ;;  %v14712_v32 = vpop.f32.mrb[191].mxu1  ;;  %v17062_v36 = vld [vmem:[%s23576_s3 + $0x17] ss:$0 sm:$0xff] }
0x5b98   :  { %v14713_v14 = vadd.f32 %v17013_v25, %v14712_v32  ;;  %20754 = vmatprep.subr.msk.bf16.mxu1 %vm21596_vm2, %v20752_v5  ;;  %v20784_v25 = vpack.c.bf16 %v17050_v42, %v17049_v16 }
0x5b99   :  { %20757 = vmatpush3.bf16.xpose.msk.msra.mxu1 %vm21596_vm2, %v20752_v5 }
0x5b9a   :  { %v20758_v49 = vpack.c.bf16 %v14718_v18, %v14713_v14 }
0x5b9c   :  { %20760 = vmatprep.subr.msk.bf16.mxu1 %vm21596_vm2, %v20758_v49 }
0x5ba1   :  { %20763 = vmatpush3.bf16.xpose.msk.msra.mxu1 %vm21596_vm2, %v20758_v49 }
0x5ba2   :  { %19667 = vmatprep.subr.mxu1 %v17036_v6 }
0x5ba8   :  { %19654 = vmatmul.mubr.msk.f32.vlgmr.msra.gmra.mrb[192].mxu1 %vm450_vm1, %v23380_v31 }
0x5ba9   :  { %19668 = vmatpush3.msra.mxu1 %v17036_v6 }
0x5baa   :  { %20781 = vmatprep.subr.bf16.mxu1 %v20780_v20 }
0x5c7b   :  { %v19655_v0 = vpop.f32.mrb[192].mxu1 }
0x5c7c   :  { %v14913_v58 = vmul.f32 0.35355338, %v19655_v0  ;;  %v14903_v62 = vpop.f32.mrb[193].mxu1 }
0x5c7d   :  { %v14912_v47 = vmul.f32 0.35355338, %v14903_v62 }
0x5c7e   :  { %v14915_v28 = vadd.f32 %v23302_v9, %v14913_v58 }
0x5c7f   :  { %v14914_v50 = vadd.f32 %v23306_v63, %v14912_v47  ;;  %v17052_v47 = vld [vmem:[%s23576_s3 + $0x13] ss:$0 sm:$0xff] }
0x5c80   :  { %v14919_v37 = vsel %vm156_vm0, %v14915_v28, -inf }
0x5c81   :  { %14920 = vmax.xlane.f32.xlu1 %v14919_v37  ;;  %v14916_v60 = vsel %vm156_vm0, %v14914_v50, -inf }
0x5c82   :  { %14917 = vmax.xlane.f32.xlu0 %v14916_v60 }
0x5d0e   :  { %v14921_v13 = vpop.xlane.xlu1 %14920 }
0x5d0f   :  { %v14923_v61 = vsub.f32 %v14915_v28, %v14921_v13  ;;  %v14918_v59 = vpop.xlane.xlu0 %14917 }
0x5d10   :  { %v14922_v31 = vsub.f32 %v14914_v50, %v14918_v59 }
0x5d11   :  { %v14926_v57 = vmul.f32 1.442695, %v14923_v61 }
0x5d12   :  { %v14924_v46 = vmul.f32 1.442695, %v14922_v31 }
0x5d13   :  { %21259 = vpow2.f32 %v14926_v57 }
0x5d14   :  { %21261 = vpow2.f32 %v14924_v46 }
0x5d1d   :  { %v21260_v44 = vpop.eup %21259 }
0x5d1e   :  { %v21262_v56 = vpop.eup %21261  ;;  %v14931_v17 = vsel %vm156_vm0, %v21260_v44, 0.0 }
0x5d1f   :  { %14932 = vadd.xlane.f32.xlu1 %v14931_v17  ;;  %v14928_v23 = vsel %vm156_vm0, %v21262_v56, 0.0 }
0x5d20   :  { %14929 = vadd.xlane.f32.xlu0 %v14928_v23 }
0x5dac   :  { %v14933_v24 = vpop.xlane.xlu1 %14932 }
0x5dad   :  { %21263 = vrcp.f32 %v14933_v24  ;;  %v14930_v12 = vpop.xlane.xlu0 %14929 }
0x5dae   :  { %21265 = vrcp.f32 %v14930_v12 }
0x5db7   :  { %v21264_v8 = vpop.eup %21263 }
0x5db8   :  { %v21266_v55 = vpop.eup %21265  ;;  %v14937_v19 = vmul.f32 %v21264_v8, %v21260_v44 }
0x5db9   :  { %v14936_v10 = vmul.f32 %v21266_v55, %v21262_v56 }
0x5dbb   :  { %19664 = vmatprep.mubr.msk.f32.mxu0 %vm156_vm0, %v14936_v10  ;;  %v17075_v10 = vld [vmem:[%s23578_s14 + $0x38] sm:$0xff] }
0x5dbc   :  { %19665 = vmatmul.mubr.msk.f32.vlgmr.msra.gmra.mrb[178].mxu0 %vm156_vm0, %v14937_v19 }
0x5dbd   :  { %20775 = vmatpush3.bf16.msra.mxu0 %v20772_v51  ;;  %19680 = vmatprep.mubr.msk.f32.mxu0 %vm156_vm0, %v23269_v45 }
0x5dbe   :  { %20777 = vmatprep.subr.bf16.mxu0 %v20776_v21 }
0x5dc1   :  { %20779 = vmatpush3.bf16.msra.mxu0 %v20776_v21 }
0x5dc2   :  { %20789 = vmatprep.subr.bf16.mxu0 %v20788_v33 }
0x5dc4   :  { %19681 = vmatmul.mubr.msk.f32.vlgmr.msra.gmra.mrb[180].mxu0 %vm156_vm0, %v23271_v35 }
0x5dc5   :  { %20791 = vmatpush3.bf16.msra.mxu0 %v20788_v33  ;;  %19705 = vmatprep.mubr.msk.f32.mxu0 %vm156_vm0, %v22741_v48 }
0x5dc6   :  { %20793 = vmatprep.subr.bf16.mxu0 %v20792_v43 }
0x5dc9   :  { %20795 = vmatpush3.bf16.msra.mxu0 %v20792_v43 }
0x5dcc   :  { %19706 = vmatmul.mubr.msk.f32.vlgmr.msra.gmra.mrb[182].mxu0 %vm156_vm0, %v22738_v40 }
0x5dcd   :  { %19708 = vmatprep.mubr.msk.f32.mxu0 %vm156_vm0, %v22754_v4 }
0x5dd0   :  { %19709 = vmatmul.mubr.msk.f32.gmra.mrb[184].mxu0 %vm156_vm0, %v22750_v34 }
0x5e8f   :  { %v19666_v38 = vpop.f32.mrb[178].mxu0 }
0x5e90   :  { %v15010_v7 = vpop.f32.mrb[179].mxu0 }
0x5e91   :  { %19669 = vmatprep.mubr.msk.f32.mxu1 %vm450_vm1, %v15010_v7 }
0x5e92   :  { %19670 = vmatmul.mubr.msk.f32.vlgmr.msra.gmra.mrb[186].mxu1 %vm450_vm1, %v19666_v38 }
0x5e93   :  { %20783 = vmatpush3.bf16.msra.mxu1 %v20780_v20  ;;  %19691 = vmatprep.mubr.msk.f32.mxu1 %vm156_vm0, %v22741_v48 }
0x5e94   :  { %20785 = vmatprep.subr.bf16.mxu1 %v20784_v25 }
0x5e97   :  { %v19682_v2 = vpop.f32.mrb[180].mxu0  ;;  %20787 = vmatpush3.bf16.msra.mxu1 %v20784_v25 }
0x5e98   :  { %v15189_v3 = vadd.f32 %v19682_v2, %v17044_v39  ;;  %v15183_v1 = vpop.f32.mrb[181].mxu0 }
0x5e99   :  { %v15184_v5 = vadd.f32 %v17044_v39, %v15183_v1 }
0x5e9a   :  { %19692 = vmatmul.mubr.msk.f32.vlgmr.msra.gmra.mrb[194].mxu1 %vm156_vm0, %v22738_v40 }
0x5e9b   :  { %19694 = vmatprep.mubr.msk.f32.mxu1 %vm156_vm0, %v22754_v4 }
0x5e9e   :  { %19695 = vmatmul.mubr.msk.f32.gmra.mrb[196].mxu1 %vm156_vm0, %v22750_v34 }
0x5e9f   :  { %v19707_v18 = vpop.f32.mrb[182].mxu0  ;;  %19719 = vmatprep.mubr.msk.f32.mxu1 %vm450_vm1, %v15184_v5 }
0x5ea0   :  { %v15375_v48 = vadd.f32 %v19707_v18, %v17062_v36  ;;  %v15369_v32 = vpop.f32.mrb[183].mxu0 }
0x5ea1   :  { %v15370_v14 = vadd.f32 %v17062_v36, %v15369_v32 }
0x5ea3   :  { %v20808_v49 = vpack.c.bf16 %v15375_v48, %v15370_v14  ;;  %v19710_v0 = vpop.f32.mrb[184].mxu0  ;;  %v17084_v14 = vld [vmem:[%s23580_s24 + $0x20] sm:$0xff] }
0x5ea4   :  { %v15385_v58 = vadd.f32 %v19710_v0, %v17062_v36  ;;  %v15379_v62 = vpop.f32.mrb[185].mxu0  ;;  %v17086_v0 = vld [vmem:[%s23580_s24 + $0x30] sm:$0xff] }
0x5ea5   :  { %v15380_v40 = vadd.f32 %v17062_v36, %v15379_v62  ;;  %20809 = vmatprep.subr.bf16.mxu0 %v20808_v49  ;;  %v17087_v62 = vld [vmem:[%s23580_s24 + $0x38] sm:$0xff] }
0x5ea6   :  { %20811 = vmatpush3.bf16.msra.mxu0 %v20808_v49  ;;  %v17085_v49 = vld [vmem:[%s23580_s24 + $0x28] sm:$0xff] }
0x5ea7   :  { %v20812_v4 = vpack.c.bf16 %v15385_v58, %v15380_v40  ;;  %v20816_v58 = vpack.c.bf16 %v17085_v49, %v17084_v14  ;;  %v20820_v40 = vpack.c.bf16 %v17087_v62, %v17086_v0 }
0x5ea9   :  { %20813 = vmatprep.subr.bf16.mxu0 %v20812_v4 }
0x5eaa   :  { %20815 = vmatpush3.bf16.msra.mxu0 %v20812_v4  ;;  %v17092_v4 = vld [vmem:[%s23581_s30 + $0x40] sm:$0xff] }
0x5eab   :  { %20817 = vmatprep.subr.bf16.mxu0 %v20816_v58 }
0x5f6d   :  { %v19693_v28 = vpop.f32.mrb[194].mxu1 }
0x5f6e   :  { %v15277_v34 = vadd.f32 %v19693_v28, %v17052_v47  ;;  %v15271_v50 = vpop.f32.mrb[195].mxu1 }
0x5f6f   :  { %v15272_v37 = vadd.f32 %v17052_v47, %v15271_v50 }
0x5f71   :  { %v20796_v60 = vpack.c.bf16 %v15277_v34, %v15272_v37  ;;  %v19696_v13 = vpop.f32.mrb[196].mxu1 }
0x5f72   :  { %v15287_v61 = vadd.f32 %v19696_v13, %v17052_v47  ;;  %v15281_v59 = vpop.f32.mrb[197].mxu1 }
0x5f73   :  { %v15282_v31 = vadd.f32 %v17052_v47, %v15281_v59  ;;  %20798 = vmatprep.subr.msk.bf16.mxu1 %vm21596_vm2, %v20796_v60  ;;  %v17093_v47 = vld [vmem:[%s23581_s30 + $0x48] sm:$0xff] }
0x5f74   :  { %20801 = vmatpush3.bf16.xpose.msk.msra.mxu1 %vm21596_vm2, %v20796_v60  ;;  %v20824_v28 = vpack.c.bf16 %v17093_v47, %v17092_v4 }
0x5f75   :  { %v20802_v57 = vpack.c.bf16 %v15287_v61, %v15282_v31 }
0x5f77   :  { %20804 = vmatprep.subr.msk.bf16.mxu1 %vm21596_vm2, %v20802_v57 }
0x5f7c   :  { %20807 = vmatpush3.bf16.xpose.msk.msra.mxu1 %vm21596_vm2, %v20802_v57 }
0x5f7d   :  { %19733 = vmatprep.subr.mxu1 %v17075_v10 }
0x5f83   :  { %19720 = vmatmul.mubr.msk.f32.vlgmr.msra.gmra.mrb[198].mxu1 %vm450_vm1, %v15189_v3 }
0x5f84   :  { %19734 = vmatpush3.msra.mxu1 %v17075_v10 }
0x6056   :  { %v19721_v46 = vpop.f32.mrb[198].mxu1 }
0x6057   :  { %v15482_v44 = vmul.f32 0.35355338, %v19721_v46  ;;  %v15472_v56 = vpop.f32.mrb[199].mxu1 }
0x6058   :  { %v15481_v17 = vmul.f32 0.35355338, %v15472_v56 }
0x6059   :  { %v15484_v23 = vadd.f32 %v23302_v9, %v15482_v44 }
0x605a   :  { %v15483_v41 = vadd.f32 %v23306_v63, %v15481_v17 }
0x605b   :  { %v15488_v53 = vsel %vm156_vm0, %v15484_v23, -inf }
0x605c   :  { %15489 = vmax.xlane.f32.xlu1 %v15488_v53  ;;  %v15485_v51 = vsel %vm156_vm0, %v15483_v41, -inf }
0x605d   :  { %15486 = vmax.xlane.f32.xlu0 %v15485_v51 }
0x60e9   :  { %v15490_v6 = vpop.xlane.xlu1 %15489 }
0x60ea   :  { %v15492_v27 = vsub.f32 %v15484_v23, %v15490_v6  ;;  %v15487_v24 = vpop.xlane.xlu0 %15486  ;;  %v17082_v6 = vld [vmem:[%s23582_s6 + $0x2] ss:$0 sm:$0xff] }
0x60eb   :  { %v15491_v12 = vsub.f32 %v15483_v41, %v15487_v24 }
0x60ec   :  { %v15495_v8 = vmul.f32 1.442695, %v15492_v27 }
0x60ed   :  { %v15493_v52 = vmul.f32 1.442695, %v15491_v12 }
0x60ee   :  { %21267 = vpow2.f32 %v15495_v8  ;;  %v17083_v8 = vld [vmem:[%s23582_s6 + $0x3] ss:$0 sm:$0xff] }
0x60ef   :  { %21269 = vpow2.f32 %v15493_v52 }
0x60f8   :  { %v21268_v26 = vpop.eup %21267 }
0x60f9   :  { %v21270_v55 = vpop.eup %21269  ;;  %v15500_v9 = vsel %vm156_vm0, %v21268_v26, 0.0 }
0x60fa   :  { %15501 = vadd.xlane.f32.xlu1 %v15500_v9  ;;  %v15497_v63 = vsel %vm156_vm0, %v21270_v55, 0.0  ;;  %v17095_v9 = vld [vmem:[%s23581_s30 + $0x58] sm:$0xff] }
0x60fb   :  { %15498 = vadd.xlane.f32.xlu0 %v15497_v63 }
0x6187   :  { %v15502_v19 = vpop.xlane.xlu1 %15501 }
0x6188   :  { %21271 = vrcp.f32 %v15502_v19  ;;  %v15499_v21 = vpop.xlane.xlu0 %15498 }
0x6189   :  { %21273 = vrcp.f32 %v15499_v21  ;;  %v17096_v21 = vld [vmem:[%s23581_s30 + $0x60] sm:$0xff] }
0x6192   :  { %v21272_v30 = vpop.eup %21271 }
0x6193   :  { %v21274_v15 = vpop.eup %21273  ;;  %v15506_v29 = vmul.f32 %v21272_v30, %v21268_v26  ;;  %v17097_v30 = vld [vmem:[%s23581_s30 + $0x68] sm:$0xff] }
0x6194   :  { %v15505_v33 = vmul.f32 %v21274_v15, %v21270_v55  ;;  %v17094_v55 = vld [vmem:[%s23581_s30 + $0x50] sm:$0xff]  ;;  %v20832_v15 = vpack.c.bf16 %v17097_v30, %v17096_v21 }
0x6195   :  { %v20828_v19 = vpack.c.bf16 %v17095_v9, %v17094_v55 }
0x6196   :  { %19730 = vmatprep.mubr.msk.f32.mxu0 %vm156_vm0, %v15505_v33  ;;  %v17098_v33 = vld [vmem:[%s23581_s30 + $0x70] sm:$0xff] }
0x6197   :  { %19731 = vmatmul.mubr.msk.f32.vlgmr.msra.gmra.mrb[186].mxu0 %vm156_vm0, %v15506_v29  ;;  %v17099_v29 = vld [vmem:[%s23581_s30 + $0x78] sm:$0xff] }
0x6198   :  { %20819 = vmatpush3.bf16.msra.mxu0 %v20816_v58 }
0x6199   :  { %20821 = vmatprep.subr.bf16.mxu0 %v20820_v40 }
0x619c   :  { %20823 = vmatpush3.bf16.msra.mxu0 %v20820_v40 }
0x619d   :  { %20825 = vmatprep.subr.bf16.mxu0 %v20824_v28 }
0x626a   :  { %v19732_v54 = vpop.f32.mrb[186].mxu0 }
0x626b   :  { %v15579_v43 = vpop.f32.mrb[187].mxu0 }
0x626c   :  { %19735 = vmatprep.mubr.msk.f32.mxu1 %vm450_vm1, %v15579_v43  ;;  %v17089_v43 = vld [vmem:[%s23583_s12 + $0x1] ss:$0 sm:$0xff] }
0x626d   :  { %19736 = vmatmul.mubr.msk.f32.vlgmr.msra.gmra.mrb[186].mxu1 %vm450_vm1, %v19732_v54  ;;  %v20836_v54 = vpack.c.bf16 %v17099_v29, %v17098_v33 }
0x6340   :  { %v19737_v11 = vpop.f32.mrb[186].mxu1 }
0x6341   :  { %v15682_v20 = vadd.f32 %v19737_v11, %v17079_v22  ;;  %v15662_v16 = vpop.f32.mrb[187].mxu1 }
0x6342   :  { %v15681_v42 = vadd.f32 %v17079_v22, %v15662_v16 }
0x6343   :  { %v15684_v38 = vadd.f32 %v15682_v20, %v23271_v35 }
0x6344   :  { %v15683_v7 = vadd.f32 %v15681_v42, %v23269_v45 }
0x6345   :  { %v15692_v25 = vsel %vm156_vm0, %v15684_v38, 0.0 }
0x6346   :  { %15693 = vadd.xlane.f32.xlu1 %v15692_v25  ;;  %v15689_v39 = vsel %vm156_vm0, %v15683_v7, 0.0 }
0x6347   :  { %15690 = vadd.xlane.f32.xlu0 %v15689_v39 }
0x63d3   :  { %v15694_v2 = vpop.xlane.xlu1 %15693 }
0x63d4   :  { %v15696_v3 = vmul.f32 0.03125, %v15694_v2  ;;  %v15691_v1 = vpop.xlane.xlu0 %15690 }
0x63d5   :  { %v15695_v5 = vmul.f32 0.03125, %v15691_v1 }
0x63d6   :  { %v15698_v36 = vsub.f32 %v15684_v38, %v15696_v3 }
0x63d7   :  { %v15697_v18 = vsub.f32 %v15683_v7, %v15695_v5  ;;  %v17101_v7 = vld [vmem:[%s21536_s27 + $0x1] ss:$0 sm:$0xff]  ;;  %s16012_s27 = sshll.u32 %s21384_s20, 4  ;;  %s16013_s27 = int_to_ptr.vmem [resolvable:$true] %s16012_s27 }
0x63d8   :  { %v15700_v48 = vmul.f32 %v15698_v36, %v15698_v36  ;;  %s21305_s22 = scalar_lea.vmem %s16013_s27, 512  ;;  %p21310_p1 = scmp.lt.s32.totalorder %s16013_s27, %s16013_s27 }
0x63d9   :  { %v15699_v35 = vmul.f32 %v15697_v18, %v15697_v18  ;;  %p21306_p0 = scmp.ne.s32.totalorder %s16013_s27, %s21305_s22  ;;  %p21311_p2 = scmp.lt.s32.totalorder %s21305_s22, %s21305_s22 }
0x63da   :  { %v15704_v45 = vsel %vm156_vm0, %v15700_v48, 0.0 }
0x63db   :  { %15705 = vadd.xlane.f32.xlu1 %v15704_v45  ;;  %v15701_v32 = vsel %vm156_vm0, %v15699_v35, 0.0  ;;  %p21312_p3 = por %p21311_p2, %p21310_p1 }
0x63dc   :  { %15702 = vadd.xlane.f32.xlu0 %v15701_v32 }
0x63dd   :  { %p21313_p4 = pnand %p21312_p3, %p21306_p0 }
0x6468   :  { %v15706_v34 = vpop.xlane.xlu1 %15705 }
0x6469   :  { %v15708_v50 = vmul.f32 0.032258064, %v15706_v34  ;;  %v15703_v37 = vpop.xlane.xlu0 %15702 }
0x646a   :  { %v15707_v60 = vmul.f32 0.032258064, %v15703_v37 }
0x646b   :  { %21275 = vrsqrt.f32 %v15708_v50  ;;  %vm15718_vm1 = vcmp.eq.f32.partialorder %v15708_v50, inf  ;;  %v15721_v31 = vand.u32 2147483648, %v15708_v50  ;;  %vm15720_vm2 = vcmp.eq.f32.partialorder %v15708_v50, 0.0 }
0x646c   :  { %21277 = vrsqrt.f32 %v15707_v60  ;;  %vm15711_vm5 = vcmp.eq.f32.partialorder %v15707_v60, inf  ;;  %v15714_v44 = vand.u32 2147483648, %v15707_v60  ;;  %vm15713_vm6 = vcmp.eq.f32.partialorder %v15707_v60, 0.0 }
0x6475   :  { %v21276_v13 = vpop.eup %21275 }
0x6476   :  { %v21278_v61 = vpop.eup %21277  ;;  %v15717_v59 = vmul.f32 %v21276_v13, %v15708_v50 }
0x6477   :  { %v15710_v57 = vmul.f32 %v21278_v61, %v15707_v60 }
0x6478   :  { %v15719_v46 = vsel %vm15718_vm1, %v15708_v50, %v15717_v59 }
0x6479   :  { %v15722_v56 = vsel %vm15720_vm2, %v15721_v31, %v15719_v46  ;;  %v15712_v17 = vsel %vm15711_vm5, %v15707_v60, %v15710_v57 }
0x647a   :  { %v15724_v23 = vadd.f32 1e-06, %v15722_v56  ;;  %v15715_v41 = vsel %vm15713_vm6, %v15714_v44, %v15712_v17 }
0x647b   :  { %v15723_v53 = vadd.f32 1e-06, %v15715_v41 }
0x647c   :  { %21279 = vrcp.f32 %v15724_v23 }
0x647d   :  { %21281 = vrcp.f32 %v15723_v53 }
0x6486   :  { %v21280_v51 = vpop.eup %21279 }
0x6487   :  { %v21282_v27 = vpop.eup %21281  ;;  %v15728_v24 = vmul.f32 %v21280_v51, %v15698_v36 }
0x6488   :  { %v15727_v12 = vmul.f32 %v21282_v27, %v15697_v18 }
0x6489   :  { %v15736_v52 = vmul.f32 %v17082_v6, %v15728_v24 }
0x648a   :  { %v15735_v26 = vmul.f32 %v17082_v6, %v15727_v12 }
0x648b   :  { %v15744_v10 = vadd.f32 %v17083_v8, %v15736_v52 }
0x648c   :  { %v15743_v63 = vadd.f32 %v17083_v8, %v15735_v26 }
0x648e   :  { %19746 = vmatprep.mubr.msk.f32.mxu0 %vm156_vm0, %v15743_v63 }
0x648f   :  { %19747 = vmatmul.mubr.msk.f32.vlgmr.msra.gmra.mrb[188].mxu0 %vm156_vm0, %v15744_v10 }
0x6490   :  { %20827 = vmatpush3.bf16.msra.mxu0 %v20824_v28 }
0x6491   :  { %20829 = vmatprep.subr.bf16.mxu0 %v20828_v19 }
0x6494   :  { %20831 = vmatpush3.bf16.msra.mxu0 %v20828_v19 }
0x6495   :  { %20833 = vmatprep.subr.bf16.mxu0 %v20832_v15 }
0x6498   :  { %20835 = vmatpush3.bf16.msra.mxu0 %v20832_v15 }
0x6499   :  { %20837 = vmatprep.subr.bf16.mxu0 %v20836_v54 }
0x649c   :  { %20839 = vmatpush3.bf16.msra.mxu0 %v20836_v54 }
0x6562   :  { %v19748_v22 = vpop.f32.mrb[188].mxu0 }
0x6563   :  { %v15836_v11 = vadd.f32 %v19748_v22, %v17089_v43  ;;  %v15830_v20 = vpop.f32.mrb[189].mxu0 }
0x6564   :  { %v15831_v16 = vadd.f32 %v17089_v43, %v15830_v20 }
0x6565   :  { %v15840_v38 = vmax.f32 %v15836_v11, 0.0 }
0x6566   :  { %v15839_v42 = vmax.f32 %v15831_v16, 0.0 }
0x6568   :  { %19765 = vmatprep.mubr.msk.f32.mxu0 %vm3014_vm11, %v15839_v42 }
0x6569   :  { %19766 = vmatmul.mubr.msk.f32.vlgmr.msra.gmra.mrb[190].mxu0 %vm3014_vm11, %v15840_v38 }
0x663c   :  { %v19767_v25 = vpop.f32.mrb[190].mxu0 }
0x663d   :  { %v15936_v39 = vadd.f32 %v19767_v25, %v17101_v7  ;;  %v15930_v2 = vpop.f32.mrb[191].mxu0 }
0x663e   :  { %v15931_v3 = vadd.f32 %v17101_v7, %v15930_v2 }
0x663f   :  { %v15940_v1 = vadd.f32 %v15936_v39, %v15744_v10 }
0x6640   :  { %v15939_v5 = vadd.f32 %v15931_v3, %v15743_v63 }
0x6641   :  { %v15948_v36 = vsel %vm156_vm0, %v15940_v1, 0.0 }
0x6642   :  { %15949 = vadd.xlane.f32.xlu1 %v15948_v36  ;;  %v15945_v18 = vsel %vm156_vm0, %v15939_v5, 0.0 }
0x6643   :  { %15946 = vadd.xlane.f32.xlu0 %v15945_v18 }
0x66cf   :  { %v15950_v48 = vpop.xlane.xlu1 %15949 }
0x66d0   :  { %v15952_v35 = vmul.f32 0.03125, %v15950_v48  ;;  %v15947_v45 = vpop.xlane.xlu0 %15946 }
0x66d1   :  { %v15951_v32 = vmul.f32 0.03125, %v15947_v45 }
0x66d2   :  { %v15954_v14 = vsub.f32 %v15940_v1, %v15952_v35 }
0x66d3   :  { %v15953_v49 = vsub.f32 %v15939_v5, %v15951_v32 }
0x66d4   :  { %v15956_v0 = vmul.f32 %v15954_v14, %v15954_v14 }
0x66d5   :  { %v15955_v58 = vmul.f32 %v15953_v49, %v15953_v49 }
0x66d6   :  { %v15960_v62 = vsel %vm156_vm0, %v15956_v0, 0.0 }
0x66d7   :  { %15961 = vadd.xlane.f32.xlu1 %v15960_v62  ;;  %v15957_v40 = vsel %vm156_vm0, %v15955_v58, 0.0 }
0x66d8   :  { %15958 = vadd.xlane.f32.xlu0 %v15957_v40 }
0x66d9   :  { %21316 = shalt.err (!%p21313_p4)
}
0x66da   :  { %s21317_s23 = scalar_lea.hbm %s21546_s21, 512 }
0x66db   :  { %p21318_p5 = scmp.ne.s32.totalorder %s21546_s21, %s21317_s23  ;;  %p21321_p6 = scmp.lt.u32.totalorder %s21317_s23, %s21546_s21 }
0x66dd   :  { %p21323_p7 = pnand %p21321_p6, %p21318_p5 }
0x66df   :  { %21326 = shalt.err (!%p21323_p7)
}
0x66e0   :  { %s21385_s26 = smov 128   ;;  %s21386_s28 = smov 8   ;;  %v17106_v41 = vld [vmem:[%s21541_s4 + $0x2] ss:$0 sm:$0xff]  ;;  %v17107_v6 = vld [vmem:[%s21541_s4 + $0x3] ss:$0 sm:$0xff] }
0x66e1   :  { %16018 = dma.vmem_to_hbm [thread:$0]  %s16013_s27, 512, %s21546_s21, [#allocation3], %s21385_s26, %s21385_s26, %s21386_s28  }
0x66e2   :  { %s21387_s21 = smov [#allocation4]  }
0x66e3   :  { %s16024_s1 = sshll.u32 %s21387_s21, 4  ;;  %s16025_s1 = int_to_ptr.vmem [resolvable:$true] %s16024_s1 }
0x66e4   :  { %s21327_s2 = scalar_lea.vmem %s16025_s1, 256  ;;  %p21332_p9 = scmp.lt.s32.totalorder %s16025_s1, %s16025_s1 }
0x66e5   :  { %p21328_p8 = scmp.ne.s32.totalorder %s16025_s1, %s21327_s2  ;;  %p21333_p10 = scmp.lt.s32.totalorder %s21327_s2, %s21327_s2 }
0x66e7   :  { %p21334_p11 = por %p21333_p10, %p21332_p9 }
0x66e9   :  { %p21335_p12 = pnand %p21334_p11, %p21328_p8 }
0x6764   :  { %v15962_v4 = vpop.xlane.xlu1 %15961 }
0x6765   :  { %v15964_v47 = vmul.f32 0.032258064, %v15962_v4  ;;  %v15959_v28 = vpop.xlane.xlu0 %15958 }
0x6766   :  { %v15963_v34 = vmul.f32 0.032258064, %v15959_v28 }
0x6767   :  { %21283 = vrsqrt.f32 %v15964_v47  ;;  %vm15974_vm11 = vcmp.eq.f32.partialorder %v15964_v47, inf  ;;  %v15977_v13 = vand.u32 2147483648, %v15964_v47  ;;  %vm15976_vm8 = vcmp.eq.f32.partialorder %v15964_v47, 0.0 }
0x6768   :  { %21285 = vrsqrt.f32 %v15963_v34  ;;  %vm15967_vm9 = vcmp.eq.f32.partialorder %v15963_v34, inf  ;;  %v15970_v31 = vand.u32 2147483648, %v15963_v34  ;;  %vm15969_vm10 = vcmp.eq.f32.partialorder %v15963_v34, 0.0 }
0x6771   :  { %v21284_v50 = vpop.eup %21283 }
0x6772   :  { %v21286_v37 = vpop.eup %21285  ;;  %v15973_v60 = vmul.f32 %v21284_v50, %v15964_v47 }
0x6773   :  { %v15966_v61 = vmul.f32 %v21286_v37, %v15963_v34 }
0x6774   :  { %v15975_v59 = vsel %vm15974_vm11, %v15964_v47, %v15973_v60 }
0x6775   :  { %v15978_v57 = vsel %vm15976_vm8, %v15977_v13, %v15975_v59  ;;  %v15968_v46 = vsel %vm15967_vm9, %v15963_v34, %v15966_v61 }
0x6776   :  { %v15980_v44 = vadd.f32 1e-06, %v15978_v57  ;;  %v15971_v56 = vsel %vm15969_vm10, %v15970_v31, %v15968_v46 }
0x6777   :  { %v15979_v17 = vadd.f32 1e-06, %v15971_v56 }
0x6778   :  { %21287 = vrcp.f32 %v15980_v44 }
0x6779   :  { %21289 = vrcp.f32 %v15979_v17 }
0x6782   :  { %v21288_v23 = vpop.eup %21287 }
0x6783   :  { %v21290_v53 = vpop.eup %21289  ;;  %v15984_v51 = vmul.f32 %v21288_v23, %v15954_v14 }
0x6784   :  { %v15983_v27 = vmul.f32 %v21290_v53, %v15953_v49 }
0x6785   :  { %v15992_v24 = vmul.f32 %v17106_v41, %v15984_v51 }
0x6786   :  { %v15991_v12 = vmul.f32 %v17106_v41, %v15983_v27 }
0x6787   :  { %v16000_v8 = vadd.f32 %v17107_v6, %v15992_v24 }
0x6788   :  { %v15999_v52 = vadd.f32 %v17107_v6, %v15991_v12 }
0x6789   :  { %16006 = vst.msk [vmem:[#allocation4 + $0x8] sm:$0xff] %vm156_vm0, %v16000_v8 }
0x678a   :  { %16005 = vst.msk [vmem:[#allocation4] sm:$0xff] %vm156_vm0, %v15999_v52 }
0x678b   :  { %21338 = shalt.err (!%p21335_p12)
}
0x678c   :  { %s21339_s4 = scalar_lea.hbm %s21551_s17, 256 }
0x678d   :  { %p21340_p13 = scmp.ne.s32.totalorder %s21551_s17, %s21339_s4  ;;  %p21343_p0 = scmp.lt.u32.totalorder %s21339_s4, %s21551_s17 }
0x678f   :  { %p21345_p1 = pnand %p21343_p0, %p21340_p13 }
0x6791   :  { %21348 = shalt.err (!%p21345_p1)
}
0x6792   :  { %16030 = dma.vmem_to_hbm [thread:$0]  %s16025_s1, 256, %s21551_s17, [#allocation5], %s21385_s26, %s21385_s26, %s21386_s28  }
0x6793   :  { %21349 = dma.done.wait [#allocation3], 512  }
0x6794   :  { %21350 = vsyncadd [#allocation3], 4294966784 }
0x6795   :  { %21351 = dma.done.wait [#allocation5], 256  }
0x6796   :  { %21352 = vsyncadd [#allocation5], 4294967040 }
0x6797   :  { %16037 = vsyncpa [#allocation3], 1 }
0x6798   :  { %16038 = vsyncpa [#allocation5], 1 }

</bundles_post_ra>
